<compile_context>
chip_gen: v6e
topology: v6e:2x2x1
jax: 0.10.0
libtpu: 0.0.40
codegen_flags: <defaults>
</compile_context>

<pallas_src>
import numpy as np

import jax
import jax.numpy as jnp
from jax.experimental import pallas as pl
from jax.experimental.pallas import tpu as pltpu

BN_EPS = 1e-5

# Auto-pipelined (BlockSpec) operator inputs, in kernel-argument order.
_AUTO_KEYS = (
    "e1_m", "e1_a", "e1_bb",
    "e2_m", "e2_a", "e2_bb",
    "e3_m", "e3_a", "e3_bb",
    "head_w", "d1_w",
    "d2_a", "d2_bb", "d3_a", "d3_bb",
)
# Decoder operators kept in HBM (pl.ANY) and manually prefetched in-kernel.
_HBM_KEYS = ("d2_m", "d3_m", "d4_m")


def _ceil_to(n, m):
    return -(-int(n) // int(m)) * int(m)


# ------------------------------ fused kernel -------------------------------

def _make_kernel(meta, n_real, n_pad):
    off = meta["small_off"]
    bn_meta = meta["bn"]
    latent = meta["latent"]
    head_pad = meta["head_pad"]
    f_d1p = meta["f_d1_pad"]
    f_outp = meta["f_out_pad"]

    def kernel(x_ref, eps_ref, small_ref,
               e1_m, e1_a, e1_bb,
               e2_m, e2_a, e2_bb,
               e3_m, e3_a, e3_bb,
               head_w, d1_w,
               d2_a, d2_bb, d3_a, d3_bb,
               d2_m_hbm, d3_m_hbm, d4_m_hbm,
               xhat_ref, mulv_ref,
               d2_buf, d3_buf, d4_buf, dma_sem):
        # Kick off the decoder-operator HBM->VMEM DMAs immediately so they
        # overlap with the encoder compute (prologue only carries ~1.8 MB).
        cp_d2 = pltpu.make_async_copy(d2_m_hbm, d2_buf, dma_sem.at[0])
        cp_d3 = pltpu.make_async_copy(d3_m_hbm, d3_buf, dma_sem.at[1])
        cp_d4 = pltpu.make_async_copy(d4_m_hbm, d4_buf, dma_sem.at[2])
        cp_d2.start()
        cp_d3.start()
        cp_d4.start()

        def small_slice(key, width):
            o = off[key]                      # 128-aligned static offset
            return small_ref[:, o:o + width]  # (1, width) f32

        def mm(a, m):
            # bf16 operands, f32 accumulation on the MXU.
            return jnp.dot(a.astype(jnp.bfloat16), m,
                           preferred_element_type=jnp.float32)

        def conv_bn_relu(a, m, a_red_ref, b_bcast_ref, prefix):
            # Conv (dense channel-major operator) + BatchNorm2d(train-mode
            # batch stats, biased variance) + ReLU.  Conv bias omitted: a
            # per-channel constant cancels exactly under train-mode BN.
            c = bn_meta[prefix]["C"]
            hw = bn_meta[prefix]["HW"]
            inv_cnt = 1.0 / float(n_real * hw)

            y = mm(a, m)                                       # (Np, Fp) f32

            # Fused BN reduce: ONE bf16 dot computes per-row channel sums of
            # both y and y*y against an exact 0/1 indicator (F, C).
            stacked = jnp.concatenate(
                [y.astype(jnp.bfloat16), (y * y).astype(jnp.bfloat16)],
                axis=0)                                        # (2Np, Fp) bf16
            s = jnp.dot(stacked, a_red_ref[...],
                        preferred_element_type=jnp.float32)    # (2Np, C) f32
            # Only the real batch rows enter the statistics (row padding is
            # sliced away here, so it can never perturb the BN stats).
            mean_c = jnp.sum(s[0:n_real], axis=0, keepdims=True) * inv_cnt
            ex2_c = jnp.sum(s[n_pad:n_pad + n_real], axis=0,
                            keepdims=True) * inv_cnt
            var_c = jnp.maximum(ex2_c - mean_c * mean_c, 0.0)

            gamma = small_slice(prefix + "_g", c)
            beta = small_slice(prefix + "_beta", c)
            scale_c = gamma * jax.lax.rsqrt(var_c + BN_EPS)
            shift_c = beta - mean_c * scale_c

            # Fused BN broadcast: ONE f32 dot (K=C<=8) maps [scale ; shift]
            # back to per-lane vectors; kept in f32 so they are not rounded.
            sb = jnp.dot(jnp.concatenate([scale_c, shift_c], axis=0),
                         b_bcast_ref[...],
                         preferred_element_type=jnp.float32)   # (2, Fp)
            return jnp.maximum(y * sb[0:1, :] + sb[1:2, :], 0.0)

        # ---- encode ----
        h = conv_bn_relu(x_ref[...], e1_m[...], e1_a, e1_bb, "e1")
        h = conv_bn_relu(h, e2_m[...], e2_a, e2_bb, "e2")
        h = conv_bn_relu(h, e3_m[...], e3_a, e3_bb, "e3")

        # ---- fused mean / log-variance heads (single dot, single output) ----
        mu_lv = mm(h, head_w[...]) + small_slice("head_b", 2 * head_pad)
        mulv_ref[...] = mu_lv                                  # (Np, 2*128)
        mu = mu_lv[:, 0:latent]
        log_var = mu_lv[:, head_pad:head_pad + latent]

        # ---- reparameterize: z = eps * exp(0.5 * log_var) + mu ----
        z = eps_ref[...] * jnp.exp(0.5 * log_var) + mu

        # ---- decode ----
        d = mm(z, d1_w[...]) + small_slice("d1_b", f_d1p)
        cp_d2.wait()
        d = conv_bn_relu(d, d2_buf[...], d2_a, d2_bb, "d2")
        cp_d3.wait()
        d = conv_bn_relu(d, d3_buf[...], d3_a, d3_bb, "d3")
        cp_d4.wait()
        y_out = mm(d, d4_buf[...]) + small_slice("d4_b", f_outp)
        xhat_ref[...] = jax.nn.sigmoid(y_out)

    return kernel


# ------------------- operator construction (host, once) --------------------

def _conv2d_operator(wgt, h_in, w_in, stride, pad):
    """Dense M with flatten_NCHW(out) = flatten_NCHW(in) @ M for Conv2d (no bias)."""
    wgt = np.asarray(wgt, np.float32)
    cout, cin, kh, kw = wgt.shape
    oh = (h_in + 2 * pad - kh) // stride + 1
    ow = (w_in + 2 * pad - kw) // stride + 1
    m = np.zeros((cin * h_in * w_in, cout * oh * ow), np.float32)
    ci_rows = np.arange(cin) * (h_in * w_in)
    co_cols = np.arange(cout) * (oh * ow)
    for oy in range(oh):
        for ox in range(ow):
            for i in range(kh):
                for j in range(kw):
                    iy = stride * oy + i - pad
                    ix = stride * ox + j - pad
                    if 0 <= iy < h_in and 0 <= ix < w_in:
                        m[np.ix_(ci_rows + iy * w_in + ix,
                                 co_cols + oy * ow + ox)] += wgt[:, :, i, j].T
    return m, oh, ow


def _convT2d_operator(wgt_t, h_in, w_in, stride, pad):
    """Dense M for ConvTranspose2d (no bias). wgt_t: (Cin, Cout, kh, kw)."""
    wgt_t = np.asarray(wgt_t, np.float32)
    cin, cout, kh, kw = wgt_t.shape
    oh = (h_in - 1) * stride - 2 * pad + kh
    ow = (w_in - 1) * stride - 2 * pad + kw
    m = np.zeros((cin * h_in * w_in, cout * oh * ow), np.float32)
    ci_rows = np.arange(cin) * (h_in * w_in)
    co_cols = np.arange(cout) * (oh * ow)
    for iy in range(h_in):
        for ix in range(w_in):
            for i in range(kh):
                for j in range(kw):
                    oy = stride * iy + i - pad
                    ox = stride * ix + j - pad
                    if 0 <= oy < oh and 0 <= ox < ow:
                        m[np.ix_(ci_rows + iy * w_in + ix,
                                 co_cols + oy * ow + ox)] += wgt_t[:, :, i, j]
    return m, oh, ow


def prepare_operators(params, image_hw=28):
    """One-time host-side weight prep: fold convs into dense lane-padded
    operators, build BN reduce/broadcast indicators, fuse the latent heads,
    pack all tiny vectors into one array, cast big GEMM operands to bf16."""
    p = {k: np.asarray(jax.device_get(v), np.float32) for k, v in params.items()}
    fn = p["e1_w"].shape[0]
    fn2 = p["e2_w"].shape[0]
    feature_in = p["e1_w"].shape[1]
    latent = p["mean_w"].shape[0]

    ops = {}
    bn_meta = {}

    def pad2(m, rows, cols):
        out = np.zeros((rows, cols), np.float32)
        out[:m.shape[0], :m.shape[1]] = m
        return out

    def bn_ops(prefix, c, hw, f_pad):
        # 0/1 channel indicator; broadcast (C,F) in f32, reduce (F,C) in bf16.
        b = np.kron(np.eye(c, dtype=np.float32), np.ones((1, hw), np.float32))
        b_pad = pad2(b, c, f_pad)
        ops[prefix + "_bb"] = b_pad
        ops[prefix + "_a"] = np.ascontiguousarray(b_pad.T)
        bn_meta[prefix] = {"C": int(c), "HW": int(hw)}

    # ---- encoder ----
    f0 = feature_in * image_hw * image_hw
    f0p = _ceil_to(f0, 128)

    m, oh, ow = _conv2d_operator(p["e1_w"], image_hw, image_hw, 2, 1)  # 28->14
    f1 = fn * oh * ow
    f1p = _ceil_to(f1, 128)
    ops["e1_m"] = pad2(m, f0p, f1p)
    bn_ops("e1", fn, oh * ow, f1p)
    h1 = oh

    m, oh, ow = _conv2d_operator(p["e2_w"], h1, h1, 2, 1)              # 14->7
    f2 = fn2 * oh * ow
    f2p = _ceil_to(f2, 128)
    ops["e2_m"] = pad2(m, f1p, f2p)
    bn_ops("e2", fn2, oh * ow, f2p)
    h2 = oh

    m, oh, ow = _conv2d_operator(p["e3_w"], h2, h2, 2, 2)              # 7->4
    f3 = fn2 * oh * ow
    f3p = _ceil_to(f3, 128)
    ops["e3_m"] = pad2(m, f2p, f3p)
    bn_ops("e3", fn2, oh * ow, f3p)
    h3 = oh
    assert f3 == p["mean_w"].shape[1], "latent input size mismatch"
    # NOTE: conv biases e1_b/e2_b/e3_b/d2_b/d3_b cancel under train-mode BN.

    # ---- fused latent heads: [mean | var], each padded to its own 128 tile ----
    head_pad = _ceil_to(latent, 128)
    head_w = np.zeros((f3p, 2 * head_pad), np.float32)
    head_w[:f3, :latent] = p["mean_w"].T
    head_w[:f3, head_pad:head_pad + latent] = p["var_w"].T
    ops["head_w"] = head_w
    head_b = np.zeros(2 * head_pad, np.float32)
    head_b[:latent] = p["mean_b"]
    head_b[head_pad:head_pad + latent] = p["var_b"]

    # ---- decoder1 (Linear latent -> fn2*16) ----
    f_d1 = p["d1_w"].shape[0]
    f_d1p = _ceil_to(f_d1, 128)
    ops["d1_w"] = pad2(p["d1_w"].T, latent, f_d1p)
    d1_b = np.zeros(f_d1p, np.float32)
    d1_b[:f_d1] = p["d1_b"]

    # ---- decoder2: ConvT 4 -> 8 ----
    m, oh2, _ = _convT2d_operator(p["d2_w"], h3, h3, 2, 1)
    f_d2 = fn2 * oh2 * oh2
    f_d2p = _ceil_to(f_d2, 128)
    ops["d2_m"] = pad2(m, f_d1p, f_d2p)
    bn_ops("d2", fn2, oh2 * oh2, f_d2p)

    # ---- decoder3: crop [:, :, :7, :7] folded in, then ConvT 7 -> 14 ----
    crop = min(7, oh2)
    m_raw, oh3, _ = _convT2d_operator(p["d3_w"], crop, crop, 2, 1)
    f_d3 = fn * oh3 * oh3
    f_d3p = _ceil_to(f_d3, 128)
    m_full = np.zeros((f_d2, m_raw.shape[1]), np.float32)
    cc, yy, xx = np.meshgrid(np.arange(fn2), np.arange(crop), np.arange(crop),
                             indexing="ij")
    rows = (cc * (oh2 * oh2) + yy * oh2 + xx).reshape(-1)
    m_full[rows, :] = m_raw
    ops["d3_m"] = pad2(m_full, f_d2p, f_d3p)
    bn_ops("d3", fn, oh3 * oh3, f_d3p)

    # ---- decoder4: ConvT 14 -> 28, + bias, sigmoid in-kernel ----
    m, oh4, ow4 = _convT2d_operator(p["d4_w"], oh3, oh3, 2, 1)
    f_out = feature_in * oh4 * ow4
    f_outp = _ceil_to(f_out, 128)
    ops["d4_m"] = pad2(m, f_d3p, f_outp)
    d4_b = np.zeros(f_outp, np.float32)
    d4_b[:f_out] = np.repeat(p["d4_b"], oh4 * ow4)

    # ---- pack all tiny vectors into one (1, K) f32 array, 128-aligned ----
    small_parts = [
        ("d4_b", d4_b), ("d1_b", d1_b), ("head_b", head_b),
        ("e1_g", p["e1_g"]), ("e1_beta", p["e1_beta"]),
        ("e2_g", p["e2_g"]), ("e2_beta", p["e2_beta"]),
        ("e3_g", p["e3_g"]), ("e3_beta", p["e3_beta"]),
        ("d2_g", p["d2_g"]), ("d2_beta", p["d2_beta"]),
        ("d3_g", p["d3_g"]), ("d3_beta", p["d3_beta"]),
    ]
    small_off = {}
    cur = 0
    for name, v in small_parts:
        small_off[name] = cur
        cur += _ceil_to(np.asarray(v).size, 128)
    small = np.zeros((1, cur), np.float32)
    for name, v in small_parts:
        v = np.asarray(v, np.float32).reshape(-1)
        small[0, small_off[name]:small_off[name] + v.size] = v
    ops["small"] = small

    meta = {
        "latent": int(latent),
        "head_pad": int(head_pad),
        "bn": bn_meta,
        "small_off": small_off,
        "f0": int(f0), "f0_pad": int(f0p),
        "f_d1_pad": int(f_d1p),
        "f_out": int(f_out), "f_out_pad": int(f_outp),
    }

    # Big GEMM operands + reduce indicators in bf16 (exact 0/1); rest f32.
    bf16_keys = ({k for k in ops if k.endswith("_m") or k.endswith("_a")}
                 | {"head_w", "d1_w"})
    jops = {k: jnp.asarray(v, jnp.bfloat16 if k in bf16_keys else jnp.float32)
            for k, v in ops.items()}
    return jops, meta


# ------------------------------ forward ------------------------------------

def vae_forward(ops, meta, x, eps_key, train=True):
    n_real = int(x.shape[0])
    n_pad = max(8, _ceil_to(n_real, 8))      # sublane-align the batch
    latent = meta["latent"]
    head_pad = meta["head_pad"]
    f0, f0p = meta["f0"], meta["f0_pad"]
    f_out, f_outp = meta["f_out"], meta["f_out_pad"]

    x_flat = x.reshape(n_real, -1).astype(jnp.float32)   # NCHW flatten == torch .view
    assert x_flat.shape[1] == f0, "input spatial size mismatch"
    xp = jnp.pad(x_flat, ((0, n_pad - n_real), (0, f0p - f0)))
    if train:
        eps = jax.random.normal(eps_key, (n_pad, latent), dtype=jnp.float32)
    else:
        eps = jnp.zeros((n_pad, latent), jnp.float32)    # z = mu

    args = ((xp, eps, ops["small"])
            + tuple(ops[k] for k in _AUTO_KEYS)
            + tuple(ops[k] for k in _HBM_KEYS))

    in_specs = (
        [pl.BlockSpec(xp.shape, lambda i: (0, 0)),
         pl.BlockSpec(eps.shape, lambda i: (0, 0)),
         pl.BlockSpec(ops["small"].shape, lambda i: (0, 0))]
        + [pl.BlockSpec(ops[k].shape, lambda i: (0, 0)) for k in _AUTO_KEYS]
        + [pl.BlockSpec(memory_space=pl.ANY) for _ in _HBM_KEYS]
    )

    out_shape = (
        jax.ShapeDtypeStruct((n_pad, f_outp), jnp.float32),        # x_hat (flat)
        jax.ShapeDtypeStruct((n_pad, 2 * head_pad), jnp.float32),  # [mu | log_var]
    )
    out_specs = tuple(pl.BlockSpec(s.shape, lambda i: (0, 0)) for s in out_shape)

    scratch_shapes = [
        pltpu.VMEM(ops["d2_m"].shape, jnp.bfloat16),
        pltpu.VMEM(ops["d3_m"].shape, jnp.bfloat16),
        pltpu.VMEM(ops["d4_m"].shape, jnp.bfloat16),
        pltpu.SemaphoreType.DMA((3,)),
    ]

    kernel = _make_kernel(meta, n_real, n_pad)

    xhat_p, mulv = pl.pallas_call(
        kernel,
        out_shape=out_shape,
        grid=(1,),
        in_specs=in_specs,
        out_specs=out_specs,
        scratch_shapes=scratch_shapes,
        compiler_params=pltpu.CompilerParams(
            dimension_semantics=("arbitrary",),
            vmem_limit_bytes=32 * 1024 * 1024,   # ~9 MiB used; safe on v5e/v6e/v7x
        ),
    )(*args)

    x_hat = xhat_p[:n_real, :f_out].reshape(x.shape)
    mu = mulv[:n_real, :latent]
    log_var = mulv[:n_real, head_pad:head_pad + latent]
    return x_hat, mu, log_var


# ------------------------------ params -------------------------------------

def init_params(key, feature_in, feature_num, latent_dim):
    fn, fn2 = feature_num, feature_num * 2
    keys = jax.random.split(key, 18)

    def rnd(k, shape, scale=0.1):
        return scale * jax.random.normal(k, shape, dtype=jnp.float32)

    return {
        # encoder (Conv2d weight: (Cout, Cin, kh, kw))
        "e1_w": rnd(keys[0], (fn, feature_in, 4, 4)), "e1_b": rnd(keys[1], (fn,)),
        "e1_g": jnp.ones((fn,), jnp.float32), "e1_beta": jnp.zeros((fn,), jnp.float32),
        "e2_w": rnd(keys[2], (fn2, fn, 4, 4)), "e2_b": rnd(keys[3], (fn2,)),
        "e2_g": jnp.ones((fn2,), jnp.float32), "e2_beta": jnp.zeros((fn2,), jnp.float32),
        "e3_w": rnd(keys[4], (fn2, fn2, 4, 4)), "e3_b": rnd(keys[5], (fn2,)),
        "e3_g": jnp.ones((fn2,), jnp.float32), "e3_beta": jnp.zeros((fn2,), jnp.float32),
        # latent heads (torch Linear weight: (out, in))
        "mean_w": rnd(keys[6], (latent_dim, fn2 * 16)), "mean_b": rnd(keys[7], (latent_dim,)),
        "var_w": rnd(keys[8], (latent_dim, fn2 * 16)), "var_b": rnd(keys[9], (latent_dim,)),
        # decoder (ConvTranspose2d weight: (Cin, Cout, kh, kw))
        "d1_w": rnd(keys[10], (fn2 * 16, latent_dim)), "d1_b": rnd(keys[11], (fn2 * 16,)),
        "d2_w": rnd(keys[12], (fn2, fn2, 4, 4)), "d2_b": rnd(keys[13], (fn2,)),
        "d2_g": jnp.ones((fn2,), jnp.float32), "d2_beta": jnp.zeros((fn2,), jnp.float32),
        "d3_w": rnd(keys[14], (fn2, fn, 4, 4)), "d3_b": rnd(keys[15], (fn,)),
        "d3_g": jnp.ones((fn,), jnp.float32), "d3_beta": jnp.zeros((fn,), jnp.float32),
        "d4_w": rnd(keys[16], (fn, feature_in, 4, 4)), "d4_b": rnd(keys[17], (feature_in,)),
    }


if __name__ == "__main__":
    # args: feature_in=1, feature_num=4 (=> feature_num_2=8), latent_dim=16
    # input spatial 28x28 (implied by the fn2*4*4 flatten in the module).
    feature_in, feature_num, latent_dim = 1, 4, 16

    root = jax.random.PRNGKey(0)
    k_param, k_x, k_eps = jax.random.split(root, 3)

    params = init_params(k_param, feature_in, feature_num, latent_dim)
    ops, meta = prepare_operators(params, image_hw=28)     # one-time prep
    x = jax.random.normal(k_x, (2, feature_in, 28, 28), dtype=jnp.float32)

    x_hat, mu, log_var = vae_forward(ops, meta, x, k_eps, train=True)
    jax.block_until_ready((x_hat, mu, log_var))

    assert x_hat.shape == (2, feature_in, 28, 28)
    assert mu.shape == (2, latent_dim)
    assert log_var.shape == (2, latent_dim)
    assert bool(jnp.all(jnp.isfinite(x_hat)))
    assert bool(jnp.all((x_hat >= 0.0) & (x_hat <= 1.0)))
    assert bool(jnp.all(jnp.isfinite(mu))) and bool(jnp.all(jnp.isfinite(log_var)))

    print("KERNEL_OK")
</pallas_src>

<mosaic_0001>
module attributes {stable_mosaic.version = 11 : i64} {
  func.func @kernel(%arg0: i32, %arg1: memref<8x896xf32, #tpu.memory_space<vmem>>, %arg2: memref<8x16xf32, #tpu.memory_space<vmem>>, %arg3: memref<1x2560xf32, #tpu.memory_space<vmem>>, %arg4: memref<896x896xbf16, #tpu.memory_space<vmem>>, %arg5: memref<896x4xbf16, #tpu.memory_space<vmem>>, %arg6: memref<4x896xf32, #tpu.memory_space<vmem>>, %arg7: memref<896x512xbf16, #tpu.memory_space<vmem>>, %arg8: memref<512x8xbf16, #tpu.memory_space<vmem>>, %arg9: memref<8x512xf32, #tpu.memory_space<vmem>>, %arg10: memref<512x128xbf16, #tpu.memory_space<vmem>>, %arg11: memref<128x8xbf16, #tpu.memory_space<vmem>>, %arg12: memref<8x128xf32, #tpu.memory_space<vmem>>, %arg13: memref<128x256xbf16, #tpu.memory_space<vmem>>, %arg14: memref<16x128xbf16, #tpu.memory_space<vmem>>, %arg15: memref<512x8xbf16, #tpu.memory_space<vmem>>, %arg16: memref<8x512xf32, #tpu.memory_space<vmem>>, %arg17: memref<896x4xbf16, #tpu.memory_space<vmem>>, %arg18: memref<4x896xf32, #tpu.memory_space<vmem>>, %arg19: memref<128x512xbf16, #tpu.memory_space<any>>, %arg20: memref<512x896xbf16, #tpu.memory_space<any>>, %arg21: memref<896x896xbf16, #tpu.memory_space<any>>, %arg22: memref<8x896xf32, #tpu.memory_space<vmem>>, %arg23: memref<8x256xf32, #tpu.memory_space<vmem>>, %arg24: memref<128x512xbf16, #tpu.memory_space<vmem>>, %arg25: memref<512x896xbf16, #tpu.memory_space<vmem>>, %arg26: memref<896x896xbf16, #tpu.memory_space<vmem>>, %arg27: memref<3x!tpu.dma_semaphore, #tpu.memory_space<semaphore_mem>>) attributes {dimension_semantics = [#tpu.dimension_semantics<arbitrary>], iteration_bounds = array<i64: 1>, scalar_prefetch = 0 : i64, scratch_operands = 4 : i64, tpu.core_type = #tpu.core_type<tc>, window_params = [{pipeline_mode = #tpu.pipeline_mode<synchronous>, transform_indices = @transform_0, window_bounds = array<i64: 8, 896>}, {pipeline_mode = #tpu.pipeline_mode<synchronous>, transform_indices = @transform_1, window_bounds = array<i64: 8, 16>}, {pipeline_mode = #tpu.pipeline_mode<synchronous>, transform_indices = @transform_2, window_bounds = array<i64: 1, 2560>}, {pipeline_mode = #tpu.pipeline_mode<synchronous>, transform_indices = @transform_3, window_bounds = array<i64: 896, 896>}, {pipeline_mode = #tpu.pipeline_mode<synchronous>, transform_indices = @transform_4, window_bounds = array<i64: 896, 4>}, {pipeline_mode = #tpu.pipeline_mode<synchronous>, transform_indices = @transform_5, window_bounds = array<i64: 4, 896>}, {pipeline_mode = #tpu.pipeline_mode<synchronous>, transform_indices = @transform_6, window_bounds = array<i64: 896, 512>}, {pipeline_mode = #tpu.pipeline_mode<synchronous>, transform_indices = @transform_7, window_bounds = array<i64: 512, 8>}, {pipeline_mode = #tpu.pipeline_mode<synchronous>, transform_indices = @transform_8, window_bounds = array<i64: 8, 512>}, {pipeline_mode = #tpu.pipeline_mode<synchronous>, transform_indices = @transform_9, window_bounds = array<i64: 512, 128>}, {pipeline_mode = #tpu.pipeline_mode<synchronous>, transform_indices = @transform_10, window_bounds = array<i64: 128, 8>}, {pipeline_mode = #tpu.pipeline_mode<synchronous>, transform_indices = @transform_11, window_bounds = array<i64: 8, 128>}, {pipeline_mode = #tpu.pipeline_mode<synchronous>, transform_indices = @transform_12, window_bounds = array<i64: 128, 256>}, {pipeline_mode = #tpu.pipeline_mode<synchronous>, transform_indices = @transform_13, window_bounds = array<i64: 16, 128>}, {pipeline_mode = #tpu.pipeline_mode<synchronous>, transform_indices = @transform_14, window_bounds = array<i64: 512, 8>}, {pipeline_mode = #tpu.pipeline_mode<synchronous>, transform_indices = @transform_15, window_bounds = array<i64: 8, 512>}, {pipeline_mode = #tpu.pipeline_mode<synchronous>, transform_indices = @transform_16, window_bounds = array<i64: 896, 4>}, {pipeline_mode = #tpu.pipeline_mode<synchronous>, transform_indices = @transform_17, window_bounds = array<i64: 4, 896>}, {}, {}, {}, {pipeline_mode = #tpu.pipeline_mode<synchronous>, transform_indices = @transform_21, window_bounds = array<i64: 8, 896>}, {pipeline_mode = #tpu.pipeline_mode<synchronous>, transform_indices = @transform_22, window_bounds = array<i64: 8, 256>}]} {
    %c0_i32 = arith.constant 0 : i32
    %0 = tpu.memref_slice %arg27[%c0_i32] : memref<3x!tpu.dma_semaphore, #tpu.memory_space<semaphore_mem>> -> memref<1x!tpu.dma_semaphore, #tpu.memory_space<semaphore_mem>>
    %1 = tpu.memref_squeeze %0 : memref<1x!tpu.dma_semaphore, #tpu.memory_space<semaphore_mem>> -> memref<!tpu.dma_semaphore, #tpu.memory_space<semaphore_mem>>
    tpu.enqueue_dma source(%arg19 : memref<128x512xbf16, #tpu.memory_space<any>>) target(%arg24 : memref<128x512xbf16, #tpu.memory_space<vmem>>) target_semaphore(%1 : memref<!tpu.dma_semaphore, #tpu.memory_space<semaphore_mem>>)
    %c1_i32 = arith.constant 1 : i32
    %2 = tpu.memref_slice %arg27[%c1_i32] : memref<3x!tpu.dma_semaphore, #tpu.memory_space<semaphore_mem>> -> memref<1x!tpu.dma_semaphore, #tpu.memory_space<semaphore_mem>>
    %3 = tpu.memref_squeeze %2 : memref<1x!tpu.dma_semaphore, #tpu.memory_space<semaphore_mem>> -> memref<!tpu.dma_semaphore, #tpu.memory_space<semaphore_mem>>
    tpu.enqueue_dma source(%arg20 : memref<512x896xbf16, #tpu.memory_space<any>>) target(%arg25 : memref<512x896xbf16, #tpu.memory_space<vmem>>) target_semaphore(%3 : memref<!tpu.dma_semaphore, #tpu.memory_space<semaphore_mem>>)
    %c2_i32 = arith.constant 2 : i32
    %4 = tpu.memref_slice %arg27[%c2_i32] : memref<3x!tpu.dma_semaphore, #tpu.memory_space<semaphore_mem>> -> memref<1x!tpu.dma_semaphore, #tpu.memory_space<semaphore_mem>>
    %5 = tpu.memref_squeeze %4 : memref<1x!tpu.dma_semaphore, #tpu.memory_space<semaphore_mem>> -> memref<!tpu.dma_semaphore, #tpu.memory_space<semaphore_mem>>
    tpu.enqueue_dma source(%arg21 : memref<896x896xbf16, #tpu.memory_space<any>>) target(%arg26 : memref<896x896xbf16, #tpu.memory_space<vmem>>) target_semaphore(%5 : memref<!tpu.dma_semaphore, #tpu.memory_space<semaphore_mem>>)
    %c0 = arith.constant 0 : index
    %c0_0 = arith.constant 0 : index
    %6 = vector.load %arg1[%c0, %c0_0] : memref<8x896xf32, #tpu.memory_space<vmem>>, vector<8x896xf32>
    %c0_1 = arith.constant 0 : index
    %c0_2 = arith.constant 0 : index
    %7 = vector.load %arg4[%c0_1, %c0_2] : memref<896x896xbf16, #tpu.memory_space<vmem>>, vector<896x896xbf16>
    %8 = arith.truncf %6 : vector<8x896xf32> to vector<8x896xbf16>
    %cst = arith.constant dense<0.000000e+00> : vector<8x896xf32>
    %9 = tpu.matmul %8, %7, %cst {dimension_numbers = #tpu.dot_dimension_numbers<[1], [0], [0], [1], [0, 0, 1, 1], [], []>} : vector<8x896xbf16>, vector<896x896xbf16>, vector<8x896xf32> -> vector<8x896xf32>
    %10 = arith.truncf %9 : vector<8x896xf32> to vector<8x896xbf16>
    %11 = arith.mulf %9, %9 : vector<8x896xf32>
    %12 = arith.truncf %11 : vector<8x896xf32> to vector<8x896xbf16>
    %13 = tpu.concatenate %10, %12 in 0 : vector<8x896xbf16>, vector<8x896xbf16> -> vector<16x896xbf16>
    %c0_3 = arith.constant 0 : index
    %c0_4 = arith.constant 0 : index
    %14 = vector.load %arg5[%c0_3, %c0_4] : memref<896x4xbf16, #tpu.memory_space<vmem>>, vector<896x4xbf16>
    %cst_5 = arith.constant dense<0.000000e+00> : vector<16x4xf32>
    %15 = tpu.matmul %13, %14, %cst_5 {dimension_numbers = #tpu.dot_dimension_numbers<[1], [0], [0], [1], [0, 0, 1, 1], [], []>} : vector<16x896xbf16>, vector<896x4xbf16>, vector<16x4xf32> -> vector<16x4xf32>
    %16 = vector.extract_strided_slice %15 {offsets = [0, 0], sizes = [2, 4], strides = [1, 1]} : vector<16x4xf32> to vector<2x4xf32>
    %cst_6 = arith.constant dense<0.000000e+00> : vector<4xf32>
    %17 = vector.multi_reduction <add>, %16, %cst_6 [0] : vector<2x4xf32> to vector<4xf32>
    %18 = vector.shape_cast %17 : vector<4xf32> to vector<1x4xf32>
    %cst_7 = arith.constant 0.00255102036 : f32
    %19 = vector.broadcast %cst_7 : f32 to vector<1x4xf32>
    %20 = arith.mulf %18, %19 : vector<1x4xf32>
    %21 = vector.extract_strided_slice %15 {offsets = [8, 0], sizes = [2, 4], strides = [1, 1]} : vector<16x4xf32> to vector<2x4xf32>
    %cst_8 = arith.constant dense<0.000000e+00> : vector<4xf32>
    %22 = vector.multi_reduction <add>, %21, %cst_8 [0] : vector<2x4xf32> to vector<4xf32>
    %23 = vector.shape_cast %22 : vector<4xf32> to vector<1x4xf32>
    %cst_9 = arith.constant 0.00255102036 : f32
    %24 = vector.broadcast %cst_9 : f32 to vector<1x4xf32>
    %25 = arith.mulf %23, %24 : vector<1x4xf32>
    %26 = arith.mulf %20, %20 : vector<1x4xf32>
    %27 = arith.subf %25, %26 : vector<1x4xf32>
    %cst_10 = arith.constant 0.000000e+00 : f32
    %28 = vector.broadcast %cst_10 : f32 to vector<1x4xf32>
    %29 = arith.maximumf %27, %28 : vector<1x4xf32>
    %c0_11 = arith.constant 0 : index
    %c1280 = arith.constant 1280 : index
    %30 = vector.load %arg3[%c0_11, %c1280] : memref<1x2560xf32, #tpu.memory_space<vmem>>, vector<1x4xf32>
    %c0_12 = arith.constant 0 : index
    %c1408 = arith.constant 1408 : index
    %31 = vector.load %arg3[%c0_12, %c1408] : memref<1x2560xf32, #tpu.memory_space<vmem>>, vector<1x4xf32>
    %cst_13 = arith.constant 9.99999974E-6 : f32
    %32 = vector.broadcast %cst_13 : f32 to vector<1x4xf32>
    %33 = arith.addf %29, %32 : vector<1x4xf32>
    %34 = math.rsqrt %33 : vector<1x4xf32>
    %35 = arith.mulf %30, %34 : vector<1x4xf32>
    %36 = arith.mulf %20, %35 : vector<1x4xf32>
    %37 = arith.subf %31, %36 : vector<1x4xf32>
    %38 = tpu.concatenate %35, %37 in 0 : vector<1x4xf32>, vector<1x4xf32> -> vector<2x4xf32>
    %c0_14 = arith.constant 0 : index
    %c0_15 = arith.constant 0 : index
    %39 = vector.load %arg6[%c0_14, %c0_15] : memref<4x896xf32, #tpu.memory_space<vmem>>, vector<4x896xf32>
    %cst_16 = arith.constant dense<0.000000e+00> : vector<2x896xf32>
    %40 = tpu.matmul %38, %39, %cst_16 {dimension_numbers = #tpu.dot_dimension_numbers<[1], [0], [0], [1], [0, 0, 1, 1], [], []>} : vector<2x4xf32>, vector<4x896xf32>, vector<2x896xf32> -> vector<2x896xf32>
    %41 = vector.extract_strided_slice %40 {offsets = [0, 0], sizes = [1, 896], strides = [1, 1]} : vector<2x896xf32> to vector<1x896xf32>
    %42 = vector.broadcast %41 : vector<1x896xf32> to vector<8x896xf32>
    %43 = arith.mulf %9, %42 : vector<8x896xf32>
    %44 = vector.extract_strided_slice %40 {offsets = [1, 0], sizes = [1, 896], strides = [1, 1]} : vector<2x896xf32> to vector<1x896xf32>
    %45 = vector.broadcast %44 : vector<1x896xf32> to vector<8x896xf32>
    %46 = arith.addf %43, %45 : vector<8x896xf32>
    %cst_17 = arith.constant 0.000000e+00 : f32
    %47 = vector.broadcast %cst_17 : f32 to vector<8x896xf32>
    %48 = arith.maximumf %46, %47 : vector<8x896xf32>
    %c0_18 = arith.constant 0 : index
    %c0_19 = arith.constant 0 : index
    %49 = vector.load %arg7[%c0_18, %c0_19] : memref<896x512xbf16, #tpu.memory_space<vmem>>, vector<896x512xbf16>
    %50 = arith.truncf %48 : vector<8x896xf32> to vector<8x896xbf16>
    %cst_20 = arith.constant dense<0.000000e+00> : vector<8x512xf32>
    %51 = tpu.matmul %50, %49, %cst_20 {dimension_numbers = #tpu.dot_dimension_numbers<[1], [0], [0], [1], [0, 0, 1, 1], [], []>} : vector<8x896xbf16>, vector<896x512xbf16>, vector<8x512xf32> -> vector<8x512xf32>
    %52 = arith.truncf %51 : vector<8x512xf32> to vector<8x512xbf16>
    %53 = arith.mulf %51, %51 : vector<8x512xf32>
    %54 = arith.truncf %53 : vector<8x512xf32> to vector<8x512xbf16>
    %55 = tpu.concatenate %52, %54 in 0 : vector<8x512xbf16>, vector<8x512xbf16> -> vector<16x512xbf16>
    %c0_21 = arith.constant 0 : index
    %c0_22 = arith.constant 0 : index
    %56 = vector.load %arg8[%c0_21, %c0_22] : memref<512x8xbf16, #tpu.memory_space<vmem>>, vector<512x8xbf16>
    %cst_23 = arith.constant dense<0.000000e+00> : vector<16x8xf32>
    %57 = tpu.matmul %55, %56, %cst_23 {dimension_numbers = #tpu.dot_dimension_numbers<[1], [0], [0], [1], [0, 0, 1, 1], [], []>} : vector<16x512xbf16>, vector<512x8xbf16>, vector<16x8xf32> -> vector<16x8xf32>
    %58 = vector.extract_strided_slice %57 {offsets = [0, 0], sizes = [2, 8], strides = [1, 1]} : vector<16x8xf32> to vector<2x8xf32>
    %cst_24 = arith.constant dense<0.000000e+00> : vector<8xf32>
    %59 = vector.multi_reduction <add>, %58, %cst_24 [0] : vector<2x8xf32> to vector<8xf32>
    %60 = vector.shape_cast %59 : vector<8xf32> to vector<1x8xf32>
    %cst_25 = arith.constant 0.0102040814 : f32
    %61 = vector.broadcast %cst_25 : f32 to vector<1x8xf32>
    %62 = arith.mulf %60, %61 : vector<1x8xf32>
    %63 = vector.extract_strided_slice %57 {offsets = [8, 0], sizes = [2, 8], strides = [1, 1]} : vector<16x8xf32> to vector<2x8xf32>
    %cst_26 = arith.constant dense<0.000000e+00> : vector<8xf32>
    %64 = vector.multi_reduction <add>, %63, %cst_26 [0] : vector<2x8xf32> to vector<8xf32>
    %65 = vector.shape_cast %64 : vector<8xf32> to vector<1x8xf32>
    %cst_27 = arith.constant 0.0102040814 : f32
    %66 = vector.broadcast %cst_27 : f32 to vector<1x8xf32>
    %67 = arith.mulf %65, %66 : vector<1x8xf32>
    %68 = arith.mulf %62, %62 : vector<1x8xf32>
    %69 = arith.subf %67, %68 : vector<1x8xf32>
    %cst_28 = arith.constant 0.000000e+00 : f32
    %70 = vector.broadcast %cst_28 : f32 to vector<1x8xf32>
    %71 = arith.maximumf %69, %70 : vector<1x8xf32>
    %c0_29 = arith.constant 0 : index
    %c1536 = arith.constant 1536 : index
    %72 = vector.load %arg3[%c0_29, %c1536] : memref<1x2560xf32, #tpu.memory_space<vmem>>, vector<1x8xf32>
    %c0_30 = arith.constant 0 : index
    %c1664 = arith.constant 1664 : index
    %73 = vector.load %arg3[%c0_30, %c1664] : memref<1x2560xf32, #tpu.memory_space<vmem>>, vector<1x8xf32>
    %cst_31 = arith.constant 9.99999974E-6 : f32
    %74 = vector.broadcast %cst_31 : f32 to vector<1x8xf32>
    %75 = arith.addf %71, %74 : vector<1x8xf32>
    %76 = math.rsqrt %75 : vector<1x8xf32>
    %77 = arith.mulf %72, %76 : vector<1x8xf32>
    %78 = arith.mulf %62, %77 : vector<1x8xf32>
    %79 = arith.subf %73, %78 : vector<1x8xf32>
    %80 = tpu.concatenate %77, %79 in 0 : vector<1x8xf32>, vector<1x8xf32> -> vector<2x8xf32>
    %c0_32 = arith.constant 0 : index
    %c0_33 = arith.constant 0 : index
    %81 = vector.load %arg9[%c0_32, %c0_33] : memref<8x512xf32, #tpu.memory_space<vmem>>, vector<8x512xf32>
    %cst_34 = arith.constant dense<0.000000e+00> : vector<2x512xf32>
    %82 = tpu.matmul %80, %81, %cst_34 {dimension_numbers = #tpu.dot_dimension_numbers<[1], [0], [0], [1], [0, 0, 1, 1], [], []>} : vector<2x8xf32>, vector<8x512xf32>, vector<2x512xf32> -> vector<2x512xf32>
    %83 = vector.extract_strided_slice %82 {offsets = [0, 0], sizes = [1, 512], strides = [1, 1]} : vector<2x512xf32> to vector<1x512xf32>
    %84 = vector.broadcast %83 : vector<1x512xf32> to vector<8x512xf32>
    %85 = arith.mulf %51, %84 : vector<8x512xf32>
    %86 = vector.extract_strided_slice %82 {offsets = [1, 0], sizes = [1, 512], strides = [1, 1]} : vector<2x512xf32> to vector<1x512xf32>
    %87 = vector.broadcast %86 : vector<1x512xf32> to vector<8x512xf32>
    %88 = arith.addf %85, %87 : vector<8x512xf32>
    %cst_35 = arith.constant 0.000000e+00 : f32
    %89 = vector.broadcast %cst_35 : f32 to vector<8x512xf32>
    %90 = arith.maximumf %88, %89 : vector<8x512xf32>
    %c0_36 = arith.constant 0 : index
    %c0_37 = arith.constant 0 : index
    %91 = vector.load %arg10[%c0_36, %c0_37] : memref<512x128xbf16, #tpu.memory_space<vmem>>, vector<512x128xbf16>
    %92 = arith.truncf %90 : vector<8x512xf32> to vector<8x512xbf16>
    %cst_38 = arith.constant dense<0.000000e+00> : vector<8x128xf32>
    %93 = tpu.matmul %92, %91, %cst_38 {dimension_numbers = #tpu.dot_dimension_numbers<[1], [0], [0], [1], [0, 0, 1, 1], [], []>} : vector<8x512xbf16>, vector<512x128xbf16>, vector<8x128xf32> -> vector<8x128xf32>
    %94 = arith.truncf %93 : vector<8x128xf32> to vector<8x128xbf16>
    %95 = arith.mulf %93, %93 : vector<8x128xf32>
    %96 = arith.truncf %95 : vector<8x128xf32> to vector<8x128xbf16>
    %97 = tpu.concatenate %94, %96 in 0 : vector<8x128xbf16>, vector<8x128xbf16> -> vector<16x128xbf16>
    %c0_39 = arith.constant 0 : index
    %c0_40 = arith.constant 0 : index
    %98 = vector.load %arg11[%c0_39, %c0_40] : memref<128x8xbf16, #tpu.memory_space<vmem>>, vector<128x8xbf16>
    %cst_41 = arith.constant dense<0.000000e+00> : vector<16x8xf32>
    %99 = tpu.matmul %97, %98, %cst_41 {dimension_numbers = #tpu.dot_dimension_numbers<[1], [0], [0], [1], [0, 0, 1, 1], [], []>} : vector<16x128xbf16>, vector<128x8xbf16>, vector<16x8xf32> -> vector<16x8xf32>
    %100 = vector.extract_strided_slice %99 {offsets = [0, 0], sizes = [2, 8], strides = [1, 1]} : vector<16x8xf32> to vector<2x8xf32>
    %cst_42 = arith.constant dense<0.000000e+00> : vector<8xf32>
    %101 = vector.multi_reduction <add>, %100, %cst_42 [0] : vector<2x8xf32> to vector<8xf32>
    %102 = vector.shape_cast %101 : vector<8xf32> to vector<1x8xf32>
    %cst_43 = arith.constant 3.125000e-02 : f32
    %103 = vector.broadcast %cst_43 : f32 to vector<1x8xf32>
    %104 = arith.mulf %102, %103 : vector<1x8xf32>
    %105 = vector.extract_strided_slice %99 {offsets = [8, 0], sizes = [2, 8], strides = [1, 1]} : vector<16x8xf32> to vector<2x8xf32>
    %cst_44 = arith.constant dense<0.000000e+00> : vector<8xf32>
    %106 = vector.multi_reduction <add>, %105, %cst_44 [0] : vector<2x8xf32> to vector<8xf32>
    %107 = vector.shape_cast %106 : vector<8xf32> to vector<1x8xf32>
    %cst_45 = arith.constant 3.125000e-02 : f32
    %108 = vector.broadcast %cst_45 : f32 to vector<1x8xf32>
    %109 = arith.mulf %107, %108 : vector<1x8xf32>
    %110 = arith.mulf %104, %104 : vector<1x8xf32>
    %111 = arith.subf %109, %110 : vector<1x8xf32>
    %cst_46 = arith.constant 0.000000e+00 : f32
    %112 = vector.broadcast %cst_46 : f32 to vector<1x8xf32>
    %113 = arith.maximumf %111, %112 : vector<1x8xf32>
    %c0_47 = arith.constant 0 : index
    %c1792 = arith.constant 1792 : index
    %114 = vector.load %arg3[%c0_47, %c1792] : memref<1x2560xf32, #tpu.memory_space<vmem>>, vector<1x8xf32>
    %c0_48 = arith.constant 0 : index
    %c1920 = arith.constant 1920 : index
    %115 = vector.load %arg3[%c0_48, %c1920] : memref<1x2560xf32, #tpu.memory_space<vmem>>, vector<1x8xf32>
    %cst_49 = arith.constant 9.99999974E-6 : f32
    %116 = vector.broadcast %cst_49 : f32 to vector<1x8xf32>
    %117 = arith.addf %113, %116 : vector<1x8xf32>
    %118 = math.rsqrt %117 : vector<1x8xf32>
    %119 = arith.mulf %114, %118 : vector<1x8xf32>
    %120 = arith.mulf %104, %119 : vector<1x8xf32>
    %121 = arith.subf %115, %120 : vector<1x8xf32>
    %122 = tpu.concatenate %119, %121 in 0 : vector<1x8xf32>, vector<1x8xf32> -> vector<2x8xf32>
    %c0_50 = arith.constant 0 : index
    %c0_51 = arith.constant 0 : index
    %123 = vector.load %arg12[%c0_50, %c0_51] : memref<8x128xf32, #tpu.memory_space<vmem>>, vector<8x128xf32>
    %cst_52 = arith.constant dense<0.000000e+00> : vector<2x128xf32>
    %124 = tpu.matmul %122, %123, %cst_52 {dimension_numbers = #tpu.dot_dimension_numbers<[1], [0], [0], [1], [0, 0, 1, 1], [], []>} : vector<2x8xf32>, vector<8x128xf32>, vector<2x128xf32> -> vector<2x128xf32>
    %125 = vector.extract_strided_slice %124 {offsets = [0, 0], sizes = [1, 128], strides = [1, 1]} : vector<2x128xf32> to vector<1x128xf32>
    %126 = vector.broadcast %125 : vector<1x128xf32> to vector<8x128xf32>
    %127 = arith.mulf %93, %126 : vector<8x128xf32>
    %128 = vector.extract_strided_slice %124 {offsets = [1, 0], sizes = [1, 128], strides = [1, 1]} : vector<2x128xf32> to vector<1x128xf32>
    %129 = vector.broadcast %128 : vector<1x128xf32> to vector<8x128xf32>
    %130 = arith.addf %127, %129 : vector<8x128xf32>
    %cst_53 = arith.constant 0.000000e+00 : f32
    %131 = vector.broadcast %cst_53 : f32 to vector<8x128xf32>
    %132 = arith.maximumf %130, %131 : vector<8x128xf32>
    %c0_54 = arith.constant 0 : index
    %c0_55 = arith.constant 0 : index
    %133 = vector.load %arg13[%c0_54, %c0_55] : memref<128x256xbf16, #tpu.memory_space<vmem>>, vector<128x256xbf16>
    %134 = arith.truncf %132 : vector<8x128xf32> to vector<8x128xbf16>
    %cst_56 = arith.constant dense<0.000000e+00> : vector<8x256xf32>
    %135 = tpu.matmul %134, %133, %cst_56 {dimension_numbers = #tpu.dot_dimension_numbers<[1], [0], [0], [1], [0, 0, 1, 1], [], []>} : vector<8x128xbf16>, vector<128x256xbf16>, vector<8x256xf32> -> vector<8x256xf32>
    %c0_57 = arith.constant 0 : index
    %c1024 = arith.constant 1024 : index
    %136 = vector.load %arg3[%c0_57, %c1024] : memref<1x2560xf32, #tpu.memory_space<vmem>>, vector<1x256xf32>
    %137 = vector.broadcast %136 : vector<1x256xf32> to vector<8x256xf32>
    %138 = arith.addf %135, %137 : vector<8x256xf32>
    %c0_58 = arith.constant 0 : index
    %c0_59 = arith.constant 0 : index
    %139 = vector.load %arg23[%c0_58, %c0_59] : memref<8x256xf32, #tpu.memory_space<vmem>>, vector<8x256xf32>
    tpu.vector_store %arg23[%c0_58, %c0_59], %138 {strides = array<i32>} : memref<8x256xf32, #tpu.memory_space<vmem>>, vector<8x256xf32>,
    %140 = vector.extract_strided_slice %138 {offsets = [0, 0], sizes = [8, 16], strides = [1, 1]} : vector<8x256xf32> to vector<8x16xf32>
    %141 = vector.extract_strided_slice %138 {offsets = [0, 128], sizes = [8, 16], strides = [1, 1]} : vector<8x256xf32> to vector<8x16xf32>
    %c0_60 = arith.constant 0 : index
    %c0_61 = arith.constant 0 : index
    %142 = vector.load %arg2[%c0_60, %c0_61] : memref<8x16xf32, #tpu.memory_space<vmem>>, vector<8x16xf32>
    %cst_62 = arith.constant 5.000000e-01 : f32
    %143 = vector.broadcast %cst_62 : f32 to vector<8x16xf32>
    %144 = arith.mulf %143, %141 : vector<8x16xf32>
    %145 = math.exp %144 : vector<8x16xf32>
    %146 = arith.mulf %142, %145 : vector<8x16xf32>
    %147 = arith.addf %146, %140 : vector<8x16xf32>
    %c0_63 = arith.constant 0 : index
    %c0_64 = arith.constant 0 : index
    %148 = vector.load %arg14[%c0_63, %c0_64] : memref<16x128xbf16, #tpu.memory_space<vmem>>, vector<16x128xbf16>
    %149 = arith.truncf %147 : vector<8x16xf32> to vector<8x16xbf16>
    %cst_65 = arith.constant dense<0.000000e+00> : vector<8x128xf32>
    %150 = tpu.matmul %149, %148, %cst_65 {dimension_numbers = #tpu.dot_dimension_numbers<[1], [0], [0], [1], [0, 0, 1, 1], [], []>} : vector<8x16xbf16>, vector<16x128xbf16>, vector<8x128xf32> -> vector<8x128xf32>
    %c0_66 = arith.constant 0 : index
    %c896 = arith.constant 896 : index
    %151 = vector.load %arg3[%c0_66, %c896] : memref<1x2560xf32, #tpu.memory_space<vmem>>, vector<1x128xf32>
    %152 = vector.broadcast %151 : vector<1x128xf32> to vector<8x128xf32>
    %153 = arith.addf %150, %152 : vector<8x128xf32>
    %c0_i32_67 = arith.constant 0 : i32
    %154 = tpu.memref_slice %arg27[%c0_i32_67] : memref<3x!tpu.dma_semaphore, #tpu.memory_space<semaphore_mem>> -> memref<1x!tpu.dma_semaphore, #tpu.memory_space<semaphore_mem>>
    %155 = tpu.memref_squeeze %154 : memref<1x!tpu.dma_semaphore, #tpu.memory_space<semaphore_mem>> -> memref<!tpu.dma_semaphore, #tpu.memory_space<semaphore_mem>>
    tpu.wait_dma2 semaphore(%155 : memref<!tpu.dma_semaphore, #tpu.memory_space<semaphore_mem>>) src(%arg19 : memref<128x512xbf16, #tpu.memory_space<any>>) dst(%arg24 : memref<128x512xbf16, #tpu.memory_space<vmem>>)
    %c0_68 = arith.constant 0 : index
    %c0_69 = arith.constant 0 : index
    %156 = vector.load %arg24[%c0_68, %c0_69] : memref<128x512xbf16, #tpu.memory_space<vmem>>, vector<128x512xbf16>
    %157 = arith.truncf %153 : vector<8x128xf32> to vector<8x128xbf16>
    %cst_70 = arith.constant dense<0.000000e+00> : vector<8x512xf32>
    %158 = tpu.matmul %157, %156, %cst_70 {dimension_numbers = #tpu.dot_dimension_numbers<[1], [0], [0], [1], [0, 0, 1, 1], [], []>} : vector<8x128xbf16>, vector<128x512xbf16>, vector<8x512xf32> -> vector<8x512xf32>
    %159 = arith.truncf %158 : vector<8x512xf32> to vector<8x512xbf16>
    %160 = arith.mulf %158, %158 : vector<8x512xf32>
    %161 = arith.truncf %160 : vector<8x512xf32> to vector<8x512xbf16>
    %162 = tpu.concatenate %159, %161 in 0 : vector<8x512xbf16>, vector<8x512xbf16> -> vector<16x512xbf16>
    %c0_71 = arith.constant 0 : index
    %c0_72 = arith.constant 0 : index
    %163 = vector.load %arg15[%c0_71, %c0_72] : memref<512x8xbf16, #tpu.memory_space<vmem>>, vector<512x8xbf16>
    %cst_73 = arith.constant dense<0.000000e+00> : vector<16x8xf32>
    %164 = tpu.matmul %162, %163, %cst_73 {dimension_numbers = #tpu.dot_dimension_numbers<[1], [0], [0], [1], [0, 0, 1, 1], [], []>} : vector<16x512xbf16>, vector<512x8xbf16>, vector<16x8xf32> -> vector<16x8xf32>
    %165 = vector.extract_strided_slice %164 {offsets = [0, 0], sizes = [2, 8], strides = [1, 1]} : vector<16x8xf32> to vector<2x8xf32>
    %cst_74 = arith.constant dense<0.000000e+00> : vector<8xf32>
    %166 = vector.multi_reduction <add>, %165, %cst_74 [0] : vector<2x8xf32> to vector<8xf32>
    %167 = vector.shape_cast %166 : vector<8xf32> to vector<1x8xf32>
    %cst_75 = arith.constant 7.812500e-03 : f32
    %168 = vector.broadcast %cst_75 : f32 to vector<1x8xf32>
    %169 = arith.mulf %167, %168 : vector<1x8xf32>
    %170 = vector.extract_strided_slice %164 {offsets = [8, 0], sizes = [2, 8], strides = [1, 1]} : vector<16x8xf32> to vector<2x8xf32>
    %cst_76 = arith.constant dense<0.000000e+00> : vector<8xf32>
    %171 = vector.multi_reduction <add>, %170, %cst_76 [0] : vector<2x8xf32> to vector<8xf32>
    %172 = vector.shape_cast %171 : vector<8xf32> to vector<1x8xf32>
    %cst_77 = arith.constant 7.812500e-03 : f32
    %173 = vector.broadcast %cst_77 : f32 to vector<1x8xf32>
    %174 = arith.mulf %172, %173 : vector<1x8xf32>
    %175 = arith.mulf %169, %169 : vector<1x8xf32>
    %176 = arith.subf %174, %175 : vector<1x8xf32>
    %cst_78 = arith.constant 0.000000e+00 : f32
    %177 = vector.broadcast %cst_78 : f32 to vector<1x8xf32>
    %178 = arith.maximumf %176, %177 : vector<1x8xf32>
    %c0_79 = arith.constant 0 : index
    %c2048 = arith.constant 2048 : index
    %179 = vector.load %arg3[%c0_79, %c2048] : memref<1x2560xf32, #tpu.memory_space<vmem>>, vector<1x8xf32>
    %c0_80 = arith.constant 0 : index
    %c2176 = arith.constant 2176 : index
    %180 = vector.load %arg3[%c0_80, %c2176] : memref<1x2560xf32, #tpu.memory_space<vmem>>, vector<1x8xf32>
    %cst_81 = arith.constant 9.99999974E-6 : f32
    %181 = vector.broadcast %cst_81 : f32 to vector<1x8xf32>
    %182 = arith.addf %178, %181 : vector<1x8xf32>
    %183 = math.rsqrt %182 : vector<1x8xf32>
    %184 = arith.mulf %179, %183 : vector<1x8xf32>
    %185 = arith.mulf %169, %184 : vector<1x8xf32>
    %186 = arith.subf %180, %185 : vector<1x8xf32>
    %187 = tpu.concatenate %184, %186 in 0 : vector<1x8xf32>, vector<1x8xf32> -> vector<2x8xf32>
    %c0_82 = arith.constant 0 : index
    %c0_83 = arith.constant 0 : index
    %188 = vector.load %arg16[%c0_82, %c0_83] : memref<8x512xf32, #tpu.memory_space<vmem>>, vector<8x512xf32>
    %cst_84 = arith.constant dense<0.000000e+00> : vector<2x512xf32>
    %189 = tpu.matmul %187, %188, %cst_84 {dimension_numbers = #tpu.dot_dimension_numbers<[1], [0], [0], [1], [0, 0, 1, 1], [], []>} : vector<2x8xf32>, vector<8x512xf32>, vector<2x512xf32> -> vector<2x512xf32>
    %190 = vector.extract_strided_slice %189 {offsets = [0, 0], sizes = [1, 512], strides = [1, 1]} : vector<2x512xf32> to vector<1x512xf32>
    %191 = vector.broadcast %190 : vector<1x512xf32> to vector<8x512xf32>
    %192 = arith.mulf %158, %191 : vector<8x512xf32>
    %193 = vector.extract_strided_slice %189 {offsets = [1, 0], sizes = [1, 512], strides = [1, 1]} : vector<2x512xf32> to vector<1x512xf32>
    %194 = vector.broadcast %193 : vector<1x512xf32> to vector<8x512xf32>
    %195 = arith.addf %192, %194 : vector<8x512xf32>
    %cst_85 = arith.constant 0.000000e+00 : f32
    %196 = vector.broadcast %cst_85 : f32 to vector<8x512xf32>
    %197 = arith.maximumf %195, %196 : vector<8x512xf32>
    %c1_i32_86 = arith.constant 1 : i32
    %198 = tpu.memref_slice %arg27[%c1_i32_86] : memref<3x!tpu.dma_semaphore, #tpu.memory_space<semaphore_mem>> -> memref<1x!tpu.dma_semaphore, #tpu.memory_space<semaphore_mem>>
    %199 = tpu.memref_squeeze %198 : memref<1x!tpu.dma_semaphore, #tpu.memory_space<semaphore_mem>> -> memref<!tpu.dma_semaphore, #tpu.memory_space<semaphore_mem>>
    tpu.wait_dma2 semaphore(%199 : memref<!tpu.dma_semaphore, #tpu.memory_space<semaphore_mem>>) src(%arg20 : memref<512x896xbf16, #tpu.memory_space<any>>) dst(%arg25 : memref<512x896xbf16, #tpu.memory_space<vmem>>)
    %c0_87 = arith.constant 0 : index
    %c0_88 = arith.constant 0 : index
    %200 = vector.load %arg25[%c0_87, %c0_88] : memref<512x896xbf16, #tpu.memory_space<vmem>>, vector<512x896xbf16>
    %201 = arith.truncf %197 : vector<8x512xf32> to vector<8x512xbf16>
    %cst_89 = arith.constant dense<0.000000e+00> : vector<8x896xf32>
    %202 = tpu.matmul %201, %200, %cst_89 {dimension_numbers = #tpu.dot_dimension_numbers<[1], [0], [0], [1], [0, 0, 1, 1], [], []>} : vector<8x512xbf16>, vector<512x896xbf16>, vector<8x896xf32> -> vector<8x896xf32>
    %203 = arith.truncf %202 : vector<8x896xf32> to vector<8x896xbf16>
    %204 = arith.mulf %202, %202 : vector<8x896xf32>
    %205 = arith.truncf %204 : vector<8x896xf32> to vector<8x896xbf16>
    %206 = tpu.concatenate %203, %205 in 0 : vector<8x896xbf16>, vector<8x896xbf16> -> vector<16x896xbf16>
    %c0_90 = arith.constant 0 : index
    %c0_91 = arith.constant 0 : index
    %207 = vector.load %arg17[%c0_90, %c0_91] : memref<896x4xbf16, #tpu.memory_space<vmem>>, vector<896x4xbf16>
    %cst_92 = arith.constant dense<0.000000e+00> : vector<16x4xf32>
    %208 = tpu.matmul %206, %207, %cst_92 {dimension_numbers = #tpu.dot_dimension_numbers<[1], [0], [0], [1], [0, 0, 1, 1], [], []>} : vector<16x896xbf16>, vector<896x4xbf16>, vector<16x4xf32> -> vector<16x4xf32>
    %209 = vector.extract_strided_slice %208 {offsets = [0, 0], sizes = [2, 4], strides = [1, 1]} : vector<16x4xf32> to vector<2x4xf32>
    %cst_93 = arith.constant dense<0.000000e+00> : vector<4xf32>
    %210 = vector.multi_reduction <add>, %209, %cst_93 [0] : vector<2x4xf32> to vector<4xf32>
    %211 = vector.shape_cast %210 : vector<4xf32> to vector<1x4xf32>
    %cst_94 = arith.constant 0.00255102036 : f32
    %212 = vector.broadcast %cst_94 : f32 to vector<1x4xf32>
    %213 = arith.mulf %211, %212 : vector<1x4xf32>
    %214 = vector.extract_strided_slice %208 {offsets = [8, 0], sizes = [2, 4], strides = [1, 1]} : vector<16x4xf32> to vector<2x4xf32>
    %cst_95 = arith.constant dense<0.000000e+00> : vector<4xf32>
    %215 = vector.multi_reduction <add>, %214, %cst_95 [0] : vector<2x4xf32> to vector<4xf32>
    %216 = vector.shape_cast %215 : vector<4xf32> to vector<1x4xf32>
    %cst_96 = arith.constant 0.00255102036 : f32
    %217 = vector.broadcast %cst_96 : f32 to vector<1x4xf32>
    %218 = arith.mulf %216, %217 : vector<1x4xf32>
    %219 = arith.mulf %213, %213 : vector<1x4xf32>
    %220 = arith.subf %218, %219 : vector<1x4xf32>
    %cst_97 = arith.constant 0.000000e+00 : f32
    %221 = vector.broadcast %cst_97 : f32 to vector<1x4xf32>
    %222 = arith.maximumf %220, %221 : vector<1x4xf32>
    %c0_98 = arith.constant 0 : index
    %c2304 = arith.constant 2304 : index
    %223 = vector.load %arg3[%c0_98, %c2304] : memref<1x2560xf32, #tpu.memory_space<vmem>>, vector<1x4xf32>
    %c0_99 = arith.constant 0 : index
    %c2432 = arith.constant 2432 : index
    %224 = vector.load %arg3[%c0_99, %c2432] : memref<1x2560xf32, #tpu.memory_space<vmem>>, vector<1x4xf32>
    %cst_100 = arith.constant 9.99999974E-6 : f32
    %225 = vector.broadcast %cst_100 : f32 to vector<1x4xf32>
    %226 = arith.addf %222, %225 : vector<1x4xf32>
    %227 = math.rsqrt %226 : vector<1x4xf32>
    %228 = arith.mulf %223, %227 : vector<1x4xf32>
    %229 = arith.mulf %213, %228 : vector<1x4xf32>
    %230 = arith.subf %224, %229 : vector<1x4xf32>
    %231 = tpu.concatenate %228, %230 in 0 : vector<1x4xf32>, vector<1x4xf32> -> vector<2x4xf32>
    %c0_101 = arith.constant 0 : index
    %c0_102 = arith.constant 0 : index
    %232 = vector.load %arg18[%c0_101, %c0_102] : memref<4x896xf32, #tpu.memory_space<vmem>>, vector<4x896xf32>
    %cst_103 = arith.constant dense<0.000000e+00> : vector<2x896xf32>
    %233 = tpu.matmul %231, %232, %cst_103 {dimension_numbers = #tpu.dot_dimension_numbers<[1], [0], [0], [1], [0, 0, 1, 1], [], []>} : vector<2x4xf32>, vector<4x896xf32>, vector<2x896xf32> -> vector<2x896xf32>
    %234 = vector.extract_strided_slice %233 {offsets = [0, 0], sizes = [1, 896], strides = [1, 1]} : vector<2x896xf32> to vector<1x896xf32>
    %235 = vector.broadcast %234 : vector<1x896xf32> to vector<8x896xf32>
    %236 = arith.mulf %202, %235 : vector<8x896xf32>
    %237 = vector.extract_strided_slice %233 {offsets = [1, 0], sizes = [1, 896], strides = [1, 1]} : vector<2x896xf32> to vector<1x896xf32>
    %238 = vector.broadcast %237 : vector<1x896xf32> to vector<8x896xf32>
    %239 = arith.addf %236, %238 : vector<8x896xf32>
    %cst_104 = arith.constant 0.000000e+00 : f32
    %240 = vector.broadcast %cst_104 : f32 to vector<8x896xf32>
    %241 = arith.maximumf %239, %240 : vector<8x896xf32>
    %c2_i32_105 = arith.constant 2 : i32
    %242 = tpu.memref_slice %arg27[%c2_i32_105] : memref<3x!tpu.dma_semaphore, #tpu.memory_space<semaphore_mem>> -> memref<1x!tpu.dma_semaphore, #tpu.memory_space<semaphore_mem>>
    %243 = tpu.memref_squeeze %242 : memref<1x!tpu.dma_semaphore, #tpu.memory_space<semaphore_mem>> -> memref<!tpu.dma_semaphore, #tpu.memory_space<semaphore_mem>>
    tpu.wait_dma2 semaphore(%243 : memref<!tpu.dma_semaphore, #tpu.memory_space<semaphore_mem>>) src(%arg21 : memref<896x896xbf16, #tpu.memory_space<any>>) dst(%arg26 : memref<896x896xbf16, #tpu.memory_space<vmem>>)
    %c0_106 = arith.constant 0 : index
    %c0_107 = arith.constant 0 : index
    %244 = vector.load %arg26[%c0_106, %c0_107] : memref<896x896xbf16, #tpu.memory_space<vmem>>, vector<896x896xbf16>
    %245 = arith.truncf %241 : vector<8x896xf32> to vector<8x896xbf16>
    %cst_108 = arith.constant dense<0.000000e+00> : vector<8x896xf32>
    %246 = tpu.matmul %245, %244, %cst_108 {dimension_numbers = #tpu.dot_dimension_numbers<[1], [0], [0], [1], [0, 0, 1, 1], [], []>} : vector<8x896xbf16>, vector<896x896xbf16>, vector<8x896xf32> -> vector<8x896xf32>
    %c0_109 = arith.constant 0 : index
    %c0_110 = arith.constant 0 : index
    %247 = vector.load %arg3[%c0_109, %c0_110] : memref<1x2560xf32, #tpu.memory_space<vmem>>, vector<1x896xf32>
    %248 = vector.broadcast %247 : vector<1x896xf32> to vector<8x896xf32>
    %249 = arith.addf %246, %248 : vector<8x896xf32>
    %250 = arith.negf %249 : vector<8x896xf32>
    %251 = math.exp %250 : vector<8x896xf32>
    %cst_111 = arith.constant 1.000000e+00 : f32
    %252 = vector.broadcast %cst_111 : f32 to vector<8x896xf32>
    %253 = arith.addf %252, %251 : vector<8x896xf32>
    %254 = arith.divf %252, %253 : vector<8x896xf32>
    %c0_112 = arith.constant 0 : index
    %c0_113 = arith.constant 0 : index
    %255 = vector.load %arg22[%c0_112, %c0_113] : memref<8x896xf32, #tpu.memory_space<vmem>>, vector<8x896xf32>
    tpu.vector_store %arg22[%c0_112, %c0_113], %254 {strides = array<i32>} : memref<8x896xf32, #tpu.memory_space<vmem>>, vector<8x896xf32>,
    return
  }
  func.func @transform_0(%arg0: i32) -> (i32, i32) {
    %c0_i32 = arith.constant 0 : i32
    %c0_i32_0 = arith.constant 0 : i32
    %c0_i32_1 = arith.constant 0 : i32
    return %c0_i32, %c0_i32_0 : i32, i32
  }
  func.func @transform_1(%arg0: i32) -> (i32, i32) {
    %c0_i32 = arith.constant 0 : i32
    %c0_i32_0 = arith.constant 0 : i32
    %c0_i32_1 = arith.constant 0 : i32
    return %c0_i32, %c0_i32_0 : i32, i32
  }
  func.func @transform_2(%arg0: i32) -> (i32, i32) {
    %c0_i32 = arith.constant 0 : i32
    %c0_i32_0 = arith.constant 0 : i32
    %c0_i32_1 = arith.constant 0 : i32
    return %c0_i32, %c0_i32_0 : i32, i32
  }
  func.func @transform_3(%arg0: i32) -> (i32, i32) {
    %c0_i32 = arith.constant 0 : i32
    %c0_i32_0 = arith.constant 0 : i32
    %c0_i32_1 = arith.constant 0 : i32
    return %c0_i32, %c0_i32_0 : i32, i32
  }
  func.func @transform_4(%arg0: i32) -> (i32, i32) {
    %c0_i32 = arith.constant 0 : i32
    %c0_i32_0 = arith.constant 0 : i32
    %c0_i32_1 = arith.constant 0 : i32
    return %c0_i32, %c0_i32_0 : i32, i32
  }
  func.func @transform_5(%arg0: i32) -> (i32, i32) {
    %c0_i32 = arith.constant 0 : i32
    %c0_i32_0 = arith.constant 0 : i32
    %c0_i32_1 = arith.constant 0 : i32
    return %c0_i32, %c0_i32_0 : i32, i32
  }
  func.func @transform_6(%arg0: i32) -> (i32, i32) {
    %c0_i32 = arith.constant 0 : i32
    %c0_i32_0 = arith.constant 0 : i32
    %c0_i32_1 = arith.constant 0 : i32
    return %c0_i32, %c0_i32_0 : i32, i32
  }
  func.func @transform_7(%arg0: i32) -> (i32, i32) {
    %c0_i32 = arith.constant 0 : i32
    %c0_i32_0 = arith.constant 0 : i32
    %c0_i32_1 = arith.constant 0 : i32
    return %c0_i32, %c0_i32_0 : i32, i32
  }
  func.func @transform_8(%arg0: i32) -> (i32, i32) {
    %c0_i32 = arith.constant 0 : i32
    %c0_i32_0 = arith.constant 0 : i32
    %c0_i32_1 = arith.constant 0 : i32
    return %c0_i32, %c0_i32_0 : i32, i32
  }
  func.func @transform_9(%arg0: i32) -> (i32, i32) {
    %c0_i32 = arith.constant 0 : i32
    %c0_i32_0 = arith.constant 0 : i32
    %c0_i32_1 = arith.constant 0 : i32
    return %c0_i32, %c0_i32_0 : i32, i32
  }
  func.func @transform_10(%arg0: i32) -> (i32, i32) {
    %c0_i32 = arith.constant 0 : i32
    %c0_i32_0 = arith.constant 0 : i32
    %c0_i32_1 = arith.constant 0 : i32
    return %c0_i32, %c0_i32_0 : i32, i32
  }
  func.func @transform_11(%arg0: i32) -> (i32, i32) {
    %c0_i32 = arith.constant 0 : i32
    %c0_i32_0 = arith.constant 0 : i32
    %c0_i32_1 = arith.constant 0 : i32
    return %c0_i32, %c0_i32_0 : i32, i32
  }
  func.func @transform_12(%arg0: i32) -> (i32, i32) {
    %c0_i32 = arith.constant 0 : i32
    %c0_i32_0 = arith.constant 0 : i32
    %c0_i32_1 = arith.constant 0 : i32
    return %c0_i32, %c0_i32_0 : i32, i32
  }
  func.func @transform_13(%arg0: i32) -> (i32, i32) {
    %c0_i32 = arith.constant 0 : i32
    %c0_i32_0 = arith.constant 0 : i32
    %c0_i32_1 = arith.constant 0 : i32
    return %c0_i32, %c0_i32_0 : i32, i32
  }
  func.func @transform_14(%arg0: i32) -> (i32, i32) {
    %c0_i32 = arith.constant 0 : i32
    %c0_i32_0 = arith.constant 0 : i32
    %c0_i32_1 = arith.constant 0 : i32
    return %c0_i32, %c0_i32_0 : i32, i32
  }
  func.func @transform_15(%arg0: i32) -> (i32, i32) {
    %c0_i32 = arith.constant 0 : i32
    %c0_i32_0 = arith.constant 0 : i32
    %c0_i32_1 = arith.constant 0 : i32
    return %c0_i32, %c0_i32_0 : i32, i32
  }
  func.func @transform_16(%arg0: i32) -> (i32, i32) {
    %c0_i32 = arith.constant 0 : i32
    %c0_i32_0 = arith.constant 0 : i32
    %c0_i32_1 = arith.constant 0 : i32
    return %c0_i32, %c0_i32_0 : i32, i32
  }
  func.func @transform_17(%arg0: i32) -> (i32, i32) {
    %c0_i32 = arith.constant 0 : i32
    %c0_i32_0 = arith.constant 0 : i32
    %c0_i32_1 = arith.constant 0 : i32
    return %c0_i32, %c0_i32_0 : i32, i32
  }
  func.func @transform_21(%arg0: i32) -> (i32, i32) {
    %c0_i32 = arith.constant 0 : i32
    %c0_i32_0 = arith.constant 0 : i32
    %c0_i32_1 = arith.constant 0 : i32
    return %c0_i32, %c0_i32_0 : i32, i32
  }
  func.func @transform_22(%arg0: i32) -> (i32, i32) {
    %c0_i32 = arith.constant 0 : i32
    %c0_i32_0 = arith.constant 0 : i32
    %c0_i32_1 = arith.constant 0 : i32
    return %c0_i32, %c0_i32_0 : i32, i32
  }
}

</mosaic_0001>

<bundles_post_ra>
// kernel: tpu_custom_call.1
= control target key start
LH: loop header
LB: loop body
LE: loop exit
PB: predicated region body
PF: predicated region fallthrough
CT: control target
= control target key end

     0   :  { %s20612_s0 = inlined_call_operand.hbm [shape: f32[8,896], index: 0, kind: input, shape index: {}]   ;;  %s20613_s1 = inlined_call_operand.hbm [shape: f32[8,16], index: 1, kind: input, shape index: {}]   ;;  %s20614_s2 = inlined_call_operand.hbm [shape: f32[1,2560], index: 2, kind: input, shape index: {}]   ;;  %s20615_s3 = inlined_call_operand.hbm [shape: bf16[896,896], index: 3, kind: input, shape index: {}]   ;;  %s20616_s4 = inlined_call_operand.vmem [shape: bf16[896,4], index: 4, kind: input, shape index: {}]   ;;  %s20617_s5 = inlined_call_operand.hbm [shape: f32[4,896], index: 5, kind: input, shape index: {}]   ;;  %s20618_s6 = inlined_call_operand.hbm [shape: bf16[896,512], index: 6, kind: input, shape index: {}]   ;;  %s20619_s7 = inlined_call_operand.vmem [shape: bf16[512,8], index: 7, kind: input, shape index: {}]   ;;  %s20620_s8 = inlined_call_operand.hbm [shape: f32[8,512], index: 8, kind: input, shape index: {}]   ;;  %s20621_s9 = inlined_call_operand.hbm [shape: bf16[512,128], index: 9, kind: input, shape index: {}]   ;;  %s20622_s10 = inlined_call_operand.vmem [shape: bf16[128,8], index: 10, kind: input, shape index: {}]   ;;  %s20623_s11 = inlined_call_operand.hbm [shape: f32[8,128], index: 11, kind: input, shape index: {}]   ;;  %s20624_s12 = inlined_call_operand.hbm [shape: bf16[128,256], index: 12, kind: input, shape index: {}]   ;;  %s20625_s13 = inlined_call_operand.hbm [shape: bf16[16,128], index: 13, kind: input, shape index: {}]   ;;  %s20626_s14 = inlined_call_operand.vmem [shape: bf16[512,8], index: 14, kind: input, shape index: {}]   ;;  %s20627_s15 = inlined_call_operand.hbm [shape: f32[8,512], index: 15, kind: input, shape index: {}]   ;;  %s20628_s16 = inlined_call_operand.vmem [shape: bf16[896,4], index: 16, kind: input, shape index: {}]   ;;  %s20629_s17 = inlined_call_operand.hbm [shape: f32[4,896], index: 17, kind: input, shape index: {}]   ;;  %s20630_s18 = inlined_call_operand.hbm [shape: bf16[128,512], index: 18, kind: input, shape index: {}]   ;;  %s20631_s19 = inlined_call_operand.hbm [shape: bf16[512,896], index: 19, kind: input, shape index: {}]   ;;  %s20632_s20 = inlined_call_operand.hbm [shape: bf16[896,896], index: 20, kind: input, shape index: {}]   ;;  %s20633_s21 = inlined_call_operand.hbm [shape: f32[8,896], index: 21, kind: output, shape index: {0}]   ;;  %s20634_s22 = inlined_call_operand.hbm [shape: f32[8,256], index: 22, kind: output, shape index: {1}]  }
   0x1   :  { %20636 = sst [smem:[#allocation50_spill]] %s20612_s0 }
   0x2   :  { %20637 = sst [smem:[#allocation51_spill]] %s20613_s1 }
   0x3   :  { %20638 = sst [smem:[#allocation52_spill]] %s20614_s2 }
   0x4   :  { %20639 = sst [smem:[#allocation53_spill]] %s20615_s3 }
   0x5   :  { %20640 = sst [smem:[#allocation54_spill]] %s20616_s4 }
   0x6   :  { %20641 = sst [smem:[#allocation55_spill]] %s20617_s5 }
   0x7   :  { %20642 = sst [smem:[#allocation56_spill]] %s20618_s6 }
   0x8   :  { %20643 = sst [smem:[#allocation57_spill]] %s20633_s21 }
   0x9   :  { %28 = vsyncpa [#allocation7], 0 }
   0xa   :  { %29 = vsyncpa [#allocation10], 0 }
   0xb   :  { %30 = vsyncpa [#allocation13], 0 }
   0xc   :  { %31 = vsyncpa [#allocation16], 0 }
   0xd   :  { %32 = vsyncpa [#allocation19], 0 }
   0xe   :  { %33 = vsyncpa [#allocation22], 0 }
   0xf   :  { %34 = vsyncpa [#allocation25], 0 }
  0x10   :  { %35 = vsyncpa [#allocation8], 0 }
  0x11   :  { %36 = vsyncpa [#allocation29], 0  ;;  %s19222_s3 = smov [#allocation9]   ;;  %s19223_s29 = smov [#allocation12]  }
  0x12   :  { %s53_s28 = sshll.u32 %s19222_s3, 4  ;;  %s72_s30 = sshll.u32 %s19223_s29, 4  ;;  %s54_s28 = int_to_ptr.vmem [resolvable:$true] %s53_s28  ;;  %s73_s30 = int_to_ptr.vmem [resolvable:$true] %s72_s30 }
  0x13   :  { %s18846_s4 = scalar_lea.vmem %s54_s28, 128  ;;  %p18851_p1 = scmp.lt.s32.totalorder %s54_s28, %s54_s28 }
  0x14   :  { %p18847_p0 = scmp.ne.s32.totalorder %s54_s28, %s18846_s4  ;;  %p18852_p2 = scmp.lt.s32.totalorder %s18846_s4, %s18846_s4 }
  0x16   :  { %p18853_p3 = por %p18852_p2, %p18851_p1 }
  0x18   :  { %p18854_p4 = pnand %p18853_p3, %p18847_p0 }
  0x1a   :  { %18857 = shalt.err (!%p18854_p4)
}
  0x1b   :  { %s20644_s1 = sld [smem:[#allocation51_spill]]  ;;  %s18866_s5 = scalar_lea.vmem %s73_s30, 50176 }
  0x1c   :  { %p18867_p5 = scmp.ne.s32.totalorder %s73_s30, %s18866_s5  ;;  %p18871_p6 = scmp.lt.s32.totalorder %s73_s30, %s73_s30 }
  0x1d   :  { %p18872_p7 = scmp.lt.s32.totalorder %s18866_s5, %s18866_s5 }
  0x1f   :  { %p18873_p8 = por %p18872_p7, %p18871_p6 }
  0x21   :  { %56 = dma.hbm_to_vmem [thread:$0]  %s20644_s1, 128, %s54_s28, [#allocation10]  }
  0x22   :  { %p18874_p9 = pnand %p18873_p8, %p18867_p5 }
  0x24   :  { %18877 = shalt.err (!%p18874_p9)
}
  0x25   :  { %s19224_s24 = smov 448   ;;  %s19225_s6 = smov 28  }
  0x26   :  { %s20645_s2 = sld [smem:[#allocation53_spill]]  ;;  %s19226_s27 = smov [#allocation15]  }
  0x27   :  { %s96_s3 = sshll.u32 %s19226_s27, 4  ;;  %s97_s3 = int_to_ptr.vmem [resolvable:$true] %s96_s3 }
  0x28   :  { %s18886_s29 = scalar_lea.vmem %s97_s3, 28672  ;;  %p18891_p11 = scmp.lt.s32.totalorder %s97_s3, %s97_s3 }
  0x29   :  { %p18887_p10 = scmp.ne.s32.totalorder %s97_s3, %s18886_s29  ;;  %p18892_p12 = scmp.lt.s32.totalorder %s18886_s29, %s18886_s29 }
  0x2b   :  { %p18893_p13 = por %p18892_p12, %p18891_p11 }
  0x2c   :  { %78 = dma.hbm_to_vmem [thread:$0]  %s20645_s2, 50176, %s73_s30, [#allocation13], %s19224_s24, %s19224_s24, %s19225_s6  }
  0x2d   :  { %p18894_p0 = pnand %p18893_p13, %p18887_p10 }
  0x2f   :  { %18897 = shalt.err (!%p18894_p0)
}
  0x30   :  { %s19227_s28 = smov 256   ;;  %s19228_s4 = smov 16  }
  0x31   :  { %s20646_s1 = sld [smem:[#allocation56_spill]]  ;;  %s19229_s5 = smov [#allocation18]  }
  0x32   :  { %s120_s21 = sshll.u32 %s19229_s5, 4  ;;  %s121_s21 = int_to_ptr.vmem [resolvable:$true] %s120_s21 }
  0x33   :  { %s18906_s30 = scalar_lea.vmem %s121_s21, 4096  ;;  %p18911_p2 = scmp.lt.s32.totalorder %s121_s21, %s121_s21 }
  0x34   :  { %p18907_p1 = scmp.ne.s32.totalorder %s121_s21, %s18906_s30  ;;  %p18912_p3 = scmp.lt.s32.totalorder %s18906_s30, %s18906_s30 }
  0x36   :  { %p18913_p4 = por %p18912_p3, %p18911_p2 }
  0x37   :  { %102 = dma.hbm_to_vmem [thread:$0]  %s20646_s1, 28672, %s97_s3, [#allocation16], %s19227_s28, %s19227_s28, %s19228_s4  }
  0x38   :  { %p18914_p5 = pnand %p18913_p4, %p18907_p1 }
  0x3a   :  { %18917 = shalt.err (!%p18914_p5)
}
  0x3b   :  { %s19230_s24 = smov 64   ;;  %s19231_s6 = smov 4  }
  0x3c   :  { %126 = dma.hbm_to_vmem [thread:$0]  %s20621_s9, 4096, %s121_s21, [#allocation19], %s19230_s24, %s19230_s24, %s19231_s6  }
  0x3d   :  { %s19232_s2 = smov [#allocation21]  }
  0x3e   :  { %s144_s27 = sshll.u32 %s19232_s2, 4  ;;  %s145_s27 = int_to_ptr.vmem [resolvable:$true] %s144_s27 }
  0x3f   :  { %s18926_s3 = scalar_lea.vmem %s145_s27, 2048  ;;  %p18931_p7 = scmp.lt.s32.totalorder %s145_s27, %s145_s27 }
  0x40   :  { %p18927_p6 = scmp.ne.s32.totalorder %s145_s27, %s18926_s3  ;;  %p18932_p8 = scmp.lt.s32.totalorder %s18926_s3, %s18926_s3 }
  0x42   :  { %p18933_p9 = por %p18932_p8, %p18931_p7 }
  0x44   :  { %p18934_p10 = pnand %p18933_p9, %p18927_p6 }
  0x46   :  { %18937 = shalt.err (!%p18934_p10)
}
  0x47   :  { %s19233_s29 = smov 128   ;;  %s19234_s28 = smov 8  }
  0x48   :  { %150 = dma.hbm_to_vmem [thread:$0]  %s20624_s12, 2048, %s145_s27, [#allocation22], %s19233_s29, %s19233_s29, %s19234_s28  }
  0x49   :  { %s19235_s23 = smov [#allocation24]   ;;  %s19236_s9 = smov [#allocation6]  }
  0x4a   :  { %s171_s1 = sshll.u32 %s19235_s23, 4  ;;  %s43_s21 = sshll.u32 %s19236_s9, 4  ;;  %s172_s1 = int_to_ptr.vmem [resolvable:$true] %s171_s1  ;;  %s44_s21 = int_to_ptr.vmem [resolvable:$true] %s43_s21 }
  0x4b   :  { %s18946_s5 = scalar_lea.vmem %s172_s1, 512  ;;  %p18951_p12 = scmp.lt.s32.totalorder %s172_s1, %s172_s1 }
  0x4c   :  { %p18947_p11 = scmp.ne.s32.totalorder %s172_s1, %s18946_s5  ;;  %p18952_p13 = scmp.lt.s32.totalorder %s18946_s5, %s18946_s5 }
  0x4e   :  { %p18953_p0 = por %p18952_p13, %p18951_p12 }
  0x50   :  { %p18954_p1 = pnand %p18953_p0, %p18947_p11 }
  0x52   :  { %18957 = shalt.err (!%p18954_p1)
}
  0x53   :  { %174 = dma.hbm_to_vmem [thread:$0]  %s20627_s15, 512, %s172_s1, [#allocation25]  }
  0x54   :  { %s18966_s26 = scalar_lea.vmem %s44_s21, 896  ;;  %p18971_p3 = scmp.lt.s32.totalorder %s44_s21, %s44_s21 }
  0x55   :  { %p18967_p2 = scmp.ne.s32.totalorder %s44_s21, %s18966_s26  ;;  %p18972_p4 = scmp.lt.s32.totalorder %s18966_s26, %s18966_s26 }
  0x57   :  { %p18973_p5 = por %p18972_p4, %p18971_p3 }
  0x59   :  { %p18974_p6 = pnand %p18973_p5, %p18967_p2 }
  0x5b   :  { %18977 = shalt.err (!%p18974_p6)
}
  0x5c   :  { %s20647_s27 = sld [smem:[#allocation50_spill]]  ;;  %s19237_s3 = smov [#allocation11]  }
  0x5d   :  { %s63_s29 = sshll.u32 %s19237_s3, 4  ;;  %s19238_s28 = smov [#allocation14]   ;;  %s64_s29 = int_to_ptr.vmem [resolvable:$true] %s63_s29 }
  0x5e   :  { %s87_s4 = sshll.u32 %s19238_s28, 4  ;;  %s18986_s0 = scalar_lea.vmem %s64_s29, 320  ;;  %s88_s4 = int_to_ptr.vmem [resolvable:$true] %s87_s4 }
  0x5f   :  { %p18987_p7 = scmp.ne.s32.totalorder %s64_s29, %s18986_s0  ;;  %p18991_p8 = scmp.lt.s32.totalorder %s64_s29, %s64_s29 }
  0x60   :  { %p18992_p9 = scmp.lt.s32.totalorder %s18986_s0, %s18986_s0 }
  0x62   :  { %46 = dma.hbm_to_vmem [thread:$0]  %s20647_s27, 896, %s44_s21, [#allocation7]  }
  0x63   :  { %p18993_p10 = por %p18992_p9, %p18991_p8 }
  0x65   :  { %p18994_p11 = pnand %p18993_p10, %p18987_p7 }
  0x67   :  { %18997 = shalt.err (!%p18994_p11)
}
  0x68   :  { %s20648_s1 = sld [smem:[#allocation52_spill]]  ;;  %s19006_s9 = scalar_lea.vmem %s88_s4, 448 }
  0x69   :  { %p19007_p12 = scmp.ne.s32.totalorder %s88_s4, %s19006_s9  ;;  %p19011_p13 = scmp.lt.s32.totalorder %s88_s4, %s88_s4 }
  0x6a   :  { %p19012_p0 = scmp.lt.s32.totalorder %s19006_s9, %s19006_s9 }
  0x6c   :  { %p19013_p1 = por %p19012_p0, %p19011_p13 }
  0x6e   :  { %66 = dma.hbm_to_vmem [thread:$0]  %s20648_s1, 320, %s64_s29, [#allocation10]  }
  0x6f   :  { %p19014_p2 = pnand %p19013_p1, %p19007_p12 }
  0x71   :  { %19017 = shalt.err (!%p19014_p2)
}
  0x72   :  { %s20649_s30 = sld [smem:[#allocation55_spill]]  ;;  %s19239_s25 = smov [#allocation17]  }
  0x73   :  { %s111_s26 = sshll.u32 %s19239_s25, 4  ;;  %s19240_s12 = smov [#allocation20]   ;;  %s112_s26 = int_to_ptr.vmem [resolvable:$true] %s111_s26 }
  0x74   :  { %s135_s2 = sshll.u32 %s19240_s12, 4  ;;  %s19026_s27 = scalar_lea.vmem %s112_s26, 512  ;;  %s136_s2 = int_to_ptr.vmem [resolvable:$true] %s135_s2 }
  0x75   :  { %p19027_p3 = scmp.ne.s32.totalorder %s112_s26, %s19026_s27  ;;  %p19031_p4 = scmp.lt.s32.totalorder %s112_s26, %s112_s26 }
  0x76   :  { %p19032_p5 = scmp.lt.s32.totalorder %s19026_s27, %s19026_s27 }
  0x78   :  { %90 = dma.hbm_to_vmem [thread:$0]  %s20649_s30, 448, %s88_s4, [#allocation13]  }
  0x79   :  { %p19033_p6 = por %p19032_p5, %p19031_p4 }
  0x7b   :  { %p19034_p7 = pnand %p19033_p6, %p19027_p3 }
  0x7d   :  { %19037 = shalt.err (!%p19034_p7)
}
  0x7e   :  { %114 = dma.hbm_to_vmem [thread:$0]  %s20620_s8, 512, %s112_s26, [#allocation16]  }
  0x7f   :  { %s19046_s28 = scalar_lea.vmem %s136_s2, 128  ;;  %p19051_p9 = scmp.lt.s32.totalorder %s136_s2, %s136_s2 }
  0x80   :  { %p19047_p8 = scmp.ne.s32.totalorder %s136_s2, %s19046_s28  ;;  %p19052_p10 = scmp.lt.s32.totalorder %s19046_s28, %s19046_s28 }
  0x82   :  { %p19053_p11 = por %p19052_p10, %p19051_p9 }
  0x84   :  { %p19054_p12 = pnand %p19053_p11, %p19047_p8 }
  0x86   :  { %19057 = shalt.err (!%p19054_p12)
}
  0x87   :  { %138 = dma.hbm_to_vmem [thread:$0]  %s20623_s11, 128, %s136_s2, [#allocation19]  }
  0x88   :  { %s19241_s15 = smov [#allocation23]   ;;  %s19242_s1 = smov [#allocation26]  }
  0x89   :  { %s156_s23 = sshll.u32 %s19241_s15, 4  ;;  %s183_s9 = sshll.u32 %s19242_s1, 4  ;;  %s157_s23 = int_to_ptr.vmem [resolvable:$true] %s156_s23  ;;  %s184_s9 = int_to_ptr.vmem [resolvable:$true] %s183_s9 }
  0x8a   :  { %s19066_s21 = scalar_lea.vmem %s157_s23, 128  ;;  %p19071_p0 = scmp.lt.s32.totalorder %s157_s23, %s157_s23 }
  0x8b   :  { %p19067_p13 = scmp.ne.s32.totalorder %s157_s23, %s19066_s21  ;;  %p19072_p1 = scmp.lt.s32.totalorder %s19066_s21, %s19066_s21 }
  0x8d   :  { %p19073_p2 = por %p19072_p1, %p19071_p0 }
  0x8f   :  { %p19074_p3 = pnand %p19073_p2, %p19067_p13 }
  0x91   :  { %19077 = shalt.err (!%p19074_p3)
}
  0x92   :  { %162 = dma.hbm_to_vmem [thread:$0]  %s20625_s13, 128, %s157_s23, [#allocation22], %s19230_s24, %s19230_s24, %s19231_s6  }
  0x93   :  { %s19086_s11 = scalar_lea.vmem %s184_s9, 448  ;;  %p19091_p5 = scmp.lt.s32.totalorder %s184_s9, %s184_s9 }
  0x94   :  { %p19087_p4 = scmp.ne.s32.totalorder %s184_s9, %s19086_s11  ;;  %p19092_p6 = scmp.lt.s32.totalorder %s19086_s11, %s19086_s11 }
  0x96   :  { %p19093_p7 = por %p19092_p6, %p19091_p5 }
  0x98   :  { %p19094_p8 = pnand %p19093_p7, %p19087_p4 }
  0x9a   :  { %19097 = shalt.err (!%p19094_p8)
}
  0x9b   :  { %186 = dma.hbm_to_vmem [thread:$0]  %s20629_s17, 448, %s184_s9, [#allocation25]  }
  0x9c   :  { %19198 = dma.done.wait [#allocation7], 896  }
  0x9d   :  { %19199 = vsyncadd [#allocation7], 4294966400 }
  0x9e   :  { %19200 = dma.done.wait [#allocation10], 448  }
  0x9f   :  { %19201 = vsyncadd [#allocation10], 4294966848 }
  0xa0   :  { %19202 = dma.done.wait [#allocation13], 50624  }
  0xa1   :  { %19203 = vsyncadd [#allocation13], 4294916672 }
  0xa2   :  { %19204 = dma.done.wait [#allocation16], 29184  }
  0xa3   :  { %19205 = vsyncadd [#allocation16], 4294938112 }
  0xa4   :  { %19206 = dma.done.wait [#allocation19], 4224  }
  0xa5   :  { %19207 = vsyncadd [#allocation19], 4294963072 }
  0xa6   :  { %19208 = dma.done.wait [#allocation22], 2176  }
  0xa7   :  { %19209 = vsyncadd [#allocation22], 4294965120 }
  0xa8   :  { %19210 = dma.done.wait [#allocation25], 960  }
  0xa9   :  { %19211 = vsyncadd [#allocation25], 4294966336  ;;  %v16727_v0 = vld [vmem:[#allocation12 + $0x18c] ss:$28 sps:$4 sm:$0xff]   ;;  %v16733_v4 = vld [vmem:[#allocation12 + $0x154] ss:$28 sps:$4 sm:$0xff]  }
  0xaa   :  { %v16729_v1 = vld [vmem:[#allocation12 + $0x50c] ss:$28 sps:$4 sm:$0xff]   ;;  %2740 = vmatprep.subr.bf16.mxu0 %v16727_v0  ;;  %v16735_v5 = vld [vmem:[#allocation12 + $0x4d4] ss:$28 sps:$4 sm:$0xff]   ;;  %v16739_v8 = vld [vmem:[#allocation12 + $0x11c] ss:$28 sps:$4 sm:$0xff]  }
  0xab   :  { %v16731_v2 = vld [vmem:[#allocation12 + $0x188] ss:$28 sps:$4 sm:$0xff]   ;;  %2781 = vmatprep.subr.bf16.mxu1 %v16729_v1  ;;  %v16737_v6 = vld [vmem:[#allocation12 + $0x150] ss:$28 sps:$4 sm:$0xff]   ;;  %v16741_v9 = vld [vmem:[#allocation12 + $0x49c] ss:$28 sps:$4 sm:$0xff]  }
  0xac   :  { %v16732_v3 = vld [vmem:[#allocation12 + $0x508] ss:$28 sps:$4 sm:$0xff]   ;;  %2741 = vmatpush1.bf16.msra.mxu0 %v16731_v2  ;;  %v16738_v7 = vld [vmem:[#allocation12 + $0x4d0] ss:$28 sps:$4 sm:$0xff]   ;;  %v16743_v10 = vld [vmem:[#allocation12 + $0x118] ss:$28 sps:$4 sm:$0xff]  }
  0xad   :  { %2782 = vmatpush1.bf16.msra.mxu1 %v16732_v3  ;;  %2742 = vmatprep.subr.bf16.mxu0 %v16733_v4  ;;  %v16744_v11 = vld [vmem:[#allocation12 + $0x498] ss:$28 sps:$4 sm:$0xff]   ;;  %v16745_v12 = vld [vmem:[#allocation12 + $0xe4] ss:$28 sps:$4 sm:$0xff]   ;;  %v16751_v16 = vld [vmem:[#allocation12 + $0xac] ss:$28 sps:$4 sm:$0xff]  }
  0xae   :  { %2783 = vmatprep.subr.bf16.mxu1 %v16735_v5  ;;  %v16747_v13 = vld [vmem:[#allocation12 + $0x464] ss:$28 sps:$4 sm:$0xff]   ;;  %v16753_v17 = vld [vmem:[#allocation12 + $0x42c] ss:$28 sps:$4 sm:$0xff]   ;;  %v16757_v20 = vld [vmem:[#allocation12 + $0x74] ss:$28 sps:$4 sm:$0xff]  }
  0xaf   :  { %v16749_v14 = vld [vmem:[#allocation12 + $0xe0] ss:$28 sps:$4 sm:$0xff]   ;;  %v16755_v18 = vld [vmem:[#allocation12 + $0xa8] ss:$28 sps:$4 sm:$0xff]   ;;  %v16759_v21 = vld [vmem:[#allocation12 + $0x3f4] ss:$28 sps:$4 sm:$0xff]  }
  0xb0   :  { %2743 = vmatpush1.bf16.msra.mxu0 %v16737_v6  ;;  %v16750_v15 = vld [vmem:[#allocation12 + $0x460] ss:$28 sps:$4 sm:$0xff]   ;;  %v16756_v19 = vld [vmem:[#allocation12 + $0x428] ss:$28 sps:$4 sm:$0xff]   ;;  %v16761_v22 = vld [vmem:[#allocation12 + $0x70] ss:$28 sps:$4 sm:$0xff]  }
  0xb1   :  { %2784 = vmatpush1.bf16.msra.mxu1 %v16738_v7  ;;  %2744 = vmatprep.subr.bf16.mxu0 %v16739_v8  ;;  %v16762_v23 = vld [vmem:[#allocation12 + $0x3f0] ss:$28 sps:$4 sm:$0xff]   ;;  %v16763_v24 = vld [vmem:[#allocation12 + $0x3c] ss:$28 sps:$4 sm:$0xff]   ;;  %v16769_v28 = vld [vmem:[#allocation12 + $0x4] ss:$28 sps:$4 sm:$0xff]  }
  0xb2   :  { %2785 = vmatprep.subr.bf16.mxu1 %v16741_v9  ;;  %v16765_v25 = vld [vmem:[#allocation12 + $0x3bc] ss:$28 sps:$4 sm:$0xff]   ;;  %v16771_v29 = vld [vmem:[#allocation12 + $0x384] ss:$28 sps:$4 sm:$0xff]   ;;  %v16775_v32 = vld [vmem:[#allocation12 + $0x34c] ss:$28 sps:$4 sm:$0xff]  }
  0xb3   :  { %v16767_v26 = vld [vmem:[#allocation12 + $0x38] ss:$28 sps:$4 sm:$0xff]   ;;  %v16773_v30 = vld [vmem:[#allocation12] ss:$28 sps:$4 sm:$0xff]   ;;  %v16777_v33 = vld [vmem:[#allocation12 + $0x6cc] ss:$28 sps:$4 sm:$0xff]  }
  0xb4   :  { %2745 = vmatpush1.bf16.msra.mxu0 %v16743_v10  ;;  %v16768_v27 = vld [vmem:[#allocation12 + $0x3b8] ss:$28 sps:$4 sm:$0xff]   ;;  %v16774_v31 = vld [vmem:[#allocation12 + $0x380] ss:$28 sps:$4 sm:$0xff]   ;;  %v16779_v34 = vld [vmem:[#allocation12 + $0x348] ss:$28 sps:$4 sm:$0xff]  }
  0xb5   :  { %2786 = vmatpush1.bf16.msra.mxu1 %v16744_v11  ;;  %2746 = vmatprep.subr.bf16.mxu0 %v16745_v12  ;;  %v16780_v35 = vld [vmem:[#allocation12 + $0x6c8] ss:$28 sps:$4 sm:$0xff]   ;;  %v16781_v36 = vld [vmem:[#allocation12 + $0x314] ss:$28 sps:$4 sm:$0xff]   ;;  %v16787_v40 = vld [vmem:[#allocation12 + $0x2dc] ss:$28 sps:$4 sm:$0xff]  }
  0xb6   :  { %2787 = vmatprep.subr.bf16.mxu1 %v16747_v13  ;;  %v16783_v37 = vld [vmem:[#allocation12 + $0x694] ss:$28 sps:$4 sm:$0xff]   ;;  %v16789_v41 = vld [vmem:[#allocation12 + $0x65c] ss:$28 sps:$4 sm:$0xff]   ;;  %v16793_v44 = vld [vmem:[#allocation12 + $0x2a4] ss:$28 sps:$4 sm:$0xff]  }
  0xb7   :  { %v16785_v38 = vld [vmem:[#allocation12 + $0x310] ss:$28 sps:$4 sm:$0xff]   ;;  %v16791_v42 = vld [vmem:[#allocation12 + $0x2d8] ss:$28 sps:$4 sm:$0xff]   ;;  %v16795_v45 = vld [vmem:[#allocation12 + $0x624] ss:$28 sps:$4 sm:$0xff]  }
  0xb8   :  { %2747 = vmatpush1.bf16.msra.mxu0 %v16749_v14  ;;  %v16786_v39 = vld [vmem:[#allocation12 + $0x690] ss:$28 sps:$4 sm:$0xff]   ;;  %v16792_v43 = vld [vmem:[#allocation12 + $0x658] ss:$28 sps:$4 sm:$0xff]   ;;  %v16797_v47 = vld [vmem:[#allocation12 + $0x2a0] ss:$28 sps:$4 sm:$0xff]  }
  0xb9   :  { %2788 = vmatpush1.bf16.msra.mxu1 %v16750_v15  ;;  %2748 = vmatprep.subr.bf16.mxu0 %v16751_v16  ;;  %v263_v46 = vld [vmem:[#allocation6 + $0x8] sm:$0xff]  ;;  %v16798_v48 = vld [vmem:[#allocation12 + $0x620] ss:$28 sps:$4 sm:$0xff]   ;;  %v265_v50 = vld [vmem:[#allocation6 + $0x18] sm:$0xff]  ;;  %s20650_s24 = sld [smem:[#allocation54_spill]]  ;;  %vm3427_vm0 = vcmask 1043456  }
  0xba   :  { %2789 = vmatprep.subr.bf16.mxu1 %v16753_v17  ;;  %v19411_v49 = vpack.c.bf16 %v263_v46, %v263_v46  ;;  %v16799_v51 = vld [vmem:[#allocation12 + $0x26c] ss:$28 sps:$4 sm:$0xff]   ;;  %v19413_v52 = vpack.c.bf16 %v265_v50, %v265_v50  ;;  %v16805_v56 = vld [vmem:[#allocation12 + $0x234] ss:$28 sps:$4 sm:$0xff]   ;;  %v16811_v60 = vld [vmem:[#allocation12 + $0x1fc] ss:$28 sps:$4 sm:$0xff]  }
  0xbb   :  { %v16801_v53 = vld [vmem:[#allocation12 + $0x5ec] ss:$28 sps:$4 sm:$0xff]   ;;  %v16807_v57 = vld [vmem:[#allocation12 + $0x5b4] ss:$28 sps:$4 sm:$0xff]   ;;  %v16813_v61 = vld [vmem:[#allocation12 + $0x57c] ss:$28 sps:$4 sm:$0xff]  }
  0xbc   :  { %2749 = vmatpush1.bf16.msra.mxu0 %v16755_v18  ;;  %2772 = vmatprep.mubr.bf16.mxu0 %v19411_v49  ;;  %v16803_v54 = vld [vmem:[#allocation12 + $0x268] ss:$28 sps:$4 sm:$0xff]   ;;  %v16809_v58 = vld [vmem:[#allocation12 + $0x230] ss:$28 sps:$4 sm:$0xff]   ;;  %v16815_v62 = vld [vmem:[#allocation12 + $0x1f8] ss:$28 sps:$4 sm:$0xff]  }
  0xbd   :  { %2790 = vmatpush1.bf16.msra.mxu1 %v16756_v19  ;;  %2750 = vmatprep.subr.bf16.mxu0 %v16757_v20  ;;  %v16804_v55 = vld [vmem:[#allocation12 + $0x5e8] ss:$28 sps:$4 sm:$0xff]   ;;  %v16810_v59 = vld [vmem:[#allocation12 + $0x5b0] ss:$28 sps:$4 sm:$0xff]   ;;  %v16816_v63 = vld [vmem:[#allocation12 + $0x578] ss:$28 sps:$4 sm:$0xff]  }
  0xbe   :  { %2791 = vmatprep.subr.bf16.mxu1 %v16759_v21  ;;  %2813 = vmatprep.mubr.bf16.mxu1 %v19413_v52  ;;  %v16817_v0 = vld [vmem:[#allocation12 + $0x1c4] ss:$28 sps:$4 sm:$0xff]   ;;  %v262_v4 = vld [vmem:[#allocation6] sm:$0xff]  ;;  %v16837_v16 = vld [vmem:[#allocation12 + $0x81c] ss:$28 sps:$4 sm:$0xff]   ;;  %v19243_v18 = vmov 0  }
  0xbf   :  { %v16819_v1 = vld [vmem:[#allocation12 + $0x544] ss:$28 sps:$4 sm:$0xff]   ;;  %v16825_v6 = vld [vmem:[#allocation12 + $0x88c] ss:$28 sps:$4 sm:$0xff]   ;;  %v19417_v8 = vpack.c.bf16 %v262_v4, %v262_v4  ;;  %v16831_v12 = vld [vmem:[#allocation12 + $0x854] ss:$28 sps:$4 sm:$0xff]  }
  0xc0   :  { %2751 = vmatpush1.bf16.msra.mxu0 %v16761_v22  ;;  %v16821_v2 = vld [vmem:[#allocation12 + $0x1c0] ss:$28 sps:$4 sm:$0xff]   ;;  %v16828_v7 = vld [vmem:[#allocation12 + $0xc0c] ss:$28 sps:$4 sm:$0xff]   ;;  %v16834_v13 = vld [vmem:[#allocation12 + $0xbd4] ss:$28 sps:$4 sm:$0xff]  }
  0xc1   :  { %2792 = vmatpush1.bf16.msra.mxu1 %v16762_v23  ;;  %2752 = vmatprep.subr.bf16.mxu0 %v16763_v24  ;;  %v16822_v3 = vld [vmem:[#allocation12 + $0x540] ss:$28 sps:$4 sm:$0xff]   ;;  %v16823_v10 = vld [vmem:[#allocation12 + $0x888] ss:$28 sps:$4 sm:$0xff]   ;;  %v16829_v14 = vld [vmem:[#allocation12 + $0x850] ss:$28 sps:$4 sm:$0xff]  }
  0xc2   :  { %2793 = vmatprep.subr.bf16.mxu1 %v16765_v25  ;;  %v264_v5 = vld [vmem:[#allocation6 + $0x10] sm:$0xff]  ;;  %v16826_v11 = vld [vmem:[#allocation12 + $0xc08] ss:$28 sps:$4 sm:$0xff]   ;;  %v16832_v15 = vld [vmem:[#allocation12 + $0xbd0] ss:$28 sps:$4 sm:$0xff]   ;;  %vm19245_vm1 = vmmov 0  }
  0xc3   :  { %v19419_v9 = vpack.c.bf16 %v264_v5, %v264_v5  ;;  %v16840_v17 = vld [vmem:[#allocation12 + $0xb9c] ss:$28 sps:$4 sm:$0xff]   ;;  %v16843_v21 = vld [vmem:[#allocation12 + $0x7e4] ss:$28 sps:$4 sm:$0xff]   ;;  %v16849_v25 = vld [vmem:[#allocation12 + $0x7ac] ss:$28 sps:$4 sm:$0xff]  }
  0xc4   :  { %2753 = vmatpush1.bf16.msra.mxu0 %v16767_v26  ;;  %v16835_v19 = vld [vmem:[#allocation12 + $0x818] ss:$28 sps:$4 sm:$0xff]   ;;  %v16846_v22 = vld [vmem:[#allocation12 + $0xb64] ss:$28 sps:$4 sm:$0xff]   ;;  %v16852_v26 = vld [vmem:[#allocation12 + $0xb2c] ss:$28 sps:$4 sm:$0xff]  }
  0xc5   :  { %2794 = vmatpush1.bf16.msra.mxu1 %v16768_v27  ;;  %2754 = vmatprep.subr.bf16.mxu0 %v16769_v28  ;;  %v16838_v20 = vld [vmem:[#allocation12 + $0xb98] ss:$28 sps:$4 sm:$0xff]   ;;  %v16841_v23 = vld [vmem:[#allocation12 + $0x7e0] ss:$28 sps:$4 sm:$0xff]   ;;  %v16847_v27 = vld [vmem:[#allocation12 + $0x7a8] ss:$28 sps:$4 sm:$0xff]  }
  0xc6   :  { %2795 = vmatprep.subr.bf16.mxu1 %v16771_v29  ;;  %v16844_v24 = vld [vmem:[#allocation12 + $0xb60] ss:$28 sps:$4 sm:$0xff]   ;;  %v16850_v28 = vld [vmem:[#allocation12 + $0xb28] ss:$28 sps:$4 sm:$0xff]   ;;  %v16855_v29 = vld [vmem:[#allocation12 + $0x774] ss:$28 sps:$4 sm:$0xff]  }
  0xc7   :  { %v16871_v46 = vld [vmem:[#allocation12 + $0xa48] ss:$28 sps:$4 sm:$0xff]   ;;  %v16879_v50 = vld [vmem:[#allocation12 + $0xa14] ss:$28 sps:$4 sm:$0xff]   ;;  %v16906_v4 = vld [vmem:[#allocation12 + $0x7c] ss:$28 sps:$4 sm:$0xff]  }
  0xc8   :  { %2755 = vmatpush1.bf16.msra.mxu0 %v16773_v30  ;;  %v16858_v30 = vld [vmem:[#allocation12 + $0xaf4] ss:$28 sps:$4 sm:$0xff]   ;;  %vm4068_vm2 = vcmask 25600   ;;  %vm4101_vm3 = vcmask 1040384   ;;  %vm4114_vm4 = vcmask 31744   ;;  %vm6545_vm5 = vcmask 58368  }
  0xc9   :  { %2796 = vmatpush1.bf16.msra.mxu1 %v16774_v31  ;;  %2756 = vmatprep.subr.bf16.mxu0 %v16775_v32  ;;  %v16853_v31 = vld [vmem:[#allocation12 + $0x770] ss:$28 sps:$4 sm:$0xff]   ;;  %vm6583_vm6 = vcmask 64512   ;;  %vm7519_vm7 = vcmask 130048   ;;  %s19247_s15 = smov [#allocation3]  }
  0xca   :  { %2797 = vmatprep.subr.bf16.mxu1 %v16777_v33  ;;  %v16856_v32 = vld [vmem:[#allocation12 + $0xaf0] ss:$28 sps:$4 sm:$0xff]   ;;  %v16861_v33 = vld [vmem:[#allocation12 + $0x73c] ss:$28 sps:$4 sm:$0xff]   ;;  %s246_s23 = sshll.u32 %s19247_s15, 4  ;;  %s247_s23 = int_to_ptr.vmem [resolvable:$true] %s246_s23 }
  0xcb   :  { %v16901_v5 = vld [vmem:[#allocation12 + $0x930] ss:$28 sps:$4 sm:$0xff]  }
  0xcc   :  { %2757 = vmatpush2.bf16.msra.mxu0 %v16779_v34  ;;  %v16864_v34 = vld [vmem:[#allocation12 + $0xabc] ss:$28 sps:$4 sm:$0xff]  }
  0xcd   :  { %2798 = vmatpush2.bf16.msra.mxu1 %v16780_v35  ;;  %2758 = vmatprep.subr.bf16.mxu0 %v16781_v36  ;;  %v16859_v35 = vld [vmem:[#allocation12 + $0x738] ss:$28 sps:$4 sm:$0xff]  }
  0xce   :  { %2799 = vmatprep.subr.bf16.mxu1 %v16783_v37  ;;  %v267_v36 = vld [vmem:[#allocation6 + $0x28] sm:$0xff] }
  0xcf   :  { %v16862_v37 = vld [vmem:[#allocation12 + $0xab8] ss:$28 sps:$4 sm:$0xff]  }
  0xd0   :  { %2759 = vmatpush2.bf16.msra.mxu0 %v16785_v38  ;;  %v16867_v38 = vld [vmem:[#allocation12 + $0x704] ss:$28 sps:$4 sm:$0xff]  }
  0xd1   :  { %2800 = vmatpush2.bf16.msra.mxu1 %v16786_v39  ;;  %2760 = vmatprep.subr.bf16.mxu0 %v16787_v40  ;;  %v19424_v39 = vpack.c.bf16 %v267_v36, %v267_v36  ;;  %v16870_v40 = vld [vmem:[#allocation12 + $0xa84] ss:$28 sps:$4 sm:$0xff]   ;;  %v16945_v36 = vld [vmem:[#allocation12 + $0x274] ss:$28 sps:$4 sm:$0xff]  }
  0xd2   :  { %2801 = vmatprep.subr.bf16.mxu1 %v16789_v41  ;;  %v16865_v41 = vld [vmem:[#allocation12 + $0x700] ss:$28 sps:$4 sm:$0xff]  }
  0xd4   :  { %2761 = vmatpush2.bf16.msra.mxu0 %v16791_v42  ;;  %v16868_v42 = vld [vmem:[#allocation12 + $0xa80] ss:$28 sps:$4 sm:$0xff]  }
  0xd5   :  { %2802 = vmatpush2.bf16.msra.mxu1 %v16792_v43  ;;  %2762 = vmatprep.subr.bf16.mxu0 %v16793_v44  ;;  %v16873_v43 = vld [vmem:[#allocation12 + $0xa4c] ss:$28 sps:$4 sm:$0xff]   ;;  %v268_v44 = vld [vmem:[#allocation6 + $0x30] sm:$0xff] }
  0xd6   :  { %2803 = vmatprep.subr.bf16.mxu1 %v16795_v45  ;;  %v16876_v45 = vld [vmem:[#allocation12 + $0x194] ss:$28 sps:$4 sm:$0xff]  }
  0xd8   :  { %2763 = vmatpush2.bf16.msra.mxu0 %v16797_v47  ;;  %v19427_v47 = vpack.c.bf16 %v268_v44, %v268_v44  ;;  %v16952_v44 = vld [vmem:[#allocation12 + $0x3f8] ss:$28 sps:$4 sm:$0xff]  }
  0xd9   :  { %2804 = vmatpush2.bf16.msra.mxu1 %v16798_v48  ;;  %2764 = vmatprep.subr.bf16.mxu0 %v16799_v51  ;;  %v16874_v48 = vld [vmem:[#allocation12 + $0x190] ss:$28 sps:$4 sm:$0xff]   ;;  %v16882_v51 = vld [vmem:[#allocation12 + $0x15c] ss:$28 sps:$4 sm:$0xff]  }
  0xda   :  { %2805 = vmatprep.subr.bf16.mxu1 %v16801_v53  ;;  %v16877_v53 = vld [vmem:[#allocation12 + $0xa10] ss:$28 sps:$4 sm:$0xff]  }
  0xdc   :  { %2765 = vmatpush2.bf16.msra.mxu0 %v16803_v54  ;;  %v16880_v54 = vld [vmem:[#allocation12 + $0x158] ss:$28 sps:$4 sm:$0xff]  }
  0xdd   :  { %2806 = vmatpush2.bf16.msra.mxu1 %v16804_v55  ;;  %2766 = vmatprep.subr.bf16.mxu0 %v16805_v56  ;;  %v16885_v55 = vld [vmem:[#allocation12 + $0x9dc] ss:$28 sps:$4 sm:$0xff]   ;;  %v16888_v56 = vld [vmem:[#allocation12 + $0x124] ss:$28 sps:$4 sm:$0xff]  }
  0xde   :  { %2807 = vmatprep.subr.bf16.mxu1 %v16807_v57  ;;  %v16883_v57 = vld [vmem:[#allocation12 + $0x9d8] ss:$28 sps:$4 sm:$0xff]  }
  0xe0   :  { %2767 = vmatpush2.bf16.msra.mxu0 %v16809_v58  ;;  %v16886_v58 = vld [vmem:[#allocation12 + $0x120] ss:$28 sps:$4 sm:$0xff]  }
  0xe1   :  { %2808 = vmatpush2.bf16.msra.mxu1 %v16810_v59  ;;  %2768 = vmatprep.subr.bf16.mxu0 %v16811_v60  ;;  %v16891_v59 = vld [vmem:[#allocation12 + $0x9a4] ss:$28 sps:$4 sm:$0xff]   ;;  %v16894_v60 = vld [vmem:[#allocation12 + $0xec] ss:$28 sps:$4 sm:$0xff]  }
  0xe2   :  { %2809 = vmatprep.subr.bf16.mxu1 %v16813_v61  ;;  %v16889_v61 = vld [vmem:[#allocation12 + $0x9a0] ss:$28 sps:$4 sm:$0xff]  }
  0xe4   :  { %2769 = vmatpush2.bf16.msra.mxu0 %v16815_v62  ;;  %v16892_v62 = vld [vmem:[#allocation12 + $0xe8] ss:$28 sps:$4 sm:$0xff]  }
  0xe5   :  { %2810 = vmatpush2.bf16.msra.mxu1 %v16816_v63  ;;  %2770 = vmatprep.subr.bf16.mxu0 %v16817_v0  ;;  %v16897_v63 = vld [vmem:[#allocation12 + $0x96c] ss:$28 sps:$4 sm:$0xff]   ;;  %v16900_v0 = vld [vmem:[#allocation12 + $0xb4] ss:$28 sps:$4 sm:$0xff]  }
  0xe6   :  { %2811 = vmatprep.subr.bf16.mxu1 %v16819_v1  ;;  %v16895_v1 = vld [vmem:[#allocation12 + $0x968] ss:$28 sps:$4 sm:$0xff]  }
  0xe8   :  { %2771 = vmatpush2.bf16.msra.mxu0 %v16821_v2  ;;  %v16898_v2 = vld [vmem:[#allocation12 + $0xb0] ss:$28 sps:$4 sm:$0xff]  }
  0xe9   :  { %2812 = vmatpush2.bf16.msra.mxu1 %v16822_v3  ;;  %2822 = vmatprep.subr.bf16.mxu0 %v16825_v6  ;;  %v16903_v3 = vld [vmem:[#allocation12 + $0x934] ss:$28 sps:$4 sm:$0xff]  }
  0xea   :  { %2863 = vmatprep.subr.bf16.mxu1 %v16828_v7  ;;  %v16904_v6 = vld [vmem:[#allocation12 + $0x78] ss:$28 sps:$4 sm:$0xff]  }
  0xeb   :  { %2773 = vmatmul.mubr.bf16.vlgmr.msra.gmra.mxu0 %v19417_v8  ;;  %v16909_v7 = vld [vmem:[#allocation12 + $0x8fc] ss:$28 sps:$4 sm:$0xff]  }
  0xec   :  { %2814 = vmatmul.mubr.bf16.vlgmr.msra.gmra.mxu1 %v19419_v9  ;;  %2823 = vmatpush1.bf16.msra.mxu0 %v16823_v10  ;;  %v16912_v10 = vld [vmem:[#allocation12 + $0x44] ss:$28 sps:$4 sm:$0xff]  }
  0xed   :  { %2864 = vmatpush1.bf16.msra.mxu1 %v16826_v11  ;;  %2824 = vmatprep.subr.bf16.mxu0 %v16831_v12  ;;  %v16907_v11 = vld [vmem:[#allocation12 + $0x8f8] ss:$28 sps:$4 sm:$0xff]   ;;  %v16910_v12 = vld [vmem:[#allocation12 + $0x40] ss:$28 sps:$4 sm:$0xff]  }
  0xee   :  { %2865 = vmatprep.subr.bf16.mxu1 %v16834_v13  ;;  %2895 = vmatprep.mubr.bf16.mxu1 %v19243_v18  ;;  %v16915_v13 = vld [vmem:[#allocation12 + $0x8c4] ss:$28 sps:$4 sm:$0xff]  }
  0xef   :  { %2854 = vmatprep.mubr.bf16.mxu0 %v19424_v39 }
  0xf0   :  { %2825 = vmatpush1.bf16.msra.mxu0 %v16829_v14  ;;  %v16918_v14 = vld [vmem:[#allocation12 + $0xc] ss:$28 sps:$4 sm:$0xff]  }
  0xf1   :  { %2866 = vmatpush1.bf16.msra.mxu1 %v16832_v15  ;;  %2826 = vmatprep.subr.bf16.mxu0 %v16837_v16  ;;  %v16913_v15 = vld [vmem:[#allocation12 + $0x8c0] ss:$28 sps:$4 sm:$0xff]   ;;  %v16916_v16 = vld [vmem:[#allocation12 + $0x8] ss:$28 sps:$4 sm:$0xff]  }
  0xf2   :  { %2867 = vmatprep.subr.bf16.mxu1 %v16840_v17  ;;  %v266_v17 = vld [vmem:[#allocation6 + $0x20] sm:$0xff] }
  0xf4   :  { %2827 = vmatpush1.bf16.msra.mxu0 %v16835_v19  ;;  %v16921_v19 = vld [vmem:[#allocation12 + $0x354] ss:$28 sps:$4 sm:$0xff]  }
  0xf5   :  { %2868 = vmatpush1.bf16.msra.mxu1 %v16838_v20  ;;  %2828 = vmatprep.subr.bf16.mxu0 %v16843_v21  ;;  %v16924_v20 = vld [vmem:[#allocation12 + $0x514] ss:$28 sps:$4 sm:$0xff]   ;;  %v19431_v21 = vpack.c.bf16 %v266_v17, %v266_v17 }
  0xf6   :  { %2869 = vmatprep.subr.bf16.mxu1 %v16846_v22  ;;  %v16919_v22 = vld [vmem:[#allocation12 + $0x350] ss:$28 sps:$4 sm:$0xff]   ;;  %v17000_v17 = vld [vmem:[#allocation12 + $0x778] ss:$28 sps:$4 sm:$0xff]  }
  0xf8   :  { %2829 = vmatpush1.bf16.msra.mxu0 %v16841_v23  ;;  %v16922_v23 = vld [vmem:[#allocation12 + $0x510] ss:$28 sps:$4 sm:$0xff]  }
  0xf9   :  { %2870 = vmatpush1.bf16.msra.mxu1 %v16844_v24  ;;  %2830 = vmatprep.subr.bf16.mxu0 %v16849_v25  ;;  %v16927_v24 = vld [vmem:[#allocation12 + $0x31c] ss:$28 sps:$4 sm:$0xff]  }
  0xfa   :  { %2871 = vmatprep.subr.bf16.mxu1 %v16852_v26  ;;  %v16930_v25 = vld [vmem:[#allocation12 + $0x4dc] ss:$28 sps:$4 sm:$0xff]  }
  0xfb   :  { %v16925_v26 = vld [vmem:[#allocation12 + $0x318] ss:$28 sps:$4 sm:$0xff]  }
  0xfc   :  { %2831 = vmatpush1.bf16.msra.mxu0 %v16847_v27  ;;  %v16928_v27 = vld [vmem:[#allocation12 + $0x4d8] ss:$28 sps:$4 sm:$0xff]  }
  0xfd   :  { %2872 = vmatpush1.bf16.msra.mxu1 %v16850_v28  ;;  %2832 = vmatprep.subr.bf16.mxu0 %v16855_v29  ;;  %v16933_v28 = vld [vmem:[#allocation12 + $0x2e4] ss:$28 sps:$4 sm:$0xff]  }
  0xfe   :  { %2873 = vmatprep.subr.bf16.mxu1 %v16858_v30  ;;  %v16936_v29 = vld [vmem:[#allocation12 + $0x4a4] ss:$28 sps:$4 sm:$0xff]  }
  0xff   :  { %v16931_v30 = vld [vmem:[#allocation12 + $0x2e0] ss:$28 sps:$4 sm:$0xff]  }
 0x100   :  { %2833 = vmatpush1.bf16.msra.mxu0 %v16853_v31  ;;  %v16934_v31 = vld [vmem:[#allocation12 + $0x4a0] ss:$28 sps:$4 sm:$0xff]  }
 0x101   :  { %2874 = vmatpush1.bf16.msra.mxu1 %v16856_v32  ;;  %2834 = vmatprep.subr.bf16.mxu0 %v16861_v33  ;;  %v16939_v32 = vld [vmem:[#allocation12 + $0x2ac] ss:$28 sps:$4 sm:$0xff]  }
 0x102   :  { %2875 = vmatprep.subr.bf16.mxu1 %v16864_v34  ;;  %v16942_v33 = vld [vmem:[#allocation12 + $0x46c] ss:$28 sps:$4 sm:$0xff]  }
 0x103   :  { %v16937_v34 = vld [vmem:[#allocation12 + $0x2a8] ss:$28 sps:$4 sm:$0xff]  }
 0x104   :  { %2835 = vmatpush1.bf16.msra.mxu0 %v16859_v35  ;;  %v16940_v35 = vld [vmem:[#allocation12 + $0x468] ss:$28 sps:$4 sm:$0xff]  }
 0x105   :  { %2876 = vmatpush1.bf16.msra.mxu1 %v16862_v37  ;;  %2836 = vmatprep.subr.bf16.mxu0 %v16867_v38  ;;  %v16948_v37 = vld [vmem:[#allocation12 + $0x434] ss:$28 sps:$4 sm:$0xff]  }
 0x106   :  { %2877 = vmatprep.subr.bf16.mxu1 %v16870_v40  ;;  %v16943_v38 = vld [vmem:[#allocation12 + $0x270] ss:$28 sps:$4 sm:$0xff]  }
 0x107   :  { %v16946_v40 = vld [vmem:[#allocation12 + $0x430] ss:$28 sps:$4 sm:$0xff]  }
 0x108   :  { %2837 = vmatpush1.bf16.msra.mxu0 %v16865_v41  ;;  %v16951_v41 = vld [vmem:[#allocation12 + $0x23c] ss:$28 sps:$4 sm:$0xff]  }
 0x109   :  { %2878 = vmatpush1.bf16.msra.mxu1 %v16868_v42  ;;  %2838 = vmatprep.subr.bf16.mxu0 %v16873_v43  ;;  %v16954_v42 = vld [vmem:[#allocation12 + $0x3fc] ss:$28 sps:$4 sm:$0xff]  }
 0x10a   :  { %2904 = vmatprep.subr.bf16.mxu1 %v16876_v45  ;;  %v16949_v43 = vld [vmem:[#allocation12 + $0x238] ss:$28 sps:$4 sm:$0xff]   ;;  %v16957_v45 = vld [vmem:[#allocation12 + $0x204] ss:$28 sps:$4 sm:$0xff]  }
 0x10c   :  { %2896 = vmatmul.mubr.bf16.vlgmr.msra.gmra.mxu1 %v19427_v47  ;;  %2839 = vmatpush2.bf16.msra.mxu0 %v16871_v46  ;;  %v16960_v46 = vld [vmem:[#allocation12 + $0x3c4] ss:$28 sps:$4 sm:$0xff]  }
 0x10d   :  { %2905 = vmatpush1.bf16.msra.mxu1 %v16874_v48  ;;  %2840 = vmatprep.subr.bf16.mxu0 %v16879_v50  ;;  %v16955_v48 = vld [vmem:[#allocation12 + $0x200] ss:$28 sps:$4 sm:$0xff]  }
 0x10e   :  { %2906 = vmatprep.subr.bf16.mxu1 %v16882_v51  ;;  %2936 = vmatprep.mubr.bf16.mxu1 %v19411_v49  ;;  %v16958_v50 = vld [vmem:[#allocation12 + $0x3c0] ss:$28 sps:$4 sm:$0xff]   ;;  %v16963_v51 = vld [vmem:[#allocation12 + $0x1cc] ss:$28 sps:$4 sm:$0xff]  }
 0x110   :  { %2841 = vmatpush2.bf16.msra.mxu0 %v16877_v53  ;;  %v16966_v53 = vld [vmem:[#allocation12 + $0x38c] ss:$28 sps:$4 sm:$0xff]  }
 0x111   :  { %2907 = vmatpush1.bf16.msra.mxu1 %v16880_v54  ;;  %2842 = vmatprep.subr.bf16.mxu0 %v16885_v55  ;;  %v16961_v54 = vld [vmem:[#allocation12 + $0x1c8] ss:$28 sps:$4 sm:$0xff]  }
 0x112   :  { %2908 = vmatprep.subr.bf16.mxu1 %v16888_v56  ;;  %v16964_v55 = vld [vmem:[#allocation12 + $0x388] ss:$28 sps:$4 sm:$0xff]   ;;  %v16969_v56 = vld [vmem:[#allocation12 + $0x6d4] ss:$28 sps:$4 sm:$0xff]  }
 0x114   :  { %2843 = vmatpush2.bf16.msra.mxu0 %v16883_v57  ;;  %v16972_v57 = vld [vmem:[#allocation12 + $0x894] ss:$28 sps:$4 sm:$0xff]  }
 0x115   :  { %2909 = vmatpush1.bf16.msra.mxu1 %v16886_v58  ;;  %2844 = vmatprep.subr.bf16.mxu0 %v16891_v59  ;;  %v16967_v58 = vld [vmem:[#allocation12 + $0x6d0] ss:$28 sps:$4 sm:$0xff]  }
 0x116   :  { %2910 = vmatprep.subr.bf16.mxu1 %v16894_v60  ;;  %v16970_v59 = vld [vmem:[#allocation12 + $0x890] ss:$28 sps:$4 sm:$0xff]   ;;  %v16975_v60 = vld [vmem:[#allocation12 + $0x69c] ss:$28 sps:$4 sm:$0xff]  }
 0x118   :  { %2845 = vmatpush2.bf16.msra.mxu0 %v16889_v61  ;;  %v16978_v61 = vld [vmem:[#allocation12 + $0x85c] ss:$28 sps:$4 sm:$0xff]  }
 0x119   :  { %2911 = vmatpush1.bf16.msra.mxu1 %v16892_v62  ;;  %2846 = vmatprep.subr.bf16.mxu0 %v16897_v63  ;;  %v16973_v62 = vld [vmem:[#allocation12 + $0x698] ss:$28 sps:$4 sm:$0xff]  }
 0x11a   :  { %2912 = vmatprep.subr.bf16.mxu1 %v16900_v0  ;;  %v16976_v63 = vld [vmem:[#allocation12 + $0x858] ss:$28 sps:$4 sm:$0xff]   ;;  %v16981_v0 = vld [vmem:[#allocation12 + $0x664] ss:$28 sps:$4 sm:$0xff]  }
 0x11c   :  { %2847 = vmatpush2.bf16.msra.mxu0 %v16895_v1  ;;  %v16984_v1 = vld [vmem:[#allocation12 + $0x824] ss:$28 sps:$4 sm:$0xff]  }
 0x11d   :  { %2913 = vmatpush1.bf16.msra.mxu1 %v16898_v2  ;;  %2848 = vmatprep.subr.bf16.mxu0 %v16903_v3  ;;  %v16979_v2 = vld [vmem:[#allocation12 + $0x660] ss:$28 sps:$4 sm:$0xff]  }
 0x11e   :  { %2914 = vmatprep.subr.bf16.mxu1 %v16906_v4  ;;  %v16982_v3 = vld [vmem:[#allocation12 + $0x820] ss:$28 sps:$4 sm:$0xff]   ;;  %v16987_v4 = vld [vmem:[#allocation12 + $0x62c] ss:$28 sps:$4 sm:$0xff]  }
 0x120   :  { %2849 = vmatpush2.bf16.msra.mxu0 %v16901_v5  ;;  %v16990_v5 = vld [vmem:[#allocation12 + $0x7ec] ss:$28 sps:$4 sm:$0xff]  }
 0x121   :  { %2915 = vmatpush1.bf16.msra.mxu1 %v16904_v6  ;;  %2850 = vmatprep.subr.bf16.mxu0 %v16909_v7  ;;  %v16985_v6 = vld [vmem:[#allocation12 + $0x628] ss:$28 sps:$4 sm:$0xff]  }
 0x122   :  { %2916 = vmatprep.subr.bf16.mxu1 %v16912_v10  ;;  %v16988_v7 = vld [vmem:[#allocation12 + $0x7e8] ss:$28 sps:$4 sm:$0xff]   ;;  %v16993_v10 = vld [vmem:[#allocation12 + $0x5f4] ss:$28 sps:$4 sm:$0xff]  }
 0x124   :  { %2851 = vmatpush2.bf16.msra.mxu0 %v16907_v11  ;;  %v16996_v11 = vld [vmem:[#allocation12 + $0x7b4] ss:$28 sps:$4 sm:$0xff]  }
 0x125   :  { %2917 = vmatpush1.bf16.msra.mxu1 %v16910_v12  ;;  %2852 = vmatprep.subr.bf16.mxu0 %v16915_v13  ;;  %v16991_v12 = vld [vmem:[#allocation12 + $0x5f0] ss:$28 sps:$4 sm:$0xff]  }
 0x126   :  { %2918 = vmatprep.subr.bf16.mxu1 %v16918_v14  ;;  %v16994_v13 = vld [vmem:[#allocation12 + $0x7b0] ss:$28 sps:$4 sm:$0xff]   ;;  %v16999_v14 = vld [vmem:[#allocation12 + $0x5bc] ss:$28 sps:$4 sm:$0xff]  }
 0x128   :  { %2853 = vmatpush2.bf16.msra.mxu0 %v16913_v15  ;;  %v17002_v15 = vld [vmem:[#allocation12 + $0x77c] ss:$28 sps:$4 sm:$0xff]  }
 0x129   :  { %2919 = vmatpush1.bf16.msra.mxu1 %v16916_v16  ;;  %2945 = vmatprep.subr.bf16.mxu0 %v16924_v20  ;;  %v16997_v16 = vld [vmem:[#allocation12 + $0x5b8] ss:$28 sps:$4 sm:$0xff]   ;;  %v17008_v20 = vld [vmem:[#allocation12 + $0x744] ss:$28 sps:$4 sm:$0xff]  }
 0x12a   :  { %2920 = vmatprep.subr.bf16.mxu1 %v16921_v19  ;;  %v17005_v19 = vld [vmem:[#allocation12 + $0x584] ss:$28 sps:$4 sm:$0xff]  }
 0x12b   :  { %2855 = vmatmul.mubr.bf16.vlgmr.msra.gmra.mxu0 %v19431_v21 }
 0x12c   :  { %2946 = vmatpush1.bf16.msra.mxu0 %v16922_v23  ;;  %2977 = vmatprep.mubr.bf16.mxu0 %v19413_v52  ;;  %v17006_v23 = vld [vmem:[#allocation12 + $0x740] ss:$28 sps:$4 sm:$0xff]  }
 0x12d   :  { %2921 = vmatpush2.bf16.msra.mxu1 %v16919_v22  ;;  %2947 = vmatprep.subr.bf16.mxu0 %v16930_v25  ;;  %v17003_v22 = vld [vmem:[#allocation12 + $0x580] ss:$28 sps:$4 sm:$0xff]   ;;  %v17014_v25 = vld [vmem:[#allocation12 + $0x70c] ss:$28 sps:$4 sm:$0xff]  }
 0x12e   :  { %2922 = vmatprep.subr.bf16.mxu1 %v16927_v24  ;;  %v17011_v24 = vld [vmem:[#allocation12 + $0x54c] ss:$28 sps:$4 sm:$0xff]  }
 0x130   :  { %2948 = vmatpush1.bf16.msra.mxu0 %v16928_v27  ;;  %v17012_v27 = vld [vmem:[#allocation12 + $0x708] ss:$28 sps:$4 sm:$0xff]  }
 0x131   :  { %2923 = vmatpush2.bf16.msra.mxu1 %v16925_v26  ;;  %2949 = vmatprep.subr.bf16.mxu0 %v16936_v29  ;;  %v17009_v26 = vld [vmem:[#allocation12 + $0x548] ss:$28 sps:$4 sm:$0xff]   ;;  %v17020_v29 = vld [vmem:[#allocation12 + $0xc14] ss:$28 sps:$4 sm:$0xff]  }
 0x132   :  { %2924 = vmatprep.subr.bf16.mxu1 %v16933_v28  ;;  %v17017_v28 = vld [vmem:[#allocation12 + $0xa54] ss:$28 sps:$4 sm:$0xff]  }
 0x134   :  { %2950 = vmatpush1.bf16.msra.mxu0 %v16934_v31  ;;  %v17018_v31 = vld [vmem:[#allocation12 + $0xc10] ss:$28 sps:$4 sm:$0xff]  }
 0x135   :  { %2925 = vmatpush2.bf16.msra.mxu1 %v16931_v30  ;;  %2951 = vmatprep.subr.bf16.mxu0 %v16942_v33  ;;  %v17015_v30 = vld [vmem:[#allocation12 + $0xa50] ss:$28 sps:$4 sm:$0xff]   ;;  %v17026_v33 = vld [vmem:[#allocation12 + $0xbdc] ss:$28 sps:$4 sm:$0xff]  }
 0x136   :  { %2926 = vmatprep.subr.bf16.mxu1 %v16939_v32  ;;  %v17023_v32 = vld [vmem:[#allocation12 + $0xa1c] ss:$28 sps:$4 sm:$0xff]  }
 0x138   :  { %2952 = vmatpush1.bf16.msra.mxu0 %v16940_v35  ;;  %v17024_v35 = vld [vmem:[#allocation12 + $0xbd8] ss:$28 sps:$4 sm:$0xff]  }
 0x139   :  { %2927 = vmatpush2.bf16.msra.mxu1 %v16937_v34  ;;  %2953 = vmatprep.subr.bf16.mxu0 %v16948_v37  ;;  %v17021_v34 = vld [vmem:[#allocation12 + $0xa18] ss:$28 sps:$4 sm:$0xff]   ;;  %v17032_v37 = vld [vmem:[#allocation12 + $0xba4] ss:$28 sps:$4 sm:$0xff]  }
 0x13a   :  { %2928 = vmatprep.subr.bf16.mxu1 %v16945_v36  ;;  %v17029_v36 = vld [vmem:[#allocation12 + $0x9e4] ss:$28 sps:$4 sm:$0xff]  }
 0x13c   :  { %2954 = vmatpush1.bf16.msra.mxu0 %v16946_v40  ;;  %v17030_v40 = vld [vmem:[#allocation12 + $0xba0] ss:$28 sps:$4 sm:$0xff]  }
 0x13d   :  { %2929 = vmatpush2.bf16.msra.mxu1 %v16943_v38  ;;  %2955 = vmatprep.subr.bf16.mxu0 %v16954_v42  ;;  %v17027_v38 = vld [vmem:[#allocation12 + $0x9e0] ss:$28 sps:$4 sm:$0xff]   ;;  %v17038_v42 = vld [vmem:[#allocation12 + $0xb6c] ss:$28 sps:$4 sm:$0xff]  }
 0x13e   :  { %2930 = vmatprep.subr.bf16.mxu1 %v16951_v41  ;;  %v17035_v41 = vld [vmem:[#allocation12 + $0x9ac] ss:$28 sps:$4 sm:$0xff]  }
 0x140   :  { %2956 = vmatpush1.bf16.msra.mxu0 %v16952_v44  ;;  %v17036_v44 = vld [vmem:[#allocation12 + $0xb68] ss:$28 sps:$4 sm:$0xff]  }
 0x141   :  { %2931 = vmatpush2.bf16.msra.mxu1 %v16949_v43  ;;  %2957 = vmatprep.subr.bf16.mxu0 %v16960_v46  ;;  %v17033_v43 = vld [vmem:[#allocation12 + $0x9a8] ss:$28 sps:$4 sm:$0xff]   ;;  %v17044_v46 = vld [vmem:[#allocation12 + $0xb34] ss:$28 sps:$4 sm:$0xff]  }
 0x142   :  { %2932 = vmatprep.subr.bf16.mxu1 %v16957_v45  ;;  %v17041_v45 = vld [vmem:[#allocation12 + $0x974] ss:$28 sps:$4 sm:$0xff]  }
 0x144   :  { %2958 = vmatpush1.bf16.msra.mxu0 %v16958_v50  ;;  %v17042_v50 = vld [vmem:[#allocation12 + $0xb30] ss:$28 sps:$4 sm:$0xff]  }
 0x145   :  { %2933 = vmatpush2.bf16.msra.mxu1 %v16955_v48  ;;  %2959 = vmatprep.subr.bf16.mxu0 %v16966_v53  ;;  %v17039_v48 = vld [vmem:[#allocation12 + $0x970] ss:$28 sps:$4 sm:$0xff]   ;;  %v17050_v53 = vld [vmem:[#allocation12 + $0xafc] ss:$28 sps:$4 sm:$0xff]  }
 0x146   :  { %2934 = vmatprep.subr.bf16.mxu1 %v16963_v51  ;;  %v17047_v51 = vld [vmem:[#allocation12 + $0x93c] ss:$28 sps:$4 sm:$0xff]  }
 0x148   :  { %2960 = vmatpush1.bf16.msra.mxu0 %v16964_v55  ;;  %v17048_v55 = vld [vmem:[#allocation12 + $0xaf8] ss:$28 sps:$4 sm:$0xff]  }
 0x149   :  { %2935 = vmatpush2.bf16.msra.mxu1 %v16961_v54  ;;  %2961 = vmatprep.subr.bf16.mxu0 %v16969_v56  ;;  %v17045_v54 = vld [vmem:[#allocation12 + $0x938] ss:$28 sps:$4 sm:$0xff]   ;;  %v17053_v56 = vld [vmem:[#allocation12 + $0x904] ss:$28 sps:$4 sm:$0xff]  }
 0x14a   :  { %2986 = vmatprep.subr.bf16.mxu1 %v16972_v57  ;;  %v17056_v57 = vld [vmem:[#allocation12 + $0xac4] ss:$28 sps:$4 sm:$0xff]  }
 0x14c   :  { %2937 = vmatmul.mubr.bf16.vlgmr.msra.gmra.mxu1 %v19417_v8  ;;  %2962 = vmatpush2.bf16.msra.mxu0 %v16967_v58  ;;  %v17051_v58 = vld [vmem:[#allocation12 + $0x900] ss:$28 sps:$4 sm:$0xff]  }
 0x14d   :  { %2987 = vmatpush1.bf16.msra.mxu1 %v16970_v59  ;;  %2963 = vmatprep.subr.bf16.mxu0 %v16975_v60  ;;  %v17054_v59 = vld [vmem:[#allocation12 + $0xac0] ss:$28 sps:$4 sm:$0xff]   ;;  %v17059_v60 = vld [vmem:[#allocation12 + $0x8cc] ss:$28 sps:$4 sm:$0xff]  }
 0x14e   :  { %2988 = vmatprep.subr.bf16.mxu1 %v16978_v61  ;;  %3018 = vmatprep.mubr.bf16.mxu1 %v19424_v39  ;;  %v17062_v61 = vld [vmem:[#allocation12 + $0xa8c] ss:$28 sps:$4 sm:$0xff]  }
 0x150   :  { %2964 = vmatpush2.bf16.msra.mxu0 %v16973_v62  ;;  %v17057_v62 = vld [vmem:[#allocation12 + $0x8c8] ss:$28 sps:$4 sm:$0xff]  }
 0x151   :  { %2989 = vmatpush1.bf16.msra.mxu1 %v16976_v63  ;;  %2965 = vmatprep.subr.bf16.mxu0 %v16981_v0  ;;  %v17060_v63 = vld [vmem:[#allocation12 + $0xa88] ss:$28 sps:$4 sm:$0xff]   ;;  %v17065_v0 = vld [vmem:[#allocation12 + $0x19c] ss:$28 sps:$4 sm:$0xff]  }
 0x152   :  { %2990 = vmatprep.subr.bf16.mxu1 %v16984_v1  ;;  %v17068_v1 = vld [vmem:[#allocation12 + $0x51c] ss:$28 sps:$4 sm:$0xff]  }
 0x154   :  { %2966 = vmatpush2.bf16.msra.mxu0 %v16979_v2  ;;  %v17063_v2 = vld [vmem:[#allocation12 + $0x198] ss:$28 sps:$4 sm:$0xff]  }
 0x155   :  { %2991 = vmatpush1.bf16.msra.mxu1 %v16982_v3  ;;  %2967 = vmatprep.subr.bf16.mxu0 %v16987_v4  ;;  %v17066_v3 = vld [vmem:[#allocation12 + $0x518] ss:$28 sps:$4 sm:$0xff]   ;;  %v17071_v4 = vld [vmem:[#allocation12 + $0x164] ss:$28 sps:$4 sm:$0xff]  }
 0x156   :  { %2992 = vmatprep.subr.bf16.mxu1 %v16990_v5  ;;  %v17074_v5 = vld [vmem:[#allocation12 + $0x4e4] ss:$28 sps:$4 sm:$0xff]  }
 0x158   :  { %2968 = vmatpush2.bf16.msra.mxu0 %v16985_v6  ;;  %v17069_v6 = vld [vmem:[#allocation12 + $0x160] ss:$28 sps:$4 sm:$0xff]  }
 0x159   :  { %2993 = vmatpush1.bf16.msra.mxu1 %v16988_v7  ;;  %2969 = vmatprep.subr.bf16.mxu0 %v16993_v10  ;;  %v17072_v7 = vld [vmem:[#allocation12 + $0x4e0] ss:$28 sps:$4 sm:$0xff]   ;;  %v17077_v10 = vld [vmem:[#allocation12 + $0x12c] ss:$28 sps:$4 sm:$0xff]  }
 0x15a   :  { %2994 = vmatprep.subr.bf16.mxu1 %v16996_v11  ;;  %v17080_v11 = vld [vmem:[#allocation12 + $0x4ac] ss:$28 sps:$4 sm:$0xff]  }
 0x15c   :  { %2970 = vmatpush2.bf16.msra.mxu0 %v16991_v12  ;;  %v17075_v12 = vld [vmem:[#allocation12 + $0x128] ss:$28 sps:$4 sm:$0xff]  }
 0x15d   :  { %2995 = vmatpush1.bf16.msra.mxu1 %v16994_v13  ;;  %2971 = vmatprep.subr.bf16.mxu0 %v16999_v14  ;;  %v17078_v13 = vld [vmem:[#allocation12 + $0x4a8] ss:$28 sps:$4 sm:$0xff]   ;;  %v17083_v14 = vld [vmem:[#allocation12 + $0xf4] ss:$28 sps:$4 sm:$0xff]  }
 0x15e   :  { %2996 = vmatprep.subr.bf16.mxu1 %v17002_v15  ;;  %v17086_v15 = vld [vmem:[#allocation12 + $0x474] ss:$28 sps:$4 sm:$0xff]  }
 0x160   :  { %2972 = vmatpush2.bf16.msra.mxu0 %v16997_v16  ;;  %v17081_v16 = vld [vmem:[#allocation12 + $0xf0] ss:$28 sps:$4 sm:$0xff]  }
 0x161   :  { %2997 = vmatpush1.bf16.msra.mxu1 %v17000_v17  ;;  %2973 = vmatprep.subr.bf16.mxu0 %v17005_v19  ;;  %v17084_v17 = vld [vmem:[#allocation12 + $0x470] ss:$28 sps:$4 sm:$0xff]   ;;  %v17089_v19 = vld [vmem:[#allocation12 + $0xbc] ss:$28 sps:$4 sm:$0xff]  }
 0x162   :  { %2998 = vmatprep.subr.bf16.mxu1 %v17008_v20  ;;  %v17092_v20 = vld [vmem:[#allocation12 + $0x43c] ss:$28 sps:$4 sm:$0xff]  }
 0x164   :  { %2974 = vmatpush2.bf16.msra.mxu0 %v17003_v22  ;;  %v17087_v22 = vld [vmem:[#allocation12 + $0xb8] ss:$28 sps:$4 sm:$0xff]  }
 0x165   :  { %2999 = vmatpush1.bf16.msra.mxu1 %v17006_v23  ;;  %2975 = vmatprep.subr.bf16.mxu0 %v17011_v24  ;;  %v17090_v23 = vld [vmem:[#allocation12 + $0x438] ss:$28 sps:$4 sm:$0xff]   ;;  %v17095_v24 = vld [vmem:[#allocation12 + $0x84] ss:$28 sps:$4 sm:$0xff]  }
 0x166   :  { %3000 = vmatprep.subr.bf16.mxu1 %v17014_v25  ;;  %v17098_v25 = vld [vmem:[#allocation12 + $0x404] ss:$28 sps:$4 sm:$0xff]  }
 0x168   :  { %2976 = vmatpush2.bf16.msra.mxu0 %v17009_v26  ;;  %v17093_v26 = vld [vmem:[#allocation12 + $0x80] ss:$28 sps:$4 sm:$0xff]  }
 0x169   :  { %3001 = vmatpush1.bf16.msra.mxu1 %v17012_v27  ;;  %3027 = vmatprep.subr.bf16.mxu0 %v17020_v29  ;;  %v17096_v27 = vld [vmem:[#allocation12 + $0x400] ss:$28 sps:$4 sm:$0xff]   ;;  %v17104_v29 = vld [vmem:[#allocation12 + $0x3cc] ss:$28 sps:$4 sm:$0xff]  }
 0x16a   :  { %3002 = vmatprep.subr.bf16.mxu1 %v17017_v28  ;;  %v17101_v28 = vld [vmem:[#allocation12 + $0x4c] ss:$28 sps:$4 sm:$0xff]  }
 0x16b   :  { %2978 = vmatmul.mubr.bf16.vlgmr.msra.gmra.mxu0 %v19419_v9 }
 0x16c   :  { %3028 = vmatpush1.bf16.msra.mxu0 %v17018_v31  ;;  %3059 = vmatprep.mubr.bf16.mxu0 %v19243_v18  ;;  %v17102_v31 = vld [vmem:[#allocation12 + $0x3c8] ss:$28 sps:$4 sm:$0xff]  }
 0x16d   :  { %3003 = vmatpush2.bf16.msra.mxu1 %v17015_v30  ;;  %3029 = vmatprep.subr.bf16.mxu0 %v17026_v33  ;;  %v17099_v30 = vld [vmem:[#allocation12 + $0x48] ss:$28 sps:$4 sm:$0xff]   ;;  %v17110_v33 = vld [vmem:[#allocation12 + $0x394] ss:$28 sps:$4 sm:$0xff]  }
 0x16e   :  { %3004 = vmatprep.subr.bf16.mxu1 %v17023_v32  ;;  %v17107_v32 = vld [vmem:[#allocation12 + $0x14] ss:$28 sps:$4 sm:$0xff]  }
 0x170   :  { %3030 = vmatpush1.bf16.msra.mxu0 %v17024_v35  ;;  %v17108_v35 = vld [vmem:[#allocation12 + $0x390] ss:$28 sps:$4 sm:$0xff]  }
 0x171   :  { %3005 = vmatpush2.bf16.msra.mxu1 %v17021_v34  ;;  %3031 = vmatprep.subr.bf16.mxu0 %v17032_v37  ;;  %v17105_v34 = vld [vmem:[#allocation12 + $0x10] ss:$28 sps:$4 sm:$0xff]   ;;  %v17116_v37 = vld [vmem:[#allocation12 + $0x6dc] ss:$28 sps:$4 sm:$0xff]  }
 0x172   :  { %3006 = vmatprep.subr.bf16.mxu1 %v17029_v36  ;;  %v17113_v36 = vld [vmem:[#allocation12 + $0x35c] ss:$28 sps:$4 sm:$0xff]  }
 0x174   :  { %3032 = vmatpush1.bf16.msra.mxu0 %v17030_v40  ;;  %v17114_v40 = vld [vmem:[#allocation12 + $0x6d8] ss:$28 sps:$4 sm:$0xff]  }
 0x175   :  { %3007 = vmatpush2.bf16.msra.mxu1 %v17027_v38  ;;  %3033 = vmatprep.subr.bf16.mxu0 %v17038_v42  ;;  %v17111_v38 = vld [vmem:[#allocation12 + $0x358] ss:$28 sps:$4 sm:$0xff]   ;;  %v17122_v42 = vld [vmem:[#allocation12 + $0x6a4] ss:$28 sps:$4 sm:$0xff]  }
 0x176   :  { %3008 = vmatprep.subr.bf16.mxu1 %v17035_v41  ;;  %v17119_v41 = vld [vmem:[#allocation12 + $0x324] ss:$28 sps:$4 sm:$0xff]  }
 0x178   :  { %3034 = vmatpush1.bf16.msra.mxu0 %v17036_v44 }
 0x179   :  { %3009 = vmatpush2.bf16.msra.mxu1 %v17033_v43  ;;  %3035 = vmatprep.subr.bf16.mxu0 %v17044_v46  ;;  %v17117_v43 = vld [vmem:[#allocation12 + $0x320] ss:$28 sps:$4 sm:$0xff]  }
 0x17a   :  { %3010 = vmatprep.subr.bf16.mxu1 %v17041_v45  ;;  %v17120_v46 = vld [vmem:[#allocation12 + $0x6a0] ss:$28 sps:$4 sm:$0xff]  }
 0x17c   :  { %3036 = vmatpush1.bf16.msra.mxu0 %v17042_v50  ;;  %v17125_v50 = vld [vmem:[#allocation12 + $0x2ec] ss:$28 sps:$4 sm:$0xff]  }
 0x17d   :  { %3011 = vmatpush2.bf16.msra.mxu1 %v17039_v48  ;;  %3037 = vmatprep.subr.bf16.mxu0 %v17050_v53 }
 0x17e   :  { %3012 = vmatprep.subr.bf16.mxu1 %v17047_v51 }
 0x180   :  { %3038 = vmatpush1.bf16.msra.mxu0 %v17048_v55 }
 0x181   :  { %3013 = vmatpush2.bf16.msra.mxu1 %v17045_v54  ;;  %3039 = vmatprep.subr.bf16.mxu0 %v17056_v57  ;;  %v17128_v54 = vld [vmem:[#allocation12 + $0x66c] ss:$28 sps:$4 sm:$0xff]  }
 0x182   :  { %3014 = vmatprep.subr.bf16.mxu1 %v17053_v56  ;;  %v17123_v56 = vld [vmem:[#allocation12 + $0x2e8] ss:$28 sps:$4 sm:$0xff]  }
 0x184   :  { %3040 = vmatpush1.bf16.msra.mxu0 %v17054_v59 }
 0x185   :  { %3015 = vmatpush2.bf16.msra.mxu1 %v17051_v58  ;;  %3041 = vmatprep.subr.bf16.mxu0 %v17062_v61  ;;  %v17126_v58 = vld [vmem:[#allocation12 + $0x668] ss:$28 sps:$4 sm:$0xff]  }
 0x186   :  { %3016 = vmatprep.subr.bf16.mxu1 %v17059_v60  ;;  %v17131_v60 = vld [vmem:[#allocation12 + $0x2b4] ss:$28 sps:$4 sm:$0xff]  }
 0x188   :  { %3042 = vmatpush1.bf16.msra.mxu0 %v17060_v63 }
 0x189   :  { %3017 = vmatpush2.bf16.msra.mxu1 %v17057_v62  ;;  %3068 = vmatprep.subr.bf16.mxu0 %v17065_v0  ;;  %v17134_v62 = vld [vmem:[#allocation12 + $0x634] ss:$28 sps:$4 sm:$0xff]  }
 0x18a   :  { %3109 = vmatprep.subr.bf16.mxu1 %v17068_v1  ;;  %v17129_v0 = vld [vmem:[#allocation12 + $0x2b0] ss:$28 sps:$4 sm:$0xff]  }
 0x18b   :  { %3060 = vmatmul.mubr.bf16.vlgmr.msra.gmra.mxu0 %v19427_v47  ;;  %v17132_v1 = vld [vmem:[#allocation12 + $0x630] ss:$28 sps:$4 sm:$0xff]  }
 0x18c   :  { %3019 = vmatmul.mubr.bf16.vlgmr.msra.gmra.mxu1 %v19431_v21  ;;  %3069 = vmatpush1.bf16.msra.mxu0 %v17063_v2  ;;  %v17137_v2 = vld [vmem:[#allocation12 + $0x27c] ss:$28 sps:$4 sm:$0xff]  }
 0x18d   :  { %3110 = vmatpush1.bf16.msra.mxu1 %v17066_v3  ;;  %3070 = vmatprep.subr.bf16.mxu0 %v17071_v4  ;;  %v17140_v3 = vld [vmem:[#allocation12 + $0x5fc] ss:$28 sps:$4 sm:$0xff]  }
 0x18e   :  { %3111 = vmatprep.subr.bf16.mxu1 %v17074_v5  ;;  %3100 = vmatprep.mubr.bf16.mxu0 %v19411_v49  ;;  %v17135_v4 = vld [vmem:[#allocation12 + $0x278] ss:$28 sps:$4 sm:$0xff]  }
 0x18f   :  { %3141 = vmatprep.mubr.bf16.mxu1 %v19413_v52  ;;  %v17138_v5 = vld [vmem:[#allocation12 + $0x5f8] ss:$28 sps:$4 sm:$0xff]  }
 0x190   :  { %3071 = vmatpush1.bf16.msra.mxu0 %v17069_v6  ;;  %v17143_v6 = vld [vmem:[#allocation12 + $0x244] ss:$28 sps:$4 sm:$0xff]  }
 0x191   :  { %3112 = vmatpush1.bf16.msra.mxu1 %v17072_v7  ;;  %3072 = vmatprep.subr.bf16.mxu0 %v17077_v10  ;;  %v17146_v7 = vld [vmem:[#allocation12 + $0x5c4] ss:$28 sps:$4 sm:$0xff]  }
 0x192   :  { %3113 = vmatprep.subr.bf16.mxu1 %v17080_v11  ;;  %v17141_v10 = vld [vmem:[#allocation12 + $0x240] ss:$28 sps:$4 sm:$0xff]  }
 0x193   :  { %v17144_v11 = vld [vmem:[#allocation12 + $0x5c0] ss:$28 sps:$4 sm:$0xff]  }
 0x194   :  { %3073 = vmatpush1.bf16.msra.mxu0 %v17075_v12  ;;  %v17149_v12 = vld [vmem:[#allocation12 + $0x20c] ss:$28 sps:$4 sm:$0xff]  }
 0x195   :  { %3114 = vmatpush1.bf16.msra.mxu1 %v17078_v13  ;;  %3074 = vmatprep.subr.bf16.mxu0 %v17083_v14  ;;  %v17152_v13 = vld [vmem:[#allocation12 + $0x58c] ss:$28 sps:$4 sm:$0xff]  }
 0x196   :  { %3115 = vmatprep.subr.bf16.mxu1 %v17086_v15  ;;  %v17147_v14 = vld [vmem:[#allocation12 + $0x208] ss:$28 sps:$4 sm:$0xff]  }
 0x197   :  { %v17150_v15 = vld [vmem:[#allocation12 + $0x588] ss:$28 sps:$4 sm:$0xff]  }
 0x198   :  { %3075 = vmatpush1.bf16.msra.mxu0 %v17081_v16  ;;  %v17155_v16 = vld [vmem:[#allocation12 + $0x1d4] ss:$28 sps:$4 sm:$0xff]  }
 0x199   :  { %3116 = vmatpush1.bf16.msra.mxu1 %v17084_v17  ;;  %3076 = vmatprep.subr.bf16.mxu0 %v17089_v19  ;;  %v17158_v17 = vld [vmem:[#allocation12 + $0x554] ss:$28 sps:$4 sm:$0xff]  }
 0x19a   :  { %3117 = vmatprep.subr.bf16.mxu1 %v17092_v20  ;;  %v17153_v19 = vld [vmem:[#allocation12 + $0x1d0] ss:$28 sps:$4 sm:$0xff]  }
 0x19b   :  { %v17156_v20 = vld [vmem:[#allocation12 + $0x550] ss:$28 sps:$4 sm:$0xff]  }
 0x19c   :  { %3077 = vmatpush1.bf16.msra.mxu0 %v17087_v22  ;;  %v17161_v22 = vld [vmem:[#allocation12 + $0x89c] ss:$28 sps:$4 sm:$0xff]  }
 0x19d   :  { %3118 = vmatpush1.bf16.msra.mxu1 %v17090_v23  ;;  %3078 = vmatprep.subr.bf16.mxu0 %v17095_v24  ;;  %v17164_v23 = vld [vmem:[#allocation12 + $0xc1c] ss:$28 sps:$4 sm:$0xff]  }
 0x19e   :  { %3119 = vmatprep.subr.bf16.mxu1 %v17098_v25  ;;  %v17159_v24 = vld [vmem:[#allocation12 + $0x898] ss:$28 sps:$4 sm:$0xff]  }
 0x19f   :  { %v17162_v25 = vld [vmem:[#allocation12 + $0xc18] ss:$28 sps:$4 sm:$0xff]  }
 0x1a0   :  { %3079 = vmatpush1.bf16.msra.mxu0 %v17093_v26  ;;  %v17167_v26 = vld [vmem:[#allocation12 + $0x864] ss:$28 sps:$4 sm:$0xff]  }
 0x1a1   :  { %3120 = vmatpush1.bf16.msra.mxu1 %v17096_v27  ;;  %3080 = vmatprep.subr.bf16.mxu0 %v17101_v28  ;;  %v17170_v27 = vld [vmem:[#allocation12 + $0xbe4] ss:$28 sps:$4 sm:$0xff]  }
 0x1a2   :  { %3121 = vmatprep.subr.bf16.mxu1 %v17104_v29  ;;  %v17165_v28 = vld [vmem:[#allocation12 + $0x860] ss:$28 sps:$4 sm:$0xff]  }
 0x1a3   :  { %v17168_v29 = vld [vmem:[#allocation12 + $0xbe0] ss:$28 sps:$4 sm:$0xff]  }
 0x1a4   :  { %3081 = vmatpush1.bf16.msra.mxu0 %v17099_v30 }
 0x1a5   :  { %3122 = vmatpush1.bf16.msra.mxu1 %v17102_v31  ;;  %3082 = vmatprep.subr.bf16.mxu0 %v17107_v32  ;;  %v17173_v31 = vld [vmem:[#allocation12 + $0x82c] ss:$28 sps:$4 sm:$0xff]  }
 0x1a6   :  { %3123 = vmatprep.subr.bf16.mxu1 %v17110_v33  ;;  %v17176_v32 = vld [vmem:[#allocation12 + $0xbac] ss:$28 sps:$4 sm:$0xff]  }
 0x1a8   :  { %3083 = vmatpush1.bf16.msra.mxu0 %v17105_v34  ;;  %v17171_v34 = vld [vmem:[#allocation12 + $0x828] ss:$28 sps:$4 sm:$0xff]  }
 0x1a9   :  { %3124 = vmatpush1.bf16.msra.mxu1 %v17108_v35  ;;  %3084 = vmatprep.subr.bf16.mxu0 %v17113_v36  ;;  %v17174_v35 = vld [vmem:[#allocation12 + $0xba8] ss:$28 sps:$4 sm:$0xff]  }
 0x1aa   :  { %3125 = vmatprep.subr.bf16.mxu1 %v17116_v37  ;;  %v17179_v37 = vld [vmem:[#allocation12 + $0x7f4] ss:$28 sps:$4 sm:$0xff]  }
 0x1ab   :  { %v2774_v44 = vpop.f32.mrf.mxu0 }
 0x1ac   :  { %v2815_v45 = vpop.f32.mrf.mxu1  ;;  %3085 = vmatpush2.bf16.msra.mxu0 %v17111_v38  ;;  %v17182_v38 = vld [vmem:[#allocation12 + $0xb74] ss:$28 sps:$4 sm:$0xff]  }
 0x1ad   :  { %v19443_v48 = vadd.f32 %v2815_v45, %v2774_v44  ;;  %3126 = vmatpush2.bf16.msra.mxu1 %v17114_v40  ;;  %v2776_v51 = vpop.f32.mrf.mxu0  ;;  %3086 = vmatprep.subr.bf16.mxu0 %v17119_v41  ;;  %v17177_v41 = vld [vmem:[#allocation12 + $0x7f0] ss:$28 sps:$4 sm:$0xff]   ;;  %v17188_v44 = vld [vmem:[#allocation12 + $0xb3c] ss:$28 sps:$4 sm:$0xff]  }
 0x1ae   :  { %v2817_v53 = vpop.f32.mrf.mxu1  ;;  %3127 = vmatprep.subr.bf16.mxu1 %v17122_v42  ;;  %v17180_v42 = vld [vmem:[#allocation12 + $0xb70] ss:$28 sps:$4 sm:$0xff]   ;;  %v17183_v45 = vld [vmem:[#allocation12 + $0x7b8] ss:$28 sps:$4 sm:$0xff]  }
 0x1af   :  { %v19445_v55 = vadd.f32 %v2817_v53, %v2776_v51  ;;  %v2778_v57 = vpop.f32.mrf.mxu0  ;;  %v17194_v51 = vld [vmem:[#allocation12 + $0xb04] ss:$28 sps:$4 sm:$0xff]  }
 0x1b0   :  { %v2819_v59 = vpop.f32.mrf.mxu1  ;;  %3087 = vmatpush2.bf16.msra.mxu0 %v17117_v43  ;;  %v17185_v43 = vld [vmem:[#allocation12 + $0x7bc] ss:$28 sps:$4 sm:$0xff]   ;;  %v17200_v57 = vld [vmem:[#allocation12 + $0xacc] ss:$28 sps:$4 sm:$0xff]  }
 0x1b1   :  { %3128 = vmatpush2.bf16.msra.mxu1 %v17120_v46  ;;  %v2779_v61 = vpop.f32.mrf.mxu0  ;;  %3088 = vmatprep.subr.bf16.mxu0 %v17125_v50  ;;  %v17186_v46 = vld [vmem:[#allocation12 + $0xb38] ss:$28 sps:$4 sm:$0xff]   ;;  %v17191_v50 = vld [vmem:[#allocation12 + $0x784] ss:$28 sps:$4 sm:$0xff]  }
 0x1b2   :  { %3129 = vmatprep.subr.bf16.mxu1 %v17128_v54  ;;  %v2820_v63 = vpop.f32.mrf.mxu1  ;;  %v17189_v53 = vld [vmem:[#allocation12 + $0x780] ss:$28 sps:$4 sm:$0xff]   ;;  %v17198_v59 = vld [vmem:[#allocation12 + $0xac8] ss:$28 sps:$4 sm:$0xff]   ;;  %v17206_v61 = vld [vmem:[#allocation12 + $0xa94] ss:$28 sps:$4 sm:$0xff]  }
 0x1b3   :  { %v17192_v54 = vld [vmem:[#allocation12 + $0xb00] ss:$28 sps:$4 sm:$0xff]   ;;  %v17204_v63 = vld [vmem:[#allocation12 + $0xa90] ss:$28 sps:$4 sm:$0xff]  }
 0x1b4   :  { %3089 = vmatpush2.bf16.msra.mxu0 %v17123_v56  ;;  %v17197_v56 = vld [vmem:[#allocation12 + $0x74c] ss:$28 sps:$4 sm:$0xff]  }
 0x1b5   :  { %3130 = vmatpush2.bf16.msra.mxu1 %v17126_v58  ;;  %3090 = vmatprep.subr.bf16.mxu0 %v17131_v60  ;;  %v17195_v58 = vld [vmem:[#allocation12 + $0x748] ss:$28 sps:$4 sm:$0xff]   ;;  %v17203_v60 = vld [vmem:[#allocation12 + $0x714] ss:$28 sps:$4 sm:$0xff]  }
 0x1b6   :  { %3131 = vmatprep.subr.bf16.mxu1 %v17134_v62  ;;  %v17201_v62 = vld [vmem:[#allocation12 + $0x710] ss:$28 sps:$4 sm:$0xff]  }
 0x1b8   :  { %3091 = vmatpush2.bf16.msra.mxu0 %v17129_v0  ;;  %v17209_v0 = vld [vmem:[#allocation12 + $0xa5c] ss:$28 sps:$4 sm:$0xff]  }
 0x1b9   :  { %3132 = vmatpush2.bf16.msra.mxu1 %v17132_v1  ;;  %3092 = vmatprep.subr.bf16.mxu0 %v17137_v2  ;;  %v17210_v1 = vld [vmem:[#allocation12 + $0x360] ss:$28 sps:$4 sm:$0xff]   ;;  %v17207_v2 = vld [vmem:[#allocation12 + $0xa58] ss:$28 sps:$4 sm:$0xff]  }
 0x1ba   :  { %3133 = vmatprep.subr.bf16.mxu1 %v17140_v3  ;;  %v17211_v3 = vld [vmem:[#allocation12 + $0x1a0] ss:$28 sps:$4 sm:$0xff]  }
 0x1bc   :  { %3093 = vmatpush2.bf16.msra.mxu0 %v17135_v4  ;;  %v17214_v4 = vld [vmem:[#allocation12 + $0xa24] ss:$28 sps:$4 sm:$0xff]  }
 0x1bd   :  { %3134 = vmatpush2.bf16.msra.mxu1 %v17138_v5  ;;  %3094 = vmatprep.subr.bf16.mxu0 %v17143_v6  ;;  %v17215_v5 = vld [vmem:[#allocation12 + $0x328] ss:$28 sps:$4 sm:$0xff]   ;;  %v17212_v6 = vld [vmem:[#allocation12 + $0xa20] ss:$28 sps:$4 sm:$0xff]  }
 0x1be   :  { %3135 = vmatprep.subr.bf16.mxu1 %v17146_v7  ;;  %v17216_v7 = vld [vmem:[#allocation12 + $0x168] ss:$28 sps:$4 sm:$0xff]  }
 0x1c0   :  { %3095 = vmatpush2.bf16.msra.mxu0 %v17141_v10 }
 0x1c1   :  { %3136 = vmatpush2.bf16.msra.mxu1 %v17144_v11  ;;  %3096 = vmatprep.subr.bf16.mxu0 %v17149_v12  ;;  %v17219_v11 = vld [vmem:[#allocation12 + $0x9ec] ss:$28 sps:$4 sm:$0xff]  }
 0x1c2   :  { %3137 = vmatprep.subr.bf16.mxu1 %v17152_v13  ;;  %v17220_v12 = vld [vmem:[#allocation12 + $0x2f0] ss:$28 sps:$4 sm:$0xff]  }
 0x1c4   :  { %3097 = vmatpush2.bf16.msra.mxu0 %v17147_v14 }
 0x1c5   :  { %3138 = vmatpush2.bf16.msra.mxu1 %v17150_v15  ;;  %3098 = vmatprep.subr.bf16.mxu0 %v17155_v16 }
 0x1c6   :  { %3139 = vmatprep.subr.bf16.mxu1 %v17158_v17  ;;  %v17217_v17 = vld [vmem:[#allocation12 + $0x9e8] ss:$28 sps:$4 sm:$0xff]  }
 0x1c8   :  { %3099 = vmatpush2.bf16.msra.mxu0 %v17153_v19  ;;  %v17221_v19 = vld [vmem:[#allocation12 + $0x130] ss:$28 sps:$4 sm:$0xff]  }
 0x1c9   :  { %3140 = vmatpush2.bf16.msra.mxu1 %v17156_v20  ;;  %3150 = vmatprep.subr.bf16.mxu0 %v17161_v22  ;;  %v17224_v22 = vld [vmem:[#allocation12 + $0x9b4] ss:$28 sps:$4 sm:$0xff]  }
 0x1ca   :  { %3191 = vmatprep.subr.bf16.mxu1 %v17164_v23  ;;  %v17225_v23 = vld [vmem:[#allocation12 + $0x2b8] ss:$28 sps:$4 sm:$0xff]  }
 0x1cb   :  { %3101 = vmatmul.mubr.bf16.vlgmr.msra.gmra.mxu0 %v19417_v8 }
 0x1cc   :  { %3142 = vmatmul.mubr.bf16.vlgmr.msra.gmra.mxu1 %v19419_v9  ;;  %v19449_v30 = vpop.f32.mrf.mxu1  ;;  %3151 = vmatpush1.bf16.msra.mxu0 %v17159_v24 }
 0x1cd   :  { %3192 = vmatpush1.bf16.msra.mxu1 %v17162_v25  ;;  %3152 = vmatprep.subr.bf16.mxu0 %v17167_v26  ;;  %v17222_v25 = vld [vmem:[#allocation12 + $0x9b0] ss:$28 sps:$4 sm:$0xff]   ;;  %v17226_v26 = vld [vmem:[#allocation12 + $0xf8] ss:$28 sps:$4 sm:$0xff]  }
 0x1ce   :  { %3193 = vmatprep.subr.bf16.mxu1 %v17170_v27  ;;  %v19451_v33 = vpop.f32.mrf.mxu1  ;;  %3223 = vmatprep.mubr.bf16.mxu1 %v19243_v18  ;;  %v17229_v27 = vld [vmem:[#allocation12 + $0x97c] ss:$28 sps:$4 sm:$0xff]  }
 0x1cf   :  { %3182 = vmatprep.mubr.bf16.mxu0 %v19424_v39 }
 0x1d0   :  { %v2901_v36 = vpop.f32.mrf.mxu1  ;;  %3153 = vmatpush1.bf16.msra.mxu0 %v17165_v28  ;;  %v17230_v28 = vld [vmem:[#allocation12 + $0x280] ss:$28 sps:$4 sm:$0xff]  }
 0x1d1   :  { %3194 = vmatpush1.bf16.msra.mxu1 %v17168_v29  ;;  %3154 = vmatprep.subr.bf16.mxu0 %v17173_v31  ;;  %v17234_v29 = vld [vmem:[#allocation12 + $0x944] ss:$28 sps:$4 sm:$0xff]   ;;  %v17241_v36 = vld [vmem:[#allocation12 + $0x50] ss:$28 sps:$4 sm:$0xff]  }
 0x1d2   :  { %3195 = vmatprep.subr.bf16.mxu1 %v17176_v32  ;;  %v2902_v40 = vpop.f32.mrf.mxu1  ;;  %v17232_v31 = vld [vmem:[#allocation12 + $0x940] ss:$28 sps:$4 sm:$0xff]   ;;  %v17236_v32 = vld [vmem:[#allocation12 + $0x88] ss:$28 sps:$4 sm:$0xff]  }
 0x1d3   :  { %v17242_v40 = vld [vmem:[#allocation12 + $0x8d0] ss:$28 sps:$4 sm:$0xff]  }
 0x1d4   :  { %3155 = vmatpush1.bf16.msra.mxu0 %v17171_v34  ;;  %v17240_v34 = vld [vmem:[#allocation12 + $0x210] ss:$28 sps:$4 sm:$0xff]  }
 0x1d5   :  { %3196 = vmatpush1.bf16.msra.mxu1 %v17174_v35  ;;  %3156 = vmatprep.subr.bf16.mxu0 %v17179_v37  ;;  %v17237_v35 = vld [vmem:[#allocation12 + $0x908] ss:$28 sps:$4 sm:$0xff]   ;;  %v17244_v37 = vld [vmem:[#allocation12 + $0x8d4] ss:$28 sps:$4 sm:$0xff]  }
 0x1d6   :  { %3197 = vmatprep.subr.bf16.mxu1 %v17182_v38  ;;  %v17245_v38 = vld [vmem:[#allocation12 + $0x1d8] ss:$28 sps:$4 sm:$0xff]  }
 0x1d8   :  { %3157 = vmatpush1.bf16.msra.mxu0 %v17177_v41  ;;  %v17246_v41 = vld [vmem:[#allocation12 + $0x18] ss:$28 sps:$4 sm:$0xff]  }
 0x1d9   :  { %3198 = vmatpush1.bf16.msra.mxu1 %v17180_v42  ;;  %3158 = vmatprep.subr.bf16.mxu0 %v17185_v43  ;;  %v17247_v42 = vld [vmem:[#allocation12 + $0x6e0] ss:$28 sps:$4 sm:$0xff]  }
 0x1da   :  { %3199 = vmatprep.subr.bf16.mxu1 %v17188_v44  ;;  %v17248_v43 = vld [vmem:[#allocation12 + $0xa60] ss:$28 sps:$4 sm:$0xff]  }
 0x1db   :  { %v17249_v44 = vld [vmem:[#allocation12 + $0x520] ss:$28 sps:$4 sm:$0xff]  }
 0x1dc   :  { %3159 = vmatpush1.bf16.msra.mxu0 %v17183_v45  ;;  %v17250_v45 = vld [vmem:[#allocation12 + $0x8a0] ss:$28 sps:$4 sm:$0xff]  }
 0x1dd   :  { %3200 = vmatpush1.bf16.msra.mxu1 %v17186_v46  ;;  %3160 = vmatprep.subr.bf16.mxu0 %v17191_v50  ;;  %v17251_v46 = vld [vmem:[#allocation12 + $0x6a8] ss:$28 sps:$4 sm:$0xff]  }
 0x1de   :  { %3201 = vmatprep.subr.bf16.mxu1 %v17194_v51  ;;  %v17252_v50 = vld [vmem:[#allocation12 + $0xa28] ss:$28 sps:$4 sm:$0xff]  }
 0x1df   :  { %v17253_v51 = vld [vmem:[#allocation12 + $0x4e8] ss:$28 sps:$4 sm:$0xff]  }
 0x1e0   :  { %3161 = vmatpush1.bf16.msra.mxu0 %v17189_v53  ;;  %v17254_v53 = vld [vmem:[#allocation12 + $0x868] ss:$28 sps:$4 sm:$0xff]  }
 0x1e1   :  { %3202 = vmatpush1.bf16.msra.mxu1 %v17192_v54  ;;  %3162 = vmatprep.subr.bf16.mxu0 %v17197_v56  ;;  %v17255_v54 = vld [vmem:[#allocation12 + $0x670] ss:$28 sps:$4 sm:$0xff]  }
 0x1e2   :  { %3203 = vmatprep.subr.bf16.mxu1 %v17200_v57  ;;  %v17256_v56 = vld [vmem:[#allocation12 + $0x9f0] ss:$28 sps:$4 sm:$0xff]  }
 0x1e4   :  { %3163 = vmatpush1.bf16.msra.mxu0 %v17195_v58 }
 0x1e5   :  { %3204 = vmatpush1.bf16.msra.mxu1 %v17198_v59  ;;  %3164 = vmatprep.subr.bf16.mxu0 %v17203_v60  ;;  %v17257_v59 = vld [vmem:[#allocation12 + $0x4b0] ss:$28 sps:$4 sm:$0xff]  }
 0x1e6   :  { %3205 = vmatprep.subr.bf16.mxu1 %v17206_v61  ;;  %v17258_v60 = vld [vmem:[#allocation12 + $0x830] ss:$28 sps:$4 sm:$0xff]  }
 0x1e8   :  { %3165 = vmatpush1.bf16.msra.mxu0 %v17201_v62  ;;  %v17260_v62 = vld [vmem:[#allocation12 + $0x9b8] ss:$28 sps:$4 sm:$0xff]  }
 0x1e9   :  { %3206 = vmatpush1.bf16.msra.mxu1 %v17204_v63  ;;  %3166 = vmatprep.subr.bf16.mxu0 %v17209_v0  ;;  %v17261_v0 = vld [vmem:[#allocation12 + $0x478] ss:$28 sps:$4 sm:$0xff]  }
 0x1ea   :  { %16084 = vmatprep.subr.bf16.mxu1 %v17210_v1  ;;  %v17262_v1 = vld [vmem:[#allocation12 + $0x7f8] ss:$28 sps:$4 sm:$0xff]  }
 0x1eb   :  { %v2856_v10 = vpop.f32.mrf.mxu0 }
 0x1ec   :  { %3224 = vmatmul.mubr.bf16.vlgmr.msra.gmra.mxu1 %v19427_v47  ;;  %v2857_v13 = vadd.f32 %v2856_v10, %v19443_v48  ;;  %3167 = vmatpush2.bf16.msra.mxu0 %v17207_v2  ;;  %v17263_v2 = vld [vmem:[#allocation12 + $0x600] ss:$28 sps:$4 sm:$0xff]   ;;  %v17271_v10 = vld [vmem:[#allocation12 + $0x590] ss:$28 sps:$4 sm:$0xff]  }
 0x1ed   :  { %16085 = vmatpush3.bf16.msra.mxu1 %v17211_v3  ;;  %v2858_v14 = vpop.f32.mrf.mxu0  ;;  %3168 = vmatprep.subr.bf16.mxu0 %v17214_v4  ;;  %v17264_v3 = vld [vmem:[#allocation12 + $0x980] ss:$28 sps:$4 sm:$0xff]  }
 0x1ee   :  { %16086 = vmatprep.subr.bf16.mxu1 %v17215_v5  ;;  %v19458_v15 = vadd.f32 %v19449_v30, %v2857_v13  ;;  %v2859_v16 = vadd.f32 %v2858_v14, %v19445_v55  ;;  %3264 = vmatprep.mubr.bf16.mxu1 %v19411_v49  ;;  %v17227_v49 = vld [vmem:[#allocation12 + $0x978] ss:$28 sps:$4 sm:$0xff]   ;;  %v17231_v55 = vld [vmem:[#allocation12 + $0xc0] ss:$28 sps:$4 sm:$0xff]   ;;  %v17235_v30 = vld [vmem:[#allocation12 + $0x248] ss:$28 sps:$4 sm:$0xff]  }
 0x1ef   :  { %v2860_v20 = vpop.f32.mrf.mxu0  ;;  %v17265_v4 = vld [vmem:[#allocation12 + $0x440] ss:$28 sps:$4 sm:$0xff]   ;;  %v17267_v5 = vld [vmem:[#allocation12 + $0x5c8] ss:$28 sps:$4 sm:$0xff]   ;;  %v17274_v13 = vld [vmem:[#allocation12 + $0x750] ss:$28 sps:$4 sm:$0xff]  }
 0x1f0   :  { %v19463_v24 = vadd.f32 %v19451_v33, %v2859_v16  ;;  %3169 = vmatpush2.bf16.msra.mxu0 %v17212_v6  ;;  %v17239_v33 = vld [vmem:[#allocation12 + $0x90c] ss:$28 sps:$4 sm:$0xff]   ;;  %v17275_v14 = vld [vmem:[#allocation12 + $0x558] ss:$28 sps:$4 sm:$0xff]  }
 0x1f1   :  { %16087 = vmatpush3.bf16.msra.mxu1 %v17216_v7  ;;  %v2861_v48 = vpop.f32.mrf.mxu0  ;;  %3170 = vmatprep.subr.bf16.mxu0 %v17219_v11  ;;  %v17269_v6 = vld [vmem:[#allocation12 + $0x408] ss:$28 sps:$4 sm:$0xff]   ;;  %v17272_v11 = vld [vmem:[#allocation12 + $0x910] ss:$28 sps:$4 sm:$0xff]   ;;  %v17276_v16 = vld [vmem:[#allocation12 + $0x8d8] ss:$28 sps:$4 sm:$0xff]  }
 0x1f2   :  { %16088 = vmatprep.subr.bf16.mxu1 %v17220_v12  ;;  %v17270_v7 = vld [vmem:[#allocation12 + $0x788] ss:$28 sps:$4 sm:$0xff]   ;;  %v17273_v12 = vld [vmem:[#allocation12 + $0x3d0] ss:$28 sps:$4 sm:$0xff]   ;;  %v17278_v20 = vld [vmem:[#allocation12 + $0x718] ss:$28 sps:$4 sm:$0xff]  }
 0x1f3   :  { %v17280_v48 = vld [vmem:[#allocation12 + $0xc20] ss:$28 sps:$4 sm:$0xff]  }
 0x1f4   :  { %3171 = vmatpush2.bf16.msra.mxu0 %v17217_v17  ;;  %v3400_v17 = vmul.f32 %v19463_v24, %v19463_v24 }
 0x1f5   :  { %16089 = vmatpush3.bf16.msra.mxu1 %v17221_v19  ;;  %3172 = vmatprep.subr.bf16.mxu0 %v17224_v22  ;;  %v17277_v19 = vld [vmem:[#allocation12 + $0x398] ss:$28 sps:$4 sm:$0xff]   ;;  %v17279_v22 = vld [vmem:[%s20650_s24 + $0x78] sm:$0xff]  }
 0x1f6   :  { %16090 = vmatprep.subr.bf16.mxu1 %v17225_v23  ;;  %v3407_v23 = vpack.c.bf16 %v3400_v17, %v3400_v17  ;;  %v17308_v17 = vld [vmem:[%s20650_s24 + $0xa8] sm:$0xff]  }
 0x1f8   :  { %3173 = vmatpush2.bf16.msra.mxu0 %v17222_v25  ;;  %v17281_v25 = vld [vmem:[%s20650_s24 + $0x38] sm:$0xff]  }
 0x1f9   :  { %16091 = vmatpush3.bf16.msra.mxu1 %v17226_v26  ;;  %3174 = vmatprep.subr.bf16.mxu0 %v17229_v27  ;;  %v3421_v26 = vrot.slane %v3407_v23, 4  ;;  %v17282_v27 = vld [vmem:[%s20650_s24 + $0x70] sm:$0xff]  }
 0x1fa   :  { %16092 = vmatprep.subr.bf16.mxu1 %v17230_v28  ;;  %v19244_v28 = vmov 0.0  }
 0x1fc   :  { %3175 = vmatpush2.bf16.msra.mxu0 %v17227_v49  ;;  %v3393_v49 = vpack.c.bf16 %v19463_v24, %v19463_v24 }
 0x1fd   :  { %16093 = vmatpush3.bf16.msra.mxu1 %v17231_v55  ;;  %3176 = vmatprep.subr.bf16.mxu0 %v17234_v29  ;;  %v17283_v55 = vld [vmem:[#allocation12 + $0xbe8] ss:$28 sps:$4 sm:$0xff]   ;;  %v17284_v29 = vld [vmem:[%s20650_s24 + $0x30] sm:$0xff]  }
 0x1fe   :  { %16094 = vmatprep.subr.bf16.mxu1 %v17235_v30 }
 0x200   :  { %3177 = vmatpush2.bf16.msra.mxu0 %v17232_v31  ;;  %v3434_v31 = vsel %vm3427_vm0, %v3393_v49, %v3421_v26 }
 0x201   :  { %16095 = vmatpush3.bf16.msra.mxu1 %v17236_v32  ;;  %3178 = vmatprep.subr.bf16.mxu0 %v17239_v33  ;;  %v17285_v33 = vld [vmem:[%s20650_s24 + $0x68] sm:$0xff]  }
 0x202   :  { %16096 = vmatprep.subr.bf16.mxu1 %v17240_v34  ;;  %v17286_v34 = vld [vmem:[#allocation12 + $0xbb0] ss:$28 sps:$4 sm:$0xff]  }
 0x204   :  { %3179 = vmatpush2.bf16.msra.mxu0 %v17237_v35 }
 0x205   :  { %16097 = vmatpush3.bf16.msra.mxu1 %v17241_v36  ;;  %3180 = vmatprep.subr.bf16.mxu0 %v17244_v37  ;;  %v17288_v36 = vld [vmem:[%s20650_s24 + $0x60] sm:$0xff]   ;;  %v17289_v37 = vld [vmem:[#allocation12 + $0xb78] ss:$28 sps:$4 sm:$0xff]  }
 0x206   :  { %16098 = vmatprep.subr.bf16.mxu1 %v17245_v38  ;;  %v17290_v38 = vld [vmem:[%s20650_s24 + $0x20] sm:$0xff]  }
 0x208   :  { %3181 = vmatpush2.bf16.msra.mxu0 %v17242_v40  ;;  %v17291_v40 = vld [vmem:[%s20650_s24 + $0x58] sm:$0xff]  }
 0x209   :  { %16099 = vmatpush3.bf16.msra.mxu1 %v17246_v41  ;;  %16106 = vmatprep.subr.bf16.mxu0 %v17247_v42  ;;  %v17292_v41 = vld [vmem:[#allocation12 + $0xb40] ss:$28 sps:$4 sm:$0xff]   ;;  %v17293_v42 = vld [vmem:[%s20650_s24 + $0x18] sm:$0xff]  }
 0x20a   :  { %16128 = vmatprep.subr.bf16.mxu1 %v17248_v43  ;;  %v3399_v43 = vmul.f32 %v19458_v15, %v19458_v15 }
 0x20b   :  { %3183 = vmatmul.mubr.bf16.vlgmr.msra.gmra.mxu0 %v19431_v21 }
 0x20c   :  { %3265 = vmatmul.mubr.bf16.vlgmr.msra.gmra.mxu1 %v19417_v8  ;;  %v19467_v57 = vpop.f32.mrf.mxu1  ;;  %16107 = vmatpush3.bf16.msra.mxu0 %v17249_v44  ;;  %v17259_v8 = vld [vmem:[#allocation12 + $0x638] ss:$28 sps:$4 sm:$0xff]   ;;  %v17294_v44 = vld [vmem:[%s20650_s24 + $0x50] sm:$0xff]  }
 0x20d   :  { %16129 = vmatpush3.bf16.msra.mxu1 %v17250_v45  ;;  %16108 = vmatprep.subr.bf16.mxu0 %v17251_v46  ;;  %v17295_v45 = vld [vmem:[#allocation12 + $0xb08] ss:$28 sps:$4 sm:$0xff]   ;;  %v17296_v46 = vld [vmem:[%s20650_s24 + $0x10] sm:$0xff]  }
 0x20e   :  { %16130 = vmatprep.subr.bf16.mxu1 %v17252_v50  ;;  %v19469_v58 = vpop.f32.mrf.mxu1  ;;  %3304 = vmatprep.mubr.bf16.mxu0 %v19413_v52  ;;  %v17266_v52 = vld [vmem:[#allocation12 + $0x7c0] ss:$28 sps:$4 sm:$0xff]   ;;  %v3406_v50 = vpack.c.bf16 %v3399_v43, %v3399_v43  ;;  %v17315_v43 = vld [vmem:[%s20650_s24 + $0xc8] sm:$0xff]  }
 0x20f   :  { %3344 = vmatprep.mubr.bf16.mxu1 %v19424_v39  ;;  %v17268_v39 = vld [vmem:[#allocation12 + $0x948] ss:$28 sps:$4 sm:$0xff]  }
 0x210   :  { %v2942_v61 = vpop.f32.mrf.mxu1  ;;  %16109 = vmatpush3.bf16.msra.mxu0 %v17253_v51  ;;  %v17297_v51 = vld [vmem:[%s20650_s24 + $0x48] sm:$0xff]  }
 0x211   :  { %16131 = vmatpush3.bf16.msra.mxu1 %v17254_v53  ;;  %16110 = vmatprep.subr.bf16.mxu0 %v17255_v54  ;;  %v17298_v53 = vld [vmem:[#allocation12 + $0xad0] ss:$28 sps:$4 sm:$0xff]   ;;  %v17299_v54 = vld [vmem:[%s20650_s24 + $0x8] sm:$0xff]  }
 0x212   :  { %16132 = vmatprep.subr.bf16.mxu1 %v17256_v56  ;;  %v2943_v63 = vpop.f32.mrf.mxu1  ;;  %v17300_v56 = vld [vmem:[%s20650_s24 + $0x40] sm:$0xff]  }
 0x213   :  { %v17302_v61 = vld [vmem:[%s20650_s24] sm:$0xff]   ;;  %v17304_v63 = vld [vmem:[%s20650_s24 + $0xb8] sm:$0xff]  }
 0x214   :  { %16111 = vmatpush3.bf16.msra.mxu0 %v17257_v59  ;;  %v3420_v59 = vrot.slane %v3406_v50, 4  ;;  %v17317_v50 = vld [vmem:[%s20650_s24 + $0xc0] sm:$0xff]  }
 0x215   :  { %16133 = vmatpush3.bf16.msra.mxu1 %v17258_v60  ;;  %16112 = vmatprep.subr.bf16.mxu0 %v17259_v8  ;;  %v17301_v60 = vld [vmem:[#allocation12 + $0xa98] ss:$28 sps:$4 sm:$0xff]   ;;  %v17303_v8 = vld [vmem:[%s20650_s24 + $0xf8] sm:$0xff]  }
 0x216   :  { %16134 = vmatprep.subr.bf16.mxu1 %v17260_v62  ;;  %v17319_v62 = vld [vmem:[%s20650_s24 + $0x178] sm:$0xff]  }
 0x218   :  { %16113 = vmatpush3.bf16.msra.mxu0 %v17261_v0  ;;  %v17320_v0 = vld [vmem:[%s20650_s24 + $0x138] sm:$0xff]  }
 0x219   :  { %16135 = vmatpush3.bf16.msra.mxu1 %v17262_v1  ;;  %16114 = vmatprep.subr.bf16.mxu0 %v17263_v2  ;;  %v17305_v1 = vld [vmem:[%s20650_s24 + $0xf0] sm:$0xff]  }
 0x21a   :  { %16136 = vmatprep.subr.bf16.mxu1 %v17264_v3  ;;  %v17321_v2 = vld [vmem:[%s20650_s24 + $0x170] sm:$0xff]   ;;  %v3392_v3 = vpack.c.bf16 %v19458_v15, %v19458_v15 }
 0x21c   :  { %16115 = vmatpush3.bf16.msra.mxu0 %v17265_v4 }
 0x21d   :  { %16137 = vmatpush3.bf16.msra.mxu1 %v17266_v52  ;;  %16116 = vmatprep.subr.bf16.mxu0 %v17267_v5  ;;  %v3430_v52 = vsel %vm3427_vm0, %v3392_v3, %v3420_v59  ;;  %v17306_v5 = vld [vmem:[%s20650_s24 + $0xb0] sm:$0xff]  }
 0x21e   :  { %16138 = vmatprep.subr.bf16.mxu1 %v17268_v39  ;;  %v17322_v39 = vld [vmem:[%s20650_s24 + $0x130] sm:$0xff]  }
 0x220   :  { %16117 = vmatpush3.bf16.msra.mxu0 %v17269_v6 }
 0x221   :  { %16139 = vmatpush3.bf16.msra.mxu1 %v17270_v7  ;;  %16118 = vmatprep.subr.bf16.mxu0 %v17271_v10  ;;  %v17307_v10 = vld [vmem:[%s20650_s24 + $0xe8] sm:$0xff]  }
 0x222   :  { %16140 = vmatprep.subr.bf16.mxu1 %v17272_v11 }
 0x224   :  { %16119 = vmatpush3.bf16.msra.mxu0 %v17273_v12 }
 0x225   :  { %16141 = vmatpush3.bf16.msra.mxu1 %v17274_v13  ;;  %16120 = vmatprep.subr.bf16.mxu0 %v17275_v14  ;;  %v17323_v14 = vld [vmem:[%s20650_s24 + $0x168] sm:$0xff]  }
 0x226   :  { %16142 = vmatprep.subr.bf16.mxu1 %v17276_v16 }
 0x228   :  { %16121 = vmatpush3.bf16.msra.mxu0 %v17277_v19 }
 0x229   :  { %16143 = vmatpush3.bf16.msra.mxu1 %v17278_v20  ;;  %16577 = vmatprep.subr.bf16.mxu0 %v19244_v28  ;;  %v17309_v20 = vld [vmem:[%s20650_s24 + $0xe0] sm:$0xff]  }
 0x22a   :  { %16159 = vmatprep.subr.bf16.mxu1 %v17279_v22 }
 0x22b   :  { %v19490_v30 = vpop.f32.mrf.mxu0  ;;  %3305 = vmatmul.mubr.bf16.vlgmr.msra.gmra.mxu0 %v19419_v9  ;;  %v17287_v9 = vld [vmem:[%s20650_s24 + $0x28] sm:$0xff]  }
 0x22c   :  { %3345 = vmatmul.mubr.bf16.vlgmr.msra.gmra.mxu1 %v19431_v21  ;;  %16578 = vmatpush3.bf16.msra.mxu0 %v17280_v48  ;;  %v2980_v4 = vadd.f32 %v19490_v30, %v19467_v57  ;;  %v17326_v30 = vld [vmem:[%s20650_s24 + $0x120] sm:$0xff]  }
 0x22d   :  { %16160 = vmatpush3.bf16.msra.mxu1 %v17281_v25  ;;  %3936 = vmatprep.mubr.bf16.mxu1 %v3434_v31  ;;  %v19495_v32 = vpop.f32.mrf.mxu0  ;;  %v17311_v31 = vld [vmem:[%s20650_s24 + $0xd8] sm:$0xff]  }
 0x22e   :  { %16579 = vmatprep.subr.bf16.mxu0 %v19244_v28  ;;  %16161 = vmatprep.subr.bf16.mxu1 %v17282_v27  ;;  %v2982_v57 = vadd.f32 %v19495_v32, %v19469_v58  ;;  %v17324_v58 = vld [vmem:[%s20650_s24 + $0x128] sm:$0xff]   ;;  %v17325_v27 = vld [vmem:[%s20650_s24 + $0x160] sm:$0xff]  }
 0x22f   :  { %16593 = vmatprep.mubr.msk.bf16.mxu0 %vm19245_vm1, %v19244_v28  ;;  %v2983_v21 = vpop.f32.mrf.mxu0 }
 0x230   :  { %16580 = vmatpush3.bf16.msra.mxu0 %v17283_v55 }
 0x231   :  { %16162 = vmatpush3.bf16.msra.mxu1 %v17284_v29  ;;  %v2984_v35 = vpop.f32.mrf.mxu0  ;;  %16581 = vmatprep.subr.bf16.mxu0 %v19244_v28  ;;  %v17310_v29 = vld [vmem:[%s20650_s24 + $0xa0] sm:$0xff]  }
 0x232   :  { %16163 = vmatprep.subr.bf16.mxu1 %v17285_v33  ;;  %v17312_v35 = vld [vmem:[%s20650_s24 + $0x98] sm:$0xff]  }
 0x234   :  { %16582 = vmatpush3.bf16.msra.mxu0 %v17286_v34  ;;  %v17327_v34 = vld [vmem:[%s20650_s24 + $0x158] sm:$0xff]  }
 0x235   :  { %16164 = vmatpush3.bf16.msra.mxu1 %v17287_v9  ;;  %16583 = vmatprep.subr.bf16.mxu0 %v19244_v28 }
 0x236   :  { %16165 = vmatprep.subr.bf16.mxu1 %v17288_v36  ;;  %v17328_v36 = vld [vmem:[%s20650_s24 + $0x118] sm:$0xff]  }
 0x238   :  { %16584 = vmatpush3.bf16.msra.mxu0 %v17289_v37  ;;  %v17313_v37 = vld [vmem:[%s20650_s24 + $0xd0] sm:$0xff]  }
 0x239   :  { %16166 = vmatpush3.bf16.msra.mxu1 %v17290_v38  ;;  %16585 = vmatprep.subr.bf16.mxu0 %v19244_v28  ;;  %v17329_v38 = vld [vmem:[%s20650_s24 + $0x150] sm:$0xff]  }
 0x23a   :  { %16167 = vmatprep.subr.bf16.mxu1 %v17291_v40 }
 0x23c   :  { %16586 = vmatpush3.bf16.msra.mxu0 %v17292_v41  ;;  %v17314_v41 = vld [vmem:[%s20650_s24 + $0x90] sm:$0xff]  }
 0x23d   :  { %16168 = vmatpush3.bf16.msra.mxu1 %v17293_v42  ;;  %16587 = vmatprep.subr.bf16.mxu0 %v19244_v28  ;;  %v17330_v42 = vld [vmem:[%s20650_s24 + $0x110] sm:$0xff]  }
 0x23e   :  { %16169 = vmatprep.subr.bf16.mxu1 %v17294_v44  ;;  %v17331_v44 = vld [vmem:[%s20650_s24 + $0x148] sm:$0xff]  }
 0x240   :  { %16588 = vmatpush3.bf16.msra.mxu0 %v17295_v45  ;;  %v17316_v45 = vld [vmem:[%s20650_s24 + $0x88] sm:$0xff]  }
 0x241   :  { %16170 = vmatpush3.bf16.msra.mxu1 %v17296_v46  ;;  %16589 = vmatprep.subr.bf16.mxu0 %v19244_v28  ;;  %v17332_v46 = vld [vmem:[%s20650_s24 + $0x108] sm:$0xff]  }
 0x242   :  { %16171 = vmatprep.subr.bf16.mxu1 %v17297_v51  ;;  %v17333_v51 = vld [vmem:[%s20650_s24 + $0x140] sm:$0xff]  }
 0x244   :  { %16590 = vmatpush3.bf16.msra.mxu0 %v17298_v53  ;;  %v17318_v53 = vld [vmem:[%s20650_s24 + $0x80] sm:$0xff]  }
 0x245   :  { %16172 = vmatpush3.bf16.msra.mxu1 %v17299_v54  ;;  %16591 = vmatprep.subr.bf16.mxu0 %v19244_v28  ;;  %v17334_v54 = vld [vmem:[%s20650_s24 + $0x100] sm:$0xff]  }
 0x246   :  { %16173 = vmatprep.subr.bf16.mxu1 %v17300_v56 }
 0x248   :  { %16592 = vmatpush3.bf16.msra.mxu0 %v17301_v60  ;;  %v17335_v60 = vld [vmem:[%s20650_s24 + $0x1b8] sm:$0xff]  }
 0x249   :  { %16174 = vmatpush3.bf16.msra.mxu1 %v17302_v61  ;;  %16181 = vmatprep.subr.bf16.mxu0 %v17303_v8  ;;  %v17336_v61 = vld [vmem:[%s20650_s24 + $0x1b0] sm:$0xff]   ;;  %v17337_v8 = vld [vmem:[%s20650_s24 + $0x1a8] sm:$0xff]  }
 0x24a   :  { %16203 = vmatprep.subr.bf16.mxu1 %v17319_v62  ;;  %v17338_v62 = vld [vmem:[%s20650_s24 + $0x1a0] sm:$0xff]  }
 0x24b   :  { %v3061_v7 = vpop.f32.mrf.mxu0  ;;  %16594 = vmatmul.mubr.bf16.vlgmr.msra.gmra.mxu0 %v19427_v47 }
 0x24c   :  { %v3020_v6 = vpop.f32.mrf.mxu1  ;;  %3937 = vmatmul.mubr.bf16.vlgmr.msra.gmra.mxu1 %v3430_v52  ;;  %16182 = vmatpush3.bf16.msra.mxu0 %v17304_v63  ;;  %v17339_v63 = vld [vmem:[%s20650_s24 + $0x198] sm:$0xff]  }
 0x24d   :  { %v3021_v11 = vadd.f32 %v3020_v6, %v2980_v4  ;;  %16204 = vmatpush3.bf16.msra.mxu1 %v17320_v0  ;;  %v3063_v13 = vpop.f32.mrf.mxu0  ;;  %16183 = vmatprep.subr.bf16.mxu0 %v17305_v1  ;;  %v17340_v0 = vld [vmem:[%s20650_s24 + $0x190] sm:$0xff]  }
 0x24e   :  { %v3022_v12 = vpop.f32.mrf.mxu1  ;;  %16205 = vmatprep.subr.bf16.mxu1 %v17321_v2 }
 0x24f   :  { %v19582_v47 = vadd.f32 %v3061_v7, %v3021_v11  ;;  %v3023_v16 = vadd.f32 %v3022_v12, %v2982_v57  ;;  %v3065_v19 = vpop.f32.mrf.mxu0  ;;  %v17342_v57 = vld [vmem:[%s20650_s24 + $0x180] sm:$0xff]  }
 0x250   :  { %v3024_v22 = vpop.f32.mrf.mxu1  ;;  %16184 = vmatpush3.bf16.msra.mxu0 %v17306_v5  ;;  %v17341_v5 = vld [vmem:[%s20650_s24 + $0x188] sm:$0xff]  }
 0x251   :  { %v3401_v23 = vmul.f32 %v19582_v47, %v19582_v47  ;;  %v19595_v48 = vadd.f32 %v3063_v13, %v3023_v16  ;;  %16206 = vmatpush3.bf16.msra.mxu1 %v17322_v39  ;;  %v3066_v25 = vpop.f32.mrf.mxu0  ;;  %16185 = vmatprep.subr.bf16.mxu0 %v17307_v10  ;;  %v3394_v56 = vpack.c.bf16 %v19582_v47, %v19582_v47 }
 0x252   :  { %v3025_v26 = vpop.f32.mrf.mxu1  ;;  %16207 = vmatprep.subr.bf16.mxu1 %v17323_v14 }
 0x253   :  { %v3408_v49 = vpack.c.bf16 %v3401_v23, %v3401_v23  ;;  %v3402_v55 = vmul.f32 %v19595_v48, %v19595_v48  ;;  %v3395_v9 = vpack.c.bf16 %v19595_v48, %v19595_v48 }
 0x254   :  { %16186 = vmatpush3.bf16.msra.mxu0 %v17308_v17 }
 0x255   :  { %v3422_v32 = vrot.slane %v3408_v49, 4  ;;  %v3409_v33 = vpack.c.bf16 %v3402_v55, %v3402_v55  ;;  %16208 = vmatpush3.bf16.msra.mxu1 %v17324_v58  ;;  %16187 = vmatprep.subr.bf16.mxu0 %v17309_v20 }
 0x256   :  { %16209 = vmatprep.subr.bf16.mxu1 %v17325_v27 }
 0x257   :  { %v3423_v21 = vrot.slane %v3409_v33, 4  ;;  %v3438_v59 = vsel %vm3427_vm0, %v3394_v56, %v3422_v32 }
 0x258   :  { %16188 = vmatpush3.bf16.msra.mxu0 %v17310_v29 }
 0x259   :  { %v3442_v40 = vsel %vm3427_vm0, %v3395_v9, %v3423_v21  ;;  %16210 = vmatpush3.bf16.msra.mxu1 %v17326_v30  ;;  %16189 = vmatprep.subr.bf16.mxu0 %v17311_v31 }
 0x25a   :  { %3977 = vmatprep.mubr.bf16.mxu0 %v3442_v40  ;;  %16211 = vmatprep.subr.bf16.mxu1 %v17327_v34 }
 0x25c   :  { %16190 = vmatpush3.bf16.msra.mxu0 %v17312_v35 }
 0x25d   :  { %16212 = vmatpush3.bf16.msra.mxu1 %v17328_v36  ;;  %16191 = vmatprep.subr.bf16.mxu0 %v17313_v37 }
 0x25e   :  { %16213 = vmatprep.subr.bf16.mxu1 %v17329_v38 }
 0x260   :  { %16192 = vmatpush3.bf16.msra.mxu0 %v17314_v41 }
 0x261   :  { %16214 = vmatpush3.bf16.msra.mxu1 %v17330_v42  ;;  %16193 = vmatprep.subr.bf16.mxu0 %v17315_v43 }
 0x262   :  { %16215 = vmatprep.subr.bf16.mxu1 %v17331_v44 }
 0x264   :  { %16194 = vmatpush3.bf16.msra.mxu0 %v17316_v45 }
 0x265   :  { %16216 = vmatpush3.bf16.msra.mxu1 %v17332_v46  ;;  %16195 = vmatprep.subr.bf16.mxu0 %v17317_v50 }
 0x266   :  { %16217 = vmatprep.subr.bf16.mxu1 %v17333_v51 }
 0x268   :  { %16196 = vmatpush3.bf16.msra.mxu0 %v17318_v53 }
 0x269   :  { %16218 = vmatpush3.bf16.msra.mxu1 %v17334_v54  ;;  %16597 = vmatprep.subr.bf16.mxu0 %v19244_v28 }
 0x26b   :  { %3978 = vmatmul.mubr.bf16.vlgmr.msra.gmra.mxu0 %v3438_v59 }
 0x26c   :  { %16613 = vmatprep.mubr.msk.bf16.mxu0 %vm19245_vm1, %v19244_v28  ;;  %16598 = vmatpush3.bf16.msra.mxu0 %v17335_v60 }
 0x26d   :  { %16599 = vmatprep.subr.bf16.mxu0 %v19244_v28 }
 0x270   :  { %16600 = vmatpush3.bf16.msra.mxu0 %v17336_v61 }
 0x271   :  { %16601 = vmatprep.subr.bf16.mxu0 %v19244_v28 }
 0x274   :  { %16602 = vmatpush3.bf16.msra.mxu0 %v17337_v8 }
 0x275   :  { %16603 = vmatprep.subr.bf16.mxu0 %v19244_v28 }
 0x278   :  { %16604 = vmatpush3.bf16.msra.mxu0 %v17338_v62 }
 0x279   :  { %16605 = vmatprep.subr.bf16.mxu0 %v19244_v28 }
 0x27c   :  { %16606 = vmatpush3.bf16.msra.mxu0 %v17339_v63 }
 0x27d   :  { %16607 = vmatprep.subr.bf16.mxu0 %v19244_v28 }
 0x280   :  { %16608 = vmatpush3.bf16.msra.mxu0 %v17340_v0 }
 0x281   :  { %16609 = vmatprep.subr.bf16.mxu0 %v19244_v28 }
 0x284   :  { %16610 = vmatpush3.bf16.msra.mxu0 %v17341_v5 }
 0x285   :  { %16611 = vmatprep.subr.bf16.mxu0 %v19244_v28 }
 0x288   :  { %16612 = vmatpush3.bf16.msra.mxu0 %v17342_v57  ;;  %v17360_v57 = vld [vmem:[#allocation15 + $0x2c4] ss:$16 sps:$4 sm:$0xff]  }
 0x28b   :  { %v3102_v1 = vpop.f32.mrf.mxu0 }
 0x28c   :  { %v3143_v2 = vpop.f32.mrf.mxu1 }
 0x28d   :  { %v3144_v3 = vadd.f32 %v3143_v2, %v3102_v1  ;;  %v3104_v4 = vpop.f32.mrf.mxu0 }
 0x28e   :  { %v3145_v52 = vpop.f32.mrf.mxu1 }
 0x28f   :  { %v3106_v39 = vpop.f32.mrf.mxu0  ;;  %v3146_v58 = vadd.f32 %v3145_v52, %v3104_v4  ;;  %v4103_v4 = vld [vmem:[#allocation14] sm:$0xff]  ;;  %v19718_v52 = vld [vmem:[#allocation14 + $0x8] sm:$0xff] }
 0x290   :  { %v3147_v6 = vpop.f32.mrf.mxu1  ;;  %v4111_v5 = vcombine.high %v4103_v4, %v4103_v4  ;;  %v4112_v39 = vcombine.high %v19718_v52, %v19718_v52 }
 0x291   :  { %v3107_v7 = vpop.f32.mrf.mxu0  ;;  %v17352_v6 = vld [vmem:[#allocation15 + $0x2e0] ss:$16 sps:$4 sm:$0xff]  }
 0x292   :  { %v3148_v10 = vpop.f32.mrf.mxu1  ;;  %14996 = vmatprep.subr.msk.mxu1 %vm3427_vm0, %v4111_v5  ;;  %v17354_v7 = vld [vmem:[#allocation15 + $0x2e4] ss:$16 sps:$4 sm:$0xff]  }
 0x293   :  { %5884 = vmatprep.subr.bf16.mxu0 %v17354_v7  ;;  %v17358_v10 = vld [vmem:[#allocation15 + $0x2c0] ss:$16 sps:$4 sm:$0xff]  }
 0x2ac   :  { %v3225_v11 = vpop.f32.mrf.mxu1 }
 0x2ae   :  { %v3227_v12 = vpop.f32.mrf.mxu1 }
 0x2b0   :  { %v3229_v13 = vpop.f32.mrf.mxu1 }
 0x2b1   :  { %v17370_v13 = vld [vmem:[#allocation15 + $0x280] ss:$16 sps:$4 sm:$0xff]  }
 0x2b2   :  { %v3230_v14 = vpop.f32.mrf.mxu1 }
 0x2b3   :  { %v17372_v14 = vld [vmem:[#allocation15 + $0x284] ss:$16 sps:$4 sm:$0xff]  }
 0x2cb   :  { %v3184_v16 = vpop.f32.mrf.mxu0 }
 0x2cc   :  { %v16100_v17 = vpop.f32.mrf.mxu1  ;;  %v3185_v19 = vadd.f32 %v3184_v16, %v3144_v3  ;;  %v17376_v16 = vld [vmem:[#allocation15 + $0x260] ss:$16 sps:$4 sm:$0xff]  }
 0x2cd   :  { %v3186_v20 = vpop.f32.mrf.mxu0 }
 0x2ce   :  { %v16101_v22 = vpop.f32.mrf.mxu1  ;;  %v19696_v23 = vadd.f32 %v3225_v11, %v3185_v19  ;;  %v3187_v25 = vadd.f32 %v3186_v20, %v3146_v58  ;;  %v17364_v11 = vld [vmem:[#allocation15 + $0x2a0] ss:$16 sps:$4 sm:$0xff]   ;;  %v17384_v19 = vld [vmem:[#allocation15 + $0x244] ss:$16 sps:$4 sm:$0xff]  }
 0x2cf   :  { %v3188_v26 = vpop.f32.mrf.mxu0  ;;  %v16102_v51 = vadd.f32 %v16101_v22, %v16100_v17  ;;  %v17378_v17 = vld [vmem:[#allocation15 + $0x264] ss:$16 sps:$4 sm:$0xff]   ;;  %v17382_v58 = vld [vmem:[#allocation15 + $0x240] ss:$16 sps:$4 sm:$0xff]  }
 0x2d0   :  { %v16103_v27 = vpop.f32.mrf.mxu1  ;;  %v3403_v49 = vmul.f32 %v19696_v23, %v19696_v23  ;;  %v19700_v55 = vadd.f32 %v3227_v12, %v3187_v25  ;;  %v3396_v35 = vpack.c.bf16 %v19696_v23, %v19696_v23  ;;  %v17366_v12 = vld [vmem:[#allocation15 + $0x2a4] ss:$16 sps:$4 sm:$0xff]   ;;  %v17388_v20 = vld [vmem:[#allocation15 + $0x220] ss:$16 sps:$4 sm:$0xff]  }
 0x2d1   :  { %v3189_v29 = vpop.f32.mrf.mxu0  ;;  %v17390_v22 = vld [vmem:[#allocation15 + $0x224] ss:$16 sps:$4 sm:$0xff]   ;;  %v17394_v25 = vld [vmem:[#allocation15 + $0x200] ss:$16 sps:$4 sm:$0xff]  }
 0x2d2   :  { %v16104_v30 = vpop.f32.mrf.mxu1  ;;  %v3410_v31 = vpack.c.bf16 %v3403_v49, %v3403_v49  ;;  %v3404_v32 = vmul.f32 %v19700_v55, %v19700_v55  ;;  %v3397_v9 = vpack.c.bf16 %v19700_v55, %v19700_v55  ;;  %v17396_v26 = vld [vmem:[#allocation15 + $0x204] ss:$16 sps:$4 sm:$0xff]   ;;  %v17400_v27 = vld [vmem:[#allocation15 + $0x3e0] ss:$16 sps:$4 sm:$0xff]  }
 0x2d3   :  { %v17402_v49 = vld [vmem:[#allocation15 + $0x3e4] ss:$16 sps:$4 sm:$0xff]   ;;  %v17406_v30 = vld [vmem:[#allocation15 + $0x3c0] ss:$16 sps:$4 sm:$0xff]  }
 0x2d4   :  { %v3411_v33 = vpack.c.bf16 %v3404_v32, %v3404_v32  ;;  %v3424_v34 = vrot.slane %v3410_v31, 4  ;;  %v17408_v31 = vld [vmem:[#allocation15 + $0x3c4] ss:$16 sps:$4 sm:$0xff]  }
 0x2d6   :  { %v3425_v21 = vrot.slane %v3411_v33, 4  ;;  %v3446_v37 = vsel %vm3427_vm0, %v3396_v35, %v3424_v34  ;;  %v17412_v33 = vld [vmem:[#allocation15 + $0x3a0] ss:$16 sps:$4 sm:$0xff]   ;;  %v17414_v34 = vld [vmem:[#allocation15 + $0x3a4] ss:$16 sps:$4 sm:$0xff]  }
 0x2d7   :  { %v17420_v35 = vld [vmem:[#allocation15 + $0x384] ss:$16 sps:$4 sm:$0xff]  }
 0x2d8   :  { %v3450_v36 = vsel %vm3427_vm0, %v3397_v9, %v3425_v21  ;;  %v17418_v21 = vld [vmem:[#allocation15 + $0x380] ss:$16 sps:$4 sm:$0xff]  }
 0x2d9   :  { %4018 = vmatprep.mubr.bf16.mxu1 %v3450_v36 }
 0x2da   :  { %4019 = vmatmul.mubr.bf16.vlgmr.msra.gmra.mxu1 %v3446_v37 }
 0x2db   :  { %4196 = vmatprep.mubr.f32.mxu1 %v19244_v28  ;;  %14997 = vmatpush1.msk.msra.mxu1 %vm3427_vm0, %v4103_v4 }
 0x2dc   :  { %14999 = vmatprep.subr.msk.mxu1 %vm3427_vm0, %v4112_v39 }
 0x2eb   :  { %v16122_v38 = vpop.f32.mrf.mxu0 }
 0x2ec   :  { %v16144_v40 = vpop.f32.mrf.mxu1 }
 0x2ed   :  { %v16123_v41 = vpop.f32.mrf.mxu0 }
 0x2ee   :  { %v16145_v42 = vpop.f32.mrf.mxu1  ;;  %v16124_v50 = vadd.f32 %v16123_v41, %v16122_v38 }
 0x2ef   :  { %v16125_v43 = vpop.f32.mrf.mxu0  ;;  %v16146_v54 = vadd.f32 %v16145_v42, %v16144_v40 }
 0x2f0   :  { %v16147_v44 = vpop.f32.mrf.mxu1  ;;  %v3307_v53 = vadd.f32 %v16124_v50, %v16102_v51 }
 0x2f1   :  { %v16126_v45 = vpop.f32.mrf.mxu0 }
 0x2f2   :  { %v16148_v46 = vpop.f32.mrf.mxu1  ;;  %v3347_v56 = vadd.f32 %v16146_v54, %v3307_v53 }
 0x30b   :  { %v3386_v59 = vpop.f32.mrf.mxu0 }
 0x30c   :  { %v19711_v60 = vadd.f32 %v3386_v59, %v3347_v56  ;;  %v16175_v29 = vpop.f32.mrf.mxu1 }
 0x30d   :  { %v16595_v61 = vpop.f32.mrf.mxu0 }
 0x30e   :  { %v3405_v8 = vmul.f32 %v19711_v60, %v19711_v60  ;;  %v3398_v1 = vpack.c.bf16 %v19711_v60, %v19711_v60  ;;  %v16176_v32 = vpop.f32.mrf.mxu1 }
 0x30f   :  { %v3389_v62 = vpop.f32.mrf.mxu0  ;;  %v16177_v46 = vadd.f32 %v16176_v32, %v16175_v29  ;;  %v4096_v29 = vlaneseq }
 0x310   :  { %v3412_v63 = vpack.c.bf16 %v3405_v8, %v3405_v8  ;;  %v16178_v9 = vpop.f32.mrf.mxu1 }
 0x311   :  { %v16596_v0 = vpop.f32.mrf.mxu0 }
 0x312   :  { %v3426_v2 = vrot.slane %v3412_v63, 4  ;;  %v16179_v36 = vpop.f32.mrf.mxu1 }
 0x313   :  { %v16180_v56 = vadd.f32 %v16179_v36, %v16178_v9  ;;  %v4105_v36 = vld [vmem:[#allocation14 + $0x10] sm:$0xff] }
 0x314   :  { %v3454_v3 = vsel %vm3427_vm0, %v3398_v1, %v3426_v2 }
 0x315   :  { %16614 = vmatmul.mubr.bf16.vlgmr.msra.gmra.mxu0 %v3454_v3 }
 0x316   :  { %5885 = vmatpush1.bf16.msra.mxu0 %v17352_v6 }
 0x317   :  { %5886 = vmatprep.subr.bf16.mxu0 %v17360_v57 }
 0x31a   :  { %5887 = vmatpush1.bf16.msra.mxu0 %v17358_v10 }
 0x31b   :  { %5888 = vmatprep.subr.bf16.mxu0 %v17366_v12 }
 0x31e   :  { %5889 = vmatpush1.bf16.msra.mxu0 %v17364_v11 }
 0x31f   :  { %5890 = vmatprep.subr.bf16.mxu0 %v17372_v14 }
 0x322   :  { %5891 = vmatpush1.bf16.msra.mxu0 %v17370_v13 }
 0x323   :  { %5892 = vmatprep.subr.bf16.mxu0 %v17378_v17 }
 0x326   :  { %5893 = vmatpush1.bf16.msra.mxu0 %v17376_v16 }
 0x327   :  { %5894 = vmatprep.subr.bf16.mxu0 %v17384_v19 }
 0x32a   :  { %5895 = vmatpush1.bf16.msra.mxu0 %v17382_v58 }
 0x32b   :  { %5896 = vmatprep.subr.bf16.mxu0 %v17390_v22  ;;  %v16197_v37 = vpop.f32.mrf.mxu0 }
 0x32d   :  { %v16198_v40 = vpop.f32.mrf.mxu0 }
 0x32e   :  { %5897 = vmatpush1.bf16.msra.mxu0 %v17388_v20  ;;  %v16199_v44 = vadd.f32 %v16198_v40, %v16197_v37 }
 0x32f   :  { %5898 = vmatprep.subr.bf16.mxu0 %v17396_v26  ;;  %v16200_v42 = vpop.f32.mrf.mxu0 }
 0x330   :  { %v3980_v53 = vadd.f32 %v16199_v44, %v16177_v46  ;;  %v17349_v44 = vld [vmem:[#allocation15 + $0xc0] ss:$16 sps:$4 sm:$0xff]  }
 0x331   :  { %v16201_v45 = vpop.f32.mrf.mxu0  ;;  %v17355_v46 = vld [vmem:[#allocation15 + $0xa0] ss:$16 sps:$4 sm:$0xff]  }
 0x332   :  { %5899 = vmatpush1.bf16.msra.mxu0 %v17394_v25  ;;  %v16202_v54 = vadd.f32 %v16201_v45, %v16200_v42  ;;  %v17348_v42 = vld [vmem:[#allocation15 + $0xe4] ss:$16 sps:$4 sm:$0xff]  }
 0x333   :  { %5900 = vmatprep.subr.bf16.mxu0 %v17402_v49  ;;  %v17357_v45 = vld [vmem:[#allocation15 + $0xa4] ss:$16 sps:$4 sm:$0xff]  }
 0x334   :  { %v3983_v62 = vadd.f32 %v16202_v54, %v16180_v56  ;;  %v17367_v54 = vld [vmem:[#allocation15 + $0x60] ss:$16 sps:$4 sm:$0xff]   ;;  %v17375_v56 = vld [vmem:[#allocation15 + $0x44] ss:$16 sps:$4 sm:$0xff]  }
 0x336   :  { %5901 = vmatpush2.bf16.msra.mxu0 %v17400_v27 }
 0x337   :  { %5902 = vmatprep.subr.bf16.mxu0 %v17408_v31  ;;  %v19727_v31 = vshrl.u32 %v4096_v29, 7  ;;  %v17450_v29 = vld [vmem:[#allocation15 + $0x6e4] ss:$16 sps:$4 sm:$0xff]  }
 0x33a   :  { %5903 = vmatpush2.bf16.msra.mxu0 %v17406_v30  ;;  %v4088_v30 = vld [vmem:[#allocation11 + $0xa] sm:$0x1] }
 0x33b   :  { %5904 = vmatprep.subr.bf16.mxu0 %v17414_v34  ;;  %v4089_v34 = vld [vmem:[#allocation11 + $0xb] sm:$0x1] }
 0x33e   :  { %5905 = vmatpush2.bf16.msra.mxu0 %v17412_v33 }
 0x33f   :  { %5906 = vmatprep.subr.bf16.mxu0 %v17420_v35 }
 0x342   :  { %5907 = vmatpush2.bf16.msra.mxu0 %v17418_v21  ;;  %v19730_v21 = vsub.s32 0, %v19727_v31 }
 0x39a   :  { %v16219_v38 = vpop.f32.mrf.mxu1 }
 0x39c   :  { %v16220_v41 = vpop.f32.mrf.mxu1 }
 0x39d   :  { %v16221_v50 = vadd.f32 %v16220_v41, %v16219_v38  ;;  %v4113_v38 = vcombine.high %v4105_v36, %v4105_v36  ;;  %v4106_v41 = vld [vmem:[#allocation14 + $0x18] sm:$0xf] }
 0x39e   :  { %v16222_v43 = vpop.f32.mrf.mxu1 }
 0x39f   :  { %v4021_v61 = vadd.f32 %v16221_v50, %v3980_v53  ;;  %v17363_v50 = vld [vmem:[#allocation15 + $0x84] ss:$16 sps:$4 sm:$0xff]  }
 0x3a0   :  { %v16223_v51 = vpop.f32.mrf.mxu1  ;;  %v17369_v53 = vld [vmem:[#allocation15 + $0x64] ss:$16 sps:$4 sm:$0xff]  }
 0x3a1   :  { %v16224_v59 = vadd.f32 %v16223_v51, %v16222_v43  ;;  %v17351_v43 = vld [vmem:[#allocation15 + $0xc4] ss:$16 sps:$4 sm:$0xff]   ;;  %v17361_v51 = vld [vmem:[#allocation15 + $0x80] ss:$16 sps:$4 sm:$0xff]  }
 0x3a3   :  { %v4024_v2 = vadd.f32 %v16224_v59, %v3983_v62  ;;  %v17373_v59 = vld [vmem:[#allocation15 + $0x40] ss:$16 sps:$4 sm:$0xff]   ;;  %v17387_v62 = vld [vmem:[#allocation15 + $0x4] ss:$16 sps:$4 sm:$0xff]  }
 0x3d5   :  { %v4061_v8 = vpop.f32.mrf.mxu0 }
 0x3d6   :  { %v4062_v63 = vadd.f32 %v4061_v8, %v4021_v61  ;;  %v17381_v61 = vld [vmem:[#allocation15 + $0x24] ss:$16 sps:$4 sm:$0xff]   ;;  %v17379_v8 = vld [vmem:[#allocation15 + $0x20] ss:$16 sps:$4 sm:$0xff]  }
 0x3d7   :  { %v16615_v0 = vpop.f32.mrf.mxu0 }
 0x3d8   :  { %v4069_v1 = vsel %vm4068_vm2, %v4062_v63, 0.0  ;;  %v17385_v63 = vld [vmem:[#allocation15] ss:$16 sps:$4 sm:$0xff]   ;;  %v17393_v0 = vld [vmem:[#allocation15 + $0x1e4] ss:$16 sps:$4 sm:$0xff]  }
 0x3d9   :  { %v4070_v3 = vrot.slane %v4069_v1, 4  ;;  %v4064_v4 = vpop.f32.mrf.mxu0 }
 0x3da   :  { %v4065_v5 = vadd.f32 %v4064_v4, %v4024_v2  ;;  %v17399_v2 = vld [vmem:[#allocation15 + $0x1c4] ss:$16 sps:$4 sm:$0xff]  }
 0x3db   :  { %v4071_v39 = vadd.f32 %v4070_v3, %v4069_v1  ;;  %v16616_v6 = vpop.f32.mrf.mxu0  ;;  %v17391_v1 = vld [vmem:[#allocation15 + $0x1e0] ss:$16 sps:$4 sm:$0xff]   ;;  %v17405_v4 = vld [vmem:[#allocation15 + $0x1a4] ss:$16 sps:$4 sm:$0xff]  }
 0x3dc   :  { %v4077_v7 = vsel %vm4068_vm2, %v4065_v5, 0.0  ;;  %v17397_v3 = vld [vmem:[#allocation15 + $0x1c0] ss:$16 sps:$4 sm:$0xff]  }
 0x3dd   :  { %v4072_v10 = vrot.slane %v4071_v39, 2  ;;  %v4078_v57 = vrot.slane %v4077_v7, 4  ;;  %v17403_v5 = vld [vmem:[#allocation15 + $0x1a0] ss:$16 sps:$4 sm:$0xff]  }
 0x3de   :  { %v17409_v6 = vld [vmem:[#allocation15 + $0x180] ss:$16 sps:$4 sm:$0xff]  }
 0x3df   :  { %v4073_v11 = vadd.f32 %v4072_v10, %v4071_v39  ;;  %v4079_v12 = vadd.f32 %v4078_v57, %v4077_v7  ;;  %v17411_v39 = vld [vmem:[#allocation15 + $0x184] ss:$16 sps:$4 sm:$0xff]   ;;  %v17415_v10 = vld [vmem:[#allocation15 + $0x160] ss:$16 sps:$4 sm:$0xff]  }
 0x3e0   :  { %v17417_v7 = vld [vmem:[#allocation15 + $0x164] ss:$16 sps:$4 sm:$0xff]  }
 0x3e1   :  { %v4074_v13 = vrot.slane %v4073_v11, 1  ;;  %v4080_v14 = vrot.slane %v4079_v12, 2  ;;  %v17423_v57 = vld [vmem:[#allocation15 + $0x144] ss:$16 sps:$4 sm:$0xff]  }
 0x3e3   :  { %v4075_v16 = vadd.f32 %v4074_v13, %v4073_v11  ;;  %v4081_v17 = vadd.f32 %v4080_v14, %v4079_v12  ;;  %v17426_v11 = vld [vmem:[#allocation15 + $0x364] ss:$16 sps:$4 sm:$0xff]   ;;  %v17421_v12 = vld [vmem:[#allocation15 + $0x140] ss:$16 sps:$4 sm:$0xff]  }
 0x3e4   :  { %v17424_v13 = vld [vmem:[#allocation15 + $0x360] ss:$16 sps:$4 sm:$0xff]   ;;  %5908 = vmatprep.subr.bf16.mxu0 %v17426_v11  ;;  %v17429_v14 = vld [vmem:[#allocation15 + $0x124] ss:$16 sps:$4 sm:$0xff]  }
 0x3e5   :  { %v4076_v58 = vmul.f32 0.0025510204, %v4075_v16  ;;  %v4082_v19 = vrot.slane %v4081_v17, 1  ;;  %5909 = vmatpush2.bf16.msra.mxu0 %v17424_v13  ;;  %v17432_v16 = vld [vmem:[#allocation15 + $0x344] ss:$16 sps:$4 sm:$0xff]  }
 0x3e6   :  { %5910 = vmatprep.subr.bf16.mxu0 %v17432_v16  ;;  %v17454_v13 = vld [vmem:[#allocation15 + $0x6c0] ss:$16 sps:$4 sm:$0xff]   ;;  %v17462_v16 = vld [vmem:[#allocation15 + $0x6a4] ss:$16 sps:$4 sm:$0xff]  }
 0x3e7   :  { %v4083_v20 = vadd.f32 %v4082_v19, %v4081_v17  ;;  %v4085_v22 = vmul.f32 %v4076_v58, %v4076_v58  ;;  %v17427_v17 = vld [vmem:[#allocation15 + $0x120] ss:$16 sps:$4 sm:$0xff]   ;;  %v17435_v19 = vld [vmem:[#allocation15 + $0x104] ss:$16 sps:$4 sm:$0xff]  }
 0x3e9   :  { %v4084_v25 = vmul.f32 0.0025510204, %v4083_v20  ;;  %v17438_v20 = vld [vmem:[#allocation15 + $0x324] ss:$16 sps:$4 sm:$0xff]  }
 0x3eb   :  { %v4086_v26 = vsub.f32 %v4084_v25, %v4085_v22  ;;  %v17433_v22 = vld [vmem:[#allocation15 + $0x100] ss:$16 sps:$4 sm:$0xff]  }
 0x3ec   :  { %v17436_v25 = vld [vmem:[#allocation15 + $0x320] ss:$16 sps:$4 sm:$0xff]  }
 0x3ed   :  { %v4087_v27 = vmax.f32 %v4086_v26, 0.0  ;;  %v17441_v26 = vld [vmem:[#allocation15 + $0x304] ss:$16 sps:$4 sm:$0xff]  }
 0x3ef   :  { %v4090_v49 = vadd.f32 1e-05, %v4087_v27  ;;  %v17444_v27 = vld [vmem:[#allocation15 + $0x4e4] ss:$16 sps:$4 sm:$0xff]  }
 0x3f1   :  { %17779 = vrsqrt.f32 %v4090_v49  ;;  %v17439_v49 = vld [vmem:[#allocation15 + $0x300] ss:$16 sps:$4 sm:$0xff]  }
 0x3fe   :  { %v17780_v32 = vpop.eup %17779 }
 0x3ff   :  { %v4092_v33 = vmul.f32 %v17780_v32, %v4088_v30  ;;  %v19749_v30 = vsub.s32 1, %v19727_v31 }
 0x401   :  { %v4093_v9 = vmul.f32 %v4092_v33, %v4076_v58  ;;  %v17430_v58 = vld [vmem:[#allocation15 + $0x340] ss:$16 sps:$4 sm:$0xff]  }
 0x402   :  { %5911 = vmatpush2.bf16.msra.mxu0 %v17430_v58  ;;  %v17460_v58 = vld [vmem:[#allocation15 + $0x6a0] ss:$16 sps:$4 sm:$0xff]  }
 0x403   :  { %v4094_v35 = vsub.f32 %v4089_v34, %v4093_v9  ;;  %5912 = vmatprep.subr.bf16.mxu0 %v17438_v20  ;;  %v17468_v20 = vld [vmem:[#allocation15 + $0x684] ss:$16 sps:$4 sm:$0xff]  }
 0x405   :  { %v4099_v37 = vrot.slane %v4094_v35, %v19730_v21 }
 0x406   :  { %5913 = vmatpush2.bf16.msra.mxu0 %v17436_v25  ;;  %v17466_v25 = vld [vmem:[#allocation15 + $0x680] ss:$16 sps:$4 sm:$0xff]  }
 0x407   :  { %v4102_v40 = vsel %vm4101_vm3, %v4092_v33, %v4099_v37  ;;  %5914 = vmatprep.subr.bf16.mxu0 %v17441_v26  ;;  %v17463_v26 = vld [vmem:[#allocation15 + $0x460] ss:$16 sps:$4 sm:$0xff]  }
 0x408   :  { %14998 = vmatmul.mubr.msk.f32.vlgmr.msra.gmra.mxu1 %vm4114_vm4, %v4102_v40 }
 0x409   :  { %15000 = vmatpush1.msk.msra.mxu1 %vm3427_vm0, %v19718_v52  ;;  %4267 = vmatprep.mubr.f32.mxu1 %v19244_v28  ;;  %v17346_v52 = vld [vmem:[#allocation15 + $0xe0] ss:$16 sps:$4 sm:$0xff]  }
 0x40a   :  { %15002 = vmatprep.subr.msk.mxu1 %vm3427_vm0, %v4113_v38  ;;  %5915 = vmatpush2.bf16.msra.mxu0 %v17439_v49  ;;  %v17471_v49 = vld [vmem:[#allocation15 + $0x444] ss:$16 sps:$4 sm:$0xff]  }
 0x40b   :  { %5966 = vmatprep.subr.bf16.mxu0 %v17450_v29  ;;  %v17472_v29 = vld [vmem:[#allocation15 + $0x660] ss:$16 sps:$4 sm:$0xff]  }
 0x40c   :  { %15001 = vmatmul.mubr.msk.f32.vlgmr.msra.gmra.mxu1 %vm4114_vm4, %v4102_v40 }
 0x40d   :  { %15003 = vmatpush1.msk.msra.mxu1 %vm3427_vm0, %v4105_v36  ;;  %4338 = vmatprep.mubr.f32.mxu1 %v19244_v28 }
 0x40e   :  { %16617 = vmatprep.subr.mxu1 %v19244_v28 }
 0x410   :  { %15004 = vmatmul.mubr.msk.f32.vlgmr.msra.gmra.mxu1 %vm4114_vm4, %v4102_v40 }
 0x411   :  { %16618 = vmatpush3.msk.msra.mxu1 %vm3427_vm0, %v4106_v41  ;;  %16619 = vmatprep.mubr.msk.f32.mxu1 %vm19245_vm1, %v19244_v28 }
 0x412   :  { %5843 = vmatprep.subr.bf16.mxu1 %v17348_v42 }
 0x414   :  { %16620 = vmatmul.mubr.msk.f32.vlgmr.msra.gmra.mxu1 %vm4114_vm4, %v4102_v40 }
 0x415   :  { %5844 = vmatpush1.bf16.msra.mxu1 %v17346_v52 }
 0x416   :  { %5845 = vmatprep.subr.bf16.mxu1 %v17351_v43 }
 0x419   :  { %5846 = vmatpush1.bf16.msra.mxu1 %v17349_v44 }
 0x41a   :  { %5847 = vmatprep.subr.bf16.mxu1 %v17357_v45 }
 0x41d   :  { %5848 = vmatpush1.bf16.msra.mxu1 %v17355_v46 }
 0x41e   :  { %5849 = vmatprep.subr.bf16.mxu1 %v17363_v50 }
 0x421   :  { %5850 = vmatpush1.bf16.msra.mxu1 %v17361_v51 }
 0x422   :  { %5851 = vmatprep.subr.bf16.mxu1 %v17369_v53 }
 0x425   :  { %5852 = vmatpush1.bf16.msra.mxu1 %v17367_v54 }
 0x426   :  { %5853 = vmatprep.subr.bf16.mxu1 %v17375_v56 }
 0x429   :  { %5854 = vmatpush1.bf16.msra.mxu1 %v17373_v59 }
 0x42a   :  { %5855 = vmatprep.subr.bf16.mxu1 %v17381_v61 }
 0x42d   :  { %5856 = vmatpush1.bf16.msra.mxu1 %v17379_v8 }
 0x42e   :  { %5857 = vmatprep.subr.bf16.mxu1 %v17387_v62 }
 0x431   :  { %5858 = vmatpush1.bf16.msra.mxu1 %v17385_v63  ;;  %v17442_v63 = vld [vmem:[#allocation15 + $0x4e0] ss:$16 sps:$4 sm:$0xff]  }
 0x432   :  { %5859 = vmatprep.subr.bf16.mxu1 %v17393_v0 }
 0x435   :  { %5860 = vmatpush2.bf16.msra.mxu1 %v17391_v1 }
 0x436   :  { %5861 = vmatprep.subr.bf16.mxu1 %v17399_v2 }
 0x439   :  { %5862 = vmatpush2.bf16.msra.mxu1 %v17397_v3 }
 0x43a   :  { %5863 = vmatprep.subr.bf16.mxu1 %v17405_v4 }
 0x43d   :  { %5864 = vmatpush2.bf16.msra.mxu1 %v17403_v5 }
 0x43e   :  { %5865 = vmatprep.subr.bf16.mxu1 %v17411_v39 }
 0x441   :  { %5866 = vmatpush2.bf16.msra.mxu1 %v17409_v6  ;;  %v17448_v6 = vld [vmem:[#allocation15 + $0x6e0] ss:$16 sps:$4 sm:$0xff]  }
 0x442   :  { %5867 = vmatprep.subr.bf16.mxu1 %v17417_v7 }
 0x445   :  { %5868 = vmatpush2.bf16.msra.mxu1 %v17415_v10  ;;  %v17445_v10 = vld [vmem:[#allocation15 + $0x4c0] ss:$16 sps:$4 sm:$0xff]  }
 0x446   :  { %5869 = vmatprep.subr.bf16.mxu1 %v17423_v57  ;;  %v17456_v57 = vld [vmem:[#allocation15 + $0x6c4] ss:$16 sps:$4 sm:$0xff]  }
 0x449   :  { %5870 = vmatpush2.bf16.msra.mxu1 %v17421_v12 }
 0x44a   :  { %5871 = vmatprep.subr.bf16.mxu1 %v17429_v14  ;;  %v17451_v14 = vld [vmem:[#allocation15 + $0x4a0] ss:$16 sps:$4 sm:$0xff]  }
 0x44d   :  { %5872 = vmatpush2.bf16.msra.mxu1 %v17427_v17  ;;  %v17459_v17 = vld [vmem:[#allocation15 + $0x484] ss:$16 sps:$4 sm:$0xff]  }
 0x44e   :  { %5873 = vmatprep.subr.bf16.mxu1 %v17435_v19  ;;  %v17457_v19 = vld [vmem:[#allocation15 + $0x480] ss:$16 sps:$4 sm:$0xff]  }
 0x451   :  { %5874 = vmatpush2.bf16.msra.mxu1 %v17433_v22  ;;  %v17465_v22 = vld [vmem:[#allocation15 + $0x464] ss:$16 sps:$4 sm:$0xff]  }
 0x452   :  { %5925 = vmatprep.subr.bf16.mxu1 %v17444_v27  ;;  %v17474_v27 = vld [vmem:[#allocation15 + $0x664] ss:$16 sps:$4 sm:$0xff]  }
 0x4c8   :  { %v4198_v32 = vpop.f32.mrf.mxu1 }
 0x4c9   :  { %v4418_v33 = vrot.slane %v4198_v32, %v19730_v21  ;;  %v4453_v35 = vrot.slane %v4198_v32, %v19749_v30 }
 0x4ca   :  { %v4200_v34 = vpop.f32.mrf.mxu1 }
 0x4cb   :  { %v4443_v9 = vmul.f32 %v4418_v33, %v19458_v15  ;;  %v4422_v36 = vrot.slane %v4200_v34, %v19730_v21  ;;  %v4457_v41 = vrot.slane %v4200_v34, %v19749_v30  ;;  %v17469_v33 = vld [vmem:[#allocation15 + $0x440] ss:$16 sps:$4 sm:$0xff]   ;;  %v17480_v34 = vld [vmem:[#allocation15 + $0x644] ss:$16 sps:$4 sm:$0xff]  }
 0x4cc   :  { %v4269_v37 = vpop.f32.mrf.mxu1 }
 0x4cd   :  { %v4478_v38 = vadd.f32 %v4453_v35, %v4443_v9  ;;  %v4444_v40 = vmul.f32 %v4422_v36, %v19463_v24  ;;  %v4426_v42 = vrot.slane %v4269_v37, %v19730_v21  ;;  %v4461_v45 = vrot.slane %v4269_v37, %v19749_v30  ;;  %v17477_v9 = vld [vmem:[#allocation15 + $0x424] ss:$16 sps:$4 sm:$0xff]   ;;  %v17478_v35 = vld [vmem:[#allocation15 + $0x640] ss:$16 sps:$4 sm:$0xff]  }
 0x4ce   :  { %v4271_v52 = vpop.f32.mrf.mxu1  ;;  %v17475_v37 = vld [vmem:[#allocation15 + $0x420] ss:$16 sps:$4 sm:$0xff]  }
 0x4cf   :  { %v4479_v43 = vadd.f32 %v4457_v41, %v4444_v40  ;;  %v4445_v44 = vmul.f32 %v4426_v42, %v19582_v47  ;;  %v4430_v15 = vrot.slane %v4271_v52, %v19730_v21  ;;  %v4485_v46 = vmax.f32 %v4478_v38, 0.0  ;;  %v17486_v38 = vld [vmem:[#allocation15 + $0x624] ss:$16 sps:$4 sm:$0xff]   ;;  %v17484_v42 = vld [vmem:[#allocation15 + $0x620] ss:$16 sps:$4 sm:$0xff]  }
 0x4d0   :  { %v19761_v50 = vpop.f32.mrf.mxu1  ;;  %v4465_v24 = vrot.slane %v4271_v52, %v19749_v30  ;;  %v17483_v40 = vld [vmem:[#allocation15 + $0x404] ss:$16 sps:$4 sm:$0xff]  }
 0x4d1   :  { %v4486_v51 = vmax.f32 %v4479_v43, 0.0  ;;  %v4480_v53 = vadd.f32 %v4461_v45, %v4445_v44  ;;  %v4446_v54 = vmul.f32 %v4430_v15, %v19595_v48  ;;  %v19770_v0 = vpack.c.bf16 %v4485_v46, %v4485_v46  ;;  %v17447_v48 = vld [vmem:[#allocation15 + $0x4c4] ss:$16 sps:$4 sm:$0xff]   ;;  %v17481_v43 = vld [vmem:[#allocation15 + $0x400] ss:$16 sps:$4 sm:$0xff]  }
 0x4d2   :  { %v4342_v56 = vpop.f32.mrf.mxu1  ;;  %v17492_v44 = vld [vmem:[#allocation15 + $0x604] ss:$16 sps:$4 sm:$0xff]   ;;  %v17487_v46 = vld [vmem:[#allocation15 + $0x5e0] ss:$16 sps:$4 sm:$0xff]  }
 0x4d3   :  { %v4481_v59 = vadd.f32 %v4465_v24, %v4446_v54  ;;  %v4438_v61 = vrot.slane %v4342_v56, %v19730_v21  ;;  %v4487_v8 = vmax.f32 %v4480_v53, 0.0  ;;  %v19768_v47 = vpack.c.bf16 %v4486_v51, %v4486_v51  ;;  %v17489_v45 = vld [vmem:[#allocation15 + $0x5e4] ss:$16 sps:$4 sm:$0xff]   ;;  %v17498_v51 = vld [vmem:[#allocation15 + $0xec] ss:$16 sps:$4 sm:$0xff]  }
 0x4d4   :  { %v19766_v62 = vpop.f32.mrf.mxu1  ;;  %v4473_v3 = vrot.slane %v4342_v56, %v19749_v30  ;;  %v17495_v53 = vld [vmem:[#allocation15 + $0x5c4] ss:$16 sps:$4 sm:$0xff]   ;;  %v17496_v54 = vld [vmem:[#allocation15 + $0xe8] ss:$16 sps:$4 sm:$0xff]   ;;  %v17493_v56 = vld [vmem:[#allocation15 + $0x5c0] ss:$16 sps:$4 sm:$0xff]  }
 0x4d5   :  { %v4488_v1 = vmax.f32 %v4481_v59, 0.0  ;;  %v4448_v2 = vmul.f32 %v4438_v61, %v19700_v55  ;;  %5875 = vmatprep.mubr.bf16.mxu1 %v19768_v47  ;;  %v19778_v7 = vpack.c.bf16 %v4487_v8, %v4487_v8  ;;  %v17453_v55 = vld [vmem:[#allocation15 + $0x4a4] ss:$16 sps:$4 sm:$0xff]   ;;  %v4442_v32 = vrot.slane %v19766_v62, %v19730_v21  ;;  %v17504_v59 = vld [vmem:[#allocation15 + $0xcc] ss:$16 sps:$4 sm:$0xff]  }
 0x4d6   :  { %v16621_v4 = vpop.f32.mrf.mxu1  ;;  %5876 = vmatmul.mubr.bf16.vlgmr.msra.gmra.mxu1 %v19770_v0  ;;  %v4477_v41 = vrot.slane %v19766_v62, %v19749_v30  ;;  %v17501_v61 = vld [vmem:[#allocation15 + $0x5a4] ss:$16 sps:$4 sm:$0xff]   ;;  %v17502_v8 = vld [vmem:[#allocation15 + $0xc8] ss:$16 sps:$4 sm:$0xff]   ;;  %v17499_v62 = vld [vmem:[#allocation15 + $0x5a0] ss:$16 sps:$4 sm:$0xff]  }
 0x4d7   :  { %v4483_v5 = vadd.f32 %v4473_v3, %v4448_v2  ;;  %v19776_v39 = vpack.c.bf16 %v4488_v1, %v4488_v1  ;;  %5926 = vmatpush1.bf16.msra.mxu1 %v17442_v63  ;;  %v4449_v36 = vmul.f32 %v4442_v32, %v19711_v60  ;;  %v17490_v60 = vld [vmem:[#allocation15 + $0x600] ss:$16 sps:$4 sm:$0xff]   ;;  %v17510_v63 = vld [vmem:[#allocation15 + $0xac] ss:$16 sps:$4 sm:$0xff]   ;;  %v17507_v1 = vld [vmem:[#allocation15 + $0x584] ss:$16 sps:$4 sm:$0xff]  }
 0x4d8   :  { %5927 = vmatprep.subr.bf16.mxu1 %v17447_v48  ;;  %v17508_v2 = vld [vmem:[#allocation15 + $0xa8] ss:$16 sps:$4 sm:$0xff]   ;;  %v17505_v3 = vld [vmem:[#allocation15 + $0x580] ss:$16 sps:$4 sm:$0xff]   ;;  %v17516_v48 = vld [vmem:[#allocation15 + $0x8c] ss:$16 sps:$4 sm:$0xff]  }
 0x4d9   :  { %v4490_v11 = vmax.f32 %v4483_v5, 0.0  ;;  %5916 = vmatprep.mubr.bf16.mxu0 %v19776_v39  ;;  %v4484_v52 = vadd.f32 %v4477_v41, %v4449_v36  ;;  %v17513_v4 = vld [vmem:[#allocation15 + $0x564] ss:$16 sps:$4 sm:$0xff]   ;;  %v17514_v5 = vld [vmem:[#allocation15 + $0x88] ss:$16 sps:$4 sm:$0xff]  }
 0x4da   :  { %5917 = vmatmul.mubr.bf16.vlgmr.msra.gmra.mxu0 %v19778_v7  ;;  %v17538_v32 = vld [vmem:[#allocation15 + $0x2e8] ss:$16 sps:$4 sm:$0xff]  }
 0x4db   :  { %5967 = vmatpush1.bf16.msra.mxu0 %v17448_v6  ;;  %v19782_v12 = vpack.c.bf16 %v4490_v11, %v4490_v11  ;;  %5998 = vmatprep.mubr.bf16.mxu0 %v19243_v18  ;;  %v4491_v15 = vmax.f32 %v4484_v52, 0.0  ;;  %v17511_v6 = vld [vmem:[#allocation15 + $0x560] ss:$16 sps:$4 sm:$0xff]   ;;  %v17520_v11 = vld [vmem:[#allocation15 + $0x68] ss:$16 sps:$4 sm:$0xff]  }
 0x4dc   :  { %5928 = vmatpush1.bf16.msra.mxu1 %v17445_v10  ;;  %5968 = vmatprep.subr.bf16.mxu0 %v17456_v57  ;;  %v4434_v10 = vrot.slane %v19761_v50, %v19730_v21  ;;  %v17519_v57 = vld [vmem:[#allocation15 + $0x544] ss:$16 sps:$4 sm:$0xff]   ;;  %v17544_v36 = vld [vmem:[#allocation15 + $0x2c8] ss:$16 sps:$4 sm:$0xff]   ;;  %v17558_v52 = vld [vmem:[#allocation15 + $0x28c] ss:$16 sps:$4 sm:$0xff]  }
 0x4dd   :  { %5929 = vmatprep.subr.bf16.mxu1 %v17453_v55  ;;  %5957 = vmatprep.mubr.bf16.mxu1 %v19782_v12  ;;  %v19791_v24 = vpack.c.bf16 %v4491_v15, %v4491_v15  ;;  %v17517_v55 = vld [vmem:[#allocation15 + $0x540] ss:$16 sps:$4 sm:$0xff]   ;;  %v17550_v41 = vld [vmem:[#allocation15 + $0x2a8] ss:$16 sps:$4 sm:$0xff]  }
 0x4de   :  { %v17562_v15 = vld [vmem:[#allocation15 + $0x268] ss:$16 sps:$4 sm:$0xff]  }
 0x4df   :  { %5969 = vmatpush1.bf16.msra.mxu0 %v17454_v13  ;;  %v17528_v13 = vld [vmem:[#allocation15 + $0x4c] ss:$16 sps:$4 sm:$0xff]  }
 0x4e0   :  { %5930 = vmatpush1.bf16.msra.mxu1 %v17451_v14  ;;  %5970 = vmatprep.subr.bf16.mxu0 %v17462_v16  ;;  %v4447_v14 = vmul.f32 %v4434_v10, %v19696_v23  ;;  %v17525_v16 = vld [vmem:[#allocation15 + $0x524] ss:$16 sps:$4 sm:$0xff]   ;;  %v17537_v23 = vld [vmem:[#allocation15 + $0xc] ss:$16 sps:$4 sm:$0xff]   ;;  %v17592_v10 = vld [vmem:[#allocation15 + $0x4e8] ss:$16 sps:$4 sm:$0xff]  }
 0x4e1   :  { %5931 = vmatprep.subr.bf16.mxu1 %v17459_v17  ;;  %v4469_v17 = vrot.slane %v19761_v50, %v19749_v30  ;;  %v17535_v50 = vld [vmem:[#allocation15 + $0x8] ss:$16 sps:$4 sm:$0xff]  }
 0x4e3   :  { %5971 = vmatpush1.bf16.msra.mxu0 %v17460_v58  ;;  %v17526_v58 = vld [vmem:[#allocation15 + $0x48] ss:$16 sps:$4 sm:$0xff]  }
 0x4e4   :  { %5932 = vmatpush1.bf16.msra.mxu1 %v17457_v19  ;;  %5972 = vmatprep.subr.bf16.mxu0 %v17468_v20  ;;  %v17523_v19 = vld [vmem:[#allocation15 + $0x520] ss:$16 sps:$4 sm:$0xff]   ;;  %v17534_v20 = vld [vmem:[#allocation15 + $0x2c] ss:$16 sps:$4 sm:$0xff]  }
 0x4e5   :  { %5933 = vmatprep.subr.bf16.mxu1 %v17465_v22  ;;  %v4482_v22 = vadd.f32 %v4469_v17, %v4447_v14  ;;  %v17595_v14 = vld [vmem:[#allocation15 + $0x3a8] ss:$16 sps:$4 sm:$0xff]   ;;  %v17603_v17 = vld [vmem:[#allocation15 + $0x38c] ss:$16 sps:$4 sm:$0xff]  }
 0x4e7   :  { %5973 = vmatpush1.bf16.msra.mxu0 %v17466_v25  ;;  %v17531_v25 = vld [vmem:[#allocation15 + $0x504] ss:$16 sps:$4 sm:$0xff]  }
 0x4e8   :  { %5934 = vmatpush1.bf16.msra.mxu1 %v17463_v26  ;;  %5974 = vmatprep.subr.bf16.mxu0 %v17474_v27  ;;  %v17532_v26 = vld [vmem:[#allocation15 + $0x28] ss:$16 sps:$4 sm:$0xff]   ;;  %v17529_v27 = vld [vmem:[#allocation15 + $0x500] ss:$16 sps:$4 sm:$0xff]  }
 0x4e9   :  { %5935 = vmatprep.subr.bf16.mxu1 %v17471_v49  ;;  %v4489_v49 = vmax.f32 %v4482_v22, 0.0  ;;  %v17609_v22 = vld [vmem:[#allocation15 + $0x36c] ss:$16 sps:$4 sm:$0xff]  }
 0x4eb   :  { %5975 = vmatpush1.bf16.msra.mxu0 %v17472_v29  ;;  %v17540_v29 = vld [vmem:[#allocation15 + $0x2ec] ss:$16 sps:$4 sm:$0xff]  }
 0x4ec   :  { %5936 = vmatpush1.bf16.msra.mxu1 %v17469_v33  ;;  %5976 = vmatprep.subr.bf16.mxu0 %v17480_v34  ;;  %v19800_v33 = vpack.c.bf16 %v4489_v49, %v4489_v49  ;;  %v17543_v34 = vld [vmem:[#allocation15 + $0x1ec] ss:$16 sps:$4 sm:$0xff]  }
 0x4ed   :  { %5937 = vmatprep.subr.bf16.mxu1 %v17477_v9  ;;  %v17546_v9 = vld [vmem:[#allocation15 + $0x2cc] ss:$16 sps:$4 sm:$0xff]  }
 0x4ee   :  { %v17624_v49 = vld [vmem:[#allocation15 + $0x44c] ss:$16 sps:$4 sm:$0xff]  }
 0x4ef   :  { %5977 = vmatpush1.bf16.msra.mxu0 %v17478_v35  ;;  %v17541_v35 = vld [vmem:[#allocation15 + $0x1e8] ss:$16 sps:$4 sm:$0xff]  }
 0x4f0   :  { %5938 = vmatpush1.bf16.msra.mxu1 %v17475_v37  ;;  %5978 = vmatprep.subr.bf16.mxu0 %v17486_v38  ;;  %v17549_v37 = vld [vmem:[#allocation15 + $0x1cc] ss:$16 sps:$4 sm:$0xff]  }
 0x4f1   :  { %5939 = vmatprep.subr.bf16.mxu1 %v17483_v40  ;;  %v17552_v38 = vld [vmem:[#allocation15 + $0x2ac] ss:$16 sps:$4 sm:$0xff]   ;;  %v17547_v40 = vld [vmem:[#allocation15 + $0x1c8] ss:$16 sps:$4 sm:$0xff]  }
 0x4f3   :  { %5979 = vmatpush1.bf16.msra.mxu0 %v17484_v42  ;;  %v17555_v42 = vld [vmem:[#allocation15 + $0x1ac] ss:$16 sps:$4 sm:$0xff]  }
 0x4f4   :  { %5940 = vmatpush1.bf16.msra.mxu1 %v17481_v43  ;;  %5980 = vmatprep.subr.bf16.mxu0 %v17492_v44  ;;  %v17553_v43 = vld [vmem:[#allocation15 + $0x1a8] ss:$16 sps:$4 sm:$0xff]  }
 0x4f5   :  { %5941 = vmatprep.subr.bf16.mxu1 %v17489_v45  ;;  %v17556_v44 = vld [vmem:[#allocation15 + $0x288] ss:$16 sps:$4 sm:$0xff]   ;;  %v17561_v45 = vld [vmem:[#allocation15 + $0x18c] ss:$16 sps:$4 sm:$0xff]  }
 0x4f7   :  { %5981 = vmatpush1.bf16.msra.mxu0 %v17490_v60  ;;  %v17559_v60 = vld [vmem:[#allocation15 + $0x188] ss:$16 sps:$4 sm:$0xff]  }
 0x4f8   :  { %5942 = vmatpush2.bf16.msra.mxu1 %v17487_v46  ;;  %6007 = vmatprep.subr.bf16.mxu0 %v17498_v51  ;;  %v17567_v46 = vld [vmem:[#allocation15 + $0x16c] ss:$16 sps:$4 sm:$0xff]  }
 0x4f9   :  { %5943 = vmatprep.subr.bf16.mxu1 %v17495_v53  ;;  %v17570_v51 = vld [vmem:[#allocation15 + $0x24c] ss:$16 sps:$4 sm:$0xff]   ;;  %v17565_v53 = vld [vmem:[#allocation15 + $0x168] ss:$16 sps:$4 sm:$0xff]  }
 0x4fa   :  { %5999 = vmatmul.mubr.bf16.vlgmr.msra.gmra.mxu0 %v19791_v24 }
 0x4fb   :  { %6008 = vmatpush1.bf16.msra.mxu0 %v17496_v54  ;;  %6039 = vmatprep.mubr.bf16.mxu0 %v19768_v47  ;;  %v17522_v47 = vld [vmem:[#allocation15 + $0x6c] ss:$16 sps:$4 sm:$0xff]   ;;  %v17568_v54 = vld [vmem:[#allocation15 + $0x248] ss:$16 sps:$4 sm:$0xff]  }
 0x4fc   :  { %5944 = vmatpush2.bf16.msra.mxu1 %v17493_v56  ;;  %6009 = vmatprep.subr.bf16.mxu0 %v17504_v59  ;;  %v17573_v56 = vld [vmem:[#allocation15 + $0x14c] ss:$16 sps:$4 sm:$0xff]  }
 0x4fd   :  { %5945 = vmatprep.subr.bf16.mxu1 %v17501_v61  ;;  %v17576_v59 = vld [vmem:[#allocation15 + $0x22c] ss:$16 sps:$4 sm:$0xff]   ;;  %v17571_v61 = vld [vmem:[#allocation15 + $0x148] ss:$16 sps:$4 sm:$0xff]  }
 0x4ff   :  { %6010 = vmatpush1.bf16.msra.mxu0 %v17502_v8  ;;  %v17574_v8 = vld [vmem:[#allocation15 + $0x228] ss:$16 sps:$4 sm:$0xff]  }
 0x500   :  { %5946 = vmatpush2.bf16.msra.mxu1 %v17499_v62  ;;  %6011 = vmatprep.subr.bf16.mxu0 %v17510_v63  ;;  %v17579_v62 = vld [vmem:[#allocation15 + $0x12c] ss:$16 sps:$4 sm:$0xff]  }
 0x501   :  { %5947 = vmatprep.subr.bf16.mxu1 %v17507_v1  ;;  %v17582_v63 = vld [vmem:[#allocation15 + $0x20c] ss:$16 sps:$4 sm:$0xff]   ;;  %v17577_v1 = vld [vmem:[#allocation15 + $0x128] ss:$16 sps:$4 sm:$0xff]  }
 0x503   :  { %6012 = vmatpush1.bf16.msra.mxu0 %v17508_v2  ;;  %v17580_v2 = vld [vmem:[#allocation15 + $0x208] ss:$16 sps:$4 sm:$0xff]  }
 0x504   :  { %5948 = vmatpush2.bf16.msra.mxu1 %v17505_v3  ;;  %6013 = vmatprep.subr.bf16.mxu0 %v17516_v48  ;;  %v17585_v3 = vld [vmem:[#allocation15 + $0x10c] ss:$16 sps:$4 sm:$0xff]  }
 0x505   :  { %5949 = vmatprep.subr.bf16.mxu1 %v17513_v4  ;;  %v17588_v48 = vld [vmem:[#allocation15 + $0x3ec] ss:$16 sps:$4 sm:$0xff]   ;;  %v17583_v4 = vld [vmem:[#allocation15 + $0x108] ss:$16 sps:$4 sm:$0xff]  }
 0x507   :  { %6014 = vmatpush1.bf16.msra.mxu0 %v17514_v5  ;;  %v17586_v5 = vld [vmem:[#allocation15 + $0x3e8] ss:$16 sps:$4 sm:$0xff]  }
 0x508   :  { %5950 = vmatpush2.bf16.msra.mxu1 %v17511_v6  ;;  %6015 = vmatprep.subr.bf16.mxu0 %v17522_v47  ;;  %v17594_v6 = vld [vmem:[#allocation15 + $0x4ec] ss:$16 sps:$4 sm:$0xff]  }
 0x509   :  { %5951 = vmatprep.subr.bf16.mxu1 %v17519_v57  ;;  %v17591_v47 = vld [vmem:[#allocation15 + $0x3cc] ss:$16 sps:$4 sm:$0xff]   ;;  %v17589_v57 = vld [vmem:[#allocation15 + $0x3c8] ss:$16 sps:$4 sm:$0xff]  }
 0x50b   :  { %6016 = vmatpush1.bf16.msra.mxu0 %v17520_v11  ;;  %v17600_v11 = vld [vmem:[#allocation15 + $0x4cc] ss:$16 sps:$4 sm:$0xff]  }
 0x50c   :  { %5952 = vmatpush2.bf16.msra.mxu1 %v17517_v55  ;;  %6017 = vmatprep.subr.bf16.mxu0 %v17528_v13  ;;  %v17597_v55 = vld [vmem:[#allocation15 + $0x3ac] ss:$16 sps:$4 sm:$0xff]   ;;  %v17598_v13 = vld [vmem:[#allocation15 + $0x4c8] ss:$16 sps:$4 sm:$0xff]  }
 0x50d   :  { %5953 = vmatprep.subr.bf16.mxu1 %v17525_v16  ;;  %v17606_v16 = vld [vmem:[#allocation15 + $0x4ac] ss:$16 sps:$4 sm:$0xff]  }
 0x50f   :  { %6018 = vmatpush1.bf16.msra.mxu0 %v17526_v58  ;;  %v17604_v58 = vld [vmem:[#allocation15 + $0x4a8] ss:$16 sps:$4 sm:$0xff]  }
 0x510   :  { %5954 = vmatpush2.bf16.msra.mxu1 %v17523_v19  ;;  %6019 = vmatprep.subr.bf16.mxu0 %v17534_v20  ;;  %v17601_v19 = vld [vmem:[#allocation15 + $0x388] ss:$16 sps:$4 sm:$0xff]   ;;  %v17612_v20 = vld [vmem:[#allocation15 + $0x48c] ss:$16 sps:$4 sm:$0xff]  }
 0x511   :  { %5955 = vmatprep.subr.bf16.mxu1 %v17531_v25  ;;  %v17607_v25 = vld [vmem:[#allocation15 + $0x368] ss:$16 sps:$4 sm:$0xff]  }
 0x513   :  { %6020 = vmatpush1.bf16.msra.mxu0 %v17532_v26  ;;  %v17615_v26 = vld [vmem:[#allocation15 + $0x34c] ss:$16 sps:$4 sm:$0xff]  }
 0x514   :  { %5956 = vmatpush2.bf16.msra.mxu1 %v17529_v27  ;;  %6021 = vmatprep.subr.bf16.mxu0 %v17537_v23  ;;  %v17616_v27 = vld [vmem:[#allocation15 + $0x468] ss:$16 sps:$4 sm:$0xff]  }
 0x515   :  { %6048 = vmatprep.subr.bf16.mxu1 %v17540_v29  ;;  %v17613_v23 = vld [vmem:[#allocation15 + $0x348] ss:$16 sps:$4 sm:$0xff]   ;;  %v17621_v29 = vld [vmem:[#allocation15 + $0x32c] ss:$16 sps:$4 sm:$0xff]  }
 0x517   :  { %5958 = vmatmul.mubr.bf16.vlgmr.msra.gmra.mxu1 %v19800_v33  ;;  %6022 = vmatpush1.bf16.msra.mxu0 %v17535_v50  ;;  %v17622_v50 = vld [vmem:[#allocation15 + $0x448] ss:$16 sps:$4 sm:$0xff]  }
 0x518   :  { %6049 = vmatpush1.bf16.msra.mxu1 %v17538_v32  ;;  %6080 = vmatprep.mubr.bf16.mxu1 %v19776_v39  ;;  %v17564_v39 = vld [vmem:[#allocation15 + $0x26c] ss:$16 sps:$4 sm:$0xff]   ;;  %v17619_v32 = vld [vmem:[#allocation15 + $0x328] ss:$16 sps:$4 sm:$0xff]  }
 0x519   :  { %6023 = vmatprep.subr.bf16.mxu0 %v17543_v34  ;;  %6050 = vmatprep.subr.bf16.mxu1 %v17546_v9  ;;  %v17630_v34 = vld [vmem:[#allocation15 + $0x42c] ss:$16 sps:$4 sm:$0xff]  }
 0x51a   :  { %v17627_v9 = vld [vmem:[#allocation15 + $0x30c] ss:$16 sps:$4 sm:$0xff]  }
 0x51b   :  { %6024 = vmatpush2.bf16.msra.mxu0 %v17541_v35  ;;  %v17628_v35 = vld [vmem:[#allocation15 + $0x428] ss:$16 sps:$4 sm:$0xff]  }
 0x51c   :  { %6051 = vmatpush1.bf16.msra.mxu1 %v17544_v36  ;;  %6025 = vmatprep.subr.bf16.mxu0 %v17549_v37  ;;  %v17625_v36 = vld [vmem:[#allocation15 + $0x308] ss:$16 sps:$4 sm:$0xff]   ;;  %v17633_v37 = vld [vmem:[#allocation15 + $0x40c] ss:$16 sps:$4 sm:$0xff]  }
 0x51d   :  { %6052 = vmatprep.subr.bf16.mxu1 %v17552_v38  ;;  %v17636_v38 = vld [vmem:[#allocation15 + $0x6ec] ss:$16 sps:$4 sm:$0xff]  }
 0x51f   :  { %6026 = vmatpush2.bf16.msra.mxu0 %v17547_v40  ;;  %v17631_v40 = vld [vmem:[#allocation15 + $0x408] ss:$16 sps:$4 sm:$0xff]  }
 0x520   :  { %6053 = vmatpush1.bf16.msra.mxu1 %v17550_v41  ;;  %6027 = vmatprep.subr.bf16.mxu0 %v17555_v42  ;;  %v17634_v41 = vld [vmem:[#allocation15 + $0x6e8] ss:$16 sps:$4 sm:$0xff]   ;;  %v17639_v42 = vld [vmem:[#allocation15 + $0x5ec] ss:$16 sps:$4 sm:$0xff]  }
 0x521   :  { %6054 = vmatprep.subr.bf16.mxu1 %v17558_v52  ;;  %v17642_v52 = vld [vmem:[#allocation15 + $0x6cc] ss:$16 sps:$4 sm:$0xff]  }
 0x523   :  { %6028 = vmatpush2.bf16.msra.mxu0 %v17553_v43  ;;  %v17637_v43 = vld [vmem:[#allocation15 + $0x5e8] ss:$16 sps:$4 sm:$0xff]  }
 0x524   :  { %6055 = vmatpush1.bf16.msra.mxu1 %v17556_v44  ;;  %6029 = vmatprep.subr.bf16.mxu0 %v17561_v45  ;;  %v17640_v44 = vld [vmem:[#allocation15 + $0x6c8] ss:$16 sps:$4 sm:$0xff]   ;;  %v17645_v45 = vld [vmem:[#allocation15 + $0x5cc] ss:$16 sps:$4 sm:$0xff]  }
 0x525   :  { %6056 = vmatprep.subr.bf16.mxu1 %v17564_v39  ;;  %v17648_v39 = vld [vmem:[#allocation15 + $0x6ac] ss:$16 sps:$4 sm:$0xff]  }
 0x527   :  { %6030 = vmatpush2.bf16.msra.mxu0 %v17559_v60  ;;  %v17643_v60 = vld [vmem:[#allocation15 + $0x5c8] ss:$16 sps:$4 sm:$0xff]  }
 0x528   :  { %6057 = vmatpush1.bf16.msra.mxu1 %v17562_v15  ;;  %6031 = vmatprep.subr.bf16.mxu0 %v17567_v46  ;;  %v17646_v15 = vld [vmem:[#allocation15 + $0x6a8] ss:$16 sps:$4 sm:$0xff]   ;;  %v17651_v46 = vld [vmem:[#allocation15 + $0x5ac] ss:$16 sps:$4 sm:$0xff]  }
 0x529   :  { %6058 = vmatprep.subr.bf16.mxu1 %v17570_v51  ;;  %v17654_v51 = vld [vmem:[#allocation15 + $0x68c] ss:$16 sps:$4 sm:$0xff]  }
 0x52b   :  { %6032 = vmatpush2.bf16.msra.mxu0 %v17565_v53  ;;  %v17652_v53 = vld [vmem:[#allocation15 + $0x688] ss:$16 sps:$4 sm:$0xff]  }
 0x52c   :  { %6059 = vmatpush1.bf16.msra.mxu1 %v17568_v54  ;;  %6033 = vmatprep.subr.bf16.mxu0 %v17573_v56  ;;  %v17657_v54 = vld [vmem:[#allocation15 + $0x58c] ss:$16 sps:$4 sm:$0xff]  }
 0x52d   :  { %6060 = vmatprep.subr.bf16.mxu1 %v17576_v59  ;;  %v17660_v56 = vld [vmem:[#allocation15 + $0x66c] ss:$16 sps:$4 sm:$0xff]   ;;  %v17655_v59 = vld [vmem:[#allocation15 + $0x588] ss:$16 sps:$4 sm:$0xff]  }
 0x52f   :  { %6034 = vmatpush2.bf16.msra.mxu0 %v17571_v61  ;;  %v17658_v61 = vld [vmem:[#allocation15 + $0x668] ss:$16 sps:$4 sm:$0xff]  }
 0x530   :  { %6061 = vmatpush1.bf16.msra.mxu1 %v17574_v8  ;;  %6035 = vmatprep.subr.bf16.mxu0 %v17579_v62  ;;  %v17663_v8 = vld [vmem:[#allocation15 + $0x56c] ss:$16 sps:$4 sm:$0xff]  }
 0x531   :  { %6062 = vmatprep.subr.bf16.mxu1 %v17582_v63  ;;  %v17666_v62 = vld [vmem:[#allocation15 + $0x64c] ss:$16 sps:$4 sm:$0xff]   ;;  %v17661_v63 = vld [vmem:[#allocation15 + $0x568] ss:$16 sps:$4 sm:$0xff]  }
 0x533   :  { %6036 = vmatpush2.bf16.msra.mxu0 %v17577_v1  ;;  %v17664_v1 = vld [vmem:[#allocation15 + $0x648] ss:$16 sps:$4 sm:$0xff]  }
 0x534   :  { %6063 = vmatpush1.bf16.msra.mxu1 %v17580_v2  ;;  %6037 = vmatprep.subr.bf16.mxu0 %v17585_v3  ;;  %v17669_v2 = vld [vmem:[#allocation15 + $0x54c] ss:$16 sps:$4 sm:$0xff]  }
 0x535   :  { %6064 = vmatprep.subr.bf16.mxu1 %v17588_v48  ;;  %v17672_v3 = vld [vmem:[#allocation15 + $0x62c] ss:$16 sps:$4 sm:$0xff]   ;;  %v17667_v48 = vld [vmem:[#allocation15 + $0x548] ss:$16 sps:$4 sm:$0xff]  }
 0x537   :  { %6038 = vmatpush2.bf16.msra.mxu0 %v17583_v4  ;;  %v17670_v4 = vld [vmem:[#allocation15 + $0x628] ss:$16 sps:$4 sm:$0xff]  }
 0x538   :  { %6065 = vmatpush2.bf16.msra.mxu1 %v17586_v5  ;;  %6089 = vmatprep.subr.bf16.mxu0 %v17594_v6  ;;  %v17675_v5 = vld [vmem:[#allocation15 + $0x52c] ss:$16 sps:$4 sm:$0xff]  }
 0x539   :  { %6066 = vmatprep.subr.bf16.mxu1 %v17591_v47  ;;  %v17678_v6 = vld [vmem:[#allocation15 + $0x60c] ss:$16 sps:$4 sm:$0xff]   ;;  %v17673_v47 = vld [vmem:[#allocation15 + $0x528] ss:$16 sps:$4 sm:$0xff]  }
 0x53a   :  { %6040 = vmatmul.mubr.bf16.vlgmr.msra.gmra.mxu0 %v19770_v0  ;;  %v17610_v0 = vld [vmem:[#allocation15 + $0x488] ss:$16 sps:$4 sm:$0xff]  }
 0x53b   :  { %6090 = vmatpush1.bf16.msra.mxu0 %v17592_v10  ;;  %6121 = vmatprep.mubr.bf16.mxu0 %v19782_v12  ;;  %v17618_v12 = vld [vmem:[#allocation15 + $0x46c] ss:$16 sps:$4 sm:$0xff]   ;;  %v17676_v10 = vld [vmem:[#allocation15 + $0x608] ss:$16 sps:$4 sm:$0xff]  }
 0x53c   :  { %6067 = vmatpush2.bf16.msra.mxu1 %v17589_v57  ;;  %6091 = vmatprep.subr.bf16.mxu0 %v17600_v11  ;;  %v17681_v57 = vld [vmem:[#allocation15 + $0x50c] ss:$16 sps:$4 sm:$0xff]  }
 0x53d   :  { %6068 = vmatprep.subr.bf16.mxu1 %v17597_v55  ;;  %v17682_v11 = vld [vmem:[%s20619_s7 + $0x78] sm:$0xff]  }
 0x53e   :  { %v17679_v55 = vld [vmem:[#allocation15 + $0x508] ss:$16 sps:$4 sm:$0xff]  }
 0x53f   :  { %6092 = vmatpush1.bf16.msra.mxu0 %v17598_v13  ;;  %v17683_v13 = vld [vmem:[%s20619_s7 + $0x38] sm:$0xff]  }
 0x540   :  { %6069 = vmatpush2.bf16.msra.mxu1 %v17595_v14  ;;  %6093 = vmatprep.subr.bf16.mxu0 %v17606_v16  ;;  %v17684_v14 = vld [vmem:[%s20619_s7 + $0x70] sm:$0xff]  }
 0x541   :  { %6070 = vmatprep.subr.bf16.mxu1 %v17603_v17  ;;  %v17685_v16 = vld [vmem:[%s20619_s7 + $0x30] sm:$0xff]   ;;  %v17686_v17 = vld [vmem:[%s20619_s7 + $0x68] sm:$0xff]  }
 0x543   :  { %6094 = vmatpush1.bf16.msra.mxu0 %v17604_v58  ;;  %v17687_v58 = vld [vmem:[%s20619_s7 + $0x28] sm:$0xff]  }
 0x544   :  { %6071 = vmatpush2.bf16.msra.mxu1 %v17601_v19  ;;  %6095 = vmatprep.subr.bf16.mxu0 %v17612_v20  ;;  %v17689_v19 = vld [vmem:[%s20619_s7 + $0x20] sm:$0xff]   ;;  %v17691_v20 = vld [vmem:[%s20619_s7 + $0x18] sm:$0xff]  }
 0x545   :  { %6072 = vmatprep.subr.bf16.mxu1 %v17609_v22  ;;  %v17692_v22 = vld [vmem:[%s20619_s7 + $0x50] sm:$0xff]  }
 0x547   :  { %6096 = vmatpush1.bf16.msra.mxu0 %v17610_v0  ;;  %v17693_v0 = vld [vmem:[%s20619_s7 + $0x10] sm:$0xff]  }
 0x548   :  { %6073 = vmatpush2.bf16.msra.mxu1 %v17607_v25  ;;  %6097 = vmatprep.subr.bf16.mxu0 %v17618_v12  ;;  %v17694_v25 = vld [vmem:[%s20619_s7 + $0x48] sm:$0xff]  }
 0x549   :  { %6074 = vmatprep.subr.bf16.mxu1 %v17615_v26  ;;  %v17695_v12 = vld [vmem:[%s20619_s7 + $0x8] sm:$0xff]   ;;  %v17696_v26 = vld [vmem:[%s20619_s7 + $0x40] sm:$0xff]  }
 0x54b   :  { %6098 = vmatpush1.bf16.msra.mxu0 %v17616_v27  ;;  %v17697_v27 = vld [vmem:[%s20619_s7] sm:$0xff]  }
 0x54c   :  { %6075 = vmatpush2.bf16.msra.mxu1 %v17613_v23  ;;  %6099 = vmatprep.subr.bf16.mxu0 %v17624_v49 }
 0x54d   :  { %6076 = vmatprep.subr.bf16.mxu1 %v17621_v29 }
 0x54f   :  { %6100 = vmatpush1.bf16.msra.mxu0 %v17622_v50 }
 0x550   :  { %6077 = vmatpush2.bf16.msra.mxu1 %v17619_v32  ;;  %6101 = vmatprep.subr.bf16.mxu0 %v17630_v34 }
 0x551   :  { %6078 = vmatprep.subr.bf16.mxu1 %v17627_v9  ;;  %v17698_v9 = vld [vmem:[%s20619_s7 + $0xf8] sm:$0xff]  }
 0x553   :  { %6102 = vmatpush1.bf16.msra.mxu0 %v17628_v35  ;;  %v17699_v35 = vld [vmem:[%s20619_s7 + $0xb8] sm:$0xff]  }
 0x554   :  { %6079 = vmatpush2.bf16.msra.mxu1 %v17625_v36  ;;  %6103 = vmatprep.subr.bf16.mxu0 %v17633_v37  ;;  %v17700_v36 = vld [vmem:[%s20619_s7 + $0xf0] sm:$0xff]  }
 0x555   :  { %6130 = vmatprep.subr.bf16.mxu1 %v17636_v38 }
 0x557   :  { %6081 = vmatmul.mubr.bf16.vlgmr.msra.gmra.mxu1 %v19778_v7  ;;  %6104 = vmatpush1.bf16.msra.mxu0 %v17631_v40  ;;  %v17649_v7 = vld [vmem:[#allocation15 + $0x5a8] ss:$16 sps:$4 sm:$0xff]   ;;  %v17701_v40 = vld [vmem:[%s20619_s7 + $0xb0] sm:$0xff]  }
 0x558   :  { %6131 = vmatpush1.bf16.msra.mxu1 %v17634_v41  ;;  %6105 = vmatprep.subr.bf16.mxu0 %v17639_v42  ;;  %v17702_v41 = vld [vmem:[%s20619_s7 + $0xe8] sm:$0xff]  }
 0x559   :  { %6132 = vmatprep.subr.bf16.mxu1 %v17642_v52  ;;  %6162 = vmatprep.mubr.bf16.mxu1 %v19243_v18  ;;  %v17703_v42 = vld [vmem:[%s20619_s7 + $0xa8] sm:$0xff]   ;;  %v17704_v52 = vld [vmem:[%s20619_s7 + $0xe0] sm:$0xff]  }
 0x55b   :  { %6106 = vmatpush2.bf16.msra.mxu0 %v17637_v43  ;;  %v17705_v43 = vld [vmem:[%s20619_s7 + $0xa0] sm:$0xff]  }
 0x55c   :  { %6133 = vmatpush1.bf16.msra.mxu1 %v17640_v44  ;;  %6107 = vmatprep.subr.bf16.mxu0 %v17645_v45  ;;  %v17706_v44 = vld [vmem:[%s20619_s7 + $0xd8] sm:$0xff]  }
 0x55d   :  { %6134 = vmatprep.subr.bf16.mxu1 %v17648_v39  ;;  %v17707_v45 = vld [vmem:[%s20619_s7 + $0x98] sm:$0xff]  }
 0x55f   :  { %6108 = vmatpush2.bf16.msra.mxu0 %v17643_v60 }
 0x560   :  { %6135 = vmatpush1.bf16.msra.mxu1 %v17646_v15  ;;  %6109 = vmatprep.subr.bf16.mxu0 %v17651_v46  ;;  %v17708_v15 = vld [vmem:[%s20619_s7 + $0xd0] sm:$0xff]  }
 0x561   :  { %6136 = vmatprep.subr.bf16.mxu1 %v17654_v51  ;;  %v17709_v46 = vld [vmem:[%s20619_s7 + $0x90] sm:$0xff]  }
 0x563   :  { %6110 = vmatpush2.bf16.msra.mxu0 %v17649_v7 }
 0x564   :  { %6137 = vmatpush1.bf16.msra.mxu1 %v17652_v53  ;;  %6111 = vmatprep.subr.bf16.mxu0 %v17657_v54  ;;  %v17710_v53 = vld [vmem:[%s20619_s7 + $0xc8] sm:$0xff]  }
 0x565   :  { %6138 = vmatprep.subr.bf16.mxu1 %v17660_v56  ;;  %v17711_v54 = vld [vmem:[%s20619_s7 + $0x88] sm:$0xff]   ;;  %v17712_v56 = vld [vmem:[%s20619_s7 + $0xc0] sm:$0xff]  }
 0x567   :  { %6112 = vmatpush2.bf16.msra.mxu0 %v17655_v59  ;;  %v17713_v59 = vld [vmem:[%s20619_s7 + $0x80] sm:$0xff]  }
 0x568   :  { %6139 = vmatpush1.bf16.msra.mxu1 %v17658_v61  ;;  %6113 = vmatprep.subr.bf16.mxu0 %v17663_v8 }
 0x569   :  { %6140 = vmatprep.subr.bf16.mxu1 %v17666_v62 }
 0x56b   :  { %6114 = vmatpush2.bf16.msra.mxu0 %v17661_v63 }
 0x56c   :  { %6141 = vmatpush1.bf16.msra.mxu1 %v17664_v1  ;;  %6115 = vmatprep.subr.bf16.mxu0 %v17669_v2 }
 0x56d   :  { %6142 = vmatprep.subr.bf16.mxu1 %v17672_v3 }
 0x56f   :  { %6116 = vmatpush2.bf16.msra.mxu0 %v17667_v48 }
 0x570   :  { %6143 = vmatpush1.bf16.msra.mxu1 %v17670_v4  ;;  %6117 = vmatprep.subr.bf16.mxu0 %v17675_v5 }
 0x571   :  { %6144 = vmatprep.subr.bf16.mxu1 %v17678_v6 }
 0x573   :  { %6118 = vmatpush2.bf16.msra.mxu0 %v17673_v47 }
 0x574   :  { %6145 = vmatpush1.bf16.msra.mxu1 %v17676_v10  ;;  %6119 = vmatprep.subr.bf16.mxu0 %v17681_v57 }
 0x575   :  { %16236 = vmatprep.subr.bf16.mxu1 %v17682_v11 }
 0x577   :  { %6163 = vmatmul.mubr.bf16.vlgmr.msra.gmra.mxu1 %v19791_v24  ;;  %6120 = vmatpush2.bf16.msra.mxu0 %v17679_v55  ;;  %v17688_v24 = vld [vmem:[%s20619_s7 + $0x60] sm:$0xff]  }
 0x578   :  { %16237 = vmatpush3.bf16.msra.mxu1 %v17683_v13  ;;  %16258 = vmatprep.subr.bf16.mxu0 %v17698_v9 }
 0x579   :  { %16238 = vmatprep.subr.bf16.mxu1 %v17684_v14 }
 0x57a   :  { %6122 = vmatmul.mubr.bf16.vlgmr.msra.gmra.mxu0 %v19800_v33  ;;  %v17690_v33 = vld [vmem:[%s20619_s7 + $0x58] sm:$0xff]  }
 0x57b   :  { %16259 = vmatpush3.bf16.msra.mxu0 %v17699_v35 }
 0x57c   :  { %16239 = vmatpush3.bf16.msra.mxu1 %v17685_v16  ;;  %16260 = vmatprep.subr.bf16.mxu0 %v17700_v36 }
 0x57d   :  { %16240 = vmatprep.subr.bf16.mxu1 %v17686_v17 }
 0x57f   :  { %16261 = vmatpush3.bf16.msra.mxu0 %v17701_v40 }
 0x580   :  { %16241 = vmatpush3.bf16.msra.mxu1 %v17687_v58  ;;  %16262 = vmatprep.subr.bf16.mxu0 %v17702_v41 }
 0x581   :  { %16242 = vmatprep.subr.bf16.mxu1 %v17688_v24 }
 0x583   :  { %16263 = vmatpush3.bf16.msra.mxu0 %v17703_v42 }
 0x584   :  { %16243 = vmatpush3.bf16.msra.mxu1 %v17689_v19  ;;  %16264 = vmatprep.subr.bf16.mxu0 %v17704_v52 }
 0x585   :  { %16244 = vmatprep.subr.bf16.mxu1 %v17690_v33 }
 0x587   :  { %16265 = vmatpush3.bf16.msra.mxu0 %v17705_v43 }
 0x588   :  { %16245 = vmatpush3.bf16.msra.mxu1 %v17691_v20  ;;  %16266 = vmatprep.subr.bf16.mxu0 %v17706_v44 }
 0x589   :  { %16246 = vmatprep.subr.bf16.mxu1 %v17692_v22 }
 0x58b   :  { %16267 = vmatpush3.bf16.msra.mxu0 %v17707_v45 }
 0x58c   :  { %16247 = vmatpush3.bf16.msra.mxu1 %v17693_v0  ;;  %16268 = vmatprep.subr.bf16.mxu0 %v17708_v15 }
 0x58d   :  { %16248 = vmatprep.subr.bf16.mxu1 %v17694_v25 }
 0x58f   :  { %16269 = vmatpush3.bf16.msra.mxu0 %v17709_v46  ;;  %v6580_v46 = vld [vmem:[#allocation17 + $0x8] sm:$0xff] }
 0x590   :  { %16249 = vmatpush3.bf16.msra.mxu1 %v17695_v12  ;;  %16270 = vmatprep.subr.bf16.mxu0 %v17710_v53  ;;  %v17714_v53 = vld [vmem:[#allocation18 + $0x78] sm:$0xff]  }
 0x591   :  { %16250 = vmatprep.subr.bf16.mxu1 %v17696_v26 }
 0x593   :  { %16271 = vmatpush3.bf16.msra.mxu0 %v17711_v54  ;;  %v17715_v54 = vld [vmem:[#allocation18 + $0x38] sm:$0xff]  }
 0x594   :  { %16251 = vmatpush3.bf16.msra.mxu1 %v17697_v27  ;;  %16272 = vmatprep.subr.bf16.mxu0 %v17712_v56  ;;  %v17716_v56 = vld [vmem:[#allocation18 + $0x70] sm:$0xff]  }
 0x595   :  { %6617 = vmatprep.subr.mxu1 %v6580_v46  ;;  %v17717_v46 = vld [vmem:[#allocation18 + $0xf8] sm:$0xff]  }
 0x596   :  { %v5877_v23 = vpop.f32.mrf.mxu1 }
 0x597   :  { %16273 = vmatpush3.bf16.msra.mxu0 %v17713_v59  ;;  %v17718_v59 = vld [vmem:[#allocation18 + $0x30] sm:$0xff]  }
 0x598   :  { %v5879_v49 = vpop.f32.mrf.mxu1  ;;  %16280 = vmatprep.subr.bf16.mxu0 %v17714_v53  ;;  %v17721_v53 = vld [vmem:[#allocation18 + $0xf0] sm:$0xff]  }
 0x59a   :  { %v5918_v29 = vpop.f32.mrf.mxu0  ;;  %v5881_v50 = vpop.f32.mrf.mxu1 }
 0x59b   :  { %v5919_v61 = vadd.f32 %v5918_v29, %v5877_v23 }
 0x59c   :  { %v5920_v32 = vpop.f32.mrf.mxu0  ;;  %v5882_v34 = vpop.f32.mrf.mxu1 }
 0x59d   :  { %v5921_v62 = vadd.f32 %v5920_v32, %v5879_v49 }
 0x59e   :  { %v5922_v37 = vpop.f32.mrf.mxu0 }
 0x5a0   :  { %v5923_v38 = vpop.f32.mrf.mxu0 }
 0x5ba   :  { %v6000_v39 = vpop.f32.mrf.mxu0 }
 0x5bc   :  { %v6002_v60 = vpop.f32.mrf.mxu0 }
 0x5be   :  { %v6004_v51 = vpop.f32.mrf.mxu0 }
 0x5bf   :  { %v6579_v51 = vld [vmem:[#allocation17] sm:$0xff] }
 0x5c0   :  { %v6005_v7 = vpop.f32.mrf.mxu0 }
 0x5c1   :  { %v6582_v7 = vld [vmem:[#allocation17 + $0x18] sm:$0xff] }
 0x5d7   :  { %v5959_v8 = vpop.f32.mrf.mxu1 }
 0x5d8   :  { %v5960_v63 = vadd.f32 %v5959_v8, %v5919_v61  ;;  %v17720_v61 = vld [vmem:[#allocation18 + $0x68] sm:$0xff]  }
 0x5d9   :  { %v5961_v1 = vpop.f32.mrf.mxu1  ;;  %v17722_v8 = vld [vmem:[#allocation18 + $0x28] sm:$0xff]  }
 0x5da   :  { %v19906_v2 = vadd.f32 %v6000_v39, %v5960_v63  ;;  %v5962_v3 = vadd.f32 %v5961_v1, %v5921_v62  ;;  %v17724_v62 = vld [vmem:[#allocation18 + $0x60] sm:$0xff]   ;;  %v17728_v1 = vld [vmem:[#allocation18 + $0x58] sm:$0xff]  }
 0x5db   :  { %v5963_v48 = vpop.f32.mrf.mxu1  ;;  %v17726_v63 = vld [vmem:[#allocation18 + $0x20] sm:$0xff]  }
 0x5dc   :  { %v6175_v4 = vmul.f32 %v19906_v2, %v19906_v2  ;;  %v19910_v5 = vadd.f32 %v6002_v60, %v5962_v3  ;;  %v6171_v14 = vpack.c.bf16 %v19906_v2, %v19906_v2  ;;  %v17730_v3 = vld [vmem:[#allocation18 + $0x18] sm:$0xff]  }
 0x5dd   :  { %v5964_v6 = vpop.f32.mrf.mxu1 }
 0x5de   :  { %v6179_v47 = vpack.c.bf16 %v6175_v4, %v6175_v4  ;;  %v6176_v10 = vmul.f32 %v19910_v5, %v19910_v5  ;;  %v6172_v55 = vpack.c.bf16 %v19910_v5, %v19910_v5 }
 0x5e0   :  { %v6180_v57 = vpack.c.bf16 %v6176_v10, %v6176_v10  ;;  %v6187_v11 = vrot.slane %v6179_v47, 4 }
 0x5e2   :  { %v6188_v13 = vrot.slane %v6180_v57, 4  ;;  %v6193_v17 = vsel %vm3427_vm0, %v6171_v14, %v6187_v11 }
 0x5e4   :  { %v6197_v16 = vsel %vm3427_vm0, %v6172_v55, %v6188_v13 }
 0x5e5   :  { %6495 = vmatprep.mubr.bf16.mxu1 %v6197_v16 }
 0x5e6   :  { %6496 = vmatmul.mubr.bf16.vlgmr.msra.gmra.mxu1 %v6193_v17 }
 0x5e7   :  { %6651 = vmatprep.mubr.f32.mxu1 %v19244_v28  ;;  %6618 = vmatpush1.msra.mxu1 %v6579_v51 }
 0x5e8   :  { %6688 = vmatprep.subr.mxu1 %v6582_v7  ;;  %v17719_v7 = vld [vmem:[#allocation18 + $0xb8] sm:$0xff]  }
 0x5fa   :  { %v6041_v58 = vpop.f32.mrf.mxu0 }
 0x5fc   :  { %v6043_v24 = vpop.f32.mrf.mxu0 }
 0x5fe   :  { %v6045_v19 = vpop.f32.mrf.mxu0 }
 0x600   :  { %v6046_v33 = vpop.f32.mrf.mxu0 }
 0x617   :  { %v6082_v20 = vpop.f32.mrf.mxu1 }
 0x618   :  { %v6083_v26 = vadd.f32 %v6082_v20, %v6041_v58 }
 0x619   :  { %v6084_v22 = vpop.f32.mrf.mxu1 }
 0x61a   :  { %v6085_v49 = vadd.f32 %v6084_v22, %v6043_v24 }
 0x61b   :  { %v6086_v0 = vpop.f32.mrf.mxu1 }
 0x61d   :  { %v6087_v25 = vpop.f32.mrf.mxu1 }
 0x637   :  { %v6164_v12 = vpop.f32.mrf.mxu1 }
 0x639   :  { %v6166_v27 = vpop.f32.mrf.mxu1 }
 0x63a   :  { %v6123_v23 = vpop.f32.mrf.mxu0 }
 0x63b   :  { %v6124_v29 = vadd.f32 %v6123_v23, %v6083_v26  ;;  %v6168_v50 = vpop.f32.mrf.mxu1 }
 0x63c   :  { %v6125_v32 = vpop.f32.mrf.mxu0 }
 0x63d   :  { %v19921_v34 = vadd.f32 %v6164_v12, %v6124_v29  ;;  %v6126_v9 = vadd.f32 %v6125_v32, %v6085_v49  ;;  %v6169_v35 = vpop.f32.mrf.mxu1 }
 0x63e   :  { %v6127_v36 = vpop.f32.mrf.mxu0 }
 0x63f   :  { %v6177_v37 = vmul.f32 %v19921_v34, %v19921_v34  ;;  %v19925_v38 = vadd.f32 %v6166_v27, %v6126_v9  ;;  %v6173_v39 = vpack.c.bf16 %v19921_v34, %v19921_v34 }
 0x640   :  { %v6128_v40 = vpop.f32.mrf.mxu0 }
 0x641   :  { %v6181_v41 = vpack.c.bf16 %v6177_v37, %v6177_v37  ;;  %v6178_v42 = vmul.f32 %v19925_v38, %v19925_v38  ;;  %v6174_v44 = vpack.c.bf16 %v19925_v38, %v19925_v38 }
 0x643   :  { %v6182_v52 = vpack.c.bf16 %v6178_v42, %v6178_v42  ;;  %v6189_v43 = vrot.slane %v6181_v41, 4  ;;  %v6565_v42 = vld [vmem:[#allocation11 + $0xc] sm:$0x1] }
 0x645   :  { %v6190_v45 = vrot.slane %v6182_v52, 4  ;;  %v6201_v15 = vsel %vm3427_vm0, %v6173_v39, %v6189_v43 }
 0x647   :  { %v6205_v60 = vsel %vm3427_vm0, %v6174_v44, %v6190_v45  ;;  %v6566_v44 = vld [vmem:[#allocation11 + $0xd] sm:$0x1] }
 0x648   :  { %6536 = vmatprep.mubr.bf16.mxu0 %v6205_v60 }
 0x649   :  { %6537 = vmatmul.mubr.bf16.vlgmr.msra.gmra.mxu0 %v6201_v15  ;;  %v6581_v15 = vld [vmem:[#allocation17 + $0x10] sm:$0xff] }
 0x64a   :  { %16281 = vmatpush3.bf16.msra.mxu0 %v17715_v54  ;;  %v17723_v54 = vld [vmem:[#allocation18 + $0xb0] sm:$0xff]  }
 0x64b   :  { %16282 = vmatprep.subr.bf16.mxu0 %v17716_v56  ;;  %v17725_v56 = vld [vmem:[#allocation18 + $0xe8] sm:$0xff]  }
 0x64e   :  { %16283 = vmatpush3.bf16.msra.mxu0 %v17718_v59  ;;  %v17727_v59 = vld [vmem:[#allocation18 + $0xa8] sm:$0xff]  }
 0x64f   :  { %16284 = vmatprep.subr.bf16.mxu0 %v17720_v61  ;;  %v17729_v61 = vld [vmem:[#allocation18 + $0xe0] sm:$0xff]  }
 0x652   :  { %16285 = vmatpush3.bf16.msra.mxu0 %v17722_v8  ;;  %v17731_v8 = vld [vmem:[#allocation18 + $0xa0] sm:$0xff]  }
 0x653   :  { %16286 = vmatprep.subr.bf16.mxu0 %v17724_v62  ;;  %v17732_v62 = vld [vmem:[#allocation18 + $0x50] sm:$0xff]  }
 0x656   :  { %16287 = vmatpush3.bf16.msra.mxu0 %v17726_v63  ;;  %v17733_v63 = vld [vmem:[#allocation18 + $0xd8] sm:$0xff]  }
 0x657   :  { %16288 = vmatprep.subr.bf16.mxu0 %v17728_v1  ;;  %v17734_v1 = vld [vmem:[#allocation18 + $0x10] sm:$0xff]  }
 0x65a   :  { %16289 = vmatpush3.bf16.msra.mxu0 %v17730_v3  ;;  %v17735_v3 = vld [vmem:[#allocation18 + $0x98] sm:$0xff]  }
 0x65b   :  { %16290 = vmatprep.subr.bf16.mxu0 %v17732_v62 }
 0x65e   :  { %16291 = vmatpush3.bf16.msra.mxu0 %v17734_v1 }
 0x6a6   :  { %v16252_v48 = vpop.f32.mrf.mxu1 }
 0x6a8   :  { %v16253_v4 = vpop.f32.mrf.mxu1 }
 0x6a9   :  { %v16254_v57 = vadd.f32 %v16253_v4, %v16252_v48  ;;  %v17736_v48 = vld [vmem:[#allocation18 + $0x48] sm:$0xff]   ;;  %v17737_v4 = vld [vmem:[#allocation18 + $0xd0] sm:$0xff]  }
 0x6aa   :  { %v16255_v6 = vpop.f32.mrf.mxu1  ;;  %16292 = vmatprep.subr.bf16.mxu0 %v17736_v48 }
 0x6ac   :  { %v16256_v55 = vpop.f32.mrf.mxu1 }
 0x6ad   :  { %v16257_v17 = vadd.f32 %v16256_v55, %v16255_v6  ;;  %v17738_v6 = vld [vmem:[#allocation18 + $0x8] sm:$0xff]  }
 0x6ae   :  { %16293 = vmatpush3.bf16.msra.mxu0 %v17738_v6  ;;  %v17743_v55 = vld [vmem:[#allocation18 + $0x88] sm:$0xff]  }
 0x709   :  { %v16274_v47 = vpop.f32.mrf.mxu0 }
 0x70b   :  { %v16275_v10 = vpop.f32.mrf.mxu0 }
 0x70c   :  { %v16276_v11 = vadd.f32 %v16275_v10, %v16274_v47  ;;  %v17739_v47 = vld [vmem:[#allocation18 + $0x90] sm:$0xff]   ;;  %v17740_v10 = vld [vmem:[#allocation18 + $0x40] sm:$0xff]  }
 0x70d   :  { %v16277_v13 = vpop.f32.mrf.mxu0  ;;  %16294 = vmatprep.subr.bf16.mxu0 %v17740_v10  ;;  %v17756_v10 = vld [vmem:[#allocation21 + $0x74] ss:$8 sps:$4 sm:$0xff]  }
 0x70e   :  { %v6539_v14 = vadd.f32 %v16276_v11, %v16254_v57  ;;  %v17741_v57 = vld [vmem:[#allocation18 + $0xc8] sm:$0xff]   ;;  %v17742_v11 = vld [vmem:[#allocation18] sm:$0xff]  }
 0x70f   :  { %v16278_v16 = vpop.f32.mrf.mxu0  ;;  %16295 = vmatpush3.bf16.msra.mxu0 %v17742_v11 }
 0x710   :  { %v6546_v58 = vsel %vm6545_vm5, %v6539_v14, 0.0  ;;  %v16279_v24 = vadd.f32 %v16278_v16, %v16277_v13  ;;  %v17744_v13 = vld [vmem:[#allocation18 + $0xc0] sm:$0xff]   ;;  %16622 = vmatprep.subr.bf16.mxu0 %v19244_v28 }
 0x711   :  { %v6547_v19 = vrot.slane %v6546_v58, 4  ;;  %v17745_v14 = vld [vmem:[#allocation18 + $0x80] sm:$0xff]  }
 0x712   :  { %v6542_v33 = vadd.f32 %v16279_v24, %v16257_v17 }
 0x713   :  { %v6548_v20 = vadd.f32 %v6547_v19, %v6546_v58 }
 0x714   :  { %v6554_v22 = vsel %vm6545_vm5, %v6542_v33, 0.0 }
 0x715   :  { %v6549_v0 = vrot.slane %v6548_v20, 2  ;;  %v6555_v25 = vrot.slane %v6554_v22, 4 }
 0x717   :  { %v6550_v12 = vadd.f32 %v6549_v0, %v6548_v20  ;;  %v6556_v26 = vadd.f32 %v6555_v25, %v6554_v22 }
 0x719   :  { %v6551_v27 = vrot.slane %v6550_v12, 1  ;;  %v6557_v23 = vrot.slane %v6556_v26, 2 }
 0x71b   :  { %v6552_v49 = vadd.f32 %v6551_v27, %v6550_v12  ;;  %v6558_v29 = vadd.f32 %v6557_v23, %v6556_v26 }
 0x71d   :  { %v6553_v50 = vmul.f32 0.010204081, %v6552_v49  ;;  %v6559_v32 = vrot.slane %v6558_v29, 1 }
 0x71f   :  { %v6560_v9 = vadd.f32 %v6559_v32, %v6558_v29  ;;  %v6562_v35 = vmul.f32 %v6553_v50, %v6553_v50 }
 0x721   :  { %v6561_v36 = vmul.f32 0.010204081, %v6560_v9 }
 0x723   :  { %v6563_v37 = vsub.f32 %v6561_v36, %v6562_v35 }
 0x725   :  { %v6564_v40 = vmax.f32 %v6563_v37, 0.0  ;;  %v17746_v37 = vld [vmem:[%s20622_s10 + $0x38] sm:$0xff]  }
 0x727   :  { %v6567_v41 = vadd.f32 1e-05, %v6564_v40 }
 0x729   :  { %17781 = vrsqrt.f32 %v6567_v41 }
 0x736   :  { %v17782_v52 = vpop.eup %17781 }
 0x737   :  { %v6569_v43 = vmul.f32 %v17782_v52, %v6565_v42  ;;  %v17747_v52 = vld [vmem:[%s20622_s10 + $0x30] sm:$0xff]  }
 0x739   :  { %v6570_v45 = vmul.f32 %v6569_v43, %v6553_v50 }
 0x73b   :  { %v6571_v39 = vsub.f32 %v6566_v44, %v6570_v45  ;;  %v17749_v44 = vld [vmem:[%s20622_s10 + $0x20] sm:$0xff]   ;;  %v17750_v45 = vld [vmem:[%s20622_s10 + $0x18] sm:$0xff]  }
 0x73d   :  { %v6576_v60 = vrot.slane %v6571_v39, %v19730_v21  ;;  %v17751_v39 = vld [vmem:[%s20622_s10 + $0x10] sm:$0xff]  }
 0x73f   :  { %v6578_v51 = vsel %vm4101_vm3, %v6569_v43, %v6576_v60  ;;  %v17748_v43 = vld [vmem:[%s20622_s10 + $0x28] sm:$0xff]  }
 0x740   :  { %15263 = vmatmul.mubr.msk.f32.vlgmr.msra.gmra.mxu1 %vm6583_vm6, %v6578_v51  ;;  %v17752_v60 = vld [vmem:[%s20622_s10 + $0x8] sm:$0xff]  }
 0x741   :  { %6689 = vmatpush1.msra.mxu1 %v6581_v15  ;;  %6722 = vmatprep.mubr.f32.mxu1 %v19244_v28  ;;  %v17753_v15 = vld [vmem:[%s20622_s10] sm:$0xff]   ;;  %s19246_s10 = smov [#allocation2]  }
 0x742   :  { %16302 = vmatprep.subr.bf16.mxu1 %v17717_v46  ;;  %s234_s0 = sshll.u32 %s19246_s10, 4  ;;  %s235_s0 = int_to_ptr.vmem [resolvable:$true] %s234_s0 }
 0x743   :  { %s19106_s1 = scalar_lea.vmem %s235_s0, 4096  ;;  %p19111_p10 = scmp.lt.s32.totalorder %s235_s0, %s235_s0 }
 0x744   :  { %15264 = vmatmul.mubr.msk.f32.vlgmr.msra.gmra.mxu1 %vm6583_vm6, %v6578_v51  ;;  %p19107_p9 = scmp.ne.s32.totalorder %s235_s0, %s19106_s1  ;;  %p19112_p11 = scmp.lt.s32.totalorder %s19106_s1, %s19106_s1 }
 0x745   :  { %16303 = vmatpush3.bf16.msra.mxu1 %v17719_v7 }
 0x746   :  { %16304 = vmatprep.subr.bf16.mxu1 %v17721_v53  ;;  %p19113_p12 = por %p19112_p11, %p19111_p10 }
 0x748   :  { %p19114_p13 = pnand %p19113_p12, %p19107_p9 }
 0x749   :  { %16305 = vmatpush3.bf16.msra.mxu1 %v17723_v54 }
 0x74a   :  { %16306 = vmatprep.subr.bf16.mxu1 %v17725_v56 }
 0x74d   :  { %16307 = vmatpush3.bf16.msra.mxu1 %v17727_v59 }
 0x74e   :  { %16308 = vmatprep.subr.bf16.mxu1 %v17729_v61 }
 0x751   :  { %16309 = vmatpush3.bf16.msra.mxu1 %v17731_v8 }
 0x752   :  { %16310 = vmatprep.subr.bf16.mxu1 %v17733_v63 }
 0x755   :  { %16311 = vmatpush3.bf16.msra.mxu1 %v17735_v3 }
 0x756   :  { %16312 = vmatprep.subr.bf16.mxu1 %v17737_v4 }
 0x759   :  { %16313 = vmatpush3.bf16.msra.mxu1 %v17739_v47  ;;  %v7260_v47 = vld [vmem:[#allocation20] sm:$0xff] }
 0x75a   :  { %16314 = vmatprep.subr.bf16.mxu1 %v17741_v57 }
 0x75d   :  { %16315 = vmatpush3.bf16.msra.mxu1 %v17743_v55 }
 0x75e   :  { %16316 = vmatprep.subr.bf16.mxu1 %v17744_v13 }
 0x761   :  { %16317 = vmatpush3.bf16.msra.mxu1 %v17745_v14 }
 0x762   :  { %16642 = vmatprep.subr.mxu1 %v19244_v28 }
 0x800   :  { %v6653_v16 = vpop.f32.mrf.mxu1 }
 0x801   :  { %v6732_v17 = vrot.slane %v6653_v16, %v19730_v21  ;;  %v6752_v19 = vrot.slane %v6653_v16, %v19749_v30 }
 0x802   :  { %v6655_v58 = vpop.f32.mrf.mxu1 }
 0x803   :  { %v6745_v24 = vmul.f32 %v6732_v17, %v19906_v2  ;;  %v6736_v33 = vrot.slane %v6655_v58, %v19730_v21  ;;  %v6756_v25 = vrot.slane %v6655_v58, %v19749_v30 }
 0x804   :  { %v6724_v20 = vpop.f32.mrf.mxu1 }
 0x805   :  { %v6765_v22 = vadd.f32 %v6752_v19, %v6745_v24  ;;  %v6746_v0 = vmul.f32 %v6736_v33, %v19910_v5  ;;  %v6740_v12 = vrot.slane %v6724_v20, %v19730_v21  ;;  %v6760_v49 = vrot.slane %v6724_v20, %v19749_v30 }
 0x806   :  { %v6726_v26 = vpop.f32.mrf.mxu1 }
 0x807   :  { %v6766_v27 = vadd.f32 %v6756_v25, %v6746_v0  ;;  %v6747_v23 = vmul.f32 %v6740_v12, %v19921_v34  ;;  %v6744_v2 = vrot.slane %v6726_v26, %v19730_v21  ;;  %v6769_v29 = vmax.f32 %v6765_v22, 0.0 }
 0x808   :  { %v6764_v35 = vrot.slane %v6726_v26, %v19749_v30 }
 0x809   :  { %v6770_v50 = vmax.f32 %v6766_v27, 0.0  ;;  %v6767_v32 = vadd.f32 %v6760_v49, %v6747_v23  ;;  %v6748_v9 = vmul.f32 %v6744_v2, %v19925_v38  ;;  %v6837_v40 = vpack.c.bf16 %v6769_v29, %v6769_v29 }
 0x80b   :  { %v6768_v5 = vadd.f32 %v6764_v35, %v6748_v9  ;;  %v6838_v36 = vpack.c.bf16 %v6770_v50, %v6770_v50  ;;  %v6771_v41 = vmax.f32 %v6767_v32, 0.0  ;;  %v7246_v9 = vld [vmem:[#allocation11 + $0xe] sm:$0x1] }
 0x80d   :  { %v6772_v34 = vmax.f32 %v6768_v5, 0.0  ;;  %7065 = vmatprep.mubr.bf16.mxu0 %v6838_v36  ;;  %v6839_v38 = vpack.c.bf16 %v6771_v41, %v6771_v41  ;;  %v7247_v36 = vld [vmem:[#allocation11 + $0xf] sm:$0x1] }
 0x80e   :  { %7066 = vmatmul.mubr.bf16.vlgmr.msra.gmra.mxu0 %v6837_v40 }
 0x80f   :  { %v6840_v42 = vpack.c.bf16 %v6772_v34, %v6772_v34  ;;  %16623 = vmatpush3.bf16.msra.mxu0 %v17746_v37  ;;  %16638 = vmatprep.mubr.msk.bf16.mxu0 %vm19245_vm1, %v19244_v28  ;;  %v17754_v34 = vld [vmem:[#allocation21 + $0x70] ss:$8 sps:$4 sm:$0xff]  }
 0x810   :  { %16624 = vmatprep.subr.bf16.mxu0 %v19244_v28 }
 0x811   :  { %7105 = vmatprep.mubr.bf16.mxu1 %v6840_v42  ;;  %v17759_v42 = vld [vmem:[#allocation21 + $0x64] ss:$8 sps:$4 sm:$0xff]  }
 0x812   :  { %7106 = vmatmul.mubr.bf16.vlgmr.msra.gmra.mxu1 %v6839_v38  ;;  %v17757_v38 = vld [vmem:[#allocation21 + $0x60] ss:$8 sps:$4 sm:$0xff]  }
 0x813   :  { %16625 = vmatpush3.bf16.msra.mxu0 %v17747_v52  ;;  %16644 = vmatprep.mubr.msk.f32.mxu1 %vm19245_vm1, %v19244_v28 }
 0x814   :  { %16626 = vmatprep.subr.bf16.mxu0 %v19244_v28  ;;  %16643 = vmatpush3.msra.mxu1 %v7260_v47  ;;  %v7362_v47 = vld [vmem:[#allocation11 + $0x8] sm:$0x3] }
 0x815   :  { %7454 = vmatprep.subr.bf16.mxu1 %v17756_v10  ;;  %v7367_v10 = vrot.slane %v7362_v47, %v19730_v21 }
 0x817   :  { %16627 = vmatpush3.bf16.msra.mxu0 %v17748_v43  ;;  %v17762_v43 = vld [vmem:[#allocation21 + $0x54] ss:$8 sps:$4 sm:$0xff]  }
 0x818   :  { %16628 = vmatprep.subr.bf16.mxu0 %v19244_v28 }
 0x81b   :  { %16629 = vmatpush3.bf16.msra.mxu0 %v17749_v44  ;;  %v17760_v44 = vld [vmem:[#allocation21 + $0x50] ss:$8 sps:$4 sm:$0xff]  }
 0x81c   :  { %16630 = vmatprep.subr.bf16.mxu0 %v19244_v28 }
 0x81f   :  { %16631 = vmatpush3.bf16.msra.mxu0 %v17750_v45  ;;  %v17765_v45 = vld [vmem:[#allocation21 + $0x44] ss:$8 sps:$4 sm:$0xff]  }
 0x820   :  { %16632 = vmatprep.subr.bf16.mxu0 %v19244_v28 }
 0x823   :  { %16633 = vmatpush3.bf16.msra.mxu0 %v17751_v39  ;;  %v17763_v39 = vld [vmem:[#allocation21 + $0x40] ss:$8 sps:$4 sm:$0xff]  }
 0x824   :  { %16634 = vmatprep.subr.bf16.mxu0 %v19244_v28 }
 0x827   :  { %16635 = vmatpush3.bf16.msra.mxu0 %v17752_v60  ;;  %v17768_v60 = vld [vmem:[#allocation21 + $0x34] ss:$8 sps:$4 sm:$0xff]  }
 0x828   :  { %16636 = vmatprep.subr.bf16.mxu0 %v19244_v28 }
 0x82b   :  { %16637 = vmatpush3.bf16.msra.mxu0 %v17753_v15  ;;  %v17766_v15 = vld [vmem:[#allocation21 + $0x30] ss:$8 sps:$4 sm:$0xff]  }
 0x8ce   :  { %v16296_v46 = vpop.f32.mrf.mxu0 }
 0x8d0   :  { %v16297_v51 = vpop.f32.mrf.mxu0 }
 0x8d1   :  { %v16298_v59 = vadd.f32 %v16297_v51, %v16296_v46  ;;  %v17771_v46 = vld [vmem:[#allocation21 + $0x24] ss:$8 sps:$4 sm:$0xff]   ;;  %v17769_v51 = vld [vmem:[#allocation21 + $0x20] ss:$8 sps:$4 sm:$0xff]  }
 0x8d2   :  { %v16299_v7 = vpop.f32.mrf.mxu0  ;;  %v16318_v53 = vpop.f32.mrf.mxu1 }
 0x8d3   :  { %v17774_v7 = vld [vmem:[#allocation21 + $0x14] ss:$8 sps:$4 sm:$0xff]  }
 0x8d4   :  { %v16300_v54 = vpop.f32.mrf.mxu0  ;;  %v16319_v56 = vpop.f32.mrf.mxu1 }
 0x8d5   :  { %v16320_v61 = vadd.f32 %v16319_v56, %v16318_v53  ;;  %v17772_v53 = vld [vmem:[#allocation21 + $0x10] ss:$8 sps:$4 sm:$0xff]   ;;  %v17777_v54 = vld [vmem:[#allocation21 + $0x4] ss:$8 sps:$4 sm:$0xff]   ;;  %v17775_v56 = vld [vmem:[#allocation21] ss:$8 sps:$4 sm:$0xff]  }
 0x8d6   :  { %v16321_v8 = vpop.f32.mrf.mxu1 }
 0x8d7   :  { %v19991_v62 = vadd.f32 %v16320_v61, %v16298_v59 }
 0x8d8   :  { %v16322_v63 = vpop.f32.mrf.mxu1 }
 0x8d9   :  { %v7114_v1 = vmul.f32 %v19991_v62, %v19991_v62  ;;  %v7113_v48 = vpack.c.bf16 %v19991_v62, %v19991_v62 }
 0x8db   :  { %v7115_v3 = vpack.c.bf16 %v7114_v1, %v7114_v1 }
 0x8dd   :  { %v7117_v4 = vrot.slane %v7115_v3, 4 }
 0x8df   :  { %v7120_v6 = vsel %vm3427_vm0, %v7113_v48, %v7117_v4 }
 0x8e0   :  { %16639 = vmatmul.mubr.bf16.vlgmr.msra.gmra.mxu0 %v7120_v6  ;;  %v17778_v6 = vld [vmem:[#allocation23] sm:$0xff]  }
 0x9a0   :  { %v7220_v57 = vpop.f32.mrf.mxu0 }
 0x9a1   :  { %v7227_v11 = vsel %vm6545_vm5, %v7220_v57, 0.0  ;;  %v7371_v57 = vrot.slane %v7362_v47, %v19749_v30 }
 0x9a2   :  { %v7228_v55 = vrot.slane %v7227_v11, 4  ;;  %v16640_v13 = vpop.f32.mrf.mxu0 }
 0x9a4   :  { %v7229_v14 = vadd.f32 %v7228_v55, %v7227_v11  ;;  %v7223_v16 = vpop.f32.mrf.mxu0 }
 0x9a5   :  { %v7235_v17 = vsel %vm6545_vm5, %v7223_v16, 0.0 }
 0x9a6   :  { %v7230_v58 = vrot.slane %v7229_v14, 2  ;;  %v7236_v24 = vrot.slane %v7235_v17, 4  ;;  %v16641_v19 = vpop.f32.mrf.mxu0 }
 0x9a8   :  { %v7231_v33 = vadd.f32 %v7230_v58, %v7229_v14  ;;  %v7237_v20 = vadd.f32 %v7236_v24, %v7235_v17  ;;  %v7497_v24 = vld [vmem:[#allocation9] sm:$0xff] }
 0x9aa   :  { %v7232_v22 = vrot.slane %v7231_v33, 1  ;;  %v7238_v0 = vrot.slane %v7237_v20, 2 }
 0x9ac   :  { %v7233_v25 = vadd.f32 %v7232_v22, %v7231_v33  ;;  %v7239_v12 = vadd.f32 %v7238_v0, %v7237_v20 }
 0x9ae   :  { %v7234_v26 = vmul.f32 0.03125, %v7233_v25  ;;  %v7240_v27 = vrot.slane %v7239_v12, 1 }
 0x9b0   :  { %v7241_v23 = vadd.f32 %v7240_v27, %v7239_v12  ;;  %v7243_v49 = vmul.f32 %v7234_v26, %v7234_v26 }
 0x9b2   :  { %v7242_v2 = vmul.f32 0.03125, %v7241_v23 }
 0x9b4   :  { %v7244_v29 = vsub.f32 %v7242_v2, %v7243_v49 }
 0x9b6   :  { %v7245_v50 = vmax.f32 %v7244_v29, 0.0 }
 0x9b8   :  { %v7248_v32 = vadd.f32 1e-05, %v7245_v50 }
 0x9ba   :  { %17783 = vrsqrt.f32 %v7248_v32 }
 0x9c7   :  { %v17784_v35 = vpop.eup %17783 }
 0x9c8   :  { %v7250_v5 = vmul.f32 %v17784_v35, %v7246_v9 }
 0x9ca   :  { %v7251_v37 = vmul.f32 %v7250_v5, %v7234_v26 }
 0x9cc   :  { %v7252_v40 = vsub.f32 %v7247_v36, %v7251_v37 }
 0x9ce   :  { %v7257_v41 = vrot.slane %v7252_v40, %v19730_v21 }
 0x9d0   :  { %v7259_v52 = vsel %vm4101_vm3, %v7250_v5, %v7257_v41 }
 0x9d1   :  { %16645 = vmatmul.mubr.msk.f32.vlgmr.msra.gmra.mxu1 %vm6583_vm6, %v7259_v52 }
 0x9d2   :  { %7455 = vmatpush1.bf16.msra.mxu1 %v17754_v34  ;;  %7486 = vmatprep.mubr.bf16.mxu1 %v19243_v18 }
 0x9d3   :  { %7456 = vmatprep.subr.bf16.mxu1 %v17759_v42 }
 0x9d6   :  { %7457 = vmatpush1.bf16.msra.mxu1 %v17757_v38 }
 0x9d7   :  { %7458 = vmatprep.subr.bf16.mxu1 %v17762_v43 }
 0x9da   :  { %7459 = vmatpush1.bf16.msra.mxu1 %v17760_v44 }
 0x9db   :  { %7460 = vmatprep.subr.bf16.mxu1 %v17765_v45 }
 0x9de   :  { %7461 = vmatpush1.bf16.msra.mxu1 %v17763_v39 }
 0x9df   :  { %7462 = vmatprep.subr.bf16.mxu1 %v17768_v60 }
 0x9e2   :  { %7463 = vmatpush1.bf16.msra.mxu1 %v17766_v15 }
 0x9e3   :  { %7464 = vmatprep.subr.bf16.mxu1 %v17771_v46 }
 0x9e6   :  { %7465 = vmatpush1.bf16.msra.mxu1 %v17769_v51 }
 0x9e7   :  { %7466 = vmatprep.subr.bf16.mxu1 %v17774_v7 }
 0x9ea   :  { %7467 = vmatpush1.bf16.msra.mxu1 %v17772_v53 }
 0x9eb   :  { %7468 = vmatprep.subr.bf16.mxu1 %v17777_v54 }
 0x9ee   :  { %7469 = vmatpush1.bf16.msra.mxu1 %v17775_v56 }
 0x9ef   :  { %16647 = vmatprep.subr.bf16.mxu1 %v19244_v28 }
 0xa91   :  { %v7330_v59 = vpop.f32.mrf.mxu1 }
 0xa92   :  { %v7337_v61 = vrot.slane %v7330_v59, %v19730_v21  ;;  %v7342_v1 = vrot.slane %v7330_v59, %v19749_v30 }
 0xa93   :  { %v16646_v8 = vpop.f32.mrf.mxu1 }
 0xa94   :  { %v7338_v63 = vmul.f32 %v7337_v61, %v19991_v62 }
 0xa96   :  { %v7343_v3 = vadd.f32 %v7342_v1, %v7338_v63 }
 0xa98   :  { %v7344_v48 = vmax.f32 %v7343_v3, 0.0 }
 0xa9a   :  { %v7361_v4 = vpack.c.bf16 %v7344_v48, %v7344_v48 }
 0xa9c   :  { %7487 = vmatmul.mubr.bf16.vlgmr.msra.gmra.mxu1 %v7361_v4 }
 0xa9d   :  { %16649 = vmatprep.mubr.msk.bf16.mxu1 %vm19245_vm1, %v19244_v28  ;;  %16648 = vmatpush3.bf16.msra.mxu1 %v17778_v6 }
 0xb5c   :  { %v7488_v11 = vpop.f32.mrf.mxu1 }
 0xb5d   :  { %v7489_v55 = vadd.f32 %v7488_v11, %v7367_v10 }
 0xb5e   :  { %v7490_v13 = vpop.f32.mrf.mxu1 }
 0xb5f   :  { %7495 = vst [vmem:[#allocation28] sm:$0xff] %v7489_v55  ;;  %v7491_v62 = vadd.f32 %v7490_v13, %v7371_v57 }
 0xb60   :  { %v7492_v14 = vpop.f32.mrf.mxu1 }
 0xb61   :  { %7496 = vst [vmem:[#allocation28 + $0x8] sm:$0xff] %v7491_v62  ;;  %v7498_v16 = vmul.f32 0.5, %v7491_v62 }
 0xb62   :  { %v7493_v17 = vpop.f32.mrf.mxu1 }
 0xb63   :  { %v7499_v58 = vmul.f32 1.442695, %v7498_v16 }
 0xb65   :  { %17785 = vpow2.f32 %v7499_v58 }
 0xb72   :  { %v17786_v19 = vpop.eup %17785 }
 0xb73   :  { %v7501_v33 = vmul.f32 %v17786_v19, %v7497_v24 }
 0xb75   :  { %v7502_v20 = vadd.f32 %v7501_v33, %v7489_v55 }
 0xb77   :  { %v7505_v22 = vpack.c.bf16 %v7502_v20, %v7502_v20 }
 0xb79   :  { %16650 = vmatmul.mubr.msk.bf16.vlgmr.msra.gmra.mxu1 %vm7519_vm7, %v7505_v22 }
 0xb7a   :  { %19117 = shalt.err (!%p19114_p13)  }
 0xb7b   :  { %237 = dma.hbm_to_vmem [thread:$0]  %s20630_s18, 4096, %s235_s0, [#allocation5] }
 0xb7c   :  { %s19126_s8 = scalar_lea.vmem %s247_s23, 28672  ;;  %p19131_p1 = scmp.lt.s32.totalorder %s247_s23, %s247_s23 }
 0xb7d   :  { %p19127_p0 = scmp.ne.s32.totalorder %s247_s23, %s19126_s8  ;;  %p19132_p2 = scmp.lt.s32.totalorder %s19126_s8, %s19126_s8 }
 0xb7f   :  { %p19133_p3 = por %p19132_p2, %p19131_p1 }
 0xb81   :  { %p19134_p4 = pnand %p19133_p3, %p19127_p0 }
 0xb83   :  { %19137 = shalt.err (!%p19134_p4)  }
 0xb84   :  { %249 = dma.hbm_to_vmem [thread:$0]  %s20631_s19, 28672, %s247_s23, [#allocation5 + $0x1] }
 0xb85   :  { %s19248_s11 = smov [#allocation4]  }
 0xb86   :  { %s258_s30 = sshll.u32 %s19248_s11, 4  ;;  %s259_s30 = int_to_ptr.vmem [resolvable:$true] %s258_s30 }
 0xb87   :  { %s19146_s25 = scalar_lea.vmem %s259_s30, 50176  ;;  %p19151_p6 = scmp.lt.s32.totalorder %s259_s30, %s259_s30 }
 0xb88   :  { %p19147_p5 = scmp.ne.s32.totalorder %s259_s30, %s19146_s25  ;;  %p19152_p7 = scmp.lt.s32.totalorder %s19146_s25, %s19146_s25 }
 0xb8a   :  { %p19153_p8 = por %p19152_p7, %p19151_p6 }
 0xb8c   :  { %p19154_p9 = pnand %p19153_p8, %p19147_p5 }
 0xb8e   :  { %19157 = shalt.err (!%p19154_p9)  }
 0xb8f   :  { %261 = dma.hbm_to_vmem [thread:$0]  %s20632_s20, 50176, %s259_s30, [#allocation5 + $0x2]  ;;  %v15322_v0 = vld [vmem:[#allocation11 + $0x7] ss:$0 sm:$0xff] }
 0xc39   :  { %v7557_v25 = vpop.f32.mrf.mxu1 }
 0xc3a   :  { %v20021_v12 = vadd.f32 %v15322_v0, %v7557_v25 }
 0xc3b   :  { %v16651_v26 = vpop.f32.mrf.mxu1 }
 0xc3d   :  { %v7560_v27 = vpop.f32.mrf.mxu1 }
 0xc3f   :  { %v16652_v23 = vpop.f32.mrf.mxu1 }
 0xc40   :  { %19212 = dma.done.wait [#allocation5], 4096 }
 0xc41   :  { %19213 = vsyncadd [#allocation5], 4294963200  ;;  %7792 = vmatprep.mubr.bf16.mxu0 %v19243_v18  ;;  %7833 = vmatprep.mubr.bf16.mxu1 %v19243_v18  ;;  %v17787_v49 = vld [vmem:[#allocation2 + $0xe4] ss:$16 sps:$4 sm:$0xff]   ;;  %v17789_v2 = vld [vmem:[#allocation2 + $0xec] ss:$16 sps:$4 sm:$0xff]   ;;  %v7599_v4 = vpack.c.bf16 %v20021_v12, %v20021_v12 }
 0xc42   :  { %7760 = vmatprep.subr.bf16.mxu0 %v17787_v49  ;;  %v17791_v29 = vld [vmem:[#allocation2 + $0xe0] ss:$16 sps:$4 sm:$0xff]   ;;  %v17792_v50 = vld [vmem:[#allocation2 + $0xe8] ss:$16 sps:$4 sm:$0xff]   ;;  %7801 = vmatprep.subr.bf16.mxu1 %v17789_v2  ;;  %v17793_v32 = vld [vmem:[#allocation2 + $0xc4] ss:$16 sps:$4 sm:$0xff]  }
 0xc43   :  { %7761 = vmatpush1.bf16.msra.mxu0 %v17791_v29  ;;  %7802 = vmatpush1.bf16.msra.mxu1 %v17792_v50  ;;  %v17795_v9 = vld [vmem:[#allocation2 + $0xcc] ss:$16 sps:$4 sm:$0xff]   ;;  %v17797_v35 = vld [vmem:[#allocation2 + $0xc0] ss:$16 sps:$4 sm:$0xff]   ;;  %v17798_v5 = vld [vmem:[#allocation2 + $0xc8] ss:$16 sps:$4 sm:$0xff]  }
 0xc44   :  { %7762 = vmatprep.subr.bf16.mxu0 %v17793_v32  ;;  %7803 = vmatprep.subr.bf16.mxu1 %v17795_v9  ;;  %v17799_v36 = vld [vmem:[#allocation2 + $0xa4] ss:$16 sps:$4 sm:$0xff]   ;;  %v17801_v37 = vld [vmem:[#allocation2 + $0xac] ss:$16 sps:$4 sm:$0xff]   ;;  %v17803_v40 = vld [vmem:[#allocation2 + $0xa0] ss:$16 sps:$4 sm:$0xff]  }
 0xc45   :  { %v17804_v41 = vld [vmem:[#allocation2 + $0xa8] ss:$16 sps:$4 sm:$0xff]   ;;  %v17805_v34 = vld [vmem:[#allocation2 + $0x84] ss:$16 sps:$4 sm:$0xff]   ;;  %v17807_v42 = vld [vmem:[#allocation2 + $0x8c] ss:$16 sps:$4 sm:$0xff]  }
 0xc46   :  { %v17809_v52 = vld [vmem:[#allocation2 + $0x80] ss:$16 sps:$4 sm:$0xff]   ;;  %v17810_v38 = vld [vmem:[#allocation2 + $0x88] ss:$16 sps:$4 sm:$0xff]   ;;  %v17811_v43 = vld [vmem:[#allocation2 + $0x64] ss:$16 sps:$4 sm:$0xff]  }
 0xc47   :  { %7763 = vmatpush1.bf16.msra.mxu0 %v17797_v35  ;;  %7804 = vmatpush1.bf16.msra.mxu1 %v17798_v5  ;;  %v17813_v44 = vld [vmem:[#allocation2 + $0x6c] ss:$16 sps:$4 sm:$0xff]   ;;  %v17815_v45 = vld [vmem:[#allocation2 + $0x60] ss:$16 sps:$4 sm:$0xff]   ;;  %v17816_v39 = vld [vmem:[#allocation2 + $0x68] ss:$16 sps:$4 sm:$0xff]  }
 0xc48   :  { %7764 = vmatprep.subr.bf16.mxu0 %v17799_v36  ;;  %7805 = vmatprep.subr.bf16.mxu1 %v17801_v37  ;;  %v17817_v60 = vld [vmem:[#allocation2 + $0x44] ss:$16 sps:$4 sm:$0xff]   ;;  %v17819_v15 = vld [vmem:[#allocation2 + $0x4c] ss:$16 sps:$4 sm:$0xff]   ;;  %v17821_v46 = vld [vmem:[#allocation2 + $0x40] ss:$16 sps:$4 sm:$0xff]  }
 0xc49   :  { %v17822_v51 = vld [vmem:[#allocation2 + $0x48] ss:$16 sps:$4 sm:$0xff]   ;;  %v17823_v7 = vld [vmem:[#allocation2 + $0x24] ss:$16 sps:$4 sm:$0xff]   ;;  %v17825_v53 = vld [vmem:[#allocation2 + $0x2c] ss:$16 sps:$4 sm:$0xff]  }
 0xc4a   :  { %v17827_v54 = vld [vmem:[#allocation2 + $0x20] ss:$16 sps:$4 sm:$0xff]   ;;  %v17828_v56 = vld [vmem:[#allocation2 + $0x28] ss:$16 sps:$4 sm:$0xff]   ;;  %v17829_v59 = vld [vmem:[#allocation2 + $0x4] ss:$16 sps:$4 sm:$0xff]  }
 0xc4b   :  { %7765 = vmatpush1.bf16.msra.mxu0 %v17803_v40  ;;  %7806 = vmatpush1.bf16.msra.mxu1 %v17804_v41  ;;  %v17831_v61 = vld [vmem:[#allocation2 + $0xc] ss:$16 sps:$4 sm:$0xff]   ;;  %v17833_v8 = vld [vmem:[#allocation2] ss:$16 sps:$4 sm:$0xff]   ;;  %v17834_v63 = vld [vmem:[#allocation2 + $0x8] ss:$16 sps:$4 sm:$0xff]  }
 0xc4c   :  { %7766 = vmatprep.subr.bf16.mxu0 %v17805_v34  ;;  %7807 = vmatprep.subr.bf16.mxu1 %v17807_v42  ;;  %v17835_v1 = vld [vmem:[%s20626_s14 + $0x78] sm:$0xff]   ;;  %v17839_v47 = vld [vmem:[%s20626_s14 + $0x70] sm:$0xff]   ;;  %v17843_v55 = vld [vmem:[%s20626_s14 + $0x68] sm:$0xff]  }
 0xc4d   :  { %v17836_v3 = vld [vmem:[%s20626_s14 + $0xf8] sm:$0xff]   ;;  %v17840_v10 = vld [vmem:[%s20626_s14 + $0xf0] sm:$0xff]   ;;  %v17844_v13 = vld [vmem:[%s20626_s14 + $0xe8] sm:$0xff]  }
 0xc4e   :  { %v17837_v48 = vld [vmem:[%s20626_s14 + $0x38] sm:$0xff]   ;;  %v17841_v57 = vld [vmem:[%s20626_s14 + $0x30] sm:$0xff]   ;;  %v17845_v62 = vld [vmem:[%s20626_s14 + $0x28] sm:$0xff]  }
 0xc4f   :  { %7767 = vmatpush1.bf16.msra.mxu0 %v17809_v52  ;;  %7808 = vmatpush1.bf16.msra.mxu1 %v17810_v38  ;;  %v17838_v6 = vld [vmem:[%s20626_s14 + $0xb8] sm:$0xff]   ;;  %v17842_v11 = vld [vmem:[%s20626_s14 + $0xb0] sm:$0xff]   ;;  %v17846_v14 = vld [vmem:[%s20626_s14 + $0xa8] sm:$0xff]  }
 0xc50   :  { %7768 = vmatprep.subr.bf16.mxu0 %v17811_v43  ;;  %7809 = vmatprep.subr.bf16.mxu1 %v17813_v44  ;;  %v17847_v16 = vld [vmem:[%s20626_s14 + $0x60] sm:$0xff]   ;;  %v17851_v19 = vld [vmem:[%s20626_s14 + $0x58] sm:$0xff]   ;;  %v17855_v0 = vld [vmem:[%s20626_s14 + $0x50] sm:$0xff]  }
 0xc51   :  { %v17848_v17 = vld [vmem:[%s20626_s14 + $0xe0] sm:$0xff]   ;;  %v17852_v33 = vld [vmem:[%s20626_s14 + $0xd8] sm:$0xff]   ;;  %v17856_v25 = vld [vmem:[%s20626_s14 + $0xd0] sm:$0xff]  }
 0xc52   :  { %v17849_v58 = vld [vmem:[%s20626_s14 + $0x20] sm:$0xff]   ;;  %v17853_v20 = vld [vmem:[%s20626_s14 + $0x18] sm:$0xff]   ;;  %v17857_v12 = vld [vmem:[%s20626_s14 + $0x10] sm:$0xff]  }
 0xc53   :  { %7769 = vmatpush1.bf16.msra.mxu0 %v17815_v45  ;;  %7810 = vmatpush1.bf16.msra.mxu1 %v17816_v39  ;;  %v17850_v24 = vld [vmem:[%s20626_s14 + $0xa0] sm:$0xff]   ;;  %v17854_v22 = vld [vmem:[%s20626_s14 + $0x98] sm:$0xff]   ;;  %v17858_v26 = vld [vmem:[%s20626_s14 + $0x90] sm:$0xff]  }
 0xc54   :  { %7770 = vmatprep.subr.bf16.mxu0 %v17817_v60  ;;  %7811 = vmatprep.subr.bf16.mxu1 %v17819_v15  ;;  %v17859_v27 = vld [vmem:[%s20626_s14 + $0x48] sm:$0xff]   ;;  %v17863_v29 = vld [vmem:[%s20626_s14 + $0x40] sm:$0xff]  }
 0xc55   :  { %v17860_v23 = vld [vmem:[%s20626_s14 + $0xc8] sm:$0xff]   ;;  %v17864_v50 = vld [vmem:[%s20626_s14 + $0xc0] sm:$0xff]  }
 0xc56   :  { %v17861_v49 = vld [vmem:[%s20626_s14 + $0x8] sm:$0xff]   ;;  %v17865_v32 = vld [vmem:[%s20626_s14] sm:$0xff]  }
 0xc57   :  { %7771 = vmatpush1.bf16.msra.mxu0 %v17821_v46  ;;  %7812 = vmatpush1.bf16.msra.mxu1 %v17822_v51  ;;  %v17862_v2 = vld [vmem:[%s20626_s14 + $0x88] sm:$0xff]   ;;  %v17866_v9 = vld [vmem:[%s20626_s14 + $0x80] sm:$0xff]  }
 0xc58   :  { %7772 = vmatprep.subr.bf16.mxu0 %v17823_v7  ;;  %7813 = vmatprep.subr.bf16.mxu1 %v17825_v53 }
 0xc5b   :  { %7773 = vmatpush1.bf16.msra.mxu0 %v17827_v54  ;;  %7814 = vmatpush1.bf16.msra.mxu1 %v17828_v56 }
 0xc5c   :  { %7774 = vmatprep.subr.bf16.mxu0 %v17829_v59  ;;  %7815 = vmatprep.subr.bf16.mxu1 %v17831_v61 }
 0xc5f   :  { %7775 = vmatpush1.bf16.msra.mxu0 %v17833_v8  ;;  %7816 = vmatpush1.bf16.msra.mxu1 %v17834_v63 }
 0xc60   :  { %16337 = vmatprep.subr.bf16.mxu0 %v17835_v1  ;;  %16359 = vmatprep.subr.bf16.mxu1 %v17836_v3 }
 0xc62   :  { %7793 = vmatmul.mubr.bf16.vlgmr.msra.gmra.mxu0 %v7599_v4  ;;  %7834 = vmatmul.mubr.bf16.vlgmr.msra.gmra.mxu1 %v7599_v4  ;;  %v8249_v4 = vld [vmem:[#allocation24] sm:$0xff] }
 0xc63   :  { %16338 = vmatpush3.bf16.msra.mxu0 %v17837_v48  ;;  %16360 = vmatpush3.bf16.msra.mxu1 %v17838_v6  ;;  %v8250_v48 = vld [vmem:[#allocation24 + $0x8] sm:$0xff]  ;;  %v8252_v6 = vld [vmem:[#allocation24 + $0x18] sm:$0xff] }
 0xc64   :  { %16339 = vmatprep.subr.bf16.mxu0 %v17839_v47  ;;  %16361 = vmatprep.subr.bf16.mxu1 %v17840_v10 }
 0xc67   :  { %16340 = vmatpush3.bf16.msra.mxu0 %v17841_v57  ;;  %16362 = vmatpush3.bf16.msra.mxu1 %v17842_v11 }
 0xc68   :  { %16341 = vmatprep.subr.bf16.mxu0 %v17843_v55  ;;  %16363 = vmatprep.subr.bf16.mxu1 %v17844_v13 }
 0xc6b   :  { %16342 = vmatpush3.bf16.msra.mxu0 %v17845_v62  ;;  %16364 = vmatpush3.bf16.msra.mxu1 %v17846_v14 }
 0xc6c   :  { %16343 = vmatprep.subr.bf16.mxu0 %v17847_v16  ;;  %16365 = vmatprep.subr.bf16.mxu1 %v17848_v17 }
 0xc6f   :  { %16344 = vmatpush3.bf16.msra.mxu0 %v17849_v58  ;;  %16366 = vmatpush3.bf16.msra.mxu1 %v17850_v24 }
 0xc70   :  { %16345 = vmatprep.subr.bf16.mxu0 %v17851_v19  ;;  %16367 = vmatprep.subr.bf16.mxu1 %v17852_v33 }
 0xc73   :  { %16346 = vmatpush3.bf16.msra.mxu0 %v17853_v20  ;;  %16368 = vmatpush3.bf16.msra.mxu1 %v17854_v22 }
 0xc74   :  { %16347 = vmatprep.subr.bf16.mxu0 %v17855_v0  ;;  %16369 = vmatprep.subr.bf16.mxu1 %v17856_v25 }
 0xc77   :  { %16348 = vmatpush3.bf16.msra.mxu0 %v17857_v12  ;;  %16370 = vmatpush3.bf16.msra.mxu1 %v17858_v26 }
 0xc78   :  { %16349 = vmatprep.subr.bf16.mxu0 %v17859_v27  ;;  %16371 = vmatprep.subr.bf16.mxu1 %v17860_v23 }
 0xc7b   :  { %16350 = vmatpush3.bf16.msra.mxu0 %v17861_v49  ;;  %16372 = vmatpush3.bf16.msra.mxu1 %v17862_v2 }
 0xc7c   :  { %16351 = vmatprep.subr.bf16.mxu0 %v17863_v29  ;;  %16373 = vmatprep.subr.bf16.mxu1 %v17864_v50 }
 0xc7f   :  { %16352 = vmatpush3.bf16.msra.mxu0 %v17865_v32  ;;  %16374 = vmatpush3.bf16.msra.mxu1 %v17866_v9 }
 0xc80   :  { %8286 = vmatprep.subr.mxu1 %v8250_v48 }
 0xd22   :  { %v20123_v35 = vpop.f32.mrf.mxu0  ;;  %v20125_v5 = vpop.f32.mrf.mxu1 }
 0xd23   :  { %v7846_v36 = vmul.f32 %v20123_v35, %v20123_v35  ;;  %v7848_v37 = vmul.f32 %v20125_v5, %v20125_v5  ;;  %v7842_v54 = vpack.c.bf16 %v20123_v35, %v20123_v35  ;;  %v7844_v61 = vpack.c.bf16 %v20125_v5, %v20125_v5 }
 0xd24   :  { %v20131_v40 = vpop.f32.mrf.mxu0  ;;  %v20133_v41 = vpop.f32.mrf.mxu1 }
 0xd25   :  { %v7850_v34 = vpack.c.bf16 %v7846_v36, %v7846_v36  ;;  %v7852_v42 = vpack.c.bf16 %v7848_v37, %v7848_v37  ;;  %v7847_v52 = vmul.f32 %v20131_v40, %v20131_v40  ;;  %v7849_v38 = vmul.f32 %v20133_v41, %v20133_v41 }
 0xd26   :  { %v7798_v43 = vpop.f32.mrf.mxu0  ;;  %v7839_v44 = vpop.f32.mrf.mxu1  ;;  %v7843_v7 = vpack.c.bf16 %v20131_v40, %v20131_v40  ;;  %v7845_v56 = vpack.c.bf16 %v20133_v41, %v20133_v41 }
 0xd27   :  { %v7851_v45 = vpack.c.bf16 %v7847_v52, %v7847_v52  ;;  %v7858_v39 = vrot.slane %v7850_v34, 4  ;;  %v7853_v60 = vpack.c.bf16 %v7849_v38, %v7849_v38  ;;  %v7860_v51 = vrot.slane %v7852_v42, 4  ;;  %v8235_v43 = vld [vmem:[#allocation11 + $0x10] sm:$0x1] }
 0xd28   :  { %v7799_v15 = vpop.f32.mrf.mxu0  ;;  %v7840_v46 = vpop.f32.mrf.mxu1 }
 0xd29   :  { %v7859_v53 = vrot.slane %v7851_v45, 4  ;;  %v7861_v59 = vrot.slane %v7853_v60, 4  ;;  %v7864_v1 = vsel %vm3427_vm0, %v7842_v54, %v7858_v39  ;;  %v7872_v3 = vsel %vm3427_vm0, %v7844_v61, %v7860_v51  ;;  %v8236_v39 = vld [vmem:[#allocation11 + $0x11] sm:$0x1] }
 0xd2a   :  { %v8251_v51 = vld [vmem:[#allocation24 + $0x10] sm:$0xff] }
 0xd2b   :  { %v7868_v8 = vsel %vm3427_vm0, %v7843_v7, %v7859_v53  ;;  %v7876_v63 = vsel %vm3427_vm0, %v7845_v56, %v7861_v59 }
 0xd2c   :  { %8166 = vmatprep.mubr.bf16.mxu0 %v7868_v8  ;;  %8207 = vmatprep.mubr.bf16.mxu1 %v7876_v63 }
 0xd2d   :  { %8167 = vmatmul.mubr.bf16.vlgmr.msra.gmra.mxu0 %v7864_v1  ;;  %8208 = vmatmul.mubr.bf16.vlgmr.msra.gmra.mxu1 %v7872_v3 }
 0xd2e   :  { %8320 = vmatprep.mubr.f32.mxu1 %v19244_v28  ;;  %8287 = vmatpush1.msra.mxu1 %v8249_v4 }
 0xd2f   :  { %8357 = vmatprep.subr.mxu1 %v8252_v6 }
 0xded   :  { %v16353_v47 = vpop.f32.mrf.mxu0  ;;  %v16375_v10 = vpop.f32.mrf.mxu1 }
 0xdef   :  { %v16354_v57 = vpop.f32.mrf.mxu0  ;;  %v16376_v55 = vpop.f32.mrf.mxu1 }
 0xdf0   :  { %v16355_v11 = vadd.f32 %v16354_v57, %v16353_v47  ;;  %v16377_v13 = vadd.f32 %v16376_v55, %v16375_v10 }
 0xdf1   :  { %v16356_v62 = vpop.f32.mrf.mxu0  ;;  %v16378_v14 = vpop.f32.mrf.mxu1 }
 0xdf2   :  { %v8210_v16 = vadd.f32 %v16377_v13, %v16355_v11 }
 0xdf3   :  { %v16357_v17 = vpop.f32.mrf.mxu0  ;;  %v16379_v24 = vpop.f32.mrf.mxu1 }
 0xdf4   :  { %v16358_v58 = vadd.f32 %v16357_v17, %v16356_v62  ;;  %v8216_v19 = vsel %vm6545_vm5, %v8210_v16, 0.0  ;;  %v16380_v33 = vadd.f32 %v16379_v24, %v16378_v14 }
 0xdf5   :  { %v8217_v20 = vrot.slane %v8216_v19, 4 }
 0xdf6   :  { %v8213_v22 = vadd.f32 %v16380_v33, %v16358_v58 }
 0xdf7   :  { %v8218_v0 = vadd.f32 %v8217_v20, %v8216_v19 }
 0xdf8   :  { %v8224_v25 = vsel %vm6545_vm5, %v8213_v22, 0.0 }
 0xdf9   :  { %v8219_v12 = vrot.slane %v8218_v0, 2  ;;  %v8225_v26 = vrot.slane %v8224_v25, 4 }
 0xdfb   :  { %v8220_v27 = vadd.f32 %v8219_v12, %v8218_v0  ;;  %v8226_v23 = vadd.f32 %v8225_v26, %v8224_v25 }
 0xdfd   :  { %v8221_v49 = vrot.slane %v8220_v27, 1  ;;  %v8227_v2 = vrot.slane %v8226_v23, 2 }
 0xdff   :  { %v8222_v29 = vadd.f32 %v8221_v49, %v8220_v27  ;;  %v8228_v50 = vadd.f32 %v8227_v2, %v8226_v23 }
 0xe01   :  { %v8223_v32 = vmul.f32 0.0078125, %v8222_v29  ;;  %v8229_v9 = vrot.slane %v8228_v50, 1 }
 0xe03   :  { %v8230_v36 = vadd.f32 %v8229_v9, %v8228_v50  ;;  %v8232_v37 = vmul.f32 %v8223_v32, %v8223_v32 }
 0xe05   :  { %v8231_v34 = vmul.f32 0.0078125, %v8230_v36 }
 0xe07   :  { %v8233_v42 = vsub.f32 %v8231_v34, %v8232_v37 }
 0xe09   :  { %v8234_v52 = vmax.f32 %v8233_v42, 0.0 }
 0xe0b   :  { %v8237_v38 = vadd.f32 1e-05, %v8234_v52 }
 0xe0d   :  { %17867 = vrsqrt.f32 %v8237_v38 }
 0xe1a   :  { %v17868_v44 = vpop.eup %17867 }
 0xe1b   :  { %v8239_v45 = vmul.f32 %v17868_v44, %v8235_v43 }
 0xe1d   :  { %v8240_v60 = vmul.f32 %v8239_v45, %v8223_v32 }
 0xe1f   :  { %v8241_v15 = vsub.f32 %v8236_v39, %v8240_v60 }
 0xe21   :  { %v8246_v46 = vrot.slane %v8241_v15, %v19730_v21 }
 0xe23   :  { %v8248_v7 = vsel %vm4101_vm3, %v8239_v45, %v8246_v46 }
 0xe24   :  { %15389 = vmatmul.mubr.msk.f32.vlgmr.msra.gmra.mxu1 %vm6583_vm6, %v8248_v7 }
 0xe25   :  { %8358 = vmatpush1.msra.mxu1 %v8251_v51  ;;  %8391 = vmatprep.mubr.f32.mxu1 %v19244_v28 }
 0xe28   :  { %15390 = vmatmul.mubr.msk.f32.vlgmr.msra.gmra.mxu1 %vm6583_vm6, %v8248_v7 }
 0xee4   :  { %v8322_v53 = vpop.f32.mrf.mxu1 }
 0xee5   :  { %v8401_v54 = vrot.slane %v8322_v53, %v19730_v21  ;;  %v8421_v61 = vrot.slane %v8322_v53, %v19749_v30 }
 0xee6   :  { %v8324_v56 = vpop.f32.mrf.mxu1 }
 0xee7   :  { %v8414_v59 = vmul.f32 %v8401_v54, %v20123_v35  ;;  %v8405_v8 = vrot.slane %v8324_v56, %v19730_v21  ;;  %v8425_v48 = vrot.slane %v8324_v56, %v19749_v30 }
 0xee8   :  { %v8393_v63 = vpop.f32.mrf.mxu1 }
 0xee9   :  { %v20163_v1 = vadd.f32 %v8421_v61, %v8414_v59  ;;  %v8415_v3 = vmul.f32 %v8405_v8, %v20131_v40  ;;  %v8409_v4 = vrot.slane %v8393_v63, %v19730_v21  ;;  %v8429_v6 = vrot.slane %v8393_v63, %v19749_v30 }
 0xeea   :  { %v8395_v47 = vpop.f32.mrf.mxu1 }
 0xeeb   :  { %v8438_v10 = vmax.f32 %v20163_v1, 0.0  ;;  %v8435_v57 = vadd.f32 %v8425_v48, %v8415_v3  ;;  %v8416_v35 = vmul.f32 %v8409_v4, %v20125_v5  ;;  %v8413_v11 = vrot.slane %v8395_v47, %v19730_v21 }
 0xeec   :  { %v8433_v40 = vrot.slane %v8395_v47, %v19749_v30 }
 0xeed   :  { %v8439_v55 = vmax.f32 %v8435_v57, 0.0  ;;  %v20172_v13 = vadd.f32 %v8429_v6, %v8416_v35  ;;  %v8417_v62 = vmul.f32 %v8413_v11, %v20133_v41 }
 0xeef   :  { %v8440_v14 = vmax.f32 %v20172_v13, 0.0  ;;  %v8437_v16 = vadd.f32 %v8433_v40, %v8417_v62 }
 0xef1   :  { %v8441_v17 = vmax.f32 %v8437_v16, 0.0 }
 0xef2   :  { %19214 = dma.done.wait [#allocation5 + $0x1], 28672 }
 0xef3   :  { %19215 = vsyncadd [#allocation5 + $0x1], 4294938624  ;;  %v20177_v58 = vpack.c.bf16 %v8439_v55, %v8439_v55  ;;  %v20179_v24 = vpack.c.bf16 %v8441_v17, %v8441_v17  ;;  %v17869_v5 = vld [vmem:[#allocation3 + $0x18c] ss:$28 sps:$4 sm:$0xff]   ;;  %v17875_v20 = vld [vmem:[#allocation3 + $0x154] ss:$28 sps:$4 sm:$0xff]  }
 0xef4   :  { %v17871_v19 = vld [vmem:[#allocation3 + $0x50c] ss:$28 sps:$4 sm:$0xff]   ;;  %9858 = vmatprep.subr.bf16.mxu0 %v17869_v5  ;;  %v17877_v22 = vld [vmem:[#allocation3 + $0x4d4] ss:$28 sps:$4 sm:$0xff]   ;;  %v17881_v12 = vld [vmem:[#allocation3 + $0x11c] ss:$28 sps:$4 sm:$0xff]  }
 0xef5   :  { %9890 = vmatprep.mubr.bf16.mxu0 %v20177_v58  ;;  %9931 = vmatprep.mubr.bf16.mxu1 %v20179_v24  ;;  %v17873_v41 = vld [vmem:[#allocation3 + $0x188] ss:$28 sps:$4 sm:$0xff]   ;;  %v17879_v0 = vld [vmem:[#allocation3 + $0x150] ss:$28 sps:$4 sm:$0xff]   ;;  %v17883_v26 = vld [vmem:[#allocation3 + $0x49c] ss:$28 sps:$4 sm:$0xff]  }
 0xef6   :  { %v17874_v33 = vld [vmem:[#allocation3 + $0x508] ss:$28 sps:$4 sm:$0xff]   ;;  %9899 = vmatprep.subr.bf16.mxu1 %v17871_v19  ;;  %9859 = vmatpush1.bf16.msra.mxu0 %v17873_v41  ;;  %v17880_v25 = vld [vmem:[#allocation3 + $0x4d0] ss:$28 sps:$4 sm:$0xff]   ;;  %v17885_v27 = vld [vmem:[#allocation3 + $0x118] ss:$28 sps:$4 sm:$0xff]  }
 0xef7   :  { %9900 = vmatpush1.bf16.msra.mxu1 %v17874_v33  ;;  %9860 = vmatprep.subr.bf16.mxu0 %v17875_v20  ;;  %v17886_v23 = vld [vmem:[#allocation3 + $0x498] ss:$28 sps:$4 sm:$0xff]   ;;  %v17887_v49 = vld [vmem:[#allocation3 + $0xe4] ss:$28 sps:$4 sm:$0xff]   ;;  %v17893_v32 = vld [vmem:[#allocation3 + $0xac] ss:$28 sps:$4 sm:$0xff]  }
 0xef8   :  { %9901 = vmatprep.subr.bf16.mxu1 %v17877_v22  ;;  %v17889_v2 = vld [vmem:[#allocation3 + $0x464] ss:$28 sps:$4 sm:$0xff]   ;;  %v17895_v9 = vld [vmem:[#allocation3 + $0x42c] ss:$28 sps:$4 sm:$0xff]   ;;  %v17899_v34 = vld [vmem:[#allocation3 + $0x74] ss:$28 sps:$4 sm:$0xff]  }
 0xef9   :  { %v17891_v29 = vld [vmem:[#allocation3 + $0xe0] ss:$28 sps:$4 sm:$0xff]   ;;  %v17897_v36 = vld [vmem:[#allocation3 + $0xa8] ss:$28 sps:$4 sm:$0xff]   ;;  %v17901_v42 = vld [vmem:[#allocation3 + $0x3f4] ss:$28 sps:$4 sm:$0xff]  }
 0xefa   :  { %9861 = vmatpush1.bf16.msra.mxu0 %v17879_v0  ;;  %v17892_v50 = vld [vmem:[#allocation3 + $0x460] ss:$28 sps:$4 sm:$0xff]   ;;  %v17898_v37 = vld [vmem:[#allocation3 + $0x428] ss:$28 sps:$4 sm:$0xff]   ;;  %v17903_v52 = vld [vmem:[#allocation3 + $0x70] ss:$28 sps:$4 sm:$0xff]  }
 0xefb   :  { %9902 = vmatpush1.bf16.msra.mxu1 %v17880_v25  ;;  %9862 = vmatprep.subr.bf16.mxu0 %v17881_v12  ;;  %v17904_v38 = vld [vmem:[#allocation3 + $0x3f0] ss:$28 sps:$4 sm:$0xff]   ;;  %v17905_v43 = vld [vmem:[#allocation3 + $0x3c] ss:$28 sps:$4 sm:$0xff]   ;;  %v17911_v60 = vld [vmem:[#allocation3 + $0x4] ss:$28 sps:$4 sm:$0xff]  }
 0xefc   :  { %9903 = vmatprep.subr.bf16.mxu1 %v17883_v26  ;;  %v17907_v44 = vld [vmem:[#allocation3 + $0x3bc] ss:$28 sps:$4 sm:$0xff]   ;;  %v17913_v15 = vld [vmem:[#allocation3 + $0x384] ss:$28 sps:$4 sm:$0xff]   ;;  %v17917_v7 = vld [vmem:[#allocation3 + $0x34c] ss:$28 sps:$4 sm:$0xff]  }
 0xefd   :  { %v17909_v45 = vld [vmem:[#allocation3 + $0x38] ss:$28 sps:$4 sm:$0xff]   ;;  %v17915_v46 = vld [vmem:[#allocation3] ss:$28 sps:$4 sm:$0xff]   ;;  %v17919_v53 = vld [vmem:[#allocation3 + $0x6cc] ss:$28 sps:$4 sm:$0xff]  }
 0xefe   :  { %9863 = vmatpush1.bf16.msra.mxu0 %v17885_v27  ;;  %v17910_v39 = vld [vmem:[#allocation3 + $0x3b8] ss:$28 sps:$4 sm:$0xff]   ;;  %v17916_v51 = vld [vmem:[#allocation3 + $0x380] ss:$28 sps:$4 sm:$0xff]   ;;  %v17921_v54 = vld [vmem:[#allocation3 + $0x348] ss:$28 sps:$4 sm:$0xff]  }
 0xeff   :  { %9904 = vmatpush1.bf16.msra.mxu1 %v17886_v23  ;;  %9864 = vmatprep.subr.bf16.mxu0 %v17887_v49  ;;  %v17922_v56 = vld [vmem:[#allocation3 + $0x6c8] ss:$28 sps:$4 sm:$0xff]   ;;  %v17923_v59 = vld [vmem:[#allocation3 + $0x314] ss:$28 sps:$4 sm:$0xff]   ;;  %v17929_v3 = vld [vmem:[#allocation3 + $0x2dc] ss:$28 sps:$4 sm:$0xff]  }
 0xf00   :  { %9905 = vmatprep.subr.bf16.mxu1 %v17889_v2  ;;  %v17925_v61 = vld [vmem:[#allocation3 + $0x694] ss:$28 sps:$4 sm:$0xff]   ;;  %v17931_v48 = vld [vmem:[#allocation3 + $0x65c] ss:$28 sps:$4 sm:$0xff]   ;;  %v17935_v47 = vld [vmem:[#allocation3 + $0x2a4] ss:$28 sps:$4 sm:$0xff]   ;;  %v20186_v2 = vpack.c.bf16 %v8438_v10, %v8438_v10 }
 0xf01   :  { %v17927_v8 = vld [vmem:[#allocation3 + $0x310] ss:$28 sps:$4 sm:$0xff]   ;;  %v17933_v4 = vld [vmem:[#allocation3 + $0x2d8] ss:$28 sps:$4 sm:$0xff]   ;;  %v17937_v57 = vld [vmem:[#allocation3 + $0x624] ss:$28 sps:$4 sm:$0xff]  }
 0xf02   :  { %9865 = vmatpush1.bf16.msra.mxu0 %v17891_v29  ;;  %v17928_v63 = vld [vmem:[#allocation3 + $0x690] ss:$28 sps:$4 sm:$0xff]   ;;  %v17934_v6 = vld [vmem:[#allocation3 + $0x658] ss:$28 sps:$4 sm:$0xff]   ;;  %v17939_v35 = vld [vmem:[#allocation3 + $0x2a0] ss:$28 sps:$4 sm:$0xff]   ;;  %v20191_v29 = vpack.c.bf16 %v8440_v14, %v8440_v14 }
 0xf03   :  { %9906 = vmatpush1.bf16.msra.mxu1 %v17892_v50  ;;  %9866 = vmatprep.subr.bf16.mxu0 %v17893_v32  ;;  %v17940_v11 = vld [vmem:[#allocation3 + $0x620] ss:$28 sps:$4 sm:$0xff]   ;;  %v17941_v55 = vld [vmem:[#allocation3 + $0x26c] ss:$28 sps:$4 sm:$0xff]   ;;  %v17947_v17 = vld [vmem:[#allocation3 + $0x234] ss:$28 sps:$4 sm:$0xff]  }
 0xf04   :  { %9907 = vmatprep.subr.bf16.mxu1 %v17895_v9  ;;  %v17943_v62 = vld [vmem:[#allocation3 + $0x5ec] ss:$28 sps:$4 sm:$0xff]   ;;  %v17949_v5 = vld [vmem:[#allocation3 + $0x5b4] ss:$28 sps:$4 sm:$0xff]   ;;  %v17953_v33 = vld [vmem:[#allocation3 + $0x1fc] ss:$28 sps:$4 sm:$0xff]  }
 0xf05   :  { %v17945_v40 = vld [vmem:[#allocation3 + $0x268] ss:$28 sps:$4 sm:$0xff]   ;;  %v17951_v19 = vld [vmem:[#allocation3 + $0x230] ss:$28 sps:$4 sm:$0xff]   ;;  %v17955_v20 = vld [vmem:[#allocation3 + $0x57c] ss:$28 sps:$4 sm:$0xff]  }
 0xf06   :  { %9867 = vmatpush1.bf16.msra.mxu0 %v17897_v36  ;;  %v17946_v16 = vld [vmem:[#allocation3 + $0x5e8] ss:$28 sps:$4 sm:$0xff]   ;;  %v17952_v41 = vld [vmem:[#allocation3 + $0x5b0] ss:$28 sps:$4 sm:$0xff]   ;;  %v17957_v22 = vld [vmem:[#allocation3 + $0x1f8] ss:$28 sps:$4 sm:$0xff]  }
 0xf07   :  { %9908 = vmatpush1.bf16.msra.mxu1 %v17898_v37  ;;  %9868 = vmatprep.subr.bf16.mxu0 %v17899_v34  ;;  %v17958_v0 = vld [vmem:[#allocation3 + $0x578] ss:$28 sps:$4 sm:$0xff]   ;;  %v17959_v25 = vld [vmem:[#allocation3 + $0x1c4] ss:$28 sps:$4 sm:$0xff]   ;;  %v17965_v50 = vld [vmem:[#allocation3 + $0x190] ss:$28 sps:$4 sm:$0xff]  }
 0xf08   :  { %9909 = vmatprep.subr.bf16.mxu1 %v17901_v42  ;;  %v17961_v12 = vld [vmem:[#allocation3 + $0x544] ss:$28 sps:$4 sm:$0xff]   ;;  %v17967_v23 = vld [vmem:[#allocation3 + $0x194] ss:$28 sps:$4 sm:$0xff]   ;;  %v17973_v9 = vld [vmem:[#allocation3 + $0x15c] ss:$28 sps:$4 sm:$0xff]  }
 0xf09   :  { %v17963_v26 = vld [vmem:[#allocation3 + $0x1c0] ss:$28 sps:$4 sm:$0xff]   ;;  %v17970_v49 = vld [vmem:[#allocation3 + $0x514] ss:$28 sps:$4 sm:$0xff]   ;;  %v17985_v42 = vld [vmem:[#allocation3 + $0xec] ss:$28 sps:$4 sm:$0xff]  }
 0xf0a   :  { %9869 = vmatpush1.bf16.msra.mxu0 %v17903_v52  ;;  %v17964_v27 = vld [vmem:[#allocation3 + $0x540] ss:$28 sps:$4 sm:$0xff]   ;;  %v17968_v32 = vld [vmem:[#allocation3 + $0x510] ss:$28 sps:$4 sm:$0xff]   ;;  %v17971_v1 = vld [vmem:[#allocation3 + $0x158] ss:$28 sps:$4 sm:$0xff]  }
 0xf0b   :  { %9910 = vmatpush1.bf16.msra.mxu1 %v17904_v38  ;;  %9870 = vmatprep.subr.bf16.mxu0 %v17905_v43  ;;  %v17976_v36 = vld [vmem:[#allocation3 + $0x4dc] ss:$28 sps:$4 sm:$0xff]   ;;  %v17979_v13 = vld [vmem:[#allocation3 + $0x124] ss:$28 sps:$4 sm:$0xff]   ;;  %v17988_v52 = vld [vmem:[#allocation3 + $0x46c] ss:$28 sps:$4 sm:$0xff]  }
 0xf0c   :  { %9911 = vmatprep.subr.bf16.mxu1 %v17907_v44  ;;  %v17974_v10 = vld [vmem:[#allocation3 + $0x4d8] ss:$28 sps:$4 sm:$0xff]   ;;  %v17982_v14 = vld [vmem:[#allocation3 + $0x4a4] ss:$28 sps:$4 sm:$0xff]  }
 0xf0d   :  { %v17977_v37 = vld [vmem:[#allocation3 + $0x120] ss:$28 sps:$4 sm:$0xff]   ;;  %v17983_v38 = vld [vmem:[#allocation3 + $0xe8] ss:$28 sps:$4 sm:$0xff]   ;;  %v17991_v44 = vld [vmem:[#allocation3 + $0xb4] ss:$28 sps:$4 sm:$0xff]  }
 0xf0e   :  { %9871 = vmatpush1.bf16.msra.mxu0 %v17909_v45  ;;  %v17980_v34 = vld [vmem:[#allocation3 + $0x4a0] ss:$28 sps:$4 sm:$0xff]   ;;  %v17986_v43 = vld [vmem:[#allocation3 + $0x468] ss:$28 sps:$4 sm:$0xff]   ;;  %v17994_v45 = vld [vmem:[#allocation3 + $0x434] ss:$28 sps:$4 sm:$0xff]  }
 0xf0f   :  { %9912 = vmatpush1.bf16.msra.mxu1 %v17910_v39  ;;  %9872 = vmatprep.subr.bf16.mxu0 %v17911_v60  ;;  %v17989_v39 = vld [vmem:[#allocation3 + $0xb0] ss:$28 sps:$4 sm:$0xff]  }
 0xf10   :  { %9913 = vmatprep.subr.bf16.mxu1 %v17913_v15  ;;  %v17992_v60 = vld [vmem:[#allocation3 + $0x430] ss:$28 sps:$4 sm:$0xff]   ;;  %v17997_v15 = vld [vmem:[#allocation3 + $0x7c] ss:$28 sps:$4 sm:$0xff]  }
 0xf12   :  { %9873 = vmatpush1.bf16.msra.mxu0 %v17915_v46  ;;  %v18000_v46 = vld [vmem:[#allocation3 + $0x3fc] ss:$28 sps:$4 sm:$0xff]  }
 0xf13   :  { %9914 = vmatpush1.bf16.msra.mxu1 %v17916_v51  ;;  %9874 = vmatprep.subr.bf16.mxu0 %v17917_v7  ;;  %v17995_v51 = vld [vmem:[#allocation3 + $0x78] ss:$28 sps:$4 sm:$0xff]  }
 0xf14   :  { %9915 = vmatprep.subr.bf16.mxu1 %v17919_v53  ;;  %v17998_v7 = vld [vmem:[#allocation3 + $0x3f8] ss:$28 sps:$4 sm:$0xff]   ;;  %v18003_v53 = vld [vmem:[#allocation3 + $0x44] ss:$28 sps:$4 sm:$0xff]  }
 0xf16   :  { %9875 = vmatpush2.bf16.msra.mxu0 %v17921_v54  ;;  %v18006_v54 = vld [vmem:[#allocation3 + $0x3c4] ss:$28 sps:$4 sm:$0xff]  }
 0xf17   :  { %9916 = vmatpush2.bf16.msra.mxu1 %v17922_v56  ;;  %9876 = vmatprep.subr.bf16.mxu0 %v17923_v59  ;;  %v18001_v56 = vld [vmem:[#allocation3 + $0x40] ss:$28 sps:$4 sm:$0xff]  }
 0xf18   :  { %9917 = vmatprep.subr.bf16.mxu1 %v17925_v61  ;;  %v18004_v59 = vld [vmem:[#allocation3 + $0x3c0] ss:$28 sps:$4 sm:$0xff]   ;;  %v18009_v61 = vld [vmem:[#allocation3 + $0xc] ss:$28 sps:$4 sm:$0xff]  }
 0xf1a   :  { %9877 = vmatpush2.bf16.msra.mxu0 %v17927_v8  ;;  %v18012_v8 = vld [vmem:[#allocation3 + $0x38c] ss:$28 sps:$4 sm:$0xff]  }
 0xf1b   :  { %9918 = vmatpush2.bf16.msra.mxu1 %v17928_v63  ;;  %9878 = vmatprep.subr.bf16.mxu0 %v17929_v3  ;;  %v18007_v63 = vld [vmem:[#allocation3 + $0x8] ss:$28 sps:$4 sm:$0xff]  }
 0xf1c   :  { %9919 = vmatprep.subr.bf16.mxu1 %v17931_v48  ;;  %v18010_v3 = vld [vmem:[#allocation3 + $0x388] ss:$28 sps:$4 sm:$0xff]   ;;  %v18015_v48 = vld [vmem:[#allocation3 + $0x354] ss:$28 sps:$4 sm:$0xff]  }
 0xf1e   :  { %9879 = vmatpush2.bf16.msra.mxu0 %v17933_v4  ;;  %v18018_v4 = vld [vmem:[#allocation3 + $0x6d4] ss:$28 sps:$4 sm:$0xff]  }
 0xf1f   :  { %9920 = vmatpush2.bf16.msra.mxu1 %v17934_v6  ;;  %9880 = vmatprep.subr.bf16.mxu0 %v17935_v47  ;;  %v18013_v6 = vld [vmem:[#allocation3 + $0x350] ss:$28 sps:$4 sm:$0xff]  }
 0xf20   :  { %9921 = vmatprep.subr.bf16.mxu1 %v17937_v57  ;;  %v18016_v47 = vld [vmem:[#allocation3 + $0x6d0] ss:$28 sps:$4 sm:$0xff]   ;;  %v18021_v57 = vld [vmem:[#allocation3 + $0x31c] ss:$28 sps:$4 sm:$0xff]  }
 0xf22   :  { %9881 = vmatpush2.bf16.msra.mxu0 %v17939_v35  ;;  %v18024_v35 = vld [vmem:[#allocation3 + $0x69c] ss:$28 sps:$4 sm:$0xff]  }
 0xf23   :  { %9922 = vmatpush2.bf16.msra.mxu1 %v17940_v11  ;;  %9882 = vmatprep.subr.bf16.mxu0 %v17941_v55  ;;  %v18019_v11 = vld [vmem:[#allocation3 + $0x318] ss:$28 sps:$4 sm:$0xff]  }
 0xf24   :  { %9923 = vmatprep.subr.bf16.mxu1 %v17943_v62  ;;  %v18022_v55 = vld [vmem:[#allocation3 + $0x698] ss:$28 sps:$4 sm:$0xff]   ;;  %v18027_v62 = vld [vmem:[#allocation3 + $0x2e4] ss:$28 sps:$4 sm:$0xff]  }
 0xf26   :  { %9883 = vmatpush2.bf16.msra.mxu0 %v17945_v40  ;;  %v18030_v40 = vld [vmem:[#allocation3 + $0x664] ss:$28 sps:$4 sm:$0xff]  }
 0xf27   :  { %9924 = vmatpush2.bf16.msra.mxu1 %v17946_v16  ;;  %9884 = vmatprep.subr.bf16.mxu0 %v17947_v17  ;;  %v18025_v16 = vld [vmem:[#allocation3 + $0x2e0] ss:$28 sps:$4 sm:$0xff]  }
 0xf28   :  { %9925 = vmatprep.subr.bf16.mxu1 %v17949_v5  ;;  %v18028_v17 = vld [vmem:[#allocation3 + $0x660] ss:$28 sps:$4 sm:$0xff]   ;;  %v18033_v5 = vld [vmem:[#allocation3 + $0x2ac] ss:$28 sps:$4 sm:$0xff]  }
 0xf2a   :  { %9885 = vmatpush2.bf16.msra.mxu0 %v17951_v19  ;;  %v18036_v19 = vld [vmem:[#allocation3 + $0x62c] ss:$28 sps:$4 sm:$0xff]  }
 0xf2b   :  { %9926 = vmatpush2.bf16.msra.mxu1 %v17952_v41  ;;  %9886 = vmatprep.subr.bf16.mxu0 %v17953_v33  ;;  %v18031_v41 = vld [vmem:[#allocation3 + $0x2a8] ss:$28 sps:$4 sm:$0xff]  }
 0xf2c   :  { %9927 = vmatprep.subr.bf16.mxu1 %v17955_v20  ;;  %v18034_v33 = vld [vmem:[#allocation3 + $0x628] ss:$28 sps:$4 sm:$0xff]   ;;  %v18039_v20 = vld [vmem:[#allocation3 + $0x274] ss:$28 sps:$4 sm:$0xff]  }
 0xf2e   :  { %9887 = vmatpush2.bf16.msra.mxu0 %v17957_v22  ;;  %v18042_v22 = vld [vmem:[#allocation3 + $0x5f4] ss:$28 sps:$4 sm:$0xff]  }
 0xf2f   :  { %9928 = vmatpush2.bf16.msra.mxu1 %v17958_v0  ;;  %9888 = vmatprep.subr.bf16.mxu0 %v17959_v25  ;;  %v18037_v0 = vld [vmem:[#allocation3 + $0x270] ss:$28 sps:$4 sm:$0xff]  }
 0xf30   :  { %9929 = vmatprep.subr.bf16.mxu1 %v17961_v12  ;;  %v18040_v25 = vld [vmem:[#allocation3 + $0x5f0] ss:$28 sps:$4 sm:$0xff]   ;;  %v18045_v12 = vld [vmem:[#allocation3 + $0x23c] ss:$28 sps:$4 sm:$0xff]  }
 0xf32   :  { %9889 = vmatpush2.bf16.msra.mxu0 %v17963_v26  ;;  %v18048_v26 = vld [vmem:[#allocation3 + $0x5bc] ss:$28 sps:$4 sm:$0xff]  }
 0xf33   :  { %9930 = vmatpush2.bf16.msra.mxu1 %v17964_v27  ;;  %9940 = vmatprep.subr.bf16.mxu0 %v17967_v23  ;;  %v18043_v27 = vld [vmem:[#allocation3 + $0x238] ss:$28 sps:$4 sm:$0xff]  }
 0xf34   :  { %9981 = vmatprep.subr.bf16.mxu1 %v17970_v49  ;;  %v18046_v23 = vld [vmem:[#allocation3 + $0x5b8] ss:$28 sps:$4 sm:$0xff]   ;;  %v18051_v49 = vld [vmem:[#allocation3 + $0x204] ss:$28 sps:$4 sm:$0xff]  }
 0xf35   :  { %9891 = vmatmul.mubr.bf16.vlgmr.msra.gmra.mxu0 %v20186_v2 }
 0xf36   :  { %9932 = vmatmul.mubr.bf16.vlgmr.msra.gmra.mxu1 %v20191_v29  ;;  %9941 = vmatpush1.bf16.msra.mxu0 %v17965_v50  ;;  %v18054_v50 = vld [vmem:[#allocation3 + $0x584] ss:$28 sps:$4 sm:$0xff]  }
 0xf37   :  { %9982 = vmatpush1.bf16.msra.mxu1 %v17968_v32  ;;  %9942 = vmatprep.subr.bf16.mxu0 %v17973_v9  ;;  %v18049_v32 = vld [vmem:[#allocation3 + $0x200] ss:$28 sps:$4 sm:$0xff]  }
 0xf38   :  { %9983 = vmatprep.subr.bf16.mxu1 %v17976_v36  ;;  %9972 = vmatprep.mubr.bf16.mxu0 %v20177_v58  ;;  %v18052_v9 = vld [vmem:[#allocation3 + $0x580] ss:$28 sps:$4 sm:$0xff]   ;;  %v18057_v36 = vld [vmem:[#allocation3 + $0x1cc] ss:$28 sps:$4 sm:$0xff]  }
 0xf39   :  { %10013 = vmatprep.mubr.bf16.mxu1 %v20179_v24 }
 0xf3a   :  { %9943 = vmatpush1.bf16.msra.mxu0 %v17971_v1  ;;  %v18060_v1 = vld [vmem:[#allocation3 + $0x54c] ss:$28 sps:$4 sm:$0xff]  }
 0xf3b   :  { %9984 = vmatpush1.bf16.msra.mxu1 %v17974_v10  ;;  %9944 = vmatprep.subr.bf16.mxu0 %v17979_v13  ;;  %v18055_v10 = vld [vmem:[#allocation3 + $0x1c8] ss:$28 sps:$4 sm:$0xff]  }
 0xf3c   :  { %9985 = vmatprep.subr.bf16.mxu1 %v17982_v14  ;;  %v18058_v13 = vld [vmem:[#allocation3 + $0x548] ss:$28 sps:$4 sm:$0xff]   ;;  %v18063_v14 = vld [vmem:[#allocation3 + $0x19c] ss:$28 sps:$4 sm:$0xff]  }
 0xf3e   :  { %9945 = vmatpush1.bf16.msra.mxu0 %v17977_v37  ;;  %v18066_v37 = vld [vmem:[#allocation3 + $0x51c] ss:$28 sps:$4 sm:$0xff]  }
 0xf3f   :  { %9986 = vmatpush1.bf16.msra.mxu1 %v17980_v34  ;;  %9946 = vmatprep.subr.bf16.mxu0 %v17985_v42  ;;  %v18061_v34 = vld [vmem:[#allocation3 + $0x198] ss:$28 sps:$4 sm:$0xff]  }
 0xf40   :  { %9987 = vmatprep.subr.bf16.mxu1 %v17988_v52  ;;  %v18064_v42 = vld [vmem:[#allocation3 + $0x518] ss:$28 sps:$4 sm:$0xff]   ;;  %v18069_v52 = vld [vmem:[#allocation3 + $0x164] ss:$28 sps:$4 sm:$0xff]  }
 0xf42   :  { %9947 = vmatpush1.bf16.msra.mxu0 %v17983_v38  ;;  %v18072_v38 = vld [vmem:[#allocation3 + $0x4e4] ss:$28 sps:$4 sm:$0xff]  }
 0xf43   :  { %9988 = vmatpush1.bf16.msra.mxu1 %v17986_v43  ;;  %9948 = vmatprep.subr.bf16.mxu0 %v17991_v44  ;;  %v18067_v43 = vld [vmem:[#allocation3 + $0x160] ss:$28 sps:$4 sm:$0xff]  }
 0xf44   :  { %9989 = vmatprep.subr.bf16.mxu1 %v17994_v45  ;;  %v18070_v44 = vld [vmem:[#allocation3 + $0x4e0] ss:$28 sps:$4 sm:$0xff]   ;;  %v18075_v45 = vld [vmem:[#allocation3 + $0x12c] ss:$28 sps:$4 sm:$0xff]  }
 0xf46   :  { %9949 = vmatpush1.bf16.msra.mxu0 %v17989_v39  ;;  %v18078_v39 = vld [vmem:[#allocation3 + $0x4ac] ss:$28 sps:$4 sm:$0xff]  }
 0xf47   :  { %9990 = vmatpush1.bf16.msra.mxu1 %v17992_v60  ;;  %9950 = vmatprep.subr.bf16.mxu0 %v17997_v15  ;;  %v18073_v60 = vld [vmem:[#allocation3 + $0x128] ss:$28 sps:$4 sm:$0xff]  }
 0xf48   :  { %9991 = vmatprep.subr.bf16.mxu1 %v18000_v46  ;;  %v18076_v15 = vld [vmem:[#allocation3 + $0x4a8] ss:$28 sps:$4 sm:$0xff]   ;;  %v18081_v46 = vld [vmem:[#allocation3 + $0xf4] ss:$28 sps:$4 sm:$0xff]  }
 0xf4a   :  { %9951 = vmatpush1.bf16.msra.mxu0 %v17995_v51  ;;  %v18084_v51 = vld [vmem:[#allocation3 + $0x474] ss:$28 sps:$4 sm:$0xff]  }
 0xf4b   :  { %9992 = vmatpush1.bf16.msra.mxu1 %v17998_v7  ;;  %9952 = vmatprep.subr.bf16.mxu0 %v18003_v53  ;;  %v18079_v7 = vld [vmem:[#allocation3 + $0xf0] ss:$28 sps:$4 sm:$0xff]  }
 0xf4c   :  { %9993 = vmatprep.subr.bf16.mxu1 %v18006_v54  ;;  %v18082_v53 = vld [vmem:[#allocation3 + $0x470] ss:$28 sps:$4 sm:$0xff]   ;;  %v18087_v54 = vld [vmem:[#allocation3 + $0xbc] ss:$28 sps:$4 sm:$0xff]  }
 0xf4e   :  { %9953 = vmatpush1.bf16.msra.mxu0 %v18001_v56  ;;  %v18090_v56 = vld [vmem:[#allocation3 + $0x43c] ss:$28 sps:$4 sm:$0xff]  }
 0xf4f   :  { %9994 = vmatpush1.bf16.msra.mxu1 %v18004_v59  ;;  %9954 = vmatprep.subr.bf16.mxu0 %v18009_v61  ;;  %v18085_v59 = vld [vmem:[#allocation3 + $0xb8] ss:$28 sps:$4 sm:$0xff]  }
 0xf50   :  { %9995 = vmatprep.subr.bf16.mxu1 %v18012_v8  ;;  %v18088_v61 = vld [vmem:[#allocation3 + $0x438] ss:$28 sps:$4 sm:$0xff]   ;;  %v18093_v8 = vld [vmem:[#allocation3 + $0x84] ss:$28 sps:$4 sm:$0xff]  }
 0xf52   :  { %9955 = vmatpush1.bf16.msra.mxu0 %v18007_v63  ;;  %v18096_v63 = vld [vmem:[#allocation3 + $0x404] ss:$28 sps:$4 sm:$0xff]  }
 0xf53   :  { %9996 = vmatpush1.bf16.msra.mxu1 %v18010_v3  ;;  %9956 = vmatprep.subr.bf16.mxu0 %v18015_v48  ;;  %v18091_v3 = vld [vmem:[#allocation3 + $0x80] ss:$28 sps:$4 sm:$0xff]  }
 0xf54   :  { %9997 = vmatprep.subr.bf16.mxu1 %v18018_v4  ;;  %v18094_v48 = vld [vmem:[#allocation3 + $0x400] ss:$28 sps:$4 sm:$0xff]   ;;  %v18099_v4 = vld [vmem:[#allocation3 + $0x4c] ss:$28 sps:$4 sm:$0xff]  }
 0xf56   :  { %9957 = vmatpush2.bf16.msra.mxu0 %v18013_v6  ;;  %v18102_v6 = vld [vmem:[#allocation3 + $0x3cc] ss:$28 sps:$4 sm:$0xff]  }
 0xf57   :  { %9998 = vmatpush2.bf16.msra.mxu1 %v18016_v47  ;;  %9958 = vmatprep.subr.bf16.mxu0 %v18021_v57  ;;  %v18097_v47 = vld [vmem:[#allocation3 + $0x48] ss:$28 sps:$4 sm:$0xff]  }
 0xf58   :  { %9999 = vmatprep.subr.bf16.mxu1 %v18024_v35  ;;  %v18100_v57 = vld [vmem:[#allocation3 + $0x3c8] ss:$28 sps:$4 sm:$0xff]   ;;  %v18105_v35 = vld [vmem:[#allocation3 + $0x14] ss:$28 sps:$4 sm:$0xff]  }
 0xf5a   :  { %9959 = vmatpush2.bf16.msra.mxu0 %v18019_v11  ;;  %v18108_v11 = vld [vmem:[#allocation3 + $0x394] ss:$28 sps:$4 sm:$0xff]  }
 0xf5b   :  { %10000 = vmatpush2.bf16.msra.mxu1 %v18022_v55  ;;  %9960 = vmatprep.subr.bf16.mxu0 %v18027_v62  ;;  %v18103_v55 = vld [vmem:[#allocation3 + $0x10] ss:$28 sps:$4 sm:$0xff]  }
 0xf5c   :  { %10001 = vmatprep.subr.bf16.mxu1 %v18030_v40  ;;  %v18106_v62 = vld [vmem:[#allocation3 + $0x390] ss:$28 sps:$4 sm:$0xff]   ;;  %v18111_v40 = vld [vmem:[#allocation3 + $0x35c] ss:$28 sps:$4 sm:$0xff]  }
 0xf5e   :  { %9961 = vmatpush2.bf16.msra.mxu0 %v18025_v16  ;;  %v18114_v16 = vld [vmem:[#allocation3 + $0x6dc] ss:$28 sps:$4 sm:$0xff]  }
 0xf5f   :  { %10002 = vmatpush2.bf16.msra.mxu1 %v18028_v17  ;;  %9962 = vmatprep.subr.bf16.mxu0 %v18033_v5  ;;  %v18109_v17 = vld [vmem:[#allocation3 + $0x358] ss:$28 sps:$4 sm:$0xff]  }
 0xf60   :  { %10003 = vmatprep.subr.bf16.mxu1 %v18036_v19  ;;  %v18112_v5 = vld [vmem:[#allocation3 + $0x6d8] ss:$28 sps:$4 sm:$0xff]   ;;  %v18117_v19 = vld [vmem:[#allocation3 + $0x324] ss:$28 sps:$4 sm:$0xff]  }
 0xf62   :  { %9963 = vmatpush2.bf16.msra.mxu0 %v18031_v41  ;;  %v18120_v41 = vld [vmem:[#allocation3 + $0x6a4] ss:$28 sps:$4 sm:$0xff]  }
 0xf63   :  { %10004 = vmatpush2.bf16.msra.mxu1 %v18034_v33  ;;  %9964 = vmatprep.subr.bf16.mxu0 %v18039_v20  ;;  %v18115_v33 = vld [vmem:[#allocation3 + $0x320] ss:$28 sps:$4 sm:$0xff]  }
 0xf64   :  { %10005 = vmatprep.subr.bf16.mxu1 %v18042_v22  ;;  %v18118_v20 = vld [vmem:[#allocation3 + $0x6a0] ss:$28 sps:$4 sm:$0xff]   ;;  %v18123_v22 = vld [vmem:[#allocation3 + $0x2ec] ss:$28 sps:$4 sm:$0xff]  }
 0xf66   :  { %9965 = vmatpush2.bf16.msra.mxu0 %v18037_v0  ;;  %v18126_v0 = vld [vmem:[#allocation3 + $0x66c] ss:$28 sps:$4 sm:$0xff]  }
 0xf67   :  { %10006 = vmatpush2.bf16.msra.mxu1 %v18040_v25  ;;  %9966 = vmatprep.subr.bf16.mxu0 %v18045_v12  ;;  %v18121_v25 = vld [vmem:[#allocation3 + $0x2e8] ss:$28 sps:$4 sm:$0xff]  }
 0xf68   :  { %10007 = vmatprep.subr.bf16.mxu1 %v18048_v26  ;;  %v18124_v12 = vld [vmem:[#allocation3 + $0x668] ss:$28 sps:$4 sm:$0xff]   ;;  %v18129_v26 = vld [vmem:[#allocation3 + $0x2b4] ss:$28 sps:$4 sm:$0xff]  }
 0xf6a   :  { %9967 = vmatpush2.bf16.msra.mxu0 %v18043_v27  ;;  %v18132_v27 = vld [vmem:[#allocation3 + $0x634] ss:$28 sps:$4 sm:$0xff]  }
 0xf6b   :  { %10008 = vmatpush2.bf16.msra.mxu1 %v18046_v23  ;;  %9968 = vmatprep.subr.bf16.mxu0 %v18051_v49  ;;  %v18127_v23 = vld [vmem:[#allocation3 + $0x2b0] ss:$28 sps:$4 sm:$0xff]  }
 0xf6c   :  { %10009 = vmatprep.subr.bf16.mxu1 %v18054_v50  ;;  %v18130_v49 = vld [vmem:[#allocation3 + $0x630] ss:$28 sps:$4 sm:$0xff]   ;;  %v18135_v50 = vld [vmem:[#allocation3 + $0x27c] ss:$28 sps:$4 sm:$0xff]  }
 0xf6e   :  { %9969 = vmatpush2.bf16.msra.mxu0 %v18049_v32  ;;  %v18138_v32 = vld [vmem:[#allocation3 + $0x5fc] ss:$28 sps:$4 sm:$0xff]  }
 0xf6f   :  { %10010 = vmatpush2.bf16.msra.mxu1 %v18052_v9  ;;  %9970 = vmatprep.subr.bf16.mxu0 %v18057_v36  ;;  %v18133_v9 = vld [vmem:[#allocation3 + $0x278] ss:$28 sps:$4 sm:$0xff]  }
 0xf70   :  { %10011 = vmatprep.subr.bf16.mxu1 %v18060_v1  ;;  %v18136_v36 = vld [vmem:[#allocation3 + $0x5f8] ss:$28 sps:$4 sm:$0xff]   ;;  %v18141_v1 = vld [vmem:[#allocation3 + $0x244] ss:$28 sps:$4 sm:$0xff]  }
 0xf72   :  { %9971 = vmatpush2.bf16.msra.mxu0 %v18055_v10  ;;  %v18144_v10 = vld [vmem:[#allocation3 + $0x5c4] ss:$28 sps:$4 sm:$0xff]  }
 0xf73   :  { %10012 = vmatpush2.bf16.msra.mxu1 %v18058_v13  ;;  %10022 = vmatprep.subr.bf16.mxu0 %v18063_v14  ;;  %v18139_v13 = vld [vmem:[#allocation3 + $0x240] ss:$28 sps:$4 sm:$0xff]  }
 0xf74   :  { %10063 = vmatprep.subr.bf16.mxu1 %v18066_v37  ;;  %v18142_v14 = vld [vmem:[#allocation3 + $0x5c0] ss:$28 sps:$4 sm:$0xff]   ;;  %v18147_v37 = vld [vmem:[#allocation3 + $0x20c] ss:$28 sps:$4 sm:$0xff]  }
 0xf75   :  { %9973 = vmatmul.mubr.bf16.vlgmr.msra.gmra.mxu0 %v20186_v2 }
 0xf76   :  { %10014 = vmatmul.mubr.bf16.vlgmr.msra.gmra.mxu1 %v20191_v29  ;;  %10023 = vmatpush1.bf16.msra.mxu0 %v18061_v34  ;;  %v18150_v34 = vld [vmem:[#allocation3 + $0x58c] ss:$28 sps:$4 sm:$0xff]  }
 0xf77   :  { %10064 = vmatpush1.bf16.msra.mxu1 %v18064_v42  ;;  %10024 = vmatprep.subr.bf16.mxu0 %v18069_v52  ;;  %v18145_v42 = vld [vmem:[#allocation3 + $0x208] ss:$28 sps:$4 sm:$0xff]  }
 0xf78   :  { %10065 = vmatprep.subr.bf16.mxu1 %v18072_v38  ;;  %10054 = vmatprep.mubr.bf16.mxu0 %v20177_v58  ;;  %v18148_v52 = vld [vmem:[#allocation3 + $0x588] ss:$28 sps:$4 sm:$0xff]   ;;  %v18153_v38 = vld [vmem:[#allocation3 + $0x1d4] ss:$28 sps:$4 sm:$0xff]  }
 0xf79   :  { %10095 = vmatprep.mubr.bf16.mxu1 %v20179_v24 }
 0xf7a   :  { %10025 = vmatpush1.bf16.msra.mxu0 %v18067_v43  ;;  %v18156_v43 = vld [vmem:[#allocation3 + $0x554] ss:$28 sps:$4 sm:$0xff]  }
 0xf7b   :  { %10066 = vmatpush1.bf16.msra.mxu1 %v18070_v44  ;;  %10026 = vmatprep.subr.bf16.mxu0 %v18075_v45  ;;  %v18151_v44 = vld [vmem:[#allocation3 + $0x1d0] ss:$28 sps:$4 sm:$0xff]  }
 0xf7c   :  { %10067 = vmatprep.subr.bf16.mxu1 %v18078_v39  ;;  %v18154_v45 = vld [vmem:[#allocation3 + $0x550] ss:$28 sps:$4 sm:$0xff]   ;;  %v18157_v39 = vld [vmem:[#allocation3 + $0x360] ss:$28 sps:$4 sm:$0xff]  }
 0xf7e   :  { %10027 = vmatpush1.bf16.msra.mxu0 %v18073_v60  ;;  %v18158_v60 = vld [vmem:[#allocation3 + $0x6e0] ss:$28 sps:$4 sm:$0xff]  }
 0xf7f   :  { %10068 = vmatpush1.bf16.msra.mxu1 %v18076_v15  ;;  %10028 = vmatprep.subr.bf16.mxu0 %v18081_v46  ;;  %v18159_v15 = vld [vmem:[#allocation3 + $0x1a0] ss:$28 sps:$4 sm:$0xff]  }
 0xf80   :  { %10069 = vmatprep.subr.bf16.mxu1 %v18084_v51  ;;  %v18160_v46 = vld [vmem:[#allocation3 + $0x520] ss:$28 sps:$4 sm:$0xff]   ;;  %v18161_v51 = vld [vmem:[#allocation3 + $0x328] ss:$28 sps:$4 sm:$0xff]  }
 0xf82   :  { %10029 = vmatpush1.bf16.msra.mxu0 %v18079_v7  ;;  %v18162_v7 = vld [vmem:[#allocation3 + $0x6a8] ss:$28 sps:$4 sm:$0xff]  }
 0xf83   :  { %10070 = vmatpush1.bf16.msra.mxu1 %v18082_v53  ;;  %10030 = vmatprep.subr.bf16.mxu0 %v18087_v54  ;;  %v18163_v53 = vld [vmem:[#allocation3 + $0x168] ss:$28 sps:$4 sm:$0xff]  }
 0xf84   :  { %10071 = vmatprep.subr.bf16.mxu1 %v18090_v56  ;;  %v18164_v54 = vld [vmem:[#allocation3 + $0x4e8] ss:$28 sps:$4 sm:$0xff]   ;;  %v18165_v56 = vld [vmem:[#allocation3 + $0x2f0] ss:$28 sps:$4 sm:$0xff]  }
 0xf86   :  { %10031 = vmatpush1.bf16.msra.mxu0 %v18085_v59  ;;  %v18166_v59 = vld [vmem:[#allocation3 + $0x670] ss:$28 sps:$4 sm:$0xff]  }
 0xf87   :  { %10072 = vmatpush1.bf16.msra.mxu1 %v18088_v61  ;;  %10032 = vmatprep.subr.bf16.mxu0 %v18093_v8  ;;  %v18167_v61 = vld [vmem:[#allocation3 + $0x130] ss:$28 sps:$4 sm:$0xff]  }
 0xf88   :  { %10073 = vmatprep.subr.bf16.mxu1 %v18096_v63  ;;  %v18168_v8 = vld [vmem:[#allocation3 + $0x4b0] ss:$28 sps:$4 sm:$0xff]   ;;  %v18169_v63 = vld [vmem:[#allocation3 + $0x2b8] ss:$28 sps:$4 sm:$0xff]  }
 0xf8a   :  { %10033 = vmatpush1.bf16.msra.mxu0 %v18091_v3  ;;  %v18170_v3 = vld [vmem:[#allocation3 + $0x638] ss:$28 sps:$4 sm:$0xff]  }
 0xf8b   :  { %10074 = vmatpush1.bf16.msra.mxu1 %v18094_v48  ;;  %10034 = vmatprep.subr.bf16.mxu0 %v18099_v4  ;;  %v18171_v48 = vld [vmem:[#allocation3 + $0xf8] ss:$28 sps:$4 sm:$0xff]  }
 0xf8c   :  { %10075 = vmatprep.subr.bf16.mxu1 %v18102_v6  ;;  %v18172_v4 = vld [vmem:[#allocation3 + $0x478] ss:$28 sps:$4 sm:$0xff]   ;;  %v18173_v6 = vld [vmem:[#allocation3 + $0x280] ss:$28 sps:$4 sm:$0xff]  }
 0xf8e   :  { %10035 = vmatpush1.bf16.msra.mxu0 %v18097_v47  ;;  %v18174_v47 = vld [vmem:[#allocation3 + $0x600] ss:$28 sps:$4 sm:$0xff]  }
 0xf8f   :  { %10076 = vmatpush1.bf16.msra.mxu1 %v18100_v57  ;;  %10036 = vmatprep.subr.bf16.mxu0 %v18105_v35  ;;  %v18176_v57 = vld [vmem:[#allocation3 + $0x440] ss:$28 sps:$4 sm:$0xff]   ;;  %v18178_v35 = vld [vmem:[#allocation3 + $0x5c8] ss:$28 sps:$4 sm:$0xff]  }
 0xf90   :  { %10077 = vmatprep.subr.bf16.mxu1 %v18108_v11  ;;  %v18179_v11 = vld [vmem:[#allocation3 + $0x88] ss:$28 sps:$4 sm:$0xff]  }
 0xf92   :  { %10037 = vmatpush1.bf16.msra.mxu0 %v18103_v55  ;;  %v18180_v55 = vld [vmem:[#allocation3 + $0x408] ss:$28 sps:$4 sm:$0xff]  }
 0xf93   :  { %10078 = vmatpush1.bf16.msra.mxu1 %v18106_v62  ;;  %10038 = vmatprep.subr.bf16.mxu0 %v18111_v40  ;;  %v18181_v62 = vld [vmem:[#allocation3 + $0x210] ss:$28 sps:$4 sm:$0xff]  }
 0xf94   :  { %10079 = vmatprep.subr.bf16.mxu1 %v18114_v16  ;;  %v18182_v40 = vld [vmem:[#allocation3 + $0x590] ss:$28 sps:$4 sm:$0xff]  }
 0xf95   :  { %v18183_v16 = vld [vmem:[#allocation3 + $0x50] ss:$28 sps:$4 sm:$0xff]  }
 0xf96   :  { %10039 = vmatpush2.bf16.msra.mxu0 %v18109_v17  ;;  %v18184_v17 = vld [vmem:[#allocation3 + $0x3d0] ss:$28 sps:$4 sm:$0xff]  }
 0xf97   :  { %10080 = vmatpush2.bf16.msra.mxu1 %v18112_v5  ;;  %10040 = vmatprep.subr.bf16.mxu0 %v18117_v19  ;;  %v18185_v5 = vld [vmem:[#allocation3 + $0x1d8] ss:$28 sps:$4 sm:$0xff]  }
 0xf98   :  { %10081 = vmatprep.subr.bf16.mxu1 %v18120_v41  ;;  %v18186_v19 = vld [vmem:[#allocation3 + $0x558] ss:$28 sps:$4 sm:$0xff]  }
 0xf99   :  { %v18187_v41 = vld [vmem:[#allocation3 + $0x18] ss:$28 sps:$4 sm:$0xff]  }
 0xf9a   :  { %10041 = vmatpush2.bf16.msra.mxu0 %v18115_v33  ;;  %v18188_v33 = vld [vmem:[#allocation3 + $0x398] ss:$28 sps:$4 sm:$0xff]  }
 0xf9b   :  { %10082 = vmatpush2.bf16.msra.mxu1 %v18118_v20  ;;  %10042 = vmatprep.subr.bf16.mxu0 %v18123_v22  ;;  %v18189_v20 = vld [vmem:[%s20628_s16 + $0x78] sm:$0xff]  }
 0xf9c   :  { %10083 = vmatprep.subr.bf16.mxu1 %v18126_v0  ;;  %v18205_v22 = vld [vmem:[%s20628_s16 + $0xf8] sm:$0xff]  }
 0xf9d   :  { %v18190_v0 = vld [vmem:[%s20628_s16 + $0x38] sm:$0xff]  }
 0xf9e   :  { %10043 = vmatpush2.bf16.msra.mxu0 %v18121_v25  ;;  %v18206_v25 = vld [vmem:[%s20628_s16 + $0xb8] sm:$0xff]  }
 0xf9f   :  { %10084 = vmatpush2.bf16.msra.mxu1 %v18124_v12  ;;  %10044 = vmatprep.subr.bf16.mxu0 %v18129_v26  ;;  %v18191_v12 = vld [vmem:[%s20628_s16 + $0x70] sm:$0xff]  }
 0xfa0   :  { %10085 = vmatprep.subr.bf16.mxu1 %v18132_v27  ;;  %v18207_v26 = vld [vmem:[%s20628_s16 + $0xf0] sm:$0xff]  }
 0xfa1   :  { %v18192_v27 = vld [vmem:[%s20628_s16 + $0x30] sm:$0xff]  }
 0xfa2   :  { %10045 = vmatpush2.bf16.msra.mxu0 %v18127_v23  ;;  %v18208_v23 = vld [vmem:[%s20628_s16 + $0xb0] sm:$0xff]  }
 0xfa3   :  { %10086 = vmatpush2.bf16.msra.mxu1 %v18130_v49  ;;  %10046 = vmatprep.subr.bf16.mxu0 %v18135_v50  ;;  %v18193_v49 = vld [vmem:[%s20628_s16 + $0x68] sm:$0xff]  }
 0xfa4   :  { %10087 = vmatprep.subr.bf16.mxu1 %v18138_v32  ;;  %v18210_v50 = vld [vmem:[%s20628_s16 + $0xa8] sm:$0xff]   ;;  %v18195_v32 = vld [vmem:[%s20628_s16 + $0x60] sm:$0xff]  }
 0xfa6   :  { %10047 = vmatpush2.bf16.msra.mxu0 %v18133_v9  ;;  %v18211_v9 = vld [vmem:[%s20628_s16 + $0xe0] sm:$0xff]  }
 0xfa7   :  { %10088 = vmatpush2.bf16.msra.mxu1 %v18136_v36  ;;  %10048 = vmatprep.subr.bf16.mxu0 %v18141_v1  ;;  %v18196_v36 = vld [vmem:[%s20628_s16 + $0x20] sm:$0xff]  }
 0xfa8   :  { %10089 = vmatprep.subr.bf16.mxu1 %v18144_v10  ;;  %v18212_v1 = vld [vmem:[%s20628_s16 + $0xa0] sm:$0xff]   ;;  %v18197_v10 = vld [vmem:[%s20628_s16 + $0x58] sm:$0xff]  }
 0xfaa   :  { %10049 = vmatpush2.bf16.msra.mxu0 %v18139_v13  ;;  %v18213_v13 = vld [vmem:[%s20628_s16 + $0xd8] sm:$0xff]  }
 0xfab   :  { %10090 = vmatpush2.bf16.msra.mxu1 %v18142_v14  ;;  %10050 = vmatprep.subr.bf16.mxu0 %v18147_v37  ;;  %v18198_v14 = vld [vmem:[%s20628_s16 + $0x18] sm:$0xff]  }
 0xfac   :  { %10091 = vmatprep.subr.bf16.mxu1 %v18150_v34  ;;  %v18214_v37 = vld [vmem:[%s20628_s16 + $0x98] sm:$0xff]   ;;  %v18199_v34 = vld [vmem:[%s20628_s16 + $0x50] sm:$0xff]  }
 0xfae   :  { %10051 = vmatpush2.bf16.msra.mxu0 %v18145_v42  ;;  %v18215_v42 = vld [vmem:[%s20628_s16 + $0xd0] sm:$0xff]  }
 0xfaf   :  { %10092 = vmatpush2.bf16.msra.mxu1 %v18148_v52  ;;  %10052 = vmatprep.subr.bf16.mxu0 %v18153_v38  ;;  %v18200_v52 = vld [vmem:[%s20628_s16 + $0x10] sm:$0xff]  }
 0xfb0   :  { %10093 = vmatprep.subr.bf16.mxu1 %v18156_v43  ;;  %v18216_v38 = vld [vmem:[%s20628_s16 + $0x90] sm:$0xff]   ;;  %v18201_v43 = vld [vmem:[%s20628_s16 + $0x48] sm:$0xff]  }
 0xfb2   :  { %10053 = vmatpush2.bf16.msra.mxu0 %v18151_v44  ;;  %v18217_v44 = vld [vmem:[%s20628_s16 + $0xc8] sm:$0xff]  }
 0xfb3   :  { %10094 = vmatpush2.bf16.msra.mxu1 %v18154_v45  ;;  %16381 = vmatprep.subr.bf16.mxu0 %v18157_v39  ;;  %v18202_v45 = vld [vmem:[%s20628_s16 + $0x8] sm:$0xff]  }
 0xfb4   :  { %16403 = vmatprep.subr.bf16.mxu1 %v18158_v60  ;;  %v18218_v39 = vld [vmem:[%s20628_s16 + $0x88] sm:$0xff]   ;;  %v18203_v60 = vld [vmem:[%s20628_s16 + $0x40] sm:$0xff]  }
 0xfb5   :  { %10055 = vmatmul.mubr.bf16.vlgmr.msra.gmra.mxu0 %v20186_v2 }
 0xfb6   :  { %10096 = vmatmul.mubr.bf16.vlgmr.msra.gmra.mxu1 %v20191_v29  ;;  %16382 = vmatpush3.bf16.msra.mxu0 %v18159_v15  ;;  %v18219_v15 = vld [vmem:[%s20628_s16 + $0xc0] sm:$0xff]  }
 0xfb7   :  { %16404 = vmatpush3.bf16.msra.mxu1 %v18160_v46  ;;  %16383 = vmatprep.subr.bf16.mxu0 %v18161_v51  ;;  %v18204_v46 = vld [vmem:[%s20628_s16] sm:$0xff]  }
 0xfb8   :  { %16405 = vmatprep.subr.bf16.mxu1 %v18162_v7  ;;  %10136 = vmatprep.mubr.bf16.mxu0 %v20177_v58  ;;  %v18175_v58 = vld [vmem:[#allocation3 + $0xc0] ss:$28 sps:$4 sm:$0xff]  }
 0xfb9   :  { %10176 = vmatprep.mubr.bf16.mxu1 %v20179_v24  ;;  %v18177_v24 = vld [vmem:[#allocation3 + $0x248] ss:$28 sps:$4 sm:$0xff]   ;;  %v18221_v7 = vld [vmem:[%s20628_s16 + $0x178] sm:$0xff]  }
 0xfba   :  { %16384 = vmatpush3.bf16.msra.mxu0 %v18163_v53  ;;  %v18220_v51 = vld [vmem:[%s20628_s16 + $0x80] sm:$0xff]  }
 0xfbb   :  { %16406 = vmatpush3.bf16.msra.mxu1 %v18164_v54  ;;  %16385 = vmatprep.subr.bf16.mxu0 %v18165_v56 }
 0xfbc   :  { %16407 = vmatprep.subr.bf16.mxu1 %v18166_v59 }
 0xfbe   :  { %16386 = vmatpush3.bf16.msra.mxu0 %v18167_v61 }
 0xfbf   :  { %16408 = vmatpush3.bf16.msra.mxu1 %v18168_v8  ;;  %16387 = vmatprep.subr.bf16.mxu0 %v18169_v63 }
 0xfc0   :  { %16409 = vmatprep.subr.bf16.mxu1 %v18170_v3 }
 0xfc2   :  { %16388 = vmatpush3.bf16.msra.mxu0 %v18171_v48 }
 0xfc3   :  { %16410 = vmatpush3.bf16.msra.mxu1 %v18172_v4  ;;  %16389 = vmatprep.subr.bf16.mxu0 %v18173_v6 }
 0xfc4   :  { %16411 = vmatprep.subr.bf16.mxu1 %v18174_v47 }
 0xfc6   :  { %16390 = vmatpush3.bf16.msra.mxu0 %v18175_v58 }
 0xfc7   :  { %16412 = vmatpush3.bf16.msra.mxu1 %v18176_v57  ;;  %16391 = vmatprep.subr.bf16.mxu0 %v18177_v24 }
 0xfc8   :  { %16413 = vmatprep.subr.bf16.mxu1 %v18178_v35 }
 0xfca   :  { %16392 = vmatpush3.bf16.msra.mxu0 %v18179_v11 }
 0xfcb   :  { %16414 = vmatpush3.bf16.msra.mxu1 %v18180_v55  ;;  %16393 = vmatprep.subr.bf16.mxu0 %v18181_v62  ;;  %v18222_v62 = vld [vmem:[%s20628_s16 + $0x138] sm:$0xff]  }
 0xfcc   :  { %16415 = vmatprep.subr.bf16.mxu1 %v18182_v40 }
 0xfce   :  { %16394 = vmatpush3.bf16.msra.mxu0 %v18183_v16  ;;  %v18223_v16 = vld [vmem:[%s20628_s16 + $0x170] sm:$0xff]  }
 0xfcf   :  { %16416 = vmatpush3.bf16.msra.mxu1 %v18184_v17  ;;  %16395 = vmatprep.subr.bf16.mxu0 %v18185_v5  ;;  %v18224_v5 = vld [vmem:[%s20628_s16 + $0x130] sm:$0xff]  }
 0xfd0   :  { %16417 = vmatprep.subr.bf16.mxu1 %v18186_v19  ;;  %v18225_v19 = vld [vmem:[%s20628_s16 + $0x168] sm:$0xff]  }
 0xfd2   :  { %16396 = vmatpush3.bf16.msra.mxu0 %v18187_v41  ;;  %v18226_v41 = vld [vmem:[%s20628_s16 + $0x128] sm:$0xff]  }
 0xfd3   :  { %16418 = vmatpush3.bf16.msra.mxu1 %v18188_v33  ;;  %16425 = vmatprep.subr.bf16.mxu0 %v18189_v20  ;;  %v18227_v33 = vld [vmem:[%s20628_s16 + $0x160] sm:$0xff]  }
 0xfd4   :  { %16447 = vmatprep.subr.bf16.mxu1 %v18205_v22  ;;  %v18228_v20 = vld [vmem:[%s20628_s16 + $0x120] sm:$0xff]   ;;  %v18229_v22 = vld [vmem:[%s20628_s16 + $0x158] sm:$0xff]  }
 0xfd5   :  { %10137 = vmatmul.mubr.bf16.vlgmr.msra.gmra.mxu0 %v20186_v2  ;;  %v18209_v2 = vld [vmem:[%s20628_s16 + $0xe8] sm:$0xff]  }
 0xfd6   :  { %10177 = vmatmul.mubr.bf16.vlgmr.msra.gmra.mxu1 %v20191_v29  ;;  %16426 = vmatpush3.bf16.msra.mxu0 %v18190_v0  ;;  %v18194_v29 = vld [vmem:[%s20628_s16 + $0x28] sm:$0xff]   ;;  %v18230_v0 = vld [vmem:[%s20628_s16 + $0x118] sm:$0xff]  }
 0xfd7   :  { %16448 = vmatpush3.bf16.msra.mxu1 %v18206_v25  ;;  %16427 = vmatprep.subr.bf16.mxu0 %v18191_v12  ;;  %v18231_v25 = vld [vmem:[%s20628_s16 + $0x150] sm:$0xff]  }
 0xfd8   :  { %16449 = vmatprep.subr.bf16.mxu1 %v18207_v26  ;;  %v18232_v12 = vld [vmem:[%s20628_s16 + $0x110] sm:$0xff]   ;;  %v18233_v26 = vld [vmem:[%s20628_s16 + $0x148] sm:$0xff]  }
 0xfda   :  { %16428 = vmatpush3.bf16.msra.mxu0 %v18192_v27  ;;  %v18234_v27 = vld [vmem:[%s20628_s16 + $0x108] sm:$0xff]  }
 0xfdb   :  { %16450 = vmatpush3.bf16.msra.mxu1 %v18208_v23  ;;  %16429 = vmatprep.subr.bf16.mxu0 %v18193_v49  ;;  %v18235_v23 = vld [vmem:[%s20628_s16 + $0x140] sm:$0xff]  }
 0xfdc   :  { %16451 = vmatprep.subr.bf16.mxu1 %v18209_v2  ;;  %v18236_v49 = vld [vmem:[%s20628_s16 + $0x100] sm:$0xff]  }
 0xfde   :  { %16430 = vmatpush3.bf16.msra.mxu0 %v18194_v29 }
 0xfdf   :  { %16452 = vmatpush3.bf16.msra.mxu1 %v18210_v50  ;;  %16431 = vmatprep.subr.bf16.mxu0 %v18195_v32 }
 0xfe0   :  { %16453 = vmatprep.subr.bf16.mxu1 %v18211_v9 }
 0xfe2   :  { %16432 = vmatpush3.bf16.msra.mxu0 %v18196_v36 }
 0xfe3   :  { %16454 = vmatpush3.bf16.msra.mxu1 %v18212_v1  ;;  %16433 = vmatprep.subr.bf16.mxu0 %v18197_v10 }
 0xfe4   :  { %16455 = vmatprep.subr.bf16.mxu1 %v18213_v13 }
 0xfe6   :  { %16434 = vmatpush3.bf16.msra.mxu0 %v18198_v14 }
 0xfe7   :  { %16456 = vmatpush3.bf16.msra.mxu1 %v18214_v37  ;;  %16435 = vmatprep.subr.bf16.mxu0 %v18199_v34 }
 0xfe8   :  { %16457 = vmatprep.subr.bf16.mxu1 %v18215_v42 }
 0xfea   :  { %16436 = vmatpush3.bf16.msra.mxu0 %v18200_v52 }
 0xfeb   :  { %16458 = vmatpush3.bf16.msra.mxu1 %v18216_v38  ;;  %16437 = vmatprep.subr.bf16.mxu0 %v18201_v43 }
 0xfec   :  { %16459 = vmatprep.subr.bf16.mxu1 %v18217_v44 }
 0xfee   :  { %16438 = vmatpush3.bf16.msra.mxu0 %v18202_v45 }
 0xfef   :  { %16460 = vmatpush3.bf16.msra.mxu1 %v18218_v39  ;;  %16439 = vmatprep.subr.bf16.mxu0 %v18203_v60  ;;  %v18237_v39 = vld [vmem:[%s20628_s16 + $0x1b8] sm:$0xff]  }
 0xff0   :  { %16461 = vmatprep.subr.bf16.mxu1 %v18219_v15 }
 0xff2   :  { %16440 = vmatpush3.bf16.msra.mxu0 %v18204_v46  ;;  %v18238_v46 = vld [vmem:[%s20628_s16 + $0x1b0] sm:$0xff]  }
 0xff3   :  { %16462 = vmatpush3.bf16.msra.mxu1 %v18220_v51  ;;  %16469 = vmatprep.subr.bf16.mxu0 %v18221_v7  ;;  %v18239_v51 = vld [vmem:[%s20628_s16 + $0x1a8] sm:$0xff]   ;;  %v18240_v7 = vld [vmem:[%s20628_s16 + $0x1a0] sm:$0xff]  }
 0xff4   :  { %16653 = vmatprep.subr.bf16.mxu1 %v19244_v28 }
 0xff5   :  { %v9892_v53 = vpop.f32.mrf.mxu0 }
 0xff6   :  { %v9933_v54 = vpop.f32.mrf.mxu1 }
 0xff7   :  { %v20307_v56 = vadd.f32 %v9933_v54, %v9892_v53  ;;  %v9894_v59 = vpop.f32.mrf.mxu0  ;;  %v18241_v53 = vld [vmem:[%s20628_s16 + $0x198] sm:$0xff]   ;;  %v18242_v54 = vld [vmem:[%s20628_s16 + $0x190] sm:$0xff]  }
 0xff8   :  { %v9935_v61 = vpop.f32.mrf.mxu1 }
 0xff9   :  { %v10191_v8 = vmul.f32 %v20307_v56, %v20307_v56  ;;  %v20311_v63 = vadd.f32 %v9935_v61, %v9894_v59  ;;  %v9896_v3 = vpop.f32.mrf.mxu0  ;;  %v10184_v55 = vpack.c.bf16 %v20307_v56, %v20307_v56  ;;  %v18243_v59 = vld [vmem:[%s20628_s16 + $0x188] sm:$0xff]   ;;  %v18244_v61 = vld [vmem:[%s20628_s16 + $0x180] sm:$0xff]  }
 0xffa   :  { %v9937_v48 = vpop.f32.mrf.mxu1 }
 0xffb   :  { %v10198_v4 = vpack.c.bf16 %v10191_v8, %v10191_v8  ;;  %v10192_v6 = vmul.f32 %v20311_v63, %v20311_v63  ;;  %v9897_v47 = vpop.f32.mrf.mxu0  ;;  %v10185_v35 = vpack.c.bf16 %v20311_v63, %v20311_v63 }
 0xffc   :  { %v9938_v58 = vpop.f32.mrf.mxu1 }
 0xffd   :  { %v10199_v57 = vpack.c.bf16 %v10192_v6, %v10192_v6  ;;  %v10212_v24 = vrot.slane %v10198_v4, 4 }
 0xfff   :  { %v10213_v11 = vrot.slane %v10199_v57, 4  ;;  %v10221_v17 = vsel %vm3427_vm0, %v10184_v55, %v10212_v24 }
0x1001   :  { %v10225_v40 = vsel %vm3427_vm0, %v10185_v35, %v10213_v11 }
0x1002   :  { %10727 = vmatprep.mubr.bf16.mxu0 %v10225_v40 }
0x1003   :  { %10728 = vmatmul.mubr.bf16.vlgmr.msra.gmra.mxu0 %v10221_v17 }
0x1004   :  { %16470 = vmatpush3.bf16.msra.mxu0 %v18222_v62 }
0x1005   :  { %16471 = vmatprep.subr.bf16.mxu0 %v18223_v16 }
0x1008   :  { %16472 = vmatpush3.bf16.msra.mxu0 %v18224_v5 }
0x1009   :  { %16473 = vmatprep.subr.bf16.mxu0 %v18225_v19 }
0x100c   :  { %16474 = vmatpush3.bf16.msra.mxu0 %v18226_v41 }
0x100d   :  { %16475 = vmatprep.subr.bf16.mxu0 %v18227_v33 }
0x1010   :  { %16476 = vmatpush3.bf16.msra.mxu0 %v18228_v20 }
0x1011   :  { %16477 = vmatprep.subr.bf16.mxu0 %v18229_v22 }
0x1014   :  { %16478 = vmatpush3.bf16.msra.mxu0 %v18230_v0 }
0x1015   :  { %16479 = vmatprep.subr.bf16.mxu0 %v18231_v25 }
0x1018   :  { %16480 = vmatpush3.bf16.msra.mxu0 %v18232_v12 }
0x1019   :  { %16481 = vmatprep.subr.bf16.mxu0 %v18233_v26 }
0x101c   :  { %16482 = vmatpush3.bf16.msra.mxu0 %v18234_v27 }
0x101d   :  { %16483 = vmatprep.subr.bf16.mxu0 %v18235_v23 }
0x1020   :  { %16484 = vmatpush3.bf16.msra.mxu0 %v18236_v49 }
0x1035   :  { %v9974_v2 = vpop.f32.mrf.mxu0 }
0x1036   :  { %v10015_v29 = vpop.f32.mrf.mxu1 }
0x1037   :  { %v20366_v50 = vadd.f32 %v10015_v29, %v9974_v2  ;;  %v9976_v32 = vpop.f32.mrf.mxu0 }
0x1038   :  { %v10017_v9 = vpop.f32.mrf.mxu1 }
0x1039   :  { %v10193_v36 = vmul.f32 %v20366_v50, %v20366_v50  ;;  %v20370_v1 = vadd.f32 %v10017_v9, %v9976_v32  ;;  %v9978_v10 = vpop.f32.mrf.mxu0  ;;  %v10186_v45 = vpack.c.bf16 %v20366_v50, %v20366_v50 }
0x103a   :  { %v10019_v13 = vpop.f32.mrf.mxu1 }
0x103b   :  { %v10200_v14 = vpack.c.bf16 %v10193_v36, %v10193_v36  ;;  %v10194_v37 = vmul.f32 %v20370_v1, %v20370_v1  ;;  %v9979_v34 = vpop.f32.mrf.mxu0  ;;  %v10187_v43 = vpack.c.bf16 %v20370_v1, %v20370_v1 }
0x103c   :  { %v10020_v42 = vpop.f32.mrf.mxu1  ;;  %v20436_v34 = vld [vmem:[#allocation26 + $0x10] sm:$0xff] }
0x103d   :  { %v10201_v52 = vpack.c.bf16 %v10194_v37, %v10194_v37  ;;  %v10214_v38 = vrot.slane %v10200_v14, 4  ;;  %v10892_v14 = vld [vmem:[#allocation26] sm:$0xff]  ;;  %v10893_v37 = vld [vmem:[#allocation26 + $0x8] sm:$0xff] }
0x103e   :  { %v10900_v42 = vcombine.high %v10892_v14, %v10892_v14 }
0x103f   :  { %v10215_v44 = vrot.slane %v10201_v52, 4  ;;  %v10229_v15 = vsel %vm3427_vm0, %v10186_v45, %v10214_v38  ;;  %v10901_v52 = vcombine.high %v10893_v37, %v10893_v37  ;;  %v10902_v38 = vcombine.high %v20436_v34, %v20436_v34 }
0x1040   :  { %15671 = vmatprep.subr.msk.mxu0 %vm3427_vm0, %v10900_v42  ;;  %v10878_v42 = vld [vmem:[#allocation11 + $0x12] sm:$0x1] }
0x1041   :  { %v10233_v60 = vsel %vm3427_vm0, %v10187_v43, %v10215_v44 }
0x1042   :  { %10768 = vmatprep.mubr.bf16.mxu1 %v10233_v60 }
0x1043   :  { %10769 = vmatmul.mubr.bf16.vlgmr.msra.gmra.mxu1 %v10229_v15 }
0x1044   :  { %16654 = vmatpush3.bf16.msra.mxu1 %v18237_v39  ;;  %16669 = vmatprep.mubr.msk.bf16.mxu1 %vm19245_vm1, %v19244_v28 }
0x1045   :  { %16655 = vmatprep.subr.bf16.mxu1 %v19244_v28 }
0x1048   :  { %16656 = vmatpush3.bf16.msra.mxu1 %v18238_v46 }
0x1049   :  { %16657 = vmatprep.subr.bf16.mxu1 %v19244_v28 }
0x104c   :  { %16658 = vmatpush3.bf16.msra.mxu1 %v18239_v51 }
0x104d   :  { %16659 = vmatprep.subr.bf16.mxu1 %v19244_v28 }
0x1050   :  { %16660 = vmatpush3.bf16.msra.mxu1 %v18240_v7 }
0x1051   :  { %16661 = vmatprep.subr.bf16.mxu1 %v19244_v28 }
0x1054   :  { %16662 = vmatpush3.bf16.msra.mxu1 %v18241_v53 }
0x1055   :  { %16663 = vmatprep.subr.bf16.mxu1 %v19244_v28 }
0x1058   :  { %16664 = vmatpush3.bf16.msra.mxu1 %v18242_v54 }
0x1059   :  { %16665 = vmatprep.subr.bf16.mxu1 %v19244_v28 }
0x105c   :  { %16666 = vmatpush3.bf16.msra.mxu1 %v18243_v59 }
0x105d   :  { %16667 = vmatprep.subr.bf16.mxu1 %v19244_v28 }
0x1060   :  { %16668 = vmatpush3.bf16.msra.mxu1 %v18244_v61 }
0x1061   :  { %15674 = vmatprep.subr.msk.mxu1 %vm3427_vm0, %v10901_v52 }
0x1075   :  { %v10056_v8 = vpop.f32.mrf.mxu0 }
0x1076   :  { %v10097_v3 = vpop.f32.mrf.mxu1 }
0x1077   :  { %v20413_v48 = vadd.f32 %v10097_v3, %v10056_v8  ;;  %v10058_v4 = vpop.f32.mrf.mxu0 }
0x1078   :  { %v10099_v6 = vpop.f32.mrf.mxu1 }
0x1079   :  { %v10195_v47 = vmul.f32 %v20413_v48, %v20413_v48  ;;  %v20417_v58 = vadd.f32 %v10099_v6, %v10058_v4  ;;  %v10060_v57 = vpop.f32.mrf.mxu0  ;;  %v10188_v19 = vpack.c.bf16 %v20413_v48, %v20413_v48 }
0x107a   :  { %v10101_v24 = vpop.f32.mrf.mxu1 }
0x107b   :  { %v10202_v35 = vpack.c.bf16 %v10195_v47, %v10195_v47  ;;  %v10196_v11 = vmul.f32 %v20417_v58, %v20417_v58  ;;  %v10061_v55 = vpop.f32.mrf.mxu0  ;;  %v10189_v17 = vpack.c.bf16 %v20417_v58, %v20417_v58 }
0x107c   :  { %v10102_v62 = vpop.f32.mrf.mxu1 }
0x107d   :  { %v10203_v40 = vpack.c.bf16 %v10196_v11, %v10196_v11  ;;  %v10216_v16 = vrot.slane %v10202_v35, 4 }
0x107f   :  { %v10217_v5 = vrot.slane %v10203_v40, 4  ;;  %v10237_v33 = vsel %vm3427_vm0, %v10188_v19, %v10216_v16 }
0x1081   :  { %v10241_v41 = vsel %vm3427_vm0, %v10189_v17, %v10217_v5 }
0x1082   :  { %10809 = vmatprep.mubr.bf16.mxu0 %v10241_v41 }
0x1083   :  { %10810 = vmatmul.mubr.bf16.vlgmr.msra.gmra.mxu0 %v10237_v33 }
0x1084   :  { %10984 = vmatprep.mubr.f32.mxu0 %v19244_v28  ;;  %15672 = vmatpush1.msk.msra.mxu0 %vm3427_vm0, %v10892_v14 }
0x1085   :  { %15677 = vmatprep.subr.msk.mxu0 %vm3427_vm0, %v10902_v38 }
0x1095   :  { %v16397_v20 = vpop.f32.mrf.mxu0 }
0x1096   :  { %v16419_v22 = vpop.f32.mrf.mxu1 }
0x1097   :  { %v16398_v0 = vpop.f32.mrf.mxu0 }
0x1098   :  { %v16420_v25 = vpop.f32.mrf.mxu1  ;;  %v16399_v12 = vadd.f32 %v16398_v0, %v16397_v20 }
0x1099   :  { %v16421_v26 = vadd.f32 %v16420_v25, %v16419_v22  ;;  %v16400_v27 = vpop.f32.mrf.mxu0 }
0x109a   :  { %v16422_v23 = vpop.f32.mrf.mxu1 }
0x109b   :  { %v20428_v49 = vadd.f32 %v16421_v26, %v16399_v12  ;;  %v16401_v2 = vpop.f32.mrf.mxu0 }
0x109c   :  { %v16423_v29 = vpop.f32.mrf.mxu1 }
0x109d   :  { %v10197_v32 = vmul.f32 %v20428_v49, %v20428_v49  ;;  %v10190_v36 = vpack.c.bf16 %v20428_v49, %v20428_v49 }
0x109f   :  { %v10204_v9 = vpack.c.bf16 %v10197_v32, %v10197_v32 }
0x10a1   :  { %v10218_v10 = vrot.slane %v10204_v9, 4 }
0x10a3   :  { %v10245_v13 = vsel %vm3427_vm0, %v10190_v36, %v10218_v10 }
0x10a4   :  { %16670 = vmatmul.mubr.bf16.vlgmr.msra.gmra.mxu1 %v10245_v13 }
0x10a5   :  { %11055 = vmatprep.mubr.f32.mxu1 %v19244_v28  ;;  %15675 = vmatpush1.msk.msra.mxu1 %vm3427_vm0, %v10893_v37 }
0x10a6   :  { %16673 = vmatprep.subr.mxu1 %v19244_v28 }
0x10c3   :  { %v16441_v43 = vpop.f32.mrf.mxu0 }
0x10c5   :  { %v16442_v44 = vpop.f32.mrf.mxu0 }
0x10c6   :  { %v16443_v61 = vadd.f32 %v16442_v44, %v16441_v43  ;;  %v10879_v43 = vld [vmem:[#allocation11 + $0x13] sm:$0x1] }
0x10c7   :  { %v16444_v45 = vpop.f32.mrf.mxu0 }
0x10c9   :  { %v16445_v39 = vpop.f32.mrf.mxu0 }
0x10ca   :  { %v16446_v47 = vadd.f32 %v16445_v39, %v16444_v45 }
0x1103   :  { %v16463_v60 = vpop.f32.mrf.mxu1 }
0x1105   :  { %v16464_v46 = vpop.f32.mrf.mxu1 }
0x1106   :  { %v16465_v54 = vadd.f32 %v16464_v46, %v16463_v60  ;;  %v10895_v60 = vld [vmem:[#allocation26 + $0x18] sm:$0xf] }
0x1107   :  { %v16466_v7 = vpop.f32.mrf.mxu1 }
0x1108   :  { %v10771_v4 = vadd.f32 %v16465_v54, %v16443_v61 }
0x1109   :  { %v16467_v59 = vpop.f32.mrf.mxu1 }
0x110a   :  { %v16468_v6 = vadd.f32 %v16467_v59, %v16466_v7 }
0x110c   :  { %v10774_v11 = vadd.f32 %v16468_v6, %v16446_v47 }
0x1143   :  { %v16485_v15 = vpop.f32.mrf.mxu0 }
0x1145   :  { %v16486_v51 = vpop.f32.mrf.mxu0 }
0x1146   :  { %v16487_v8 = vadd.f32 %v16486_v51, %v16485_v15 }
0x1147   :  { %v16488_v53 = vpop.f32.mrf.mxu0 }
0x1148   :  { %v10812_v24 = vadd.f32 %v16487_v8, %v10771_v4 }
0x1149   :  { %v16489_v3 = vpop.f32.mrf.mxu0 }
0x114a   :  { %v16490_v57 = vadd.f32 %v16489_v3, %v16488_v53 }
0x114c   :  { %v10815_v16 = vadd.f32 %v16490_v57, %v10774_v11 }
0x1164   :  { %v10852_v35 = vpop.f32.mrf.mxu1 }
0x1165   :  { %v10853_v55 = vadd.f32 %v10852_v35, %v10812_v24 }
0x1166   :  { %v16671_v62 = vpop.f32.mrf.mxu1 }
0x1167   :  { %v10859_v40 = vsel %vm4068_vm2, %v10853_v55, 0.0 }
0x1168   :  { %v10860_v17 = vrot.slane %v10859_v40, 4  ;;  %v10855_v5 = vpop.f32.mrf.mxu1 }
0x1169   :  { %v10856_v19 = vadd.f32 %v10855_v5, %v10815_v16 }
0x116a   :  { %v10861_v41 = vadd.f32 %v10860_v17, %v10859_v40  ;;  %v16672_v33 = vpop.f32.mrf.mxu1 }
0x116b   :  { %v10867_v20 = vsel %vm4068_vm2, %v10856_v19, 0.0 }
0x116c   :  { %v10862_v22 = vrot.slane %v10861_v41, 2  ;;  %v10868_v0 = vrot.slane %v10867_v20, 4 }
0x116e   :  { %v10863_v25 = vadd.f32 %v10862_v22, %v10861_v41  ;;  %v10869_v12 = vadd.f32 %v10868_v0, %v10867_v20 }
0x1170   :  { %v10864_v26 = vrot.slane %v10863_v25, 1  ;;  %v10870_v27 = vrot.slane %v10869_v12, 2 }
0x1172   :  { %v10865_v23 = vadd.f32 %v10864_v26, %v10863_v25  ;;  %v10871_v2 = vadd.f32 %v10870_v27, %v10869_v12 }
0x1174   :  { %v10866_v29 = vmul.f32 0.0025510204, %v10865_v23  ;;  %v10872_v32 = vrot.slane %v10871_v2, 1 }
0x1176   :  { %v10873_v9 = vadd.f32 %v10872_v32, %v10871_v2  ;;  %v10875_v36 = vmul.f32 %v10866_v29, %v10866_v29 }
0x1178   :  { %v10874_v10 = vmul.f32 0.0025510204, %v10873_v9 }
0x117a   :  { %v10876_v13 = vsub.f32 %v10874_v10, %v10875_v36 }
0x117c   :  { %v10877_v14 = vmax.f32 %v10876_v13, 0.0 }
0x117e   :  { %v10880_v37 = vadd.f32 1e-05, %v10877_v14 }
0x1180   :  { %18248 = vrsqrt.f32 %v10880_v37 }
0x118d   :  { %v18249_v52 = vpop.eup %18248 }
0x118e   :  { %v10882_v38 = vmul.f32 %v18249_v52, %v10878_v42 }
0x1190   :  { %v10883_v44 = vmul.f32 %v10882_v38, %v10866_v29 }
0x1192   :  { %v10884_v45 = vsub.f32 %v10879_v43, %v10883_v44 }
0x1194   :  { %v10889_v39 = vrot.slane %v10884_v45, %v19730_v21 }
0x1196   :  { %v10891_v15 = vsel %vm4101_vm3, %v10882_v38, %v10889_v39 }
0x1197   :  { %15673 = vmatmul.mubr.msk.f32.vlgmr.msra.gmra.mxu0 %vm4114_vm4, %v10891_v15  ;;  %15676 = vmatmul.mubr.msk.f32.vlgmr.msra.gmra.mxu1 %vm4114_vm4, %v10891_v15 }
0x1198   :  { %15678 = vmatpush1.msk.msra.mxu0 %vm3427_vm0, %v20436_v34  ;;  %16674 = vmatpush3.msk.msra.mxu1 %vm3427_vm0, %v10895_v60 }
0x1199   :  { %11126 = vmatprep.mubr.f32.mxu0 %v19244_v28  ;;  %16675 = vmatprep.mubr.msk.f32.mxu1 %vm19245_vm1, %v19244_v28 }
0x119b   :  { %15679 = vmatmul.mubr.msk.f32.vlgmr.msra.gmra.mxu0 %vm4114_vm4, %v10891_v15  ;;  %16676 = vmatmul.mubr.msk.f32.vlgmr.msra.gmra.mxu1 %vm4114_vm4, %v10891_v15 }
0x1257   :  { %v10986_v46 = vpop.f32.mrf.mxu0  ;;  %v11057_v51 = vpop.f32.mrf.mxu1 }
0x1258   :  { %v11206_v7 = vrot.slane %v10986_v46, %v19730_v21  ;;  %v11214_v53 = vrot.slane %v11057_v51, %v19730_v21  ;;  %v11241_v54 = vrot.slane %v10986_v46, %v19749_v30  ;;  %v11249_v3 = vrot.slane %v11057_v51, %v19749_v30 }
0x1259   :  { %v10988_v34 = vpop.f32.mrf.mxu0  ;;  %v11059_v59 = vpop.f32.mrf.mxu1 }
0x125a   :  { %v11231_v61 = vmul.f32 %v11206_v7, %v20307_v56  ;;  %v11233_v8 = vmul.f32 %v11214_v53, %v20366_v50  ;;  %v11210_v4 = vrot.slane %v10988_v34, %v19730_v21  ;;  %v11245_v6 = vrot.slane %v10988_v34, %v19749_v30 }
0x125b   :  { %v11218_v47 = vrot.slane %v11059_v59, %v19730_v21  ;;  %v11128_v57 = vpop.f32.mrf.mxu0  ;;  %v11199_v24 = vpop.f32.mrf.mxu1  ;;  %v11253_v62 = vrot.slane %v11059_v59, %v19749_v30 }
0x125c   :  { %v20469_v35 = vadd.f32 %v11241_v54, %v11231_v61  ;;  %v20471_v11 = vadd.f32 %v11249_v3, %v11233_v8  ;;  %v11232_v55 = vmul.f32 %v11210_v4, %v20311_v63  ;;  %v11222_v56 = vrot.slane %v11128_v57, %v19730_v21 }
0x125d   :  { %v11234_v50 = vmul.f32 %v11218_v47, %v20370_v1  ;;  %v11257_v40 = vrot.slane %v11128_v57, %v19749_v30  ;;  %v11230_v16 = vrot.slane %v11199_v24, %v19730_v21  ;;  %v11130_v17 = vpop.f32.mrf.mxu0  ;;  %v16677_v5 = vpop.f32.mrf.mxu1  ;;  %v11265_v1 = vrot.slane %v11199_v24, %v19749_v30 }
0x125e   :  { %v11273_v19 = vmax.f32 %v20469_v35, 0.0  ;;  %v11275_v41 = vmax.f32 %v20471_v11, 0.0  ;;  %v11267_v33 = vadd.f32 %v11245_v6, %v11232_v55  ;;  %v11235_v20 = vmul.f32 %v11222_v56, %v20413_v48 }
0x125f   :  { %v11269_v63 = vadd.f32 %v11253_v62, %v11234_v50  ;;  %v11237_v22 = vmul.f32 %v11230_v16, %v20428_v49  ;;  %v11226_v0 = vrot.slane %v11130_v17, %v19730_v21  ;;  %v11261_v2 = vrot.slane %v11130_v17, %v19749_v30 }
0x1260   :  { %v11274_v25 = vmax.f32 %v11267_v33, 0.0  ;;  %v20485_v12 = vadd.f32 %v11257_v40, %v11235_v20 }
0x1261   :  { %v11276_v26 = vmax.f32 %v11269_v63, 0.0  ;;  %v20487_v27 = vadd.f32 %v11265_v1, %v11237_v22  ;;  %v11236_v23 = vmul.f32 %v11226_v0, %v20417_v58 }
0x1262   :  { %v11277_v29 = vmax.f32 %v20485_v12, 0.0 }
0x1263   :  { %v11279_v48 = vmax.f32 %v20487_v27, 0.0  ;;  %v20493_v32 = vadd.f32 %v11261_v2, %v11236_v23 }
0x1265   :  { %v11278_v49 = vmax.f32 %v20493_v32, 0.0 }
0x1266   :  { %19216 = dma.done.wait [#allocation5 + $0x2], 50176 }
0x1267   :  { %19217 = vsyncadd [#allocation5 + $0x2], 4294917120  ;;  %v20496_v9 = vpack.c.bf16 %v11274_v25, %v11274_v25  ;;  %v20498_v36 = vpack.c.bf16 %v11276_v26, %v11276_v26  ;;  %v18250_v58 = vld [vmem:[#allocation4 + $0x18c] ss:$28 sps:$4 sm:$0xff]   ;;  %v18256_v37 = vld [vmem:[#allocation4 + $0x154] ss:$28 sps:$4 sm:$0xff]   ;;  %v20515_v35 = vpack.c.bf16 %v11278_v49, %v11278_v49 }
0x1268   :  { %v18252_v10 = vld [vmem:[#allocation4 + $0x50c] ss:$28 sps:$4 sm:$0xff]   ;;  %13792 = vmatprep.subr.bf16.mxu0 %v18250_v58  ;;  %v18258_v42 = vld [vmem:[#allocation4 + $0x4d4] ss:$28 sps:$4 sm:$0xff]   ;;  %v18262_v43 = vld [vmem:[#allocation4 + $0x11c] ss:$28 sps:$4 sm:$0xff]  }
0x1269   :  { %13824 = vmatprep.mubr.bf16.mxu0 %v20496_v9  ;;  %13865 = vmatprep.mubr.bf16.mxu1 %v20498_v36  ;;  %v18254_v13 = vld [vmem:[#allocation4 + $0x188] ss:$28 sps:$4 sm:$0xff]   ;;  %v18260_v52 = vld [vmem:[#allocation4 + $0x150] ss:$28 sps:$4 sm:$0xff]   ;;  %v18264_v44 = vld [vmem:[#allocation4 + $0x49c] ss:$28 sps:$4 sm:$0xff]  }
0x126a   :  { %v18255_v14 = vld [vmem:[#allocation4 + $0x508] ss:$28 sps:$4 sm:$0xff]   ;;  %13833 = vmatprep.subr.bf16.mxu1 %v18252_v10  ;;  %13793 = vmatpush1.bf16.msra.mxu0 %v18254_v13  ;;  %v18261_v38 = vld [vmem:[#allocation4 + $0x4d0] ss:$28 sps:$4 sm:$0xff]   ;;  %v18266_v45 = vld [vmem:[#allocation4 + $0x118] ss:$28 sps:$4 sm:$0xff]  }
0x126b   :  { %13834 = vmatpush1.bf16.msra.mxu1 %v18255_v14  ;;  %13794 = vmatprep.subr.bf16.mxu0 %v18256_v37  ;;  %v18267_v39 = vld [vmem:[#allocation4 + $0x498] ss:$28 sps:$4 sm:$0xff]   ;;  %v18268_v60 = vld [vmem:[#allocation4 + $0xe4] ss:$28 sps:$4 sm:$0xff]   ;;  %v18274_v7 = vld [vmem:[#allocation4 + $0xac] ss:$28 sps:$4 sm:$0xff]  }
0x126c   :  { %13835 = vmatprep.subr.bf16.mxu1 %v18258_v42  ;;  %v18270_v15 = vld [vmem:[#allocation4 + $0x464] ss:$28 sps:$4 sm:$0xff]   ;;  %v18276_v53 = vld [vmem:[#allocation4 + $0x42c] ss:$28 sps:$4 sm:$0xff]   ;;  %v18280_v59 = vld [vmem:[#allocation4 + $0x74] ss:$28 sps:$4 sm:$0xff]  }
0x126d   :  { %v18272_v46 = vld [vmem:[#allocation4 + $0xe0] ss:$28 sps:$4 sm:$0xff]   ;;  %v18278_v54 = vld [vmem:[#allocation4 + $0xa8] ss:$28 sps:$4 sm:$0xff]   ;;  %v18282_v61 = vld [vmem:[#allocation4 + $0x3f4] ss:$28 sps:$4 sm:$0xff]  }
0x126e   :  { %13795 = vmatpush1.bf16.msra.mxu0 %v18260_v52  ;;  %v18273_v51 = vld [vmem:[#allocation4 + $0x460] ss:$28 sps:$4 sm:$0xff]   ;;  %v18279_v34 = vld [vmem:[#allocation4 + $0x428] ss:$28 sps:$4 sm:$0xff]   ;;  %v18284_v8 = vld [vmem:[#allocation4 + $0x70] ss:$28 sps:$4 sm:$0xff]  }
0x126f   :  { %13836 = vmatpush1.bf16.msra.mxu1 %v18261_v38  ;;  %13796 = vmatprep.subr.bf16.mxu0 %v18262_v43  ;;  %v18285_v3 = vld [vmem:[#allocation4 + $0x3f0] ss:$28 sps:$4 sm:$0xff]   ;;  %v18286_v4 = vld [vmem:[#allocation4 + $0x3c] ss:$28 sps:$4 sm:$0xff]   ;;  %v18292_v24 = vld [vmem:[#allocation4 + $0x4] ss:$28 sps:$4 sm:$0xff]  }
0x1270   :  { %13837 = vmatprep.subr.bf16.mxu1 %v18264_v44  ;;  %v18288_v6 = vld [vmem:[#allocation4 + $0x3bc] ss:$28 sps:$4 sm:$0xff]   ;;  %v18294_v55 = vld [vmem:[#allocation4 + $0x384] ss:$28 sps:$4 sm:$0xff]   ;;  %v18298_v62 = vld [vmem:[#allocation4 + $0x34c] ss:$28 sps:$4 sm:$0xff]  }
0x1271   :  { %v18290_v47 = vld [vmem:[#allocation4 + $0x38] ss:$28 sps:$4 sm:$0xff]   ;;  %v18296_v56 = vld [vmem:[#allocation4] ss:$28 sps:$4 sm:$0xff]   ;;  %v18300_v40 = vld [vmem:[#allocation4 + $0x6cc] ss:$28 sps:$4 sm:$0xff]  }
0x1272   :  { %13797 = vmatpush1.bf16.msra.mxu0 %v18266_v45  ;;  %v18291_v57 = vld [vmem:[#allocation4 + $0x3b8] ss:$28 sps:$4 sm:$0xff]   ;;  %v18297_v50 = vld [vmem:[#allocation4 + $0x380] ss:$28 sps:$4 sm:$0xff]   ;;  %v18302_v16 = vld [vmem:[#allocation4 + $0x348] ss:$28 sps:$4 sm:$0xff]  }
0x1273   :  { %13838 = vmatpush1.bf16.msra.mxu1 %v18267_v39  ;;  %13798 = vmatprep.subr.bf16.mxu0 %v18268_v60  ;;  %v18303_v17 = vld [vmem:[#allocation4 + $0x6c8] ss:$28 sps:$4 sm:$0xff]   ;;  %v18304_v5 = vld [vmem:[#allocation4 + $0x314] ss:$28 sps:$4 sm:$0xff]   ;;  %v18310_v22 = vld [vmem:[#allocation4 + $0x2dc] ss:$28 sps:$4 sm:$0xff]  }
0x1274   :  { %13839 = vmatprep.subr.bf16.mxu1 %v18270_v15  ;;  %v18306_v33 = vld [vmem:[#allocation4 + $0x694] ss:$28 sps:$4 sm:$0xff]   ;;  %v18312_v1 = vld [vmem:[#allocation4 + $0x65c] ss:$28 sps:$4 sm:$0xff]   ;;  %v18316_v26 = vld [vmem:[#allocation4 + $0x2a4] ss:$28 sps:$4 sm:$0xff]  }
0x1275   :  { %v18308_v20 = vld [vmem:[#allocation4 + $0x310] ss:$28 sps:$4 sm:$0xff]   ;;  %v18314_v0 = vld [vmem:[#allocation4 + $0x2d8] ss:$28 sps:$4 sm:$0xff]   ;;  %v18318_v23 = vld [vmem:[#allocation4 + $0x624] ss:$28 sps:$4 sm:$0xff]  }
0x1276   :  { %13799 = vmatpush1.bf16.msra.mxu0 %v18272_v46  ;;  %v18309_v63 = vld [vmem:[#allocation4 + $0x690] ss:$28 sps:$4 sm:$0xff]   ;;  %v18315_v25 = vld [vmem:[#allocation4 + $0x658] ss:$28 sps:$4 sm:$0xff]   ;;  %v18320_v2 = vld [vmem:[#allocation4 + $0x2a0] ss:$28 sps:$4 sm:$0xff]  }
0x1277   :  { %13840 = vmatpush1.bf16.msra.mxu1 %v18273_v51  ;;  %13800 = vmatprep.subr.bf16.mxu0 %v18274_v7  ;;  %v18321_v58 = vld [vmem:[#allocation4 + $0x620] ss:$28 sps:$4 sm:$0xff]   ;;  %v18322_v10 = vld [vmem:[#allocation4 + $0x26c] ss:$28 sps:$4 sm:$0xff]   ;;  %v18328_v42 = vld [vmem:[#allocation4 + $0x234] ss:$28 sps:$4 sm:$0xff]  }
0x1278   :  { %13841 = vmatprep.subr.bf16.mxu1 %v18276_v53  ;;  %v18324_v13 = vld [vmem:[#allocation4 + $0x5ec] ss:$28 sps:$4 sm:$0xff]   ;;  %v18330_v52 = vld [vmem:[#allocation4 + $0x5b4] ss:$28 sps:$4 sm:$0xff]   ;;  %v18334_v44 = vld [vmem:[#allocation4 + $0x1fc] ss:$28 sps:$4 sm:$0xff]  }
0x1279   :  { %v18326_v14 = vld [vmem:[#allocation4 + $0x268] ss:$28 sps:$4 sm:$0xff]   ;;  %v18332_v38 = vld [vmem:[#allocation4 + $0x230] ss:$28 sps:$4 sm:$0xff]   ;;  %v18336_v45 = vld [vmem:[#allocation4 + $0x57c] ss:$28 sps:$4 sm:$0xff]  }
0x127a   :  { %13801 = vmatpush1.bf16.msra.mxu0 %v18278_v54  ;;  %v18327_v37 = vld [vmem:[#allocation4 + $0x5e8] ss:$28 sps:$4 sm:$0xff]   ;;  %v18333_v43 = vld [vmem:[#allocation4 + $0x5b0] ss:$28 sps:$4 sm:$0xff]   ;;  %v18338_v39 = vld [vmem:[#allocation4 + $0x1f8] ss:$28 sps:$4 sm:$0xff]  }
0x127b   :  { %13842 = vmatpush1.bf16.msra.mxu1 %v18279_v34  ;;  %13802 = vmatprep.subr.bf16.mxu0 %v18280_v59  ;;  %v18339_v60 = vld [vmem:[#allocation4 + $0x578] ss:$28 sps:$4 sm:$0xff]   ;;  %v18340_v15 = vld [vmem:[#allocation4 + $0x1c4] ss:$28 sps:$4 sm:$0xff]   ;;  %v18348_v53 = vld [vmem:[#allocation4 + $0x88c] ss:$28 sps:$4 sm:$0xff]   ;;  %v20505_v34 = vpack.c.bf16 %v11273_v19, %v11273_v19 }
0x127c   :  { %13843 = vmatprep.subr.bf16.mxu1 %v18282_v61  ;;  %v18342_v46 = vld [vmem:[#allocation4 + $0x544] ss:$28 sps:$4 sm:$0xff]   ;;  %v18351_v54 = vld [vmem:[#allocation4 + $0xc0c] ss:$28 sps:$4 sm:$0xff]   ;;  %v18358_v32 = vld [vmem:[#allocation4 + $0x818] ss:$28 sps:$4 sm:$0xff]  }
0x127d   :  { %v18344_v51 = vld [vmem:[#allocation4 + $0x1c0] ss:$28 sps:$4 sm:$0xff]   ;;  %v18346_v59 = vld [vmem:[#allocation4 + $0x888] ss:$28 sps:$4 sm:$0xff]   ;;  %v18352_v19 = vld [vmem:[#allocation4 + $0x850] ss:$28 sps:$4 sm:$0xff]  }
0x127e   :  { %13803 = vmatpush1.bf16.msra.mxu0 %v18284_v8  ;;  %v18345_v7 = vld [vmem:[#allocation4 + $0x540] ss:$28 sps:$4 sm:$0xff]   ;;  %v18349_v61 = vld [vmem:[#allocation4 + $0xc08] ss:$28 sps:$4 sm:$0xff]   ;;  %v20510_v8 = vpack.c.bf16 %v11275_v41, %v11275_v41  ;;  %v18355_v11 = vld [vmem:[#allocation4 + $0xbd0] ss:$28 sps:$4 sm:$0xff]  }
0x127f   :  { %13844 = vmatpush1.bf16.msra.mxu1 %v18285_v3  ;;  %13804 = vmatprep.subr.bf16.mxu0 %v18286_v4  ;;  %v18354_v3 = vld [vmem:[#allocation4 + $0x854] ss:$28 sps:$4 sm:$0xff]   ;;  %v18360_v41 = vld [vmem:[#allocation4 + $0x81c] ss:$28 sps:$4 sm:$0xff]   ;;  %v18366_v49 = vld [vmem:[#allocation4 + $0x7e4] ss:$28 sps:$4 sm:$0xff]  }
0x1280   :  { %13845 = vmatprep.subr.bf16.mxu1 %v18288_v6  ;;  %v18357_v4 = vld [vmem:[#allocation4 + $0xbd4] ss:$28 sps:$4 sm:$0xff]   ;;  %v18363_v6 = vld [vmem:[#allocation4 + $0xb9c] ss:$28 sps:$4 sm:$0xff]   ;;  %v18459_v12 = vld [vmem:[#allocation4 + $0x4a4] ss:$28 sps:$4 sm:$0xff]  }
0x1281   :  { %v18406_v27 = vld [vmem:[#allocation4 + $0x9d8] ss:$28 sps:$4 sm:$0xff]   ;;  %s19249_s16 = smov [#allocation28]  }
0x1282   :  { %13805 = vmatpush1.bf16.msra.mxu0 %v18290_v47  ;;  %v18361_v47 = vld [vmem:[#allocation4 + $0xb98] ss:$28 sps:$4 sm:$0xff]   ;;  %s14509_s6 = sshll.u32 %s19249_s16, 4  ;;  %s14510_s6 = int_to_ptr.vmem [resolvable:$true] %s14509_s6 }
0x1283   :  { %13846 = vmatpush1.bf16.msra.mxu1 %v18291_v57  ;;  %13806 = vmatprep.subr.bf16.mxu0 %v18292_v24  ;;  %v18369_v57 = vld [vmem:[#allocation4 + $0xb64] ss:$28 sps:$4 sm:$0xff]   ;;  %s19158_s26 = scalar_lea.vmem %s14510_s6, 256  ;;  %p19163_p11 = scmp.lt.s32.totalorder %s14510_s6, %s14510_s6 }
0x1284   :  { %13847 = vmatprep.subr.bf16.mxu1 %v18294_v55  ;;  %v18364_v24 = vld [vmem:[#allocation4 + $0x7e0] ss:$28 sps:$4 sm:$0xff]   ;;  %p19159_p10 = scmp.ne.s32.totalorder %s14510_s6, %s19158_s26  ;;  %p19164_p12 = scmp.lt.s32.totalorder %s19158_s26, %s19158_s26 }
0x1285   :  { %v18367_v55 = vld [vmem:[#allocation4 + $0xb60] ss:$28 sps:$4 sm:$0xff]  }
0x1286   :  { %13807 = vmatpush1.bf16.msra.mxu0 %v18296_v56  ;;  %v18372_v56 = vld [vmem:[#allocation4 + $0x7ac] ss:$28 sps:$4 sm:$0xff]   ;;  %p19165_p13 = por %p19164_p12, %p19163_p11 }
0x1287   :  { %13848 = vmatpush1.bf16.msra.mxu1 %v18297_v50  ;;  %13808 = vmatprep.subr.bf16.mxu0 %v18298_v62  ;;  %v18375_v50 = vld [vmem:[#allocation4 + $0xb2c] ss:$28 sps:$4 sm:$0xff]  }
0x1288   :  { %13849 = vmatprep.subr.bf16.mxu1 %v18300_v40  ;;  %v18370_v62 = vld [vmem:[#allocation4 + $0x7a8] ss:$28 sps:$4 sm:$0xff]   ;;  %p19166_p0 = pnand %p19165_p13, %p19159_p10 }
0x1289   :  { %v18373_v40 = vld [vmem:[#allocation4 + $0xb28] ss:$28 sps:$4 sm:$0xff]  }
0x128a   :  { %13809 = vmatpush2.bf16.msra.mxu0 %v18302_v16  ;;  %v18378_v16 = vld [vmem:[#allocation4 + $0x774] ss:$28 sps:$4 sm:$0xff]  }
0x128b   :  { %13850 = vmatpush2.bf16.msra.mxu1 %v18303_v17  ;;  %13810 = vmatprep.subr.bf16.mxu0 %v18304_v5  ;;  %v18381_v17 = vld [vmem:[#allocation4 + $0xaf4] ss:$28 sps:$4 sm:$0xff]  }
0x128c   :  { %13851 = vmatprep.subr.bf16.mxu1 %v18306_v33  ;;  %v18376_v5 = vld [vmem:[#allocation4 + $0x770] ss:$28 sps:$4 sm:$0xff]  }
0x128d   :  { %v18379_v33 = vld [vmem:[#allocation4 + $0xaf0] ss:$28 sps:$4 sm:$0xff]  }
0x128e   :  { %13811 = vmatpush2.bf16.msra.mxu0 %v18308_v20  ;;  %v18384_v20 = vld [vmem:[#allocation4 + $0x73c] ss:$28 sps:$4 sm:$0xff]  }
0x128f   :  { %13852 = vmatpush2.bf16.msra.mxu1 %v18309_v63  ;;  %13812 = vmatprep.subr.bf16.mxu0 %v18310_v22  ;;  %v18387_v63 = vld [vmem:[#allocation4 + $0xabc] ss:$28 sps:$4 sm:$0xff]  }
0x1290   :  { %13853 = vmatprep.subr.bf16.mxu1 %v18312_v1  ;;  %v18382_v22 = vld [vmem:[#allocation4 + $0x738] ss:$28 sps:$4 sm:$0xff]  }
0x1291   :  { %v18385_v1 = vld [vmem:[#allocation4 + $0xab8] ss:$28 sps:$4 sm:$0xff]  }
0x1292   :  { %13813 = vmatpush2.bf16.msra.mxu0 %v18314_v0  ;;  %v18390_v0 = vld [vmem:[#allocation4 + $0x704] ss:$28 sps:$4 sm:$0xff]  }
0x1293   :  { %13854 = vmatpush2.bf16.msra.mxu1 %v18315_v25  ;;  %13814 = vmatprep.subr.bf16.mxu0 %v18316_v26  ;;  %v18393_v25 = vld [vmem:[#allocation4 + $0xa84] ss:$28 sps:$4 sm:$0xff]  }
0x1294   :  { %13855 = vmatprep.subr.bf16.mxu1 %v18318_v23  ;;  %v18388_v26 = vld [vmem:[#allocation4 + $0x700] ss:$28 sps:$4 sm:$0xff]  }
0x1295   :  { %v18391_v23 = vld [vmem:[#allocation4 + $0xa80] ss:$28 sps:$4 sm:$0xff]  }
0x1296   :  { %13815 = vmatpush2.bf16.msra.mxu0 %v18320_v2  ;;  %v18396_v2 = vld [vmem:[#allocation4 + $0xa4c] ss:$28 sps:$4 sm:$0xff]  }
0x1297   :  { %13856 = vmatpush2.bf16.msra.mxu1 %v18321_v58  ;;  %13816 = vmatprep.subr.bf16.mxu0 %v18322_v10  ;;  %v18399_v58 = vld [vmem:[#allocation4 + $0x194] ss:$28 sps:$4 sm:$0xff]   ;;  %v18394_v10 = vld [vmem:[#allocation4 + $0xa48] ss:$28 sps:$4 sm:$0xff]  }
0x1298   :  { %13857 = vmatprep.subr.bf16.mxu1 %v18324_v13  ;;  %v18397_v13 = vld [vmem:[#allocation4 + $0x190] ss:$28 sps:$4 sm:$0xff]  }
0x129a   :  { %13817 = vmatpush2.bf16.msra.mxu0 %v18326_v14  ;;  %v20524_v14 = vpack.c.bf16 %v11279_v48, %v11279_v48  ;;  %v18409_v48 = vld [vmem:[#allocation4 + $0x120] ss:$28 sps:$4 sm:$0xff]  }
0x129b   :  { %13858 = vmatpush2.bf16.msra.mxu1 %v18327_v37  ;;  %13818 = vmatprep.subr.bf16.mxu0 %v18328_v42  ;;  %v18402_v37 = vld [vmem:[#allocation4 + $0xa14] ss:$28 sps:$4 sm:$0xff]   ;;  %v18405_v42 = vld [vmem:[#allocation4 + $0x15c] ss:$28 sps:$4 sm:$0xff]  }
0x129c   :  { %13859 = vmatprep.subr.bf16.mxu1 %v18330_v52  ;;  %v18400_v52 = vld [vmem:[#allocation4 + $0xa10] ss:$28 sps:$4 sm:$0xff]  }
0x129e   :  { %13819 = vmatpush2.bf16.msra.mxu0 %v18332_v38  ;;  %v18403_v38 = vld [vmem:[#allocation4 + $0x158] ss:$28 sps:$4 sm:$0xff]  }
0x129f   :  { %13860 = vmatpush2.bf16.msra.mxu1 %v18333_v43  ;;  %13820 = vmatprep.subr.bf16.mxu0 %v18334_v44  ;;  %v18408_v43 = vld [vmem:[#allocation4 + $0x9dc] ss:$28 sps:$4 sm:$0xff]   ;;  %v18411_v44 = vld [vmem:[#allocation4 + $0x124] ss:$28 sps:$4 sm:$0xff]  }
0x12a0   :  { %13861 = vmatprep.subr.bf16.mxu1 %v18336_v45  ;;  %v18414_v45 = vld [vmem:[#allocation4 + $0x9a4] ss:$28 sps:$4 sm:$0xff]  }
0x12a2   :  { %13821 = vmatpush2.bf16.msra.mxu0 %v18338_v39  ;;  %v18417_v39 = vld [vmem:[#allocation4 + $0xec] ss:$28 sps:$4 sm:$0xff]  }
0x12a3   :  { %13862 = vmatpush2.bf16.msra.mxu1 %v18339_v60  ;;  %13822 = vmatprep.subr.bf16.mxu0 %v18340_v15  ;;  %v18412_v60 = vld [vmem:[#allocation4 + $0x9a0] ss:$28 sps:$4 sm:$0xff]   ;;  %v18415_v15 = vld [vmem:[#allocation4 + $0xe8] ss:$28 sps:$4 sm:$0xff]  }
0x12a4   :  { %13863 = vmatprep.subr.bf16.mxu1 %v18342_v46  ;;  %v18420_v46 = vld [vmem:[#allocation4 + $0x96c] ss:$28 sps:$4 sm:$0xff]  }
0x12a6   :  { %13823 = vmatpush2.bf16.msra.mxu0 %v18344_v51  ;;  %v18423_v51 = vld [vmem:[#allocation4 + $0xb4] ss:$28 sps:$4 sm:$0xff]  }
0x12a7   :  { %13864 = vmatpush2.bf16.msra.mxu1 %v18345_v7  ;;  %13874 = vmatprep.subr.bf16.mxu0 %v18348_v53  ;;  %v18418_v7 = vld [vmem:[#allocation4 + $0x968] ss:$28 sps:$4 sm:$0xff]   ;;  %v18421_v53 = vld [vmem:[#allocation4 + $0xb0] ss:$28 sps:$4 sm:$0xff]  }
0x12a8   :  { %13915 = vmatprep.subr.bf16.mxu1 %v18351_v54  ;;  %v18426_v54 = vld [vmem:[#allocation4 + $0x934] ss:$28 sps:$4 sm:$0xff]  }
0x12a9   :  { %13825 = vmatmul.mubr.bf16.vlgmr.msra.gmra.mxu0 %v20505_v34 }
0x12aa   :  { %13866 = vmatmul.mubr.bf16.vlgmr.msra.gmra.mxu1 %v20510_v8  ;;  %13875 = vmatpush1.bf16.msra.mxu0 %v18346_v59  ;;  %v18429_v59 = vld [vmem:[#allocation4 + $0x7c] ss:$28 sps:$4 sm:$0xff]  }
0x12ab   :  { %13916 = vmatpush1.bf16.msra.mxu1 %v18349_v61  ;;  %13876 = vmatprep.subr.bf16.mxu0 %v18354_v3  ;;  %v18424_v61 = vld [vmem:[#allocation4 + $0x930] ss:$28 sps:$4 sm:$0xff]   ;;  %v18427_v3 = vld [vmem:[#allocation4 + $0x78] ss:$28 sps:$4 sm:$0xff]  }
0x12ac   :  { %13917 = vmatprep.subr.bf16.mxu1 %v18357_v4  ;;  %13947 = vmatprep.mubr.bf16.mxu1 %v19243_v18  ;;  %v18432_v4 = vld [vmem:[#allocation4 + $0x8fc] ss:$28 sps:$4 sm:$0xff]  }
0x12ad   :  { %13906 = vmatprep.mubr.bf16.mxu0 %v20515_v35 }
0x12ae   :  { %13877 = vmatpush1.bf16.msra.mxu0 %v18352_v19  ;;  %v18435_v19 = vld [vmem:[#allocation4 + $0x44] ss:$28 sps:$4 sm:$0xff]  }
0x12af   :  { %13918 = vmatpush1.bf16.msra.mxu1 %v18355_v11  ;;  %13878 = vmatprep.subr.bf16.mxu0 %v18360_v41  ;;  %v18430_v11 = vld [vmem:[#allocation4 + $0x8f8] ss:$28 sps:$4 sm:$0xff]   ;;  %v18433_v41 = vld [vmem:[#allocation4 + $0x40] ss:$28 sps:$4 sm:$0xff]  }
0x12b0   :  { %13919 = vmatprep.subr.bf16.mxu1 %v18363_v6  ;;  %v18438_v6 = vld [vmem:[#allocation4 + $0x8c4] ss:$28 sps:$4 sm:$0xff]  }
0x12b2   :  { %13879 = vmatpush1.bf16.msra.mxu0 %v18358_v32  ;;  %v18441_v32 = vld [vmem:[#allocation4 + $0xc] ss:$28 sps:$4 sm:$0xff]  }
0x12b3   :  { %13920 = vmatpush1.bf16.msra.mxu1 %v18361_v47  ;;  %13880 = vmatprep.subr.bf16.mxu0 %v18366_v49  ;;  %v18436_v47 = vld [vmem:[#allocation4 + $0x8c0] ss:$28 sps:$4 sm:$0xff]   ;;  %v18439_v49 = vld [vmem:[#allocation4 + $0x8] ss:$28 sps:$4 sm:$0xff]  }
0x12b4   :  { %13921 = vmatprep.subr.bf16.mxu1 %v18369_v57  ;;  %v18444_v57 = vld [vmem:[#allocation4 + $0x354] ss:$28 sps:$4 sm:$0xff]  }
0x12b6   :  { %13881 = vmatpush1.bf16.msra.mxu0 %v18364_v24  ;;  %v18447_v24 = vld [vmem:[#allocation4 + $0x514] ss:$28 sps:$4 sm:$0xff]  }
0x12b7   :  { %13922 = vmatpush1.bf16.msra.mxu1 %v18367_v55  ;;  %13882 = vmatprep.subr.bf16.mxu0 %v18372_v56  ;;  %v20531_v55 = vpack.c.bf16 %v11277_v29, %v11277_v29  ;;  %v18442_v56 = vld [vmem:[#allocation4 + $0x350] ss:$28 sps:$4 sm:$0xff]   ;;  %v18454_v29 = vld [vmem:[#allocation4 + $0x2e0] ss:$28 sps:$4 sm:$0xff]  }
0x12b8   :  { %13923 = vmatprep.subr.bf16.mxu1 %v18375_v50  ;;  %v18445_v50 = vld [vmem:[#allocation4 + $0x510] ss:$28 sps:$4 sm:$0xff]  }
0x12ba   :  { %13883 = vmatpush1.bf16.msra.mxu0 %v18370_v62  ;;  %v18450_v62 = vld [vmem:[#allocation4 + $0x31c] ss:$28 sps:$4 sm:$0xff]  }
0x12bb   :  { %13924 = vmatpush1.bf16.msra.mxu1 %v18373_v40  ;;  %13884 = vmatprep.subr.bf16.mxu0 %v18378_v16  ;;  %v18453_v40 = vld [vmem:[#allocation4 + $0x4dc] ss:$28 sps:$4 sm:$0xff]  }
0x12bc   :  { %13925 = vmatprep.subr.bf16.mxu1 %v18381_v17  ;;  %v18448_v16 = vld [vmem:[#allocation4 + $0x318] ss:$28 sps:$4 sm:$0xff]  }
0x12bd   :  { %v18451_v17 = vld [vmem:[#allocation4 + $0x4d8] ss:$28 sps:$4 sm:$0xff]  }
0x12be   :  { %13885 = vmatpush1.bf16.msra.mxu0 %v18376_v5  ;;  %v18456_v5 = vld [vmem:[#allocation4 + $0x2e4] ss:$28 sps:$4 sm:$0xff]  }
0x12bf   :  { %13926 = vmatpush1.bf16.msra.mxu1 %v18379_v33  ;;  %13886 = vmatprep.subr.bf16.mxu0 %v18384_v20  ;;  %v18457_v33 = vld [vmem:[#allocation4 + $0x4a0] ss:$28 sps:$4 sm:$0xff]   ;;  %v18462_v20 = vld [vmem:[#allocation4 + $0x2ac] ss:$28 sps:$4 sm:$0xff]  }
0x12c0   :  { %13927 = vmatprep.subr.bf16.mxu1 %v18387_v63  ;;  %v18465_v63 = vld [vmem:[#allocation4 + $0x46c] ss:$28 sps:$4 sm:$0xff]  }
0x12c2   :  { %13887 = vmatpush1.bf16.msra.mxu0 %v18382_v22  ;;  %v18460_v22 = vld [vmem:[#allocation4 + $0x2a8] ss:$28 sps:$4 sm:$0xff]  }
0x12c3   :  { %13928 = vmatpush1.bf16.msra.mxu1 %v18385_v1  ;;  %13888 = vmatprep.subr.bf16.mxu0 %v18390_v0  ;;  %v18463_v1 = vld [vmem:[#allocation4 + $0x468] ss:$28 sps:$4 sm:$0xff]   ;;  %v18468_v0 = vld [vmem:[#allocation4 + $0x274] ss:$28 sps:$4 sm:$0xff]  }
0x12c4   :  { %13929 = vmatprep.subr.bf16.mxu1 %v18393_v25  ;;  %v18471_v25 = vld [vmem:[#allocation4 + $0x434] ss:$28 sps:$4 sm:$0xff]  }
0x12c6   :  { %13889 = vmatpush1.bf16.msra.mxu0 %v18388_v26  ;;  %v18466_v26 = vld [vmem:[#allocation4 + $0x270] ss:$28 sps:$4 sm:$0xff]  }
0x12c7   :  { %13930 = vmatpush1.bf16.msra.mxu1 %v18391_v23  ;;  %13890 = vmatprep.subr.bf16.mxu0 %v18396_v2  ;;  %v18469_v23 = vld [vmem:[#allocation4 + $0x430] ss:$28 sps:$4 sm:$0xff]   ;;  %v18474_v2 = vld [vmem:[#allocation4 + $0x23c] ss:$28 sps:$4 sm:$0xff]  }
0x12c8   :  { %13956 = vmatprep.subr.bf16.mxu1 %v18399_v58  ;;  %v18477_v58 = vld [vmem:[#allocation4 + $0x3fc] ss:$28 sps:$4 sm:$0xff]  }
0x12ca   :  { %13948 = vmatmul.mubr.bf16.vlgmr.msra.gmra.mxu1 %v20524_v14  ;;  %13891 = vmatpush2.bf16.msra.mxu0 %v18394_v10  ;;  %v18472_v10 = vld [vmem:[#allocation4 + $0x238] ss:$28 sps:$4 sm:$0xff]  }
0x12cb   :  { %13957 = vmatpush1.bf16.msra.mxu1 %v18397_v13  ;;  %13892 = vmatprep.subr.bf16.mxu0 %v18402_v37  ;;  %v18475_v13 = vld [vmem:[#allocation4 + $0x3f8] ss:$28 sps:$4 sm:$0xff]   ;;  %v18480_v37 = vld [vmem:[#allocation4 + $0x204] ss:$28 sps:$4 sm:$0xff]  }
0x12cc   :  { %13958 = vmatprep.subr.bf16.mxu1 %v18405_v42  ;;  %13988 = vmatprep.mubr.bf16.mxu1 %v20496_v9  ;;  %v18483_v42 = vld [vmem:[#allocation4 + $0x3c4] ss:$28 sps:$4 sm:$0xff]  }
0x12ce   :  { %13893 = vmatpush2.bf16.msra.mxu0 %v18400_v52  ;;  %v18478_v52 = vld [vmem:[#allocation4 + $0x200] ss:$28 sps:$4 sm:$0xff]  }
0x12cf   :  { %13959 = vmatpush1.bf16.msra.mxu1 %v18403_v38  ;;  %13894 = vmatprep.subr.bf16.mxu0 %v18408_v43  ;;  %v18481_v38 = vld [vmem:[#allocation4 + $0x3c0] ss:$28 sps:$4 sm:$0xff]   ;;  %v18486_v43 = vld [vmem:[#allocation4 + $0x1cc] ss:$28 sps:$4 sm:$0xff]  }
0x12d0   :  { %13960 = vmatprep.subr.bf16.mxu1 %v18411_v44  ;;  %v18489_v44 = vld [vmem:[#allocation4 + $0x38c] ss:$28 sps:$4 sm:$0xff]  }
0x12d2   :  { %13895 = vmatpush2.bf16.msra.mxu0 %v18406_v27  ;;  %v18484_v27 = vld [vmem:[#allocation4 + $0x1c8] ss:$28 sps:$4 sm:$0xff]  }
0x12d3   :  { %13961 = vmatpush1.bf16.msra.mxu1 %v18409_v48  ;;  %13896 = vmatprep.subr.bf16.mxu0 %v18414_v45  ;;  %v18487_v48 = vld [vmem:[#allocation4 + $0x388] ss:$28 sps:$4 sm:$0xff]   ;;  %v18492_v45 = vld [vmem:[#allocation4 + $0x6d4] ss:$28 sps:$4 sm:$0xff]  }
0x12d4   :  { %13962 = vmatprep.subr.bf16.mxu1 %v18417_v39  ;;  %v18495_v39 = vld [vmem:[#allocation4 + $0x894] ss:$28 sps:$4 sm:$0xff]  }
0x12d6   :  { %13897 = vmatpush2.bf16.msra.mxu0 %v18412_v60  ;;  %v18490_v60 = vld [vmem:[#allocation4 + $0x6d0] ss:$28 sps:$4 sm:$0xff]  }
0x12d7   :  { %13963 = vmatpush1.bf16.msra.mxu1 %v18415_v15  ;;  %13898 = vmatprep.subr.bf16.mxu0 %v18420_v46  ;;  %v18493_v15 = vld [vmem:[#allocation4 + $0x890] ss:$28 sps:$4 sm:$0xff]   ;;  %v18498_v46 = vld [vmem:[#allocation4 + $0x69c] ss:$28 sps:$4 sm:$0xff]  }
0x12d8   :  { %13964 = vmatprep.subr.bf16.mxu1 %v18423_v51  ;;  %v18501_v51 = vld [vmem:[#allocation4 + $0x85c] ss:$28 sps:$4 sm:$0xff]  }
0x12da   :  { %13899 = vmatpush2.bf16.msra.mxu0 %v18418_v7  ;;  %v18496_v7 = vld [vmem:[#allocation4 + $0x698] ss:$28 sps:$4 sm:$0xff]  }
0x12db   :  { %13965 = vmatpush1.bf16.msra.mxu1 %v18421_v53  ;;  %13900 = vmatprep.subr.bf16.mxu0 %v18426_v54  ;;  %v18499_v53 = vld [vmem:[#allocation4 + $0x858] ss:$28 sps:$4 sm:$0xff]   ;;  %v18504_v54 = vld [vmem:[#allocation4 + $0x664] ss:$28 sps:$4 sm:$0xff]  }
0x12dc   :  { %13966 = vmatprep.subr.bf16.mxu1 %v18429_v59  ;;  %v18507_v59 = vld [vmem:[#allocation4 + $0x824] ss:$28 sps:$4 sm:$0xff]  }
0x12de   :  { %13901 = vmatpush2.bf16.msra.mxu0 %v18424_v61  ;;  %v18502_v61 = vld [vmem:[#allocation4 + $0x660] ss:$28 sps:$4 sm:$0xff]  }
0x12df   :  { %13967 = vmatpush1.bf16.msra.mxu1 %v18427_v3  ;;  %13902 = vmatprep.subr.bf16.mxu0 %v18432_v4  ;;  %v18505_v3 = vld [vmem:[#allocation4 + $0x820] ss:$28 sps:$4 sm:$0xff]   ;;  %v18510_v4 = vld [vmem:[#allocation4 + $0x62c] ss:$28 sps:$4 sm:$0xff]  }
0x12e0   :  { %13968 = vmatprep.subr.bf16.mxu1 %v18435_v19  ;;  %v18513_v19 = vld [vmem:[#allocation4 + $0x7ec] ss:$28 sps:$4 sm:$0xff]  }
0x12e2   :  { %13903 = vmatpush2.bf16.msra.mxu0 %v18430_v11  ;;  %v18508_v11 = vld [vmem:[#allocation4 + $0x628] ss:$28 sps:$4 sm:$0xff]  }
0x12e3   :  { %13969 = vmatpush1.bf16.msra.mxu1 %v18433_v41  ;;  %13904 = vmatprep.subr.bf16.mxu0 %v18438_v6  ;;  %v18511_v41 = vld [vmem:[#allocation4 + $0x7e8] ss:$28 sps:$4 sm:$0xff]   ;;  %v18516_v6 = vld [vmem:[#allocation4 + $0x5f4] ss:$28 sps:$4 sm:$0xff]  }
0x12e4   :  { %13970 = vmatprep.subr.bf16.mxu1 %v18441_v32  ;;  %v18519_v32 = vld [vmem:[#allocation4 + $0x7b4] ss:$28 sps:$4 sm:$0xff]  }
0x12e6   :  { %13905 = vmatpush2.bf16.msra.mxu0 %v18436_v47  ;;  %v18514_v47 = vld [vmem:[#allocation4 + $0x5f0] ss:$28 sps:$4 sm:$0xff]  }
0x12e7   :  { %13971 = vmatpush1.bf16.msra.mxu1 %v18439_v49  ;;  %13997 = vmatprep.subr.bf16.mxu0 %v18447_v24  ;;  %v18517_v49 = vld [vmem:[#allocation4 + $0x7b0] ss:$28 sps:$4 sm:$0xff]   ;;  %v18525_v24 = vld [vmem:[#allocation4 + $0x77c] ss:$28 sps:$4 sm:$0xff]  }
0x12e8   :  { %13972 = vmatprep.subr.bf16.mxu1 %v18444_v57  ;;  %v18522_v57 = vld [vmem:[#allocation4 + $0x5bc] ss:$28 sps:$4 sm:$0xff]  }
0x12e9   :  { %13907 = vmatmul.mubr.bf16.vlgmr.msra.gmra.mxu0 %v20531_v55 }
0x12ea   :  { %13998 = vmatpush1.bf16.msra.mxu0 %v18445_v50  ;;  %14029 = vmatprep.mubr.bf16.mxu0 %v20498_v36  ;;  %v18523_v50 = vld [vmem:[#allocation4 + $0x778] ss:$28 sps:$4 sm:$0xff]  }
0x12eb   :  { %13973 = vmatpush2.bf16.msra.mxu1 %v18442_v56  ;;  %13999 = vmatprep.subr.bf16.mxu0 %v18453_v40  ;;  %v18520_v56 = vld [vmem:[#allocation4 + $0x5b8] ss:$28 sps:$4 sm:$0xff]   ;;  %v18531_v40 = vld [vmem:[#allocation4 + $0x744] ss:$28 sps:$4 sm:$0xff]  }
0x12ec   :  { %13974 = vmatprep.subr.bf16.mxu1 %v18450_v62  ;;  %v18528_v62 = vld [vmem:[#allocation4 + $0x584] ss:$28 sps:$4 sm:$0xff]  }
0x12ee   :  { %14000 = vmatpush1.bf16.msra.mxu0 %v18451_v17  ;;  %v18529_v17 = vld [vmem:[#allocation4 + $0x740] ss:$28 sps:$4 sm:$0xff]  }
0x12ef   :  { %13975 = vmatpush2.bf16.msra.mxu1 %v18448_v16  ;;  %14001 = vmatprep.subr.bf16.mxu0 %v18459_v12  ;;  %v18526_v16 = vld [vmem:[#allocation4 + $0x580] ss:$28 sps:$4 sm:$0xff]   ;;  %v18537_v12 = vld [vmem:[#allocation4 + $0x70c] ss:$28 sps:$4 sm:$0xff]  }
0x12f0   :  { %13976 = vmatprep.subr.bf16.mxu1 %v18456_v5  ;;  %v18534_v5 = vld [vmem:[#allocation4 + $0x54c] ss:$28 sps:$4 sm:$0xff]  }
0x12f2   :  { %14002 = vmatpush1.bf16.msra.mxu0 %v18457_v33  ;;  %v18535_v33 = vld [vmem:[#allocation4 + $0x708] ss:$28 sps:$4 sm:$0xff]  }
0x12f3   :  { %13977 = vmatpush2.bf16.msra.mxu1 %v18454_v29  ;;  %14003 = vmatprep.subr.bf16.mxu0 %v18465_v63  ;;  %v18532_v29 = vld [vmem:[#allocation4 + $0x548] ss:$28 sps:$4 sm:$0xff]   ;;  %v18543_v63 = vld [vmem:[#allocation4 + $0xc14] ss:$28 sps:$4 sm:$0xff]  }
0x12f4   :  { %13978 = vmatprep.subr.bf16.mxu1 %v18462_v20  ;;  %v18540_v20 = vld [vmem:[#allocation4 + $0xa54] ss:$28 sps:$4 sm:$0xff]  }
0x12f6   :  { %14004 = vmatpush1.bf16.msra.mxu0 %v18463_v1  ;;  %v18541_v1 = vld [vmem:[#allocation4 + $0xc10] ss:$28 sps:$4 sm:$0xff]  }
0x12f7   :  { %13979 = vmatpush2.bf16.msra.mxu1 %v18460_v22  ;;  %14005 = vmatprep.subr.bf16.mxu0 %v18471_v25  ;;  %v18538_v22 = vld [vmem:[#allocation4 + $0xa50] ss:$28 sps:$4 sm:$0xff]   ;;  %v18549_v25 = vld [vmem:[#allocation4 + $0xbdc] ss:$28 sps:$4 sm:$0xff]  }
0x12f8   :  { %13980 = vmatprep.subr.bf16.mxu1 %v18468_v0  ;;  %v18546_v0 = vld [vmem:[#allocation4 + $0xa1c] ss:$28 sps:$4 sm:$0xff]  }
0x12fa   :  { %14006 = vmatpush1.bf16.msra.mxu0 %v18469_v23  ;;  %v18547_v23 = vld [vmem:[#allocation4 + $0xbd8] ss:$28 sps:$4 sm:$0xff]  }
0x12fb   :  { %13981 = vmatpush2.bf16.msra.mxu1 %v18466_v26  ;;  %14007 = vmatprep.subr.bf16.mxu0 %v18477_v58  ;;  %v18544_v26 = vld [vmem:[#allocation4 + $0xa18] ss:$28 sps:$4 sm:$0xff]   ;;  %v18555_v58 = vld [vmem:[#allocation4 + $0xba4] ss:$28 sps:$4 sm:$0xff]  }
0x12fc   :  { %13982 = vmatprep.subr.bf16.mxu1 %v18474_v2  ;;  %v18552_v2 = vld [vmem:[#allocation4 + $0x9e4] ss:$28 sps:$4 sm:$0xff]  }
0x12fe   :  { %14008 = vmatpush1.bf16.msra.mxu0 %v18475_v13  ;;  %v18553_v13 = vld [vmem:[#allocation4 + $0xba0] ss:$28 sps:$4 sm:$0xff]  }
0x12ff   :  { %13983 = vmatpush2.bf16.msra.mxu1 %v18472_v10  ;;  %14009 = vmatprep.subr.bf16.mxu0 %v18483_v42  ;;  %v18550_v10 = vld [vmem:[#allocation4 + $0x9e0] ss:$28 sps:$4 sm:$0xff]   ;;  %v18561_v42 = vld [vmem:[#allocation4 + $0xb6c] ss:$28 sps:$4 sm:$0xff]  }
0x1300   :  { %13984 = vmatprep.subr.bf16.mxu1 %v18480_v37  ;;  %v18558_v37 = vld [vmem:[#allocation4 + $0x9ac] ss:$28 sps:$4 sm:$0xff]  }
0x1302   :  { %14010 = vmatpush1.bf16.msra.mxu0 %v18481_v38  ;;  %v18559_v38 = vld [vmem:[#allocation4 + $0xb68] ss:$28 sps:$4 sm:$0xff]  }
0x1303   :  { %13985 = vmatpush2.bf16.msra.mxu1 %v18478_v52  ;;  %14011 = vmatprep.subr.bf16.mxu0 %v18489_v44  ;;  %v18556_v52 = vld [vmem:[#allocation4 + $0x9a8] ss:$28 sps:$4 sm:$0xff]   ;;  %v18567_v44 = vld [vmem:[#allocation4 + $0xb34] ss:$28 sps:$4 sm:$0xff]  }
0x1304   :  { %13986 = vmatprep.subr.bf16.mxu1 %v18486_v43  ;;  %v18564_v43 = vld [vmem:[#allocation4 + $0x974] ss:$28 sps:$4 sm:$0xff]  }
0x1306   :  { %14012 = vmatpush1.bf16.msra.mxu0 %v18487_v48  ;;  %v18565_v48 = vld [vmem:[#allocation4 + $0xb30] ss:$28 sps:$4 sm:$0xff]  }
0x1307   :  { %13987 = vmatpush2.bf16.msra.mxu1 %v18484_v27  ;;  %14013 = vmatprep.subr.bf16.mxu0 %v18492_v45  ;;  %v18562_v27 = vld [vmem:[#allocation4 + $0x970] ss:$28 sps:$4 sm:$0xff]   ;;  %v18570_v45 = vld [vmem:[#allocation4 + $0x93c] ss:$28 sps:$4 sm:$0xff]  }
0x1308   :  { %14038 = vmatprep.subr.bf16.mxu1 %v18495_v39  ;;  %v18573_v39 = vld [vmem:[#allocation4 + $0xafc] ss:$28 sps:$4 sm:$0xff]  }
0x130a   :  { %13989 = vmatmul.mubr.bf16.vlgmr.msra.gmra.mxu1 %v20505_v34  ;;  %14014 = vmatpush2.bf16.msra.mxu0 %v18490_v60  ;;  %v18568_v60 = vld [vmem:[#allocation4 + $0x938] ss:$28 sps:$4 sm:$0xff]  }
0x130b   :  { %14039 = vmatpush1.bf16.msra.mxu1 %v18493_v15  ;;  %14015 = vmatprep.subr.bf16.mxu0 %v18498_v46  ;;  %v18571_v15 = vld [vmem:[#allocation4 + $0xaf8] ss:$28 sps:$4 sm:$0xff]   ;;  %v18576_v46 = vld [vmem:[#allocation4 + $0x904] ss:$28 sps:$4 sm:$0xff]  }
0x130c   :  { %14040 = vmatprep.subr.bf16.mxu1 %v18501_v51  ;;  %14070 = vmatprep.mubr.bf16.mxu1 %v20515_v35  ;;  %v18579_v51 = vld [vmem:[#allocation4 + $0xac4] ss:$28 sps:$4 sm:$0xff]  }
0x130e   :  { %14016 = vmatpush2.bf16.msra.mxu0 %v18496_v7  ;;  %v18574_v7 = vld [vmem:[#allocation4 + $0x900] ss:$28 sps:$4 sm:$0xff]  }
0x130f   :  { %14041 = vmatpush1.bf16.msra.mxu1 %v18499_v53  ;;  %14017 = vmatprep.subr.bf16.mxu0 %v18504_v54  ;;  %v18577_v53 = vld [vmem:[#allocation4 + $0xac0] ss:$28 sps:$4 sm:$0xff]   ;;  %v18582_v54 = vld [vmem:[#allocation4 + $0x8cc] ss:$28 sps:$4 sm:$0xff]  }
0x1310   :  { %14042 = vmatprep.subr.bf16.mxu1 %v18507_v59  ;;  %v18585_v59 = vld [vmem:[#allocation4 + $0xa8c] ss:$28 sps:$4 sm:$0xff]  }
0x1312   :  { %14018 = vmatpush2.bf16.msra.mxu0 %v18502_v61  ;;  %v18580_v61 = vld [vmem:[#allocation4 + $0x8c8] ss:$28 sps:$4 sm:$0xff]  }
0x1313   :  { %14043 = vmatpush1.bf16.msra.mxu1 %v18505_v3  ;;  %14019 = vmatprep.subr.bf16.mxu0 %v18510_v4  ;;  %v18583_v3 = vld [vmem:[#allocation4 + $0xa88] ss:$28 sps:$4 sm:$0xff]   ;;  %v18588_v4 = vld [vmem:[#allocation4 + $0x19c] ss:$28 sps:$4 sm:$0xff]  }
0x1314   :  { %14044 = vmatprep.subr.bf16.mxu1 %v18513_v19  ;;  %v18591_v19 = vld [vmem:[#allocation4 + $0x51c] ss:$28 sps:$4 sm:$0xff]  }
0x1316   :  { %14020 = vmatpush2.bf16.msra.mxu0 %v18508_v11  ;;  %v18586_v11 = vld [vmem:[#allocation4 + $0x198] ss:$28 sps:$4 sm:$0xff]  }
0x1317   :  { %14045 = vmatpush1.bf16.msra.mxu1 %v18511_v41  ;;  %14021 = vmatprep.subr.bf16.mxu0 %v18516_v6  ;;  %v18589_v41 = vld [vmem:[#allocation4 + $0x518] ss:$28 sps:$4 sm:$0xff]   ;;  %v18594_v6 = vld [vmem:[#allocation4 + $0x164] ss:$28 sps:$4 sm:$0xff]  }
0x1318   :  { %14046 = vmatprep.subr.bf16.mxu1 %v18519_v32  ;;  %v18597_v32 = vld [vmem:[#allocation4 + $0x4e4] ss:$28 sps:$4 sm:$0xff]  }
0x131a   :  { %14022 = vmatpush2.bf16.msra.mxu0 %v18514_v47  ;;  %v18592_v47 = vld [vmem:[#allocation4 + $0x160] ss:$28 sps:$4 sm:$0xff]  }
0x131b   :  { %14047 = vmatpush1.bf16.msra.mxu1 %v18517_v49  ;;  %14023 = vmatprep.subr.bf16.mxu0 %v18522_v57  ;;  %v18595_v49 = vld [vmem:[#allocation4 + $0x4e0] ss:$28 sps:$4 sm:$0xff]   ;;  %v18600_v57 = vld [vmem:[#allocation4 + $0x12c] ss:$28 sps:$4 sm:$0xff]  }
0x131c   :  { %14048 = vmatprep.subr.bf16.mxu1 %v18525_v24  ;;  %v18603_v24 = vld [vmem:[#allocation4 + $0x4ac] ss:$28 sps:$4 sm:$0xff]  }
0x131e   :  { %14024 = vmatpush2.bf16.msra.mxu0 %v18520_v56  ;;  %v18598_v56 = vld [vmem:[#allocation4 + $0x128] ss:$28 sps:$4 sm:$0xff]  }
0x131f   :  { %14049 = vmatpush1.bf16.msra.mxu1 %v18523_v50  ;;  %14025 = vmatprep.subr.bf16.mxu0 %v18528_v62  ;;  %v18601_v50 = vld [vmem:[#allocation4 + $0x4a8] ss:$28 sps:$4 sm:$0xff]   ;;  %v18606_v62 = vld [vmem:[#allocation4 + $0xf4] ss:$28 sps:$4 sm:$0xff]  }
0x1320   :  { %14050 = vmatprep.subr.bf16.mxu1 %v18531_v40  ;;  %v18609_v40 = vld [vmem:[#allocation4 + $0x474] ss:$28 sps:$4 sm:$0xff]  }
0x1322   :  { %14026 = vmatpush2.bf16.msra.mxu0 %v18526_v16  ;;  %v18604_v16 = vld [vmem:[#allocation4 + $0xf0] ss:$28 sps:$4 sm:$0xff]  }
0x1323   :  { %14051 = vmatpush1.bf16.msra.mxu1 %v18529_v17  ;;  %14027 = vmatprep.subr.bf16.mxu0 %v18534_v5  ;;  %v18607_v17 = vld [vmem:[#allocation4 + $0x470] ss:$28 sps:$4 sm:$0xff]   ;;  %v18612_v5 = vld [vmem:[#allocation4 + $0xbc] ss:$28 sps:$4 sm:$0xff]  }
0x1324   :  { %14052 = vmatprep.subr.bf16.mxu1 %v18537_v12  ;;  %v18615_v12 = vld [vmem:[#allocation4 + $0x43c] ss:$28 sps:$4 sm:$0xff]  }
0x1326   :  { %14028 = vmatpush2.bf16.msra.mxu0 %v18532_v29  ;;  %v18610_v29 = vld [vmem:[#allocation4 + $0xb8] ss:$28 sps:$4 sm:$0xff]  }
0x1327   :  { %14053 = vmatpush1.bf16.msra.mxu1 %v18535_v33  ;;  %14079 = vmatprep.subr.bf16.mxu0 %v18543_v63  ;;  %v18613_v33 = vld [vmem:[#allocation4 + $0x438] ss:$28 sps:$4 sm:$0xff]   ;;  %v18621_v63 = vld [vmem:[#allocation4 + $0x404] ss:$28 sps:$4 sm:$0xff]  }
0x1328   :  { %14054 = vmatprep.subr.bf16.mxu1 %v18540_v20  ;;  %v18618_v20 = vld [vmem:[#allocation4 + $0x84] ss:$28 sps:$4 sm:$0xff]  }
0x1329   :  { %14030 = vmatmul.mubr.bf16.vlgmr.msra.gmra.mxu0 %v20510_v8 }
0x132a   :  { %14080 = vmatpush1.bf16.msra.mxu0 %v18541_v1  ;;  %14111 = vmatprep.mubr.bf16.mxu0 %v19243_v18  ;;  %v18619_v1 = vld [vmem:[#allocation4 + $0x400] ss:$28 sps:$4 sm:$0xff]  }
0x132b   :  { %14055 = vmatpush2.bf16.msra.mxu1 %v18538_v22  ;;  %14081 = vmatprep.subr.bf16.mxu0 %v18549_v25  ;;  %v18616_v22 = vld [vmem:[#allocation4 + $0x80] ss:$28 sps:$4 sm:$0xff]   ;;  %v18627_v25 = vld [vmem:[#allocation4 + $0x3cc] ss:$28 sps:$4 sm:$0xff]  }
0x132c   :  { %14056 = vmatprep.subr.bf16.mxu1 %v18546_v0  ;;  %v18624_v0 = vld [vmem:[#allocation4 + $0x4c] ss:$28 sps:$4 sm:$0xff]  }
0x132e   :  { %14082 = vmatpush1.bf16.msra.mxu0 %v18547_v23  ;;  %v18625_v23 = vld [vmem:[#allocation4 + $0x3c8] ss:$28 sps:$4 sm:$0xff]  }
0x132f   :  { %14057 = vmatpush2.bf16.msra.mxu1 %v18544_v26  ;;  %14083 = vmatprep.subr.bf16.mxu0 %v18555_v58  ;;  %v18622_v26 = vld [vmem:[#allocation4 + $0x48] ss:$28 sps:$4 sm:$0xff]   ;;  %v18633_v58 = vld [vmem:[#allocation4 + $0x394] ss:$28 sps:$4 sm:$0xff]  }
0x1330   :  { %14058 = vmatprep.subr.bf16.mxu1 %v18552_v2  ;;  %v18630_v2 = vld [vmem:[#allocation4 + $0x14] ss:$28 sps:$4 sm:$0xff]  }
0x1332   :  { %14084 = vmatpush1.bf16.msra.mxu0 %v18553_v13  ;;  %v18631_v13 = vld [vmem:[#allocation4 + $0x390] ss:$28 sps:$4 sm:$0xff]  }
0x1333   :  { %14059 = vmatpush2.bf16.msra.mxu1 %v18550_v10  ;;  %14085 = vmatprep.subr.bf16.mxu0 %v18561_v42  ;;  %v18628_v10 = vld [vmem:[#allocation4 + $0x10] ss:$28 sps:$4 sm:$0xff]   ;;  %v18639_v42 = vld [vmem:[#allocation4 + $0x6dc] ss:$28 sps:$4 sm:$0xff]  }
0x1334   :  { %14060 = vmatprep.subr.bf16.mxu1 %v18558_v37  ;;  %v18636_v37 = vld [vmem:[#allocation4 + $0x35c] ss:$28 sps:$4 sm:$0xff]  }
0x1336   :  { %14086 = vmatpush1.bf16.msra.mxu0 %v18559_v38  ;;  %v18637_v38 = vld [vmem:[#allocation4 + $0x6d8] ss:$28 sps:$4 sm:$0xff]  }
0x1337   :  { %14061 = vmatpush2.bf16.msra.mxu1 %v18556_v52  ;;  %14087 = vmatprep.subr.bf16.mxu0 %v18567_v44  ;;  %v18634_v52 = vld [vmem:[#allocation4 + $0x358] ss:$28 sps:$4 sm:$0xff]   ;;  %v18645_v44 = vld [vmem:[#allocation4 + $0x6a4] ss:$28 sps:$4 sm:$0xff]  }
0x1338   :  { %14062 = vmatprep.subr.bf16.mxu1 %v18564_v43  ;;  %v18642_v43 = vld [vmem:[#allocation4 + $0x324] ss:$28 sps:$4 sm:$0xff]  }
0x133a   :  { %14088 = vmatpush1.bf16.msra.mxu0 %v18565_v48 }
0x133b   :  { %14063 = vmatpush2.bf16.msra.mxu1 %v18562_v27  ;;  %14089 = vmatprep.subr.bf16.mxu0 %v18573_v39  ;;  %v18643_v39 = vld [vmem:[#allocation4 + $0x6a0] ss:$28 sps:$4 sm:$0xff]  }
0x133c   :  { %14064 = vmatprep.subr.bf16.mxu1 %v18570_v45  ;;  %v18640_v45 = vld [vmem:[#allocation4 + $0x320] ss:$28 sps:$4 sm:$0xff]  }
0x133e   :  { %14090 = vmatpush1.bf16.msra.mxu0 %v18571_v15 }
0x133f   :  { %14065 = vmatpush2.bf16.msra.mxu1 %v18568_v60  ;;  %14091 = vmatprep.subr.bf16.mxu0 %v18579_v51  ;;  %v18651_v51 = vld [vmem:[#allocation4 + $0x66c] ss:$28 sps:$4 sm:$0xff]  }
0x1340   :  { %14066 = vmatprep.subr.bf16.mxu1 %v18576_v46  ;;  %v18648_v46 = vld [vmem:[#allocation4 + $0x2ec] ss:$28 sps:$4 sm:$0xff]  }
0x1342   :  { %14092 = vmatpush1.bf16.msra.mxu0 %v18577_v53 }
0x1343   :  { %14067 = vmatpush2.bf16.msra.mxu1 %v18574_v7  ;;  %14093 = vmatprep.subr.bf16.mxu0 %v18585_v59  ;;  %v18646_v7 = vld [vmem:[#allocation4 + $0x2e8] ss:$28 sps:$4 sm:$0xff]  }
0x1344   :  { %14068 = vmatprep.subr.bf16.mxu1 %v18582_v54  ;;  %v18649_v54 = vld [vmem:[#allocation4 + $0x668] ss:$28 sps:$4 sm:$0xff]  }
0x1346   :  { %14094 = vmatpush1.bf16.msra.mxu0 %v18583_v3 }
0x1347   :  { %14069 = vmatpush2.bf16.msra.mxu1 %v18580_v61  ;;  %14120 = vmatprep.subr.bf16.mxu0 %v18588_v4  ;;  %v18654_v61 = vld [vmem:[#allocation4 + $0x2b4] ss:$28 sps:$4 sm:$0xff]  }
0x1348   :  { %14161 = vmatprep.subr.bf16.mxu1 %v18591_v19  ;;  %v18657_v4 = vld [vmem:[#allocation4 + $0x634] ss:$28 sps:$4 sm:$0xff]  }
0x1349   :  { %14112 = vmatmul.mubr.bf16.vlgmr.msra.gmra.mxu0 %v20524_v14 }
0x134a   :  { %14071 = vmatmul.mubr.bf16.vlgmr.msra.gmra.mxu1 %v20531_v55  ;;  %14121 = vmatpush1.bf16.msra.mxu0 %v18586_v11  ;;  %v18652_v11 = vld [vmem:[#allocation4 + $0x2b0] ss:$28 sps:$4 sm:$0xff]  }
0x134b   :  { %14162 = vmatpush1.bf16.msra.mxu1 %v18589_v41  ;;  %14122 = vmatprep.subr.bf16.mxu0 %v18594_v6  ;;  %v18655_v41 = vld [vmem:[#allocation4 + $0x630] ss:$28 sps:$4 sm:$0xff]   ;;  %v18660_v6 = vld [vmem:[#allocation4 + $0x27c] ss:$28 sps:$4 sm:$0xff]  }
0x134c   :  { %14163 = vmatprep.subr.bf16.mxu1 %v18597_v32  ;;  %14152 = vmatprep.mubr.bf16.mxu0 %v20496_v9  ;;  %v18663_v32 = vld [vmem:[#allocation4 + $0x5fc] ss:$28 sps:$4 sm:$0xff]  }
0x134d   :  { %14193 = vmatprep.mubr.bf16.mxu1 %v20498_v36 }
0x134e   :  { %14123 = vmatpush1.bf16.msra.mxu0 %v18592_v47  ;;  %v18658_v47 = vld [vmem:[#allocation4 + $0x278] ss:$28 sps:$4 sm:$0xff]  }
0x134f   :  { %14164 = vmatpush1.bf16.msra.mxu1 %v18595_v49  ;;  %14124 = vmatprep.subr.bf16.mxu0 %v18600_v57  ;;  %v18661_v49 = vld [vmem:[#allocation4 + $0x5f8] ss:$28 sps:$4 sm:$0xff]   ;;  %v18666_v57 = vld [vmem:[#allocation4 + $0x244] ss:$28 sps:$4 sm:$0xff]  }
0x1350   :  { %14165 = vmatprep.subr.bf16.mxu1 %v18603_v24  ;;  %v18669_v24 = vld [vmem:[#allocation4 + $0x5c4] ss:$28 sps:$4 sm:$0xff]  }
0x1352   :  { %14125 = vmatpush1.bf16.msra.mxu0 %v18598_v56  ;;  %v18664_v56 = vld [vmem:[#allocation4 + $0x240] ss:$28 sps:$4 sm:$0xff]  }
0x1353   :  { %14166 = vmatpush1.bf16.msra.mxu1 %v18601_v50  ;;  %14126 = vmatprep.subr.bf16.mxu0 %v18606_v62  ;;  %v18667_v50 = vld [vmem:[#allocation4 + $0x5c0] ss:$28 sps:$4 sm:$0xff]   ;;  %v18672_v62 = vld [vmem:[#allocation4 + $0x20c] ss:$28 sps:$4 sm:$0xff]  }
0x1354   :  { %14167 = vmatprep.subr.bf16.mxu1 %v18609_v40  ;;  %v18675_v40 = vld [vmem:[#allocation4 + $0x58c] ss:$28 sps:$4 sm:$0xff]  }
0x1356   :  { %14127 = vmatpush1.bf16.msra.mxu0 %v18604_v16  ;;  %v18670_v16 = vld [vmem:[#allocation4 + $0x208] ss:$28 sps:$4 sm:$0xff]  }
0x1357   :  { %14168 = vmatpush1.bf16.msra.mxu1 %v18607_v17  ;;  %14128 = vmatprep.subr.bf16.mxu0 %v18612_v5  ;;  %v18673_v17 = vld [vmem:[#allocation4 + $0x588] ss:$28 sps:$4 sm:$0xff]   ;;  %v18678_v5 = vld [vmem:[#allocation4 + $0x1d4] ss:$28 sps:$4 sm:$0xff]  }
0x1358   :  { %14169 = vmatprep.subr.bf16.mxu1 %v18615_v12  ;;  %v18681_v12 = vld [vmem:[#allocation4 + $0x554] ss:$28 sps:$4 sm:$0xff]  }
0x135a   :  { %14129 = vmatpush1.bf16.msra.mxu0 %v18610_v29  ;;  %v18676_v29 = vld [vmem:[#allocation4 + $0x1d0] ss:$28 sps:$4 sm:$0xff]  }
0x135b   :  { %14170 = vmatpush1.bf16.msra.mxu1 %v18613_v33  ;;  %14130 = vmatprep.subr.bf16.mxu0 %v18618_v20  ;;  %v18679_v33 = vld [vmem:[#allocation4 + $0x550] ss:$28 sps:$4 sm:$0xff]   ;;  %v18684_v20 = vld [vmem:[#allocation4 + $0x89c] ss:$28 sps:$4 sm:$0xff]  }
0x135c   :  { %14171 = vmatprep.subr.bf16.mxu1 %v18621_v63  ;;  %v18687_v63 = vld [vmem:[#allocation4 + $0xc1c] ss:$28 sps:$4 sm:$0xff]  }
0x135e   :  { %14131 = vmatpush1.bf16.msra.mxu0 %v18616_v22  ;;  %v18682_v22 = vld [vmem:[#allocation4 + $0x898] ss:$28 sps:$4 sm:$0xff]  }
0x135f   :  { %14172 = vmatpush1.bf16.msra.mxu1 %v18619_v1  ;;  %14132 = vmatprep.subr.bf16.mxu0 %v18624_v0  ;;  %v18685_v1 = vld [vmem:[#allocation4 + $0xc18] ss:$28 sps:$4 sm:$0xff]   ;;  %v18690_v0 = vld [vmem:[#allocation4 + $0x864] ss:$28 sps:$4 sm:$0xff]  }
0x1360   :  { %14173 = vmatprep.subr.bf16.mxu1 %v18627_v25  ;;  %v18693_v25 = vld [vmem:[#allocation4 + $0xbe4] ss:$28 sps:$4 sm:$0xff]  }
0x1362   :  { %14133 = vmatpush1.bf16.msra.mxu0 %v18622_v26 }
0x1363   :  { %14174 = vmatpush1.bf16.msra.mxu1 %v18625_v23  ;;  %14134 = vmatprep.subr.bf16.mxu0 %v18630_v2  ;;  %v18688_v23 = vld [vmem:[#allocation4 + $0x860] ss:$28 sps:$4 sm:$0xff]  }
0x1364   :  { %14175 = vmatprep.subr.bf16.mxu1 %v18633_v58  ;;  %v18691_v2 = vld [vmem:[#allocation4 + $0xbe0] ss:$28 sps:$4 sm:$0xff]   ;;  %v18696_v58 = vld [vmem:[#allocation4 + $0x82c] ss:$28 sps:$4 sm:$0xff]  }
0x1366   :  { %14135 = vmatpush1.bf16.msra.mxu0 %v18628_v10  ;;  %v18699_v10 = vld [vmem:[#allocation4 + $0xbac] ss:$28 sps:$4 sm:$0xff]  }
0x1367   :  { %14176 = vmatpush1.bf16.msra.mxu1 %v18631_v13  ;;  %14136 = vmatprep.subr.bf16.mxu0 %v18636_v37 }
0x1368   :  { %14177 = vmatprep.subr.bf16.mxu1 %v18639_v42  ;;  %v18694_v42 = vld [vmem:[#allocation4 + $0x828] ss:$28 sps:$4 sm:$0xff]  }
0x1369   :  { %v20543_v27 = vpop.f32.mrf.mxu0 }
0x136a   :  { %v20545_v48 = vpop.f32.mrf.mxu1  ;;  %14137 = vmatpush2.bf16.msra.mxu0 %v18634_v52  ;;  %v18697_v52 = vld [vmem:[#allocation4 + $0xba8] ss:$28 sps:$4 sm:$0xff]  }
0x136b   :  { %14178 = vmatpush2.bf16.msra.mxu1 %v18637_v38  ;;  %v20547_v60 = vpop.f32.mrf.mxu0  ;;  %14138 = vmatprep.subr.bf16.mxu0 %v18642_v43  ;;  %v18702_v38 = vld [vmem:[#allocation4 + $0x7f4] ss:$28 sps:$4 sm:$0xff]  }
0x136c   :  { %v20549_v15 = vpop.f32.mrf.mxu1  ;;  %14179 = vmatprep.subr.bf16.mxu1 %v18645_v44  ;;  %v18705_v43 = vld [vmem:[#allocation4 + $0xb74] ss:$28 sps:$4 sm:$0xff]  }
0x136d   :  { %v13830_v53 = vpop.f32.mrf.mxu0 }
0x136e   :  { %v13871_v59 = vpop.f32.mrf.mxu1  ;;  %14139 = vmatpush2.bf16.msra.mxu0 %v18640_v45  ;;  %v18700_v45 = vld [vmem:[#allocation4 + $0x7f0] ss:$28 sps:$4 sm:$0xff]   ;;  %v18714_v53 = vld [vmem:[#allocation4 + $0x784] ss:$28 sps:$4 sm:$0xff]  }
0x136f   :  { %14180 = vmatpush2.bf16.msra.mxu1 %v18643_v39  ;;  %v13831_v3 = vpop.f32.mrf.mxu0  ;;  %14140 = vmatprep.subr.bf16.mxu0 %v18648_v46  ;;  %v18703_v39 = vld [vmem:[#allocation4 + $0xb70] ss:$28 sps:$4 sm:$0xff]   ;;  %v18708_v46 = vld [vmem:[#allocation4 + $0x7bc] ss:$28 sps:$4 sm:$0xff]  }
0x1370   :  { %14181 = vmatprep.subr.bf16.mxu1 %v18651_v51  ;;  %v13872_v19 = vpop.f32.mrf.mxu1  ;;  %v18706_v51 = vld [vmem:[#allocation4 + $0x7b8] ss:$28 sps:$4 sm:$0xff]   ;;  %v18712_v59 = vld [vmem:[#allocation4 + $0x780] ss:$28 sps:$4 sm:$0xff]   ;;  %v18720_v3 = vld [vmem:[#allocation4 + $0x74c] ss:$28 sps:$4 sm:$0xff]  }
0x1371   :  { %v20559_v19 = vld [vmem:[#allocation11] sm:$0xff] }
0x1372   :  { %14141 = vmatpush2.bf16.msra.mxu0 %v18646_v7  ;;  %v18709_v7 = vld [vmem:[#allocation4 + $0xb38] ss:$28 sps:$4 sm:$0xff]  }
0x1373   :  { %14182 = vmatpush2.bf16.msra.mxu1 %v18649_v54  ;;  %14142 = vmatprep.subr.bf16.mxu0 %v18654_v61  ;;  %v18717_v54 = vld [vmem:[#allocation4 + $0xb04] ss:$28 sps:$4 sm:$0xff]  }
0x1374   :  { %14183 = vmatprep.subr.bf16.mxu1 %v18657_v4  ;;  %v18715_v61 = vld [vmem:[#allocation4 + $0xb00] ss:$28 sps:$4 sm:$0xff]   ;;  %v18723_v4 = vld [vmem:[#allocation4 + $0xacc] ss:$28 sps:$4 sm:$0xff]  }
0x1376   :  { %14143 = vmatpush2.bf16.msra.mxu0 %v18652_v11  ;;  %v18718_v11 = vld [vmem:[#allocation4 + $0x748] ss:$28 sps:$4 sm:$0xff]  }
0x1377   :  { %14184 = vmatpush2.bf16.msra.mxu1 %v18655_v41  ;;  %14144 = vmatprep.subr.bf16.mxu0 %v18660_v6  ;;  %v18721_v41 = vld [vmem:[#allocation4 + $0xac8] ss:$28 sps:$4 sm:$0xff]   ;;  %v18726_v6 = vld [vmem:[#allocation4 + $0x714] ss:$28 sps:$4 sm:$0xff]  }
0x1378   :  { %14185 = vmatprep.subr.bf16.mxu1 %v18663_v32  ;;  %v18729_v32 = vld [vmem:[#allocation4 + $0xa94] ss:$28 sps:$4 sm:$0xff]  }
0x137a   :  { %14145 = vmatpush2.bf16.msra.mxu0 %v18658_v47  ;;  %v11744_v47 = vrot.slane %v20559_v19, %v19730_v21  ;;  %v18737_v21 = vld [vmem:[#allocation4 + $0xa24] ss:$28 sps:$4 sm:$0xff]  }
0x137b   :  { %14186 = vmatpush2.bf16.msra.mxu1 %v18661_v49  ;;  %14146 = vmatprep.subr.bf16.mxu0 %v18666_v57  ;;  %v11748_v49 = vrot.slane %v20559_v19, %v19749_v30  ;;  %v18724_v57 = vld [vmem:[#allocation4 + $0x710] ss:$28 sps:$4 sm:$0xff]   ;;  %v18738_v30 = vld [vmem:[#allocation4 + $0x328] ss:$28 sps:$4 sm:$0xff]  }
0x137c   :  { %14187 = vmatprep.subr.bf16.mxu1 %v18669_v24  ;;  %v18727_v24 = vld [vmem:[#allocation4 + $0xa90] ss:$28 sps:$4 sm:$0xff]  }
0x137e   :  { %14147 = vmatpush2.bf16.msra.mxu0 %v18664_v56  ;;  %v18732_v56 = vld [vmem:[#allocation4 + $0xa5c] ss:$28 sps:$4 sm:$0xff]  }
0x137f   :  { %14188 = vmatpush2.bf16.msra.mxu1 %v18667_v50  ;;  %14148 = vmatprep.subr.bf16.mxu0 %v18672_v62  ;;  %v18733_v50 = vld [vmem:[#allocation4 + $0x360] ss:$28 sps:$4 sm:$0xff]   ;;  %v13827_v62 = vadd.f32 %v20543_v27, %v11744_v47 }
0x1380   :  { %14189 = vmatprep.subr.bf16.mxu1 %v18675_v40  ;;  %v13829_v40 = vadd.f32 %v20547_v60, %v11748_v49  ;;  %v18735_v27 = vld [vmem:[#allocation4 + $0xa20] ss:$28 sps:$4 sm:$0xff]   ;;  %v18739_v60 = vld [vmem:[#allocation4 + $0x168] ss:$28 sps:$4 sm:$0xff]  }
0x1381   :  { %v18772_v47 = vld [vmem:[#allocation4 + $0xa60] ss:$28 sps:$4 sm:$0xff]  }
0x1382   :  { %14149 = vmatpush2.bf16.msra.mxu0 %v18670_v16  ;;  %v18730_v16 = vld [vmem:[#allocation4 + $0xa58] ss:$28 sps:$4 sm:$0xff]   ;;  %v18771_v49 = vld [vmem:[#allocation4 + $0x520] ss:$28 sps:$4 sm:$0xff]  }
0x1383   :  { %14190 = vmatpush2.bf16.msra.mxu1 %v18673_v17  ;;  %14150 = vmatprep.subr.bf16.mxu0 %v18678_v5  ;;  %v18734_v17 = vld [vmem:[#allocation4 + $0x1a0] ss:$28 sps:$4 sm:$0xff]   ;;  %v13868_v5 = vadd.f32 %v20545_v48, %v13827_v62  ;;  %v18775_v62 = vld [vmem:[#allocation4 + $0x4e8] ss:$28 sps:$4 sm:$0xff]  }
0x1384   :  { %14191 = vmatprep.subr.bf16.mxu1 %v18681_v12 }
0x1386   :  { %14151 = vmatpush2.bf16.msra.mxu0 %v18676_v29  ;;  %v13870_v29 = vadd.f32 %v20549_v15, %v13829_v40  ;;  %v18740_v15 = vld [vmem:[#allocation4 + $0x9e8] ss:$28 sps:$4 sm:$0xff]  }
0x1387   :  { %14192 = vmatpush2.bf16.msra.mxu1 %v18679_v33  ;;  %14202 = vmatprep.subr.bf16.mxu0 %v18684_v20  ;;  %v18777_v40 = vld [vmem:[#allocation4 + $0x868] ss:$28 sps:$4 sm:$0xff]  }
0x1388   :  { %14243 = vmatprep.subr.bf16.mxu1 %v18687_v63  ;;  %v18742_v63 = vld [vmem:[#allocation4 + $0x9ec] ss:$28 sps:$4 sm:$0xff]  }
0x1389   :  { %14153 = vmatmul.mubr.bf16.vlgmr.msra.gmra.mxu0 %v20505_v34 }
0x138a   :  { %14194 = vmatmul.mubr.bf16.vlgmr.msra.gmra.mxu1 %v20510_v8  ;;  %v20553_v26 = vpop.f32.mrf.mxu1  ;;  %14203 = vmatpush1.bf16.msra.mxu0 %v18682_v22  ;;  %v18743_v22 = vld [vmem:[#allocation4 + $0x2f0] ss:$28 sps:$4 sm:$0xff]  }
0x138b   :  { %14244 = vmatpush1.bf16.msra.mxu1 %v18685_v1  ;;  %14204 = vmatprep.subr.bf16.mxu0 %v18690_v0 }
0x138c   :  { %14245 = vmatprep.subr.bf16.mxu1 %v18693_v25  ;;  %v20555_v13 = vpop.f32.mrf.mxu1  ;;  %14275 = vmatprep.mubr.bf16.mxu1 %v19243_v18  ;;  %v18711_v18 = vld [vmem:[#allocation4 + $0xb3c] ss:$28 sps:$4 sm:$0xff]  }
0x138d   :  { %14234 = vmatprep.mubr.bf16.mxu0 %v20515_v35 }
0x138e   :  { %v13953_v37 = vpop.f32.mrf.mxu1  ;;  %14205 = vmatpush1.bf16.msra.mxu0 %v18688_v23 }
0x138f   :  { %14246 = vmatpush1.bf16.msra.mxu1 %v18691_v2  ;;  %14206 = vmatprep.subr.bf16.mxu0 %v18696_v58  ;;  %v18744_v2 = vld [vmem:[#allocation4 + $0x130] ss:$28 sps:$4 sm:$0xff]   ;;  %v18748_v37 = vld [vmem:[#allocation4 + $0x2b8] ss:$28 sps:$4 sm:$0xff]  }
0x1390   :  { %14247 = vmatprep.subr.bf16.mxu1 %v18699_v10  ;;  %v13954_v44 = vpop.f32.mrf.mxu1  ;;  %v18747_v10 = vld [vmem:[#allocation4 + $0x9b4] ss:$28 sps:$4 sm:$0xff]  }
0x1391   :  { %v18757_v44 = vld [vmem:[#allocation4 + $0x944] ss:$28 sps:$4 sm:$0xff]  }
0x1392   :  { %14207 = vmatpush1.bf16.msra.mxu0 %v18694_v42 }
0x1393   :  { %14248 = vmatpush1.bf16.msra.mxu1 %v18697_v52  ;;  %14208 = vmatprep.subr.bf16.mxu0 %v18702_v38  ;;  %v18752_v52 = vld [vmem:[#allocation4 + $0x97c] ss:$28 sps:$4 sm:$0xff]  }
0x1394   :  { %14249 = vmatprep.subr.bf16.mxu1 %v18705_v43  ;;  %v18750_v38 = vld [vmem:[#allocation4 + $0x978] ss:$28 sps:$4 sm:$0xff]   ;;  %v18754_v43 = vld [vmem:[#allocation4 + $0xc0] ss:$28 sps:$4 sm:$0xff]  }
0x1396   :  { %14209 = vmatpush1.bf16.msra.mxu0 %v18700_v45  ;;  %v18758_v45 = vld [vmem:[#allocation4 + $0x248] ss:$28 sps:$4 sm:$0xff]  }
0x1397   :  { %14250 = vmatpush1.bf16.msra.mxu1 %v18703_v39  ;;  %14210 = vmatprep.subr.bf16.mxu0 %v18708_v46  ;;  %v18755_v39 = vld [vmem:[#allocation4 + $0x940] ss:$28 sps:$4 sm:$0xff]   ;;  %v18759_v46 = vld [vmem:[#allocation4 + $0x88] ss:$28 sps:$4 sm:$0xff]  }
0x1398   :  { %14251 = vmatprep.subr.bf16.mxu1 %v18711_v18  ;;  %v18762_v18 = vld [vmem:[#allocation4 + $0x90c] ss:$28 sps:$4 sm:$0xff]  }
0x139a   :  { %14211 = vmatpush1.bf16.msra.mxu0 %v18706_v51  ;;  %v18763_v51 = vld [vmem:[#allocation4 + $0x210] ss:$28 sps:$4 sm:$0xff]  }
0x139b   :  { %14252 = vmatpush1.bf16.msra.mxu1 %v18709_v7  ;;  %14212 = vmatprep.subr.bf16.mxu0 %v18714_v53 }
0x139c   :  { %14253 = vmatprep.subr.bf16.mxu1 %v18717_v54  ;;  %v18760_v54 = vld [vmem:[#allocation4 + $0x908] ss:$28 sps:$4 sm:$0xff]  }
0x139e   :  { %14213 = vmatpush1.bf16.msra.mxu0 %v18712_v59  ;;  %v18764_v59 = vld [vmem:[#allocation4 + $0x50] ss:$28 sps:$4 sm:$0xff]  }
0x139f   :  { %14254 = vmatpush1.bf16.msra.mxu1 %v18715_v61  ;;  %14214 = vmatprep.subr.bf16.mxu0 %v18720_v3  ;;  %v18767_v3 = vld [vmem:[#allocation4 + $0x8d4] ss:$28 sps:$4 sm:$0xff]  }
0x13a0   :  { %14255 = vmatprep.subr.bf16.mxu1 %v18723_v4  ;;  %v18768_v4 = vld [vmem:[#allocation4 + $0x1d8] ss:$28 sps:$4 sm:$0xff]  }
0x13a2   :  { %14215 = vmatpush1.bf16.msra.mxu0 %v18718_v11 }
0x13a3   :  { %14256 = vmatpush1.bf16.msra.mxu1 %v18721_v41  ;;  %14216 = vmatprep.subr.bf16.mxu0 %v18726_v6  ;;  %v18765_v41 = vld [vmem:[#allocation4 + $0x8d0] ss:$28 sps:$4 sm:$0xff]   ;;  %v18769_v6 = vld [vmem:[#allocation4 + $0x18] ss:$28 sps:$4 sm:$0xff]  }
0x13a4   :  { %14257 = vmatprep.subr.bf16.mxu1 %v18729_v32  ;;  %v18770_v32 = vld [vmem:[#allocation4 + $0x6e0] ss:$28 sps:$4 sm:$0xff]  }
0x13a6   :  { %14217 = vmatpush1.bf16.msra.mxu0 %v18724_v57  ;;  %v18773_v57 = vld [vmem:[#allocation4 + $0x8a0] ss:$28 sps:$4 sm:$0xff]  }
0x13a7   :  { %14258 = vmatpush1.bf16.msra.mxu1 %v18727_v24  ;;  %14218 = vmatprep.subr.bf16.mxu0 %v18732_v56  ;;  %v18774_v24 = vld [vmem:[#allocation4 + $0x6a8] ss:$28 sps:$4 sm:$0xff]  }
0x13a8   :  { %16502 = vmatprep.subr.bf16.mxu1 %v18733_v50  ;;  %v18776_v56 = vld [vmem:[#allocation4 + $0xa28] ss:$28 sps:$4 sm:$0xff]  }
0x13a9   :  { %v13908_v12 = vpop.f32.mrf.mxu0 }
0x13aa   :  { %14276 = vmatmul.mubr.bf16.vlgmr.msra.gmra.mxu1 %v20524_v14  ;;  %v13909_v33 = vadd.f32 %v13908_v12, %v13868_v5  ;;  %14219 = vmatpush2.bf16.msra.mxu0 %v18730_v16  ;;  %v18778_v16 = vld [vmem:[#allocation4 + $0x670] ss:$28 sps:$4 sm:$0xff]  }
0x13ab   :  { %16503 = vmatpush3.bf16.msra.mxu1 %v18734_v17  ;;  %v13910_v20 = vpop.f32.mrf.mxu0  ;;  %14220 = vmatprep.subr.bf16.mxu0 %v18737_v21  ;;  %v18780_v17 = vld [vmem:[#allocation4 + $0x9f0] ss:$28 sps:$4 sm:$0xff]  }
0x13ac   :  { %16504 = vmatprep.subr.bf16.mxu1 %v18738_v30  ;;  %v13950_v1 = vadd.f32 %v20553_v26, %v13909_v33  ;;  %v13911_v0 = vadd.f32 %v13910_v20, %v13870_v29  ;;  %14316 = vmatprep.mubr.bf16.mxu1 %v20496_v9  ;;  %v18745_v26 = vld [vmem:[#allocation4 + $0x9b0] ss:$28 sps:$4 sm:$0xff]   ;;  %v18749_v9 = vld [vmem:[#allocation4 + $0xf8] ss:$28 sps:$4 sm:$0xff]  }
0x13ad   :  { %v13912_v48 = vpop.f32.mrf.mxu0  ;;  %v18781_v12 = vld [vmem:[#allocation4 + $0x830] ss:$28 sps:$4 sm:$0xff]   ;;  %v18782_v33 = vld [vmem:[#allocation4 + $0x638] ss:$28 sps:$4 sm:$0xff]  }
0x13ae   :  { %v16074_v25 = vmul.f32 -1.442695, %v13950_v1  ;;  %v13952_v23 = vadd.f32 %v20555_v13, %v13911_v0  ;;  %14221 = vmatpush2.bf16.msra.mxu0 %v18735_v27  ;;  %v18753_v13 = vld [vmem:[#allocation4 + $0x280] ss:$28 sps:$4 sm:$0xff]   ;;  %v18784_v27 = vld [vmem:[#allocation4 + $0x9b8] ss:$28 sps:$4 sm:$0xff]  }
0x13af   :  { %16505 = vmatpush3.bf16.msra.mxu1 %v18739_v60  ;;  %v13913_v58 = vpop.f32.mrf.mxu0  ;;  %14222 = vmatprep.subr.bf16.mxu0 %v18742_v63  ;;  %v18783_v20 = vld [vmem:[#allocation4 + $0x478] ss:$28 sps:$4 sm:$0xff]   ;;  %v18788_v63 = vld [vmem:[#allocation4 + $0x980] ss:$28 sps:$4 sm:$0xff]   ;;  %v18790_v0 = vld [vmem:[#allocation4 + $0x5c8] ss:$28 sps:$4 sm:$0xff]  }
0x13b0   :  { %16506 = vmatprep.subr.bf16.mxu1 %v18743_v22  ;;  %18810 = vpow2.f32 %v16074_v25  ;;  %v16075_v42 = vmul.f32 -1.442695, %v13952_v23  ;;  %v18787_v22 = vld [vmem:[#allocation4 + $0x440] ss:$28 sps:$4 sm:$0xff]   ;;  %v18792_v48 = vld [vmem:[#allocation4 + $0x948] ss:$28 sps:$4 sm:$0xff]  }
0x13b1   :  { %v18789_v1 = vld [vmem:[#allocation4 + $0x7c0] ss:$28 sps:$4 sm:$0xff]   ;;  %v18791_v25 = vld [vmem:[#allocation4 + $0x408] ss:$28 sps:$4 sm:$0xff]   ;;  %v18795_v58 = vld [vmem:[#allocation4 + $0x3d0] ss:$28 sps:$4 sm:$0xff]  }
0x13b2   :  { %18812 = vpow2.f32 %v16075_v42  ;;  %14223 = vmatpush2.bf16.msra.mxu0 %v18740_v15  ;;  %v18793_v23 = vld [vmem:[#allocation4 + $0x788] ss:$28 sps:$4 sm:$0xff]   ;;  %v18794_v15 = vld [vmem:[#allocation4 + $0x590] ss:$28 sps:$4 sm:$0xff]   ;;  %v18800_v42 = vld [vmem:[#allocation4 + $0x8d8] ss:$28 sps:$4 sm:$0xff]  }
0x13b3   :  { %16507 = vmatpush3.bf16.msra.mxu1 %v18744_v2  ;;  %14224 = vmatprep.subr.bf16.mxu0 %v18747_v10  ;;  %v18796_v2 = vld [vmem:[#allocation4 + $0x910] ss:$28 sps:$4 sm:$0xff]  }
0x13b4   :  { %16508 = vmatprep.subr.bf16.mxu1 %v18748_v37  ;;  %v18797_v10 = vld [vmem:[#allocation4 + $0x750] ss:$28 sps:$4 sm:$0xff]   ;;  %v18798_v37 = vld [vmem:[#allocation4 + $0x558] ss:$28 sps:$4 sm:$0xff]  }
0x13b6   :  { %14225 = vmatpush2.bf16.msra.mxu0 %v18745_v26  ;;  %v18799_v26 = vld [vmem:[#allocation4 + $0x398] ss:$28 sps:$4 sm:$0xff]  }
0x13b7   :  { %16509 = vmatpush3.bf16.msra.mxu1 %v18749_v9  ;;  %14226 = vmatprep.subr.bf16.mxu0 %v18752_v52  ;;  %v18801_v9 = vld [vmem:[#allocation4 + $0x718] ss:$28 sps:$4 sm:$0xff]   ;;  %v18802_v52 = vld [vmem:[#allocation4 + $0xc20] ss:$28 sps:$4 sm:$0xff]  }
0x13b8   :  { %16510 = vmatprep.subr.bf16.mxu1 %v18753_v13 }
0x13ba   :  { %14227 = vmatpush2.bf16.msra.mxu0 %v18750_v38  ;;  %v18803_v38 = vld [vmem:[#allocation4 + $0xbe8] ss:$28 sps:$4 sm:$0xff]  }
0x13bb   :  { %16511 = vmatpush3.bf16.msra.mxu1 %v18754_v43  ;;  %14228 = vmatprep.subr.bf16.mxu0 %v18757_v44 }
0x13bc   :  { %16512 = vmatprep.subr.bf16.mxu1 %v18758_v45  ;;  %v18804_v45 = vld [vmem:[#allocation4 + $0xbb0] ss:$28 sps:$4 sm:$0xff]  }
0x13bd   :  { %v18811_v7 = vpop.eup %18810 }
0x13be   :  { %v14465_v53 = vadd.f32 1.0, %v18811_v7  ;;  %14229 = vmatpush2.bf16.msra.mxu0 %v18755_v39  ;;  %v11755_v7 = vsub.s32 3, %v19727_v31 }
0x13bf   :  { %16513 = vmatpush3.bf16.msra.mxu1 %v18759_v46  ;;  %v18813_v61 = vpop.eup %18812  ;;  %14230 = vmatprep.subr.bf16.mxu0 %v18762_v18  ;;  %v18805_v46 = vld [vmem:[#allocation4 + $0xb78] ss:$28 sps:$4 sm:$0xff]   ;;  %v11751_v18 = vsub.s32 2, %v19727_v31 }
0x13c0   :  { %16514 = vmatprep.subr.bf16.mxu1 %v18763_v51  ;;  %18814 = vrcp.f32 %v14465_v53  ;;  %v14466_v11 = vadd.f32 1.0, %v18813_v61  ;;  %v18808_v51 = vld [vmem:[#allocation4 + $0xad0] ss:$28 sps:$4 sm:$0xff]  }
0x13c1   :  { %v11752_v53 = vrot.slane %v20559_v19, %v11751_v18 }
0x13c2   :  { %18816 = vrcp.f32 %v14466_v11  ;;  %14231 = vmatpush2.bf16.msra.mxu0 %v18760_v54  ;;  %v18809_v54 = vld [vmem:[#allocation4 + $0xa98] ss:$28 sps:$4 sm:$0xff]  }
0x13c3   :  { %16515 = vmatpush3.bf16.msra.mxu1 %v18764_v59  ;;  %14232 = vmatprep.subr.bf16.mxu0 %v18767_v3  ;;  %v11756_v59 = vrot.slane %v20559_v19, %v11755_v7 }
0x13c4   :  { %16516 = vmatprep.subr.bf16.mxu1 %v18768_v4 }
0x13c6   :  { %14233 = vmatpush2.bf16.msra.mxu0 %v18765_v41 }
0x13c7   :  { %16517 = vmatpush3.bf16.msra.mxu1 %v18769_v6  ;;  %16524 = vmatprep.subr.bf16.mxu0 %v18770_v32 }
0x13c8   :  { %16546 = vmatprep.subr.bf16.mxu1 %v18772_v47 }
0x13c9   :  { %14235 = vmatmul.mubr.bf16.vlgmr.msra.gmra.mxu0 %v20531_v55 }
0x13ca   :  { %14317 = vmatmul.mubr.bf16.vlgmr.msra.gmra.mxu1 %v20505_v34  ;;  %v20575_v50 = vpop.f32.mrf.mxu1  ;;  %16525 = vmatpush3.bf16.msra.mxu0 %v18771_v49  ;;  %v18779_v34 = vld [vmem:[#allocation4 + $0x4b0] ss:$28 sps:$4 sm:$0xff]  }
0x13cb   :  { %16547 = vmatpush3.bf16.msra.mxu1 %v18773_v57  ;;  %16526 = vmatprep.subr.bf16.mxu0 %v18774_v24  ;;  %v13991_v61 = vadd.f32 %v20575_v50, %v11752_v53 }
0x13cc   :  { %16548 = vmatprep.subr.bf16.mxu1 %v18776_v56  ;;  %v20577_v21 = vpop.f32.mrf.mxu1  ;;  %14356 = vmatprep.mubr.bf16.mxu0 %v20498_v36  ;;  %v18785_v36 = vld [vmem:[#allocation4 + $0x7f8] ss:$28 sps:$4 sm:$0xff]  }
0x13cd   :  { %14396 = vmatprep.mubr.bf16.mxu1 %v20515_v35  ;;  %v18815_v30 = vpop.eup %18814  ;;  %v18786_v35 = vld [vmem:[#allocation4 + $0x600] ss:$28 sps:$4 sm:$0xff]   ;;  %v13993_v3 = vadd.f32 %v20577_v21, %v11756_v59 }
0x13ce   :  { %v13994_v5 = vpop.f32.mrf.mxu1  ;;  %14486 = vst [vmem:[#allocation27] sm:$0xff] %v18815_v30  ;;  %16527 = vmatpush3.bf16.msra.mxu0 %v18775_v62 }
0x13cf   :  { %16549 = vmatpush3.bf16.msra.mxu1 %v18777_v40  ;;  %v18817_v29 = vpop.eup %18816  ;;  %16528 = vmatprep.subr.bf16.mxu0 %v18778_v16 }
0x13d0   :  { %16550 = vmatprep.subr.bf16.mxu1 %v18780_v17  ;;  %v13995_v60 = vpop.f32.mrf.mxu1  ;;  %14487 = vst [vmem:[#allocation27 + $0x8] sm:$0xff] %v18817_v29 }
0x13d2   :  { %16529 = vmatpush3.bf16.msra.mxu0 %v18779_v34 }
0x13d3   :  { %16551 = vmatpush3.bf16.msra.mxu1 %v18781_v12  ;;  %16530 = vmatprep.subr.bf16.mxu0 %v18782_v33 }
0x13d4   :  { %16552 = vmatprep.subr.bf16.mxu1 %v18784_v27 }
0x13d6   :  { %16531 = vmatpush3.bf16.msra.mxu0 %v18783_v20 }
0x13d7   :  { %16553 = vmatpush3.bf16.msra.mxu1 %v18785_v36  ;;  %16532 = vmatprep.subr.bf16.mxu0 %v18786_v35 }
0x13d8   :  { %16554 = vmatprep.subr.bf16.mxu1 %v18788_v63 }
0x13da   :  { %16533 = vmatpush3.bf16.msra.mxu0 %v18787_v22 }
0x13db   :  { %16555 = vmatpush3.bf16.msra.mxu1 %v18789_v1  ;;  %16534 = vmatprep.subr.bf16.mxu0 %v18790_v0 }
0x13dc   :  { %16556 = vmatprep.subr.bf16.mxu1 %v18792_v48 }
0x13de   :  { %16535 = vmatpush3.bf16.msra.mxu0 %v18791_v25 }
0x13df   :  { %16557 = vmatpush3.bf16.msra.mxu1 %v18793_v23  ;;  %16536 = vmatprep.subr.bf16.mxu0 %v18794_v15 }
0x13e0   :  { %16558 = vmatprep.subr.bf16.mxu1 %v18796_v2 }
0x13e2   :  { %16537 = vmatpush3.bf16.msra.mxu0 %v18795_v58 }
0x13e3   :  { %16559 = vmatpush3.bf16.msra.mxu1 %v18797_v10  ;;  %16538 = vmatprep.subr.bf16.mxu0 %v18798_v37 }
0x13e4   :  { %16560 = vmatprep.subr.bf16.mxu1 %v18800_v42 }
0x13e6   :  { %16539 = vmatpush3.bf16.msra.mxu0 %v18799_v26 }
0x13e7   :  { %16561 = vmatpush3.bf16.msra.mxu1 %v18801_v9  ;;  %16678 = vmatprep.subr.bf16.mxu0 %v19244_v28 }
0x13e9   :  { %v14031_v13 = vpop.f32.mrf.mxu0  ;;  %14357 = vmatmul.mubr.bf16.vlgmr.msra.gmra.mxu0 %v20510_v8  ;;  %v18806_v8 = vld [vmem:[#allocation4 + $0xb40] ss:$28 sps:$4 sm:$0xff]  }
0x13ea   :  { %14397 = vmatmul.mubr.bf16.vlgmr.msra.gmra.mxu1 %v20531_v55  ;;  %16679 = vmatpush3.bf16.msra.mxu0 %v18802_v52  ;;  %v18807_v55 = vld [vmem:[#allocation4 + $0xb08] ss:$28 sps:$4 sm:$0xff]   ;;  %v14032_v4 = vadd.f32 %v14031_v13, %v13991_v61 }
0x13eb   :  { %16694 = vmatprep.mubr.msk.bf16.mxu0 %vm19245_vm1, %v19244_v28  ;;  %v14033_v43 = vpop.f32.mrf.mxu0  ;;  %16680 = vmatprep.subr.bf16.mxu0 %v19244_v28 }
0x13ec   :  { %v14034_v6 = vadd.f32 %v14033_v43, %v13993_v3 }
0x13ed   :  { %v14035_v44 = vpop.f32.mrf.mxu0 }
0x13ee   :  { %16681 = vmatpush3.bf16.msra.mxu0 %v18803_v38 }
0x13ef   :  { %v14036_v39 = vpop.f32.mrf.mxu0  ;;  %16682 = vmatprep.subr.bf16.mxu0 %v19244_v28 }
0x13f2   :  { %16683 = vmatpush3.bf16.msra.mxu0 %v18804_v45 }
0x13f3   :  { %16684 = vmatprep.subr.bf16.mxu0 %v19244_v28 }
0x13f6   :  { %16685 = vmatpush3.bf16.msra.mxu0 %v18805_v46 }
0x13f7   :  { %16686 = vmatprep.subr.bf16.mxu0 %v19244_v28 }
0x13fa   :  { %16687 = vmatpush3.bf16.msra.mxu0 %v18806_v8 }
0x13fb   :  { %16688 = vmatprep.subr.bf16.mxu0 %v19244_v28 }
0x13fe   :  { %16689 = vmatpush3.bf16.msra.mxu0 %v18807_v55 }
0x13ff   :  { %16690 = vmatprep.subr.bf16.mxu0 %v19244_v28 }
0x1402   :  { %16691 = vmatpush3.bf16.msra.mxu0 %v18808_v51 }
0x1403   :  { %16692 = vmatprep.subr.bf16.mxu0 %v19244_v28 }
0x1406   :  { %16693 = vmatpush3.bf16.msra.mxu0 %v18809_v54 }
0x1409   :  { %v14113_v41 = vpop.f32.mrf.mxu0  ;;  %16695 = vmatmul.mubr.bf16.vlgmr.msra.gmra.mxu0 %v20524_v14 }
0x140a   :  { %v14072_v11 = vpop.f32.mrf.mxu1 }
0x140b   :  { %v14073_v32 = vadd.f32 %v14072_v11, %v14032_v4  ;;  %v14115_v49 = vpop.f32.mrf.mxu0 }
0x140c   :  { %v14074_v47 = vpop.f32.mrf.mxu1 }
0x140d   :  { %v14114_v57 = vadd.f32 %v14113_v41, %v14073_v32  ;;  %v14075_v24 = vadd.f32 %v14074_v47, %v14034_v6  ;;  %v14117_v56 = vpop.f32.mrf.mxu0 }
0x140e   :  { %v14076_v28 = vpop.f32.mrf.mxu1 }
0x140f   :  { %v16076_v62 = vmul.f32 -1.442695, %v14114_v57  ;;  %v14116_v40 = vadd.f32 %v14115_v49, %v14075_v24  ;;  %v14118_v16 = vpop.f32.mrf.mxu0 }
0x1410   :  { %v14077_v50 = vpop.f32.mrf.mxu1 }
0x1411   :  { %18818 = vpow2.f32 %v16076_v62  ;;  %v16077_v17 = vmul.f32 -1.442695, %v14116_v40 }
0x1413   :  { %18820 = vpow2.f32 %v16077_v17 }
0x141e   :  { %v18819_v21 = vpop.eup %18818 }
0x141f   :  { %v14467_v30 = vadd.f32 1.0, %v18819_v21 }
0x1420   :  { %v18821_v5 = vpop.eup %18820 }
0x1421   :  { %18822 = vrcp.f32 %v14467_v30  ;;  %v14468_v14 = vadd.f32 1.0, %v18821_v5 }
0x1423   :  { %18824 = vrcp.f32 %v14468_v14 }
0x142e   :  { %v18823_v34 = vpop.eup %18822 }
0x142f   :  { %14488 = vst [vmem:[#allocation27 + $0x10] sm:$0xff] %v18823_v34 }
0x1430   :  { %v18825_v12 = vpop.eup %18824 }
0x1431   :  { %14489 = vst [vmem:[#allocation27 + $0x18] sm:$0xff] %v18825_v12 }
0x1449   :  { %v14154_v29 = vpop.f32.mrf.mxu0 }
0x144a   :  { %v14195_v33 = vpop.f32.mrf.mxu1 }
0x144b   :  { %v14156_v27 = vpop.f32.mrf.mxu0 }
0x144c   :  { %v14197_v60 = vpop.f32.mrf.mxu1 }
0x144d   :  { %v14158_v20 = vpop.f32.mrf.mxu0 }
0x144e   :  { %v14199_v36 = vpop.f32.mrf.mxu1 }
0x144f   :  { %v14159_v35 = vpop.f32.mrf.mxu0 }
0x1450   :  { %v14200_v63 = vpop.f32.mrf.mxu1 }
0x146a   :  { %v14277_v22 = vpop.f32.mrf.mxu1 }
0x146c   :  { %v14279_v1 = vpop.f32.mrf.mxu1 }
0x146e   :  { %v14281_v0 = vpop.f32.mrf.mxu1 }
0x146f   :  { %19169 = shalt.err (!%p19166_p0)
}
0x1470   :  { %14512 = dma.vmem_to_hbm [thread:$0]  %s14510_s6, 256, %s20634_s22, [#allocation29]   ;;  %v14282_v48 = vpop.f32.mrf.mxu1  ;;  %v11759_v25 = vsub.s32 4, %v19727_v31  ;;  %v11763_v23 = vsub.s32 5, %v19727_v31  ;;  %v11767_v24 = vsub.s32 6, %v19727_v31 }
0x1471   :  { %s19250_s22 = smov [#allocation27]  }
0x1472   :  { %v11760_v15 = vrot.slane %v20559_v19, %v11759_v25  ;;  %v11764_v2 = vrot.slane %v20559_v19, %v11763_v23  ;;  %v11768_v56 = vrot.slane %v20559_v19, %v11767_v24  ;;  %s14499_s14 = sshll.u32 %s19250_s22, 4  ;;  %s14500_s14 = int_to_ptr.vmem [resolvable:$true] %s14499_s14 }
0x1473   :  { %s19178_s27 = scalar_lea.vmem %s14500_s14, 896  ;;  %p19183_p2 = scmp.lt.s32.totalorder %s14500_s14, %s14500_s14 }
0x1474   :  { %v14155_v58 = vadd.f32 %v14154_v29, %v11760_v15  ;;  %v14157_v10 = vadd.f32 %v14156_v27, %v11764_v2  ;;  %p19179_p1 = scmp.ne.s32.totalorder %s14500_s14, %s19178_s27  ;;  %p19184_p3 = scmp.lt.s32.totalorder %s19178_s27, %s19178_s27 }
0x1476   :  { %v14196_v37 = vadd.f32 %v14195_v33, %v14155_v58  ;;  %v14198_v9 = vadd.f32 %v14197_v60, %v14157_v10  ;;  %p19185_p4 = por %p19184_p3, %p19183_p2 }
0x1478   :  { %p19186_p5 = pnand %p19185_p4, %p19179_p1 }
0x1489   :  { %v14236_v42 = vpop.f32.mrf.mxu0 }
0x148a   :  { %v16518_v26 = vpop.f32.mrf.mxu1  ;;  %v14237_v52 = vadd.f32 %v14236_v42, %v14196_v37 }
0x148b   :  { %v14238_v13 = vpop.f32.mrf.mxu0 }
0x148c   :  { %v16519_v38 = vpop.f32.mrf.mxu1  ;;  %v14278_v43 = vadd.f32 %v14277_v22, %v14237_v52  ;;  %v14239_v44 = vadd.f32 %v14238_v13, %v14198_v9 }
0x148d   :  { %v14240_v45 = vpop.f32.mrf.mxu0  ;;  %v16520_v28 = vadd.f32 %v16519_v38, %v16518_v26 }
0x148e   :  { %v16521_v39 = vpop.f32.mrf.mxu1  ;;  %v16078_v46 = vmul.f32 -1.442695, %v14278_v43  ;;  %v14280_v8 = vadd.f32 %v14279_v1, %v14239_v44 }
0x148f   :  { %v14241_v55 = vpop.f32.mrf.mxu0  ;;  %v14319_v40 = vadd.f32 %v16520_v28, %v11768_v56 }
0x1490   :  { %v16522_v18 = vpop.f32.mrf.mxu1  ;;  %18826 = vpow2.f32 %v16078_v46  ;;  %v16079_v51 = vmul.f32 -1.442695, %v14280_v8 }
0x1492   :  { %18828 = vpow2.f32 %v16079_v51 }
0x149d   :  { %v18827_v7 = vpop.eup %18826 }
0x149e   :  { %v14469_v53 = vadd.f32 1.0, %v18827_v7 }
0x149f   :  { %v18829_v54 = vpop.eup %18828 }
0x14a0   :  { %18830 = vrcp.f32 %v14469_v53  ;;  %v14470_v59 = vadd.f32 1.0, %v18829_v54 }
0x14a2   :  { %18832 = vrcp.f32 %v14470_v59 }
0x14a9   :  { %v16540_v61 = vpop.f32.mrf.mxu0 }
0x14aa   :  { %v16562_v3 = vpop.f32.mrf.mxu1 }
0x14ab   :  { %v16541_v4 = vpop.f32.mrf.mxu0 }
0x14ac   :  { %v16563_v11 = vpop.f32.mrf.mxu1  ;;  %v16542_v62 = vadd.f32 %v16541_v4, %v16540_v61 }
0x14ad   :  { %v18831_v41 = vpop.eup %18830  ;;  %v16543_v6 = vpop.f32.mrf.mxu0  ;;  %v16564_v50 = vadd.f32 %v16563_v11, %v16562_v3 }
0x14ae   :  { %v16565_v32 = vpop.f32.mrf.mxu1  ;;  %14490 = vst [vmem:[#allocation27 + $0x20] sm:$0xff] %v18831_v41  ;;  %v14359_v16 = vadd.f32 %v16542_v62, %v14319_v40 }
0x14af   :  { %v18833_v47 = vpop.eup %18832  ;;  %v16544_v49 = vpop.f32.mrf.mxu0 }
0x14b0   :  { %v16566_v57 = vpop.f32.mrf.mxu1  ;;  %14491 = vst [vmem:[#allocation27 + $0x28] sm:$0xff] %v18833_v47  ;;  %v14399_v17 = vadd.f32 %v16564_v50, %v14359_v16 }
0x14c9   :  { %v14438_v21 = vpop.f32.mrf.mxu0 }
0x14ca   :  { %v14439_v30 = vadd.f32 %v14438_v21, %v14399_v17 }
0x14cb   :  { %v16696_v5 = vpop.f32.mrf.mxu0 }
0x14cc   :  { %v16080_v14 = vmul.f32 -1.442695, %v14439_v30 }
0x14cd   :  { %v14441_v34 = vpop.f32.mrf.mxu0 }
0x14ce   :  { %18834 = vpow2.f32 %v16080_v14 }
0x14cf   :  { %v16697_v12 = vpop.f32.mrf.mxu0 }
0x14db   :  { %v18835_v29 = vpop.eup %18834 }
0x14dc   :  { %v14471_v33 = vadd.f32 1.0, %v18835_v29 }
0x14de   :  { %18836 = vrcp.f32 %v14471_v33 }
0x14eb   :  { %v18837_v31 = vpop.eup %18836 }
0x14ec   :  { %14492 = vst [vmem:[#allocation27 + $0x30] sm:$0xff] %v18837_v31 }
0x14ed   :  { %19189 = shalt.err (!%p19186_p5)
}
0x14ee   :  { %s20651_s28 = sld [smem:[#allocation57_spill]] }
0x14f4   :  { %14502 = dma.vmem_to_hbm [thread:$0]  %s14500_s14, 896, %s20651_s28, [#allocation8]  }
0x14f5   :  { %19218 = dma.done.wait [#allocation8], 896  }
0x14f6   :  { %19219 = vsyncadd [#allocation8], 4294966400 }
0x14f7   :  { %19220 = dma.done.wait [#allocation29], 256  }
0x14f8   :  { %19221 = vsyncadd [#allocation29], 4294967040 }
0x14f9   :  { %14519 = vsyncpa [#allocation7], 1 }
0x14fa   :  { %14520 = vsyncpa [#allocation10], 1 }
0x14fb   :  { %14521 = vsyncpa [#allocation13], 1 }
0x14fc   :  { %14522 = vsyncpa [#allocation16], 1 }
0x14fd   :  { %14523 = vsyncpa [#allocation19], 1 }
0x14fe   :  { %14524 = vsyncpa [#allocation22], 1 }
0x14ff   :  { %14525 = vsyncpa [#allocation25], 1 }
0x1500   :  { %14526 = vsyncpa [#allocation8], 1 }
0x1501   :  { %14527 = vsyncpa [#allocation29], 1 }
0x1502   :  { %14528 = vsyncmov [#allocation5] }
0x1505   :  { %s14529_s4 = vpop.sfrf %14528 }
0x1506   :  { %p16081_p6 = scmp.ne.s32.totalorder %s14529_s4, 0 }
0x1508   :  { %14533 = shalt.err (%p16081_p6)  }
0x1509   :  { %14535 = vsyncmov [#allocation5 + $0x1] }
0x150c   :  { %s14536_s10 = vpop.sfrf %14535 }
0x150d   :  { %p16082_p7 = scmp.ne.s32.totalorder %s14536_s10, 0 }
0x150f   :  { %14540 = shalt.err (%p16082_p7)  }
0x1510   :  { %14542 = vsyncmov [#allocation5 + $0x2] }
0x1513   :  { %s14543_s0 = vpop.sfrf %14542 }
0x1514   :  { %p16083_p8 = scmp.ne.s32.totalorder %s14543_s0, 0 }
0x1516   :  { %14547 = shalt.err (%p16083_p8)  }

</bundles_post_ra>
